<compile_context>
chip_gen: v5e
topology: v5e:2x2
jax: 0.10.0
libtpu: 0.0.40
codegen_flags: <defaults>
</compile_context>

<pallas_src>
import functools

import jax
import jax.numpy as jnp
from jax.experimental import pallas as pl
from jax.experimental.pallas import tpu as pltpu


def _round_up(x, m):
    return ((x + m - 1) // m) * m


def _pick_time_chunk(t, max_chunk):
    """Largest divisor of t that is <= max_chunk (amortizes per-grid-step overhead)."""
    for c in range(min(t, max_chunk), 0, -1):
        if t % c == 0:
            return c
    return 1


def _vmem_limit(block_bytes):
    """Scoped-VMEM budget from actual block residency (x2 for double buffering, plus
    headroom).  Capped well under v7x's 64 MiB physical VMEM."""
    total = int(sum(block_bytes) * 2 * 1.5) + (1 << 20)
    return int(min(max(total, 4 << 20), 48 << 20))


def _gru_chunk_kernel(n_layers, hp, tc,
                      gi0_ref, h0_ref, wih_ref, whh_ref, bi_ref, bhn_ref,
                      htop_ref, hout_ref):
    """One grid step = Tc timesteps.  hout_ref (constant block index) is the
    grid-resident recurrent-state carry; top-layer hidden states are streamed out per
    chunk for the (hoisted) decoder matmul."""
    c = pl.program_id(0)

    @pl.when(c == 0)
    def _():
        hout_ref[...] = h0_ref[...]

    w_dtype = whh_ref.dtype

    def step(t, hs):
        # The L recurrent projections depend only on the previous step's hidden states
        # -> issue them back-to-back so the MXU pipelines them instead of stalling on
        # each layer's VPU/EUP result.
        ghs = [jnp.dot(hs[l].astype(w_dtype), whh_ref[l],
                       preferred_element_type=jnp.float32)
               for l in range(n_layers)]
        gi = gi0_ref[t]                  # layer-0 input projection, precomputed in wrapper
        new_hs = []
        for l in range(n_layers):
            gh = ghs[l]
            # PyTorch gate order [r, z, n]; each gate is one 128-lane-aligned slice.
            r = jax.nn.sigmoid(gi[:, 0 * hp:1 * hp] + gh[:, 0 * hp:1 * hp])
            z = jax.nn.sigmoid(gi[:, 1 * hp:2 * hp] + gh[:, 1 * hp:2 * hp])
            n = jnp.tanh(gi[:, 2 * hp:3 * hp] + r * (gh[:, 2 * hp:3 * hp] + bhn_ref[l]))
            h_new = (1.0 - z) * n + z * hs[l]        # GRU update (PyTorch convention)
            new_hs.append(h_new)
            if l + 1 < n_layers:                     # input projection for next layer
                gi = (jnp.dot(h_new.astype(w_dtype), wih_ref[l],
                              preferred_element_type=jnp.float32) + bi_ref[l + 1])
        htop_ref[t] = new_hs[-1]                     # top-layer output for the decoder
        return tuple(new_hs)

    hs = tuple(hout_ref[l] for l in range(n_layers))
    if tc <= 8:
        for t in range(tc):                          # fully unrolled -> LLO visibility
            hs = step(t, hs)
    else:
        hs = jax.lax.fori_loop(0, tc, step, hs)
    for l in range(n_layers):
        hout_ref[l] = hs[l]


def _decoder_kernel(h_ref, w_ref, b_ref, o_ref):
    """logits = h_top @ W_dec + b_dec over all T*B rows at once (off the serial path)."""
    o_ref[...] = (jnp.dot(h_ref[...].astype(w_ref.dtype), w_ref[...],
                          preferred_element_type=jnp.float32) + b_ref[...])


def _pack_params(wih, whh, bih, bhh, wdec, bdec, hp, op, param_dtype):
    """Pre-transpose + fuse gate weights (gate g at cols [g*hp, g*hp+H)), pre-sum r/z
    biases, pad to (8,128) tiles, cast the big matmul operands to param_dtype."""
    L, _, H, _ = wih.shape
    O = wdec.shape[0]

    wih_all = jnp.zeros((L, hp, 3 * hp), param_dtype)
    whh_all = jnp.zeros((L, hp, 3 * hp), param_dtype)
    for g in range(3):
        wih_all = wih_all.at[:, :H, g * hp:g * hp + H].set(
            jnp.transpose(wih[:, g], (0, 2, 1)).astype(param_dtype))
        whh_all = whh_all.at[:, :H, g * hp:g * hp + H].set(
            jnp.transpose(whh[:, g], (0, 2, 1)).astype(param_dtype))

    bi_all = jnp.zeros((L, 1, 3 * hp), jnp.float32)
    bi_all = bi_all.at[:, :, 0 * hp:0 * hp + H].set((bih[:, 0] + bhh[:, 0]).astype(jnp.float32))
    bi_all = bi_all.at[:, :, 1 * hp:1 * hp + H].set((bih[:, 1] + bhh[:, 1]).astype(jnp.float32))
    bi_all = bi_all.at[:, :, 2 * hp:2 * hp + H].set(bih[:, 2].astype(jnp.float32))
    bhn = jnp.zeros((L, 1, hp), jnp.float32).at[:, :, :H].set(bhh[:, 2].astype(jnp.float32))

    wdec_p = jnp.zeros((hp, op), param_dtype).at[:H, :O].set(wdec.T.astype(param_dtype))
    bdec_p = jnp.zeros((1, op), jnp.float32).at[:, :O].set(bdec.astype(jnp.float32))
    return wih_all, whh_all, bi_all, bhn, wdec_p, bdec_p


def char_rnn_sequence(input_ids_seq, hidden, emb, wih, whh, bih, bhh, wdec, bdec,
                      *, param_dtype=jnp.bfloat16, max_time_chunk=32):
    """Run T recurrent steps; each step == CharRNN.forward (model='gru', seq_len=1).
    input_ids_seq: (T, B) int32; hidden: (L, B, H).
    Returns (logits (T, B, O), new_hidden (L, B, H))."""
    T, B = input_ids_seq.shape
    L, _, H = hidden.shape
    O = wdec.shape[0]
    hp = _round_up(H, 128)
    op = _round_up(O, 128)
    bp = _round_up(max(B, 8), 8)
    tc = _pick_time_chunk(T, max_time_chunk)
    nchunks = T // tc
    dsz = jnp.dtype(param_dtype).itemsize
    lm1 = max(L - 1, 1)

    wih_all, whh_all, bi_all, bhn, wdec_p, bdec_p = _pack_params(
        wih, whh, bih, bhh, wdec, bdec, hp, op, param_dtype)
    wih_rest = wih_all[1:] if L > 1 else jnp.zeros((1, hp, 3 * hp), param_dtype)

    # Embedding gather + layer-0 input projection hoisted out of the serial recurrence:
    # one throughput-friendly (T*B, H) x (H, 3H) GEMM instead of T tiny matmuls.
    # Padded lanes/rows carry exact zeros through every step (zero weights/biases/h0).
    x = jnp.take(emb.astype(jnp.float32), input_ids_seq, axis=0)          # (T, B, H)
    x = jnp.pad(x, ((0, 0), (0, bp - B), (0, hp - H)))
    gi0 = (jnp.dot(x.reshape(T * bp, hp).astype(param_dtype), wih_all[0],
                   preferred_element_type=jnp.float32)
           + bi_all[0]).reshape(T, bp, 3 * hp)
    h0 = jnp.pad(hidden.astype(jnp.float32), ((0, 0), (0, bp - B), (0, hp - H)))

    gru_vmem = _vmem_limit([
        tc * bp * 3 * hp * 4,        # gi0 chunk (streamed)
        tc * bp * hp * 4,            # h_top chunk (streamed)
        2 * L * bp * hp * 4,         # h0 + resident hidden carry
        lm1 * hp * 3 * hp * dsz,     # fused W_ih, layers 1..L-1 (resident)
        L * hp * 3 * hp * dsz,       # fused W_hh (resident)
        L * 4 * hp * 4,              # biases
    ])

    kernel = functools.partial(_gru_chunk_kernel, L, hp, tc)
    htop_p, h_new_p = pl.pallas_call(
        kernel,
        out_shape=(jax.ShapeDtypeStruct((T, bp, hp), jnp.float32),
                   jax.ShapeDtypeStruct((L, bp, hp), jnp.float32)),
        grid=(nchunks,),
        in_specs=[
            pl.BlockSpec((tc, bp, 3 * hp), lambda c: (c, 0, 0)),    # gi0 chunk (streamed)
            pl.BlockSpec((L, bp, hp), lambda c: (0, 0, 0)),         # h0 (fetched once)
            pl.BlockSpec((lm1, hp, 3 * hp), lambda c: (0, 0, 0)),   # W_ih layers>=1 (resident)
            pl.BlockSpec((L, hp, 3 * hp), lambda c: (0, 0, 0)),     # W_hh (resident)
            pl.BlockSpec((L, 1, 3 * hp), lambda c: (0, 0, 0)),      # b_ih (+b_hh for r,z)
            pl.BlockSpec((L, 1, hp), lambda c: (0, 0, 0)),          # b_hn
        ],
        out_specs=(
            pl.BlockSpec((tc, bp, hp), lambda c: (c, 0, 0)),        # top-layer h per step
            pl.BlockSpec((L, bp, hp), lambda c: (0, 0, 0)),         # final hidden (carry)
        ),
        compiler_params=pltpu.CompilerParams(
            dimension_semantics=("arbitrary",),     # time recurrence is inherently serial
            vmem_limit_bytes=gru_vmem,
        ),
    )(gi0, h0, wih_rest, whh_all, bi_all, bhn)

    # Decoder hoisted off the recurrence: one (T*bp, hp) x (hp, op) batched matmul.
    M = T * bp
    tm = min(M, 512)
    dec_vmem = _vmem_limit([tm * hp * 4, hp * op * dsz, op * 4, tm * op * 4])
    logits_flat = pl.pallas_call(
        _decoder_kernel,
        out_shape=jax.ShapeDtypeStruct((M, op), jnp.float32),
        grid=(pl.cdiv(M, tm),),
        in_specs=[
            pl.BlockSpec((tm, hp), lambda i: (i, 0)),
            pl.BlockSpec((hp, op), lambda i: (0, 0)),
            pl.BlockSpec((1, op), lambda i: (0, 0)),
        ],
        out_specs=pl.BlockSpec((tm, op), lambda i: (i, 0)),
        compiler_params=pltpu.CompilerParams(
            dimension_semantics=("parallel",),
            vmem_limit_bytes=dec_vmem,
        ),
    )(htop_p.reshape(M, hp), wdec_p, bdec_p)

    logits_p = logits_flat.reshape(T, bp, op)
    return logits_p[:, :B, :O], h_new_p[:, :B, :H]


def char_rnn_step(input_ids, hidden, emb, wih, whh, bih, bhh, wdec, bdec, **kw):
    """Exactly CharRNN.forward: input_ids (B,), hidden (L,B,H) -> (logits (B,O), hidden)."""
    logits_seq, h_new = char_rnn_sequence(input_ids[None, :], hidden,
                                          emb, wih, whh, bih, bhh, wdec, bdec, **kw)
    return logits_seq[0], h_new


def _ref_sequence(input_ids_seq, hidden, emb, wih, whh, bih, bhh, wdec, bdec):
    """Pure-JAX reference (mirrors torch.nn.GRU gate math), for correctness checking."""
    h = hidden.astype(jnp.float32)
    logits = []
    for t in range(input_ids_seq.shape[0]):
        x = emb[input_ids_seq[t]].astype(jnp.float32)
        new_h = []
        for l in range(h.shape[0]):
            hl = h[l]
            gi = [x @ wih[l, g].T + bih[l, g] for g in range(3)]
            gh = [hl @ whh[l, g].T + bhh[l, g] for g in range(3)]
            r = jax.nn.sigmoid(gi[0] + gh[0])
            z = jax.nn.sigmoid(gi[1] + gh[1])
            n = jnp.tanh(gi[2] + r * gh[2])
            hl_new = (1.0 - z) * n + z * hl
            new_h.append(hl_new)
            x = hl_new
        h = jnp.stack(new_h)
        logits.append(x @ wdec.T + bdec)
    return jnp.stack(logits), h


if __name__ == "__main__":
    key = jax.random.PRNGKey(0)
    vocab = 16          # input_size == output_size for a char model
    hidden_size = 32
    n_layers = 2
    batch = 2
    seq_len = 8

    ks = jax.random.split(key, 8)
    scale = 1.0 / float(hidden_size) ** 0.5

    emb = jax.random.normal(ks[0], (vocab, hidden_size), jnp.float32) * 0.1
    wih = jax.random.uniform(ks[1], (n_layers, 3, hidden_size, hidden_size),
                             jnp.float32, -scale, scale)
    whh = jax.random.uniform(ks[2], (n_layers, 3, hidden_size, hidden_size),
                             jnp.float32, -scale, scale)
    bih = jax.random.uniform(ks[3], (n_layers, 3, 1, hidden_size),
                             jnp.float32, -scale, scale)
    bhh = jax.random.uniform(ks[4], (n_layers, 3, 1, hidden_size),
                             jnp.float32, -scale, scale)
    wdec = jax.random.uniform(ks[5], (vocab, hidden_size), jnp.float32, -scale, scale)
    bdec = jax.random.uniform(ks[6], (1, vocab), jnp.float32, -scale, scale)

    ids_seq = jax.random.randint(ks[7], (seq_len, batch), 0, vocab, jnp.int32)
    h0 = jnp.zeros((n_layers, batch, hidden_size), jnp.float32)  # init_hidden (non-LSTM)

    ref_logits, ref_h = _ref_sequence(ids_seq, h0, emb, wih, whh, bih, bhh, wdec, bdec)

    # f32 weights: tight numerical check of the kernel math.
    logits_f32, h_f32 = char_rnn_sequence(ids_seq, h0, emb, wih, whh, bih, bhh, wdec, bdec,
                                          param_dtype=jnp.float32)
    jax.block_until_ready((logits_f32, h_f32))
    assert logits_f32.shape == (seq_len, batch, vocab)
    assert h_f32.shape == (n_layers, batch, hidden_size)
    assert jnp.allclose(logits_f32, ref_logits, atol=2e-3, rtol=2e-3)
    assert jnp.allclose(h_f32, ref_h, atol=2e-3, rtol=2e-3)

    # bf16 weights (default fast path): looser tolerance vs the f32 reference.
    logits_bf, h_bf = char_rnn_sequence(ids_seq, h0, emb, wih, whh, bih, bhh, wdec, bdec)
    jax.block_until_ready((logits_bf, h_bf))
    assert logits_bf.shape == (seq_len, batch, vocab)
    assert h_bf.shape == (n_layers, batch, hidden_size)
    assert jnp.allclose(logits_bf, ref_logits, atol=5e-2, rtol=5e-2)
    assert jnp.allclose(h_bf, ref_h, atol=5e-2, rtol=5e-2)

    # Single-step entry point matching CharRNN.forward(input, hidden).
    step_logits, step_h = char_rnn_step(ids_seq[0], h0, emb, wih, whh, bih, bhh, wdec, bdec)
    jax.block_until_ready((step_logits, step_h))
    assert step_logits.shape == (batch, vocab)
    assert step_h.shape == (n_layers, batch, hidden_size)

    print("KERNEL_OK")
</pallas_src>

<mosaic_0001>
module attributes {stable_mosaic.version = 11 : i64} {
  func.func @_gru_chunk_kernel(%arg0: i32, %arg1: memref<8x8x384xf32, #tpu.memory_space<vmem>>, %arg2: memref<2x8x128xf32, #tpu.memory_space<vmem>>, %arg3: memref<1x128x384xf32, #tpu.memory_space<vmem>>, %arg4: memref<2x128x384xf32, #tpu.memory_space<vmem>>, %arg5: memref<2x1x384xf32, #tpu.memory_space<vmem>>, %arg6: memref<2x1x128xf32, #tpu.memory_space<vmem>>, %arg7: memref<8x8x128xf32, #tpu.memory_space<vmem>>, %arg8: memref<2x8x128xf32, #tpu.memory_space<vmem>>) attributes {dimension_semantics = [#tpu.dimension_semantics<arbitrary>], iteration_bounds = array<i64: 1>, scalar_prefetch = 0 : i64, scratch_operands = 0 : i64, tpu.core_type = #tpu.core_type<tc>, window_params = [{transform_indices = @transform_0, window_bounds = array<i64: 8, 8, 384>}, {pipeline_mode = #tpu.pipeline_mode<synchronous>, transform_indices = @transform_1, window_bounds = array<i64: 2, 8, 128>}, {pipeline_mode = #tpu.pipeline_mode<synchronous>, transform_indices = @transform_2, window_bounds = array<i64: 1, 128, 384>}, {pipeline_mode = #tpu.pipeline_mode<synchronous>, transform_indices = @transform_3, window_bounds = array<i64: 2, 128, 384>}, {pipeline_mode = #tpu.pipeline_mode<synchronous>, transform_indices = @transform_4, window_bounds = array<i64: 2, 1, 384>}, {pipeline_mode = #tpu.pipeline_mode<synchronous>, transform_indices = @transform_5, window_bounds = array<i64: 2, 1, 128>}, {transform_indices = @transform_6, window_bounds = array<i64: 8, 8, 128>}, {pipeline_mode = #tpu.pipeline_mode<synchronous>, transform_indices = @transform_7, window_bounds = array<i64: 2, 8, 128>}]} {
    %c0_i32 = arith.constant 0 : i32
    %0 = arith.cmpi eq, %arg0, %c0_i32 : i32
    %1 = arith.extui %0 : i1 to i32
    %c0_i32_0 = arith.constant 0 : i32
    %2 = arith.cmpi ne, %1, %c0_i32_0 : i32
    scf.if %2 {
      %c0_268 = arith.constant 0 : index
      %c0_269 = arith.constant 0 : index
      %c0_270 = arith.constant 0 : index
      %637 = vector.load %arg2[%c0_268, %c0_269, %c0_270] : memref<2x8x128xf32, #tpu.memory_space<vmem>>, vector<2x8x128xf32>
      %c0_271 = arith.constant 0 : index
      %c0_272 = arith.constant 0 : index
      %c0_273 = arith.constant 0 : index
      %638 = vector.load %arg8[%c0_271, %c0_272, %c0_273] : memref<2x8x128xf32, #tpu.memory_space<vmem>>, vector<2x8x128xf32>
      tpu.vector_store %arg8[%c0_271, %c0_272, %c0_273], %637 {strides = array<i32>} : memref<2x8x128xf32, #tpu.memory_space<vmem>>, vector<2x8x128xf32>,
    } else {
    }
    %c0 = arith.constant 0 : index
    %c0_1 = arith.constant 0 : index
    %c0_2 = arith.constant 0 : index
    %3 = vector.load %arg8[%c0, %c0_1, %c0_2] : memref<2x8x128xf32, #tpu.memory_space<vmem>>, vector<1x8x128xf32>
    %4 = vector.shape_cast %3 : vector<1x8x128xf32> to vector<8x128xf32>
    %c1 = arith.constant 1 : index
    %c0_3 = arith.constant 0 : index
    %c0_4 = arith.constant 0 : index
    %5 = vector.load %arg8[%c1, %c0_3, %c0_4] : memref<2x8x128xf32, #tpu.memory_space<vmem>>, vector<1x8x128xf32>
    %6 = vector.shape_cast %5 : vector<1x8x128xf32> to vector<8x128xf32>
    %c0_5 = arith.constant 0 : index
    %c0_6 = arith.constant 0 : index
    %c0_7 = arith.constant 0 : index
    %7 = vector.load %arg4[%c0_5, %c0_6, %c0_7] : memref<2x128x384xf32, #tpu.memory_space<vmem>>, vector<1x128x384xf32>
    %8 = vector.shape_cast %7 : vector<1x128x384xf32> to vector<128x384xf32>
    %cst = arith.constant dense<0.000000e+00> : vector<8x384xf32>
    %9 = tpu.matmul %4, %8, %cst {dimension_numbers = #tpu.dot_dimension_numbers<[1], [0], [0], [1], [0, 0, 1, 1], [], []>} : vector<8x128xf32>, vector<128x384xf32>, vector<8x384xf32> -> vector<8x384xf32>
    %c1_8 = arith.constant 1 : index
    %c0_9 = arith.constant 0 : index
    %c0_10 = arith.constant 0 : index
    %10 = vector.load %arg4[%c1_8, %c0_9, %c0_10] : memref<2x128x384xf32, #tpu.memory_space<vmem>>, vector<1x128x384xf32>
    %11 = vector.shape_cast %10 : vector<1x128x384xf32> to vector<128x384xf32>
    %cst_11 = arith.constant dense<0.000000e+00> : vector<8x384xf32>
    %12 = tpu.matmul %6, %11, %cst_11 {dimension_numbers = #tpu.dot_dimension_numbers<[1], [0], [0], [1], [0, 0, 1, 1], [], []>} : vector<8x128xf32>, vector<128x384xf32>, vector<8x384xf32> -> vector<8x384xf32>
    %c0_12 = arith.constant 0 : index
    %c0_13 = arith.constant 0 : index
    %c0_14 = arith.constant 0 : index
    %13 = vector.load %arg1[%c0_12, %c0_13, %c0_14] : memref<8x8x384xf32, #tpu.memory_space<vmem>>, vector<1x8x384xf32>
    %14 = vector.shape_cast %13 : vector<1x8x384xf32> to vector<8x384xf32>
    %15 = vector.extract_strided_slice %14 {offsets = [0, 0], sizes = [8, 128], strides = [1, 1]} : vector<8x384xf32> to vector<8x128xf32>
    %16 = vector.extract_strided_slice %9 {offsets = [0, 0], sizes = [8, 128], strides = [1, 1]} : vector<8x384xf32> to vector<8x128xf32>
    %17 = arith.addf %15, %16 : vector<8x128xf32>
    %18 = arith.negf %17 : vector<8x128xf32>
    %19 = math.exp %18 : vector<8x128xf32>
    %cst_15 = arith.constant 1.000000e+00 : f32
    %20 = vector.broadcast %cst_15 : f32 to vector<8x128xf32>
    %21 = arith.addf %20, %19 : vector<8x128xf32>
    %22 = arith.divf %20, %21 : vector<8x128xf32>
    %23 = vector.extract_strided_slice %14 {offsets = [0, 128], sizes = [8, 128], strides = [1, 1]} : vector<8x384xf32> to vector<8x128xf32>
    %24 = vector.extract_strided_slice %9 {offsets = [0, 128], sizes = [8, 128], strides = [1, 1]} : vector<8x384xf32> to vector<8x128xf32>
    %25 = arith.addf %23, %24 : vector<8x128xf32>
    %26 = arith.negf %25 : vector<8x128xf32>
    %27 = math.exp %26 : vector<8x128xf32>
    %cst_16 = arith.constant 1.000000e+00 : f32
    %28 = vector.broadcast %cst_16 : f32 to vector<8x128xf32>
    %29 = arith.addf %28, %27 : vector<8x128xf32>
    %30 = arith.divf %28, %29 : vector<8x128xf32>
    %31 = vector.extract_strided_slice %14 {offsets = [0, 256], sizes = [8, 128], strides = [1, 1]} : vector<8x384xf32> to vector<8x128xf32>
    %32 = vector.extract_strided_slice %9 {offsets = [0, 256], sizes = [8, 128], strides = [1, 1]} : vector<8x384xf32> to vector<8x128xf32>
    %c0_17 = arith.constant 0 : index
    %c0_18 = arith.constant 0 : index
    %c0_19 = arith.constant 0 : index
    %33 = vector.load %arg6[%c0_17, %c0_18, %c0_19] : memref<2x1x128xf32, #tpu.memory_space<vmem>>, vector<1x1x128xf32>
    %34 = vector.shape_cast %33 : vector<1x1x128xf32> to vector<1x128xf32>
    %35 = vector.broadcast %34 : vector<1x128xf32> to vector<8x128xf32>
    %36 = arith.addf %32, %35 : vector<8x128xf32>
    %37 = arith.mulf %22, %36 : vector<8x128xf32>
    %38 = arith.addf %31, %37 : vector<8x128xf32>
    %39 = math.tanh %38 : vector<8x128xf32>
    %cst_20 = arith.constant 1.000000e+00 : f32
    %40 = vector.broadcast %cst_20 : f32 to vector<8x128xf32>
    %41 = arith.subf %40, %30 : vector<8x128xf32>
    %42 = arith.mulf %41, %39 : vector<8x128xf32>
    %43 = arith.mulf %30, %4 : vector<8x128xf32>
    %44 = arith.addf %42, %43 : vector<8x128xf32>
    %c0_21 = arith.constant 0 : index
    %c0_22 = arith.constant 0 : index
    %c0_23 = arith.constant 0 : index
    %45 = vector.load %arg3[%c0_21, %c0_22, %c0_23] : memref<1x128x384xf32, #tpu.memory_space<vmem>>, vector<1x128x384xf32>
    %46 = vector.shape_cast %45 : vector<1x128x384xf32> to vector<128x384xf32>
    %cst_24 = arith.constant dense<0.000000e+00> : vector<8x384xf32>
    %47 = tpu.matmul %44, %46, %cst_24 {dimension_numbers = #tpu.dot_dimension_numbers<[1], [0], [0], [1], [0, 0, 1, 1], [], []>} : vector<8x128xf32>, vector<128x384xf32>, vector<8x384xf32> -> vector<8x384xf32>
    %c1_25 = arith.constant 1 : index
    %c0_26 = arith.constant 0 : index
    %c0_27 = arith.constant 0 : index
    %48 = vector.load %arg5[%c1_25, %c0_26, %c0_27] : memref<2x1x384xf32, #tpu.memory_space<vmem>>, vector<1x1x384xf32>
    %49 = vector.shape_cast %48 : vector<1x1x384xf32> to vector<1x384xf32>
    %50 = vector.broadcast %49 : vector<1x384xf32> to vector<8x384xf32>
    %51 = arith.addf %47, %50 : vector<8x384xf32>
    %52 = vector.extract_strided_slice %51 {offsets = [0, 0], sizes = [8, 128], strides = [1, 1]} : vector<8x384xf32> to vector<8x128xf32>
    %53 = vector.extract_strided_slice %12 {offsets = [0, 0], sizes = [8, 128], strides = [1, 1]} : vector<8x384xf32> to vector<8x128xf32>
    %54 = arith.addf %52, %53 : vector<8x128xf32>
    %55 = arith.negf %54 : vector<8x128xf32>
    %56 = math.exp %55 : vector<8x128xf32>
    %cst_28 = arith.constant 1.000000e+00 : f32
    %57 = vector.broadcast %cst_28 : f32 to vector<8x128xf32>
    %58 = arith.addf %57, %56 : vector<8x128xf32>
    %59 = arith.divf %57, %58 : vector<8x128xf32>
    %60 = vector.extract_strided_slice %51 {offsets = [0, 128], sizes = [8, 128], strides = [1, 1]} : vector<8x384xf32> to vector<8x128xf32>
    %61 = vector.extract_strided_slice %12 {offsets = [0, 128], sizes = [8, 128], strides = [1, 1]} : vector<8x384xf32> to vector<8x128xf32>
    %62 = arith.addf %60, %61 : vector<8x128xf32>
    %63 = arith.negf %62 : vector<8x128xf32>
    %64 = math.exp %63 : vector<8x128xf32>
    %cst_29 = arith.constant 1.000000e+00 : f32
    %65 = vector.broadcast %cst_29 : f32 to vector<8x128xf32>
    %66 = arith.addf %65, %64 : vector<8x128xf32>
    %67 = arith.divf %65, %66 : vector<8x128xf32>
    %68 = vector.extract_strided_slice %51 {offsets = [0, 256], sizes = [8, 128], strides = [1, 1]} : vector<8x384xf32> to vector<8x128xf32>
    %69 = vector.extract_strided_slice %12 {offsets = [0, 256], sizes = [8, 128], strides = [1, 1]} : vector<8x384xf32> to vector<8x128xf32>
    %c1_30 = arith.constant 1 : index
    %c0_31 = arith.constant 0 : index
    %c0_32 = arith.constant 0 : index
    %70 = vector.load %arg6[%c1_30, %c0_31, %c0_32] : memref<2x1x128xf32, #tpu.memory_space<vmem>>, vector<1x1x128xf32>
    %71 = vector.shape_cast %70 : vector<1x1x128xf32> to vector<1x128xf32>
    %72 = vector.broadcast %71 : vector<1x128xf32> to vector<8x128xf32>
    %73 = arith.addf %69, %72 : vector<8x128xf32>
    %74 = arith.mulf %59, %73 : vector<8x128xf32>
    %75 = arith.addf %68, %74 : vector<8x128xf32>
    %76 = math.tanh %75 : vector<8x128xf32>
    %cst_33 = arith.constant 1.000000e+00 : f32
    %77 = vector.broadcast %cst_33 : f32 to vector<8x128xf32>
    %78 = arith.subf %77, %67 : vector<8x128xf32>
    %79 = arith.mulf %78, %76 : vector<8x128xf32>
    %80 = arith.mulf %67, %6 : vector<8x128xf32>
    %81 = arith.addf %79, %80 : vector<8x128xf32>
    %c0_34 = arith.constant 0 : index
    %c0_35 = arith.constant 0 : index
    %c0_36 = arith.constant 0 : index
    %82 = vector.load %arg7[%c0_34, %c0_35, %c0_36] : memref<8x8x128xf32, #tpu.memory_space<vmem>>, vector<1x8x128xf32>
    %83 = vector.shape_cast %82 : vector<1x8x128xf32> to vector<8x128xf32>
    %84 = vector.shape_cast %81 : vector<8x128xf32> to vector<1x8x128xf32>
    tpu.vector_store %arg7[%c0_34, %c0_35, %c0_36], %84 {strides = array<i32>} : memref<8x8x128xf32, #tpu.memory_space<vmem>>, vector<1x8x128xf32>,
    %c0_37 = arith.constant 0 : index
    %c0_38 = arith.constant 0 : index
    %c0_39 = arith.constant 0 : index
    %85 = vector.load %arg4[%c0_37, %c0_38, %c0_39] : memref<2x128x384xf32, #tpu.memory_space<vmem>>, vector<1x128x384xf32>
    %86 = vector.shape_cast %85 : vector<1x128x384xf32> to vector<128x384xf32>
    %cst_40 = arith.constant dense<0.000000e+00> : vector<8x384xf32>
    %87 = tpu.matmul %44, %86, %cst_40 {dimension_numbers = #tpu.dot_dimension_numbers<[1], [0], [0], [1], [0, 0, 1, 1], [], []>} : vector<8x128xf32>, vector<128x384xf32>, vector<8x384xf32> -> vector<8x384xf32>
    %c1_41 = arith.constant 1 : index
    %c0_42 = arith.constant 0 : index
    %c0_43 = arith.constant 0 : index
    %88 = vector.load %arg4[%c1_41, %c0_42, %c0_43] : memref<2x128x384xf32, #tpu.memory_space<vmem>>, vector<1x128x384xf32>
    %89 = vector.shape_cast %88 : vector<1x128x384xf32> to vector<128x384xf32>
    %cst_44 = arith.constant dense<0.000000e+00> : vector<8x384xf32>
    %90 = tpu.matmul %81, %89, %cst_44 {dimension_numbers = #tpu.dot_dimension_numbers<[1], [0], [0], [1], [0, 0, 1, 1], [], []>} : vector<8x128xf32>, vector<128x384xf32>, vector<8x384xf32> -> vector<8x384xf32>
    %c1_45 = arith.constant 1 : index
    %c0_46 = arith.constant 0 : index
    %c0_47 = arith.constant 0 : index
    %91 = vector.load %arg1[%c1_45, %c0_46, %c0_47] : memref<8x8x384xf32, #tpu.memory_space<vmem>>, vector<1x8x384xf32>
    %92 = vector.shape_cast %91 : vector<1x8x384xf32> to vector<8x384xf32>
    %93 = vector.extract_strided_slice %92 {offsets = [0, 0], sizes = [8, 128], strides = [1, 1]} : vector<8x384xf32> to vector<8x128xf32>
    %94 = vector.extract_strided_slice %87 {offsets = [0, 0], sizes = [8, 128], strides = [1, 1]} : vector<8x384xf32> to vector<8x128xf32>
    %95 = arith.addf %93, %94 : vector<8x128xf32>
    %96 = arith.negf %95 : vector<8x128xf32>
    %97 = math.exp %96 : vector<8x128xf32>
    %cst_48 = arith.constant 1.000000e+00 : f32
    %98 = vector.broadcast %cst_48 : f32 to vector<8x128xf32>
    %99 = arith.addf %98, %97 : vector<8x128xf32>
    %100 = arith.divf %98, %99 : vector<8x128xf32>
    %101 = vector.extract_strided_slice %92 {offsets = [0, 128], sizes = [8, 128], strides = [1, 1]} : vector<8x384xf32> to vector<8x128xf32>
    %102 = vector.extract_strided_slice %87 {offsets = [0, 128], sizes = [8, 128], strides = [1, 1]} : vector<8x384xf32> to vector<8x128xf32>
    %103 = arith.addf %101, %102 : vector<8x128xf32>
    %104 = arith.negf %103 : vector<8x128xf32>
    %105 = math.exp %104 : vector<8x128xf32>
    %cst_49 = arith.constant 1.000000e+00 : f32
    %106 = vector.broadcast %cst_49 : f32 to vector<8x128xf32>
    %107 = arith.addf %106, %105 : vector<8x128xf32>
    %108 = arith.divf %106, %107 : vector<8x128xf32>
    %109 = vector.extract_strided_slice %92 {offsets = [0, 256], sizes = [8, 128], strides = [1, 1]} : vector<8x384xf32> to vector<8x128xf32>
    %110 = vector.extract_strided_slice %87 {offsets = [0, 256], sizes = [8, 128], strides = [1, 1]} : vector<8x384xf32> to vector<8x128xf32>
    %c0_50 = arith.constant 0 : index
    %c0_51 = arith.constant 0 : index
    %c0_52 = arith.constant 0 : index
    %111 = vector.load %arg6[%c0_50, %c0_51, %c0_52] : memref<2x1x128xf32, #tpu.memory_space<vmem>>, vector<1x1x128xf32>
    %112 = vector.shape_cast %111 : vector<1x1x128xf32> to vector<1x128xf32>
    %113 = vector.broadcast %112 : vector<1x128xf32> to vector<8x128xf32>
    %114 = arith.addf %110, %113 : vector<8x128xf32>
    %115 = arith.mulf %100, %114 : vector<8x128xf32>
    %116 = arith.addf %109, %115 : vector<8x128xf32>
    %117 = math.tanh %116 : vector<8x128xf32>
    %cst_53 = arith.constant 1.000000e+00 : f32
    %118 = vector.broadcast %cst_53 : f32 to vector<8x128xf32>
    %119 = arith.subf %118, %108 : vector<8x128xf32>
    %120 = arith.mulf %119, %117 : vector<8x128xf32>
    %121 = arith.mulf %108, %44 : vector<8x128xf32>
    %122 = arith.addf %120, %121 : vector<8x128xf32>
    %c0_54 = arith.constant 0 : index
    %c0_55 = arith.constant 0 : index
    %c0_56 = arith.constant 0 : index
    %123 = vector.load %arg3[%c0_54, %c0_55, %c0_56] : memref<1x128x384xf32, #tpu.memory_space<vmem>>, vector<1x128x384xf32>
    %124 = vector.shape_cast %123 : vector<1x128x384xf32> to vector<128x384xf32>
    %cst_57 = arith.constant dense<0.000000e+00> : vector<8x384xf32>
    %125 = tpu.matmul %122, %124, %cst_57 {dimension_numbers = #tpu.dot_dimension_numbers<[1], [0], [0], [1], [0, 0, 1, 1], [], []>} : vector<8x128xf32>, vector<128x384xf32>, vector<8x384xf32> -> vector<8x384xf32>
    %c1_58 = arith.constant 1 : index
    %c0_59 = arith.constant 0 : index
    %c0_60 = arith.constant 0 : index
    %126 = vector.load %arg5[%c1_58, %c0_59, %c0_60] : memref<2x1x384xf32, #tpu.memory_space<vmem>>, vector<1x1x384xf32>
    %127 = vector.shape_cast %126 : vector<1x1x384xf32> to vector<1x384xf32>
    %128 = vector.broadcast %127 : vector<1x384xf32> to vector<8x384xf32>
    %129 = arith.addf %125, %128 : vector<8x384xf32>
    %130 = vector.extract_strided_slice %129 {offsets = [0, 0], sizes = [8, 128], strides = [1, 1]} : vector<8x384xf32> to vector<8x128xf32>
    %131 = vector.extract_strided_slice %90 {offsets = [0, 0], sizes = [8, 128], strides = [1, 1]} : vector<8x384xf32> to vector<8x128xf32>
    %132 = arith.addf %130, %131 : vector<8x128xf32>
    %133 = arith.negf %132 : vector<8x128xf32>
    %134 = math.exp %133 : vector<8x128xf32>
    %cst_61 = arith.constant 1.000000e+00 : f32
    %135 = vector.broadcast %cst_61 : f32 to vector<8x128xf32>
    %136 = arith.addf %135, %134 : vector<8x128xf32>
    %137 = arith.divf %135, %136 : vector<8x128xf32>
    %138 = vector.extract_strided_slice %129 {offsets = [0, 128], sizes = [8, 128], strides = [1, 1]} : vector<8x384xf32> to vector<8x128xf32>
    %139 = vector.extract_strided_slice %90 {offsets = [0, 128], sizes = [8, 128], strides = [1, 1]} : vector<8x384xf32> to vector<8x128xf32>
    %140 = arith.addf %138, %139 : vector<8x128xf32>
    %141 = arith.negf %140 : vector<8x128xf32>
    %142 = math.exp %141 : vector<8x128xf32>
    %cst_62 = arith.constant 1.000000e+00 : f32
    %143 = vector.broadcast %cst_62 : f32 to vector<8x128xf32>
    %144 = arith.addf %143, %142 : vector<8x128xf32>
    %145 = arith.divf %143, %144 : vector<8x128xf32>
    %146 = vector.extract_strided_slice %129 {offsets = [0, 256], sizes = [8, 128], strides = [1, 1]} : vector<8x384xf32> to vector<8x128xf32>
    %147 = vector.extract_strided_slice %90 {offsets = [0, 256], sizes = [8, 128], strides = [1, 1]} : vector<8x384xf32> to vector<8x128xf32>
    %c1_63 = arith.constant 1 : index
    %c0_64 = arith.constant 0 : index
    %c0_65 = arith.constant 0 : index
    %148 = vector.load %arg6[%c1_63, %c0_64, %c0_65] : memref<2x1x128xf32, #tpu.memory_space<vmem>>, vector<1x1x128xf32>
    %149 = vector.shape_cast %148 : vector<1x1x128xf32> to vector<1x128xf32>
    %150 = vector.broadcast %149 : vector<1x128xf32> to vector<8x128xf32>
    %151 = arith.addf %147, %150 : vector<8x128xf32>
    %152 = arith.mulf %137, %151 : vector<8x128xf32>
    %153 = arith.addf %146, %152 : vector<8x128xf32>
    %154 = math.tanh %153 : vector<8x128xf32>
    %cst_66 = arith.constant 1.000000e+00 : f32
    %155 = vector.broadcast %cst_66 : f32 to vector<8x128xf32>
    %156 = arith.subf %155, %145 : vector<8x128xf32>
    %157 = arith.mulf %156, %154 : vector<8x128xf32>
    %158 = arith.mulf %145, %81 : vector<8x128xf32>
    %159 = arith.addf %157, %158 : vector<8x128xf32>
    %c1_67 = arith.constant 1 : index
    %c0_68 = arith.constant 0 : index
    %c0_69 = arith.constant 0 : index
    %160 = vector.load %arg7[%c1_67, %c0_68, %c0_69] : memref<8x8x128xf32, #tpu.memory_space<vmem>>, vector<1x8x128xf32>
    %161 = vector.shape_cast %160 : vector<1x8x128xf32> to vector<8x128xf32>
    %162 = vector.shape_cast %159 : vector<8x128xf32> to vector<1x8x128xf32>
    tpu.vector_store %arg7[%c1_67, %c0_68, %c0_69], %162 {strides = array<i32>} : memref<8x8x128xf32, #tpu.memory_space<vmem>>, vector<1x8x128xf32>,
    %c0_70 = arith.constant 0 : index
    %c0_71 = arith.constant 0 : index
    %c0_72 = arith.constant 0 : index
    %163 = vector.load %arg4[%c0_70, %c0_71, %c0_72] : memref<2x128x384xf32, #tpu.memory_space<vmem>>, vector<1x128x384xf32>
    %164 = vector.shape_cast %163 : vector<1x128x384xf32> to vector<128x384xf32>
    %cst_73 = arith.constant dense<0.000000e+00> : vector<8x384xf32>
    %165 = tpu.matmul %122, %164, %cst_73 {dimension_numbers = #tpu.dot_dimension_numbers<[1], [0], [0], [1], [0, 0, 1, 1], [], []>} : vector<8x128xf32>, vector<128x384xf32>, vector<8x384xf32> -> vector<8x384xf32>
    %c1_74 = arith.constant 1 : index
    %c0_75 = arith.constant 0 : index
    %c0_76 = arith.constant 0 : index
    %166 = vector.load %arg4[%c1_74, %c0_75, %c0_76] : memref<2x128x384xf32, #tpu.memory_space<vmem>>, vector<1x128x384xf32>
    %167 = vector.shape_cast %166 : vector<1x128x384xf32> to vector<128x384xf32>
    %cst_77 = arith.constant dense<0.000000e+00> : vector<8x384xf32>
    %168 = tpu.matmul %159, %167, %cst_77 {dimension_numbers = #tpu.dot_dimension_numbers<[1], [0], [0], [1], [0, 0, 1, 1], [], []>} : vector<8x128xf32>, vector<128x384xf32>, vector<8x384xf32> -> vector<8x384xf32>
    %c2 = arith.constant 2 : index
    %c0_78 = arith.constant 0 : index
    %c0_79 = arith.constant 0 : index
    %169 = vector.load %arg1[%c2, %c0_78, %c0_79] : memref<8x8x384xf32, #tpu.memory_space<vmem>>, vector<1x8x384xf32>
    %170 = vector.shape_cast %169 : vector<1x8x384xf32> to vector<8x384xf32>
    %171 = vector.extract_strided_slice %170 {offsets = [0, 0], sizes = [8, 128], strides = [1, 1]} : vector<8x384xf32> to vector<8x128xf32>
    %172 = vector.extract_strided_slice %165 {offsets = [0, 0], sizes = [8, 128], strides = [1, 1]} : vector<8x384xf32> to vector<8x128xf32>
    %173 = arith.addf %171, %172 : vector<8x128xf32>
    %174 = arith.negf %173 : vector<8x128xf32>
    %175 = math.exp %174 : vector<8x128xf32>
    %cst_80 = arith.constant 1.000000e+00 : f32
    %176 = vector.broadcast %cst_80 : f32 to vector<8x128xf32>
    %177 = arith.addf %176, %175 : vector<8x128xf32>
    %178 = arith.divf %176, %177 : vector<8x128xf32>
    %179 = vector.extract_strided_slice %170 {offsets = [0, 128], sizes = [8, 128], strides = [1, 1]} : vector<8x384xf32> to vector<8x128xf32>
    %180 = vector.extract_strided_slice %165 {offsets = [0, 128], sizes = [8, 128], strides = [1, 1]} : vector<8x384xf32> to vector<8x128xf32>
    %181 = arith.addf %179, %180 : vector<8x128xf32>
    %182 = arith.negf %181 : vector<8x128xf32>
    %183 = math.exp %182 : vector<8x128xf32>
    %cst_81 = arith.constant 1.000000e+00 : f32
    %184 = vector.broadcast %cst_81 : f32 to vector<8x128xf32>
    %185 = arith.addf %184, %183 : vector<8x128xf32>
    %186 = arith.divf %184, %185 : vector<8x128xf32>
    %187 = vector.extract_strided_slice %170 {offsets = [0, 256], sizes = [8, 128], strides = [1, 1]} : vector<8x384xf32> to vector<8x128xf32>
    %188 = vector.extract_strided_slice %165 {offsets = [0, 256], sizes = [8, 128], strides = [1, 1]} : vector<8x384xf32> to vector<8x128xf32>
    %c0_82 = arith.constant 0 : index
    %c0_83 = arith.constant 0 : index
    %c0_84 = arith.constant 0 : index
    %189 = vector.load %arg6[%c0_82, %c0_83, %c0_84] : memref<2x1x128xf32, #tpu.memory_space<vmem>>, vector<1x1x128xf32>
    %190 = vector.shape_cast %189 : vector<1x1x128xf32> to vector<1x128xf32>
    %191 = vector.broadcast %190 : vector<1x128xf32> to vector<8x128xf32>
    %192 = arith.addf %188, %191 : vector<8x128xf32>
    %193 = arith.mulf %178, %192 : vector<8x128xf32>
    %194 = arith.addf %187, %193 : vector<8x128xf32>
    %195 = math.tanh %194 : vector<8x128xf32>
    %cst_85 = arith.constant 1.000000e+00 : f32
    %196 = vector.broadcast %cst_85 : f32 to vector<8x128xf32>
    %197 = arith.subf %196, %186 : vector<8x128xf32>
    %198 = arith.mulf %197, %195 : vector<8x128xf32>
    %199 = arith.mulf %186, %122 : vector<8x128xf32>
    %200 = arith.addf %198, %199 : vector<8x128xf32>
    %c0_86 = arith.constant 0 : index
    %c0_87 = arith.constant 0 : index
    %c0_88 = arith.constant 0 : index
    %201 = vector.load %arg3[%c0_86, %c0_87, %c0_88] : memref<1x128x384xf32, #tpu.memory_space<vmem>>, vector<1x128x384xf32>
    %202 = vector.shape_cast %201 : vector<1x128x384xf32> to vector<128x384xf32>
    %cst_89 = arith.constant dense<0.000000e+00> : vector<8x384xf32>
    %203 = tpu.matmul %200, %202, %cst_89 {dimension_numbers = #tpu.dot_dimension_numbers<[1], [0], [0], [1], [0, 0, 1, 1], [], []>} : vector<8x128xf32>, vector<128x384xf32>, vector<8x384xf32> -> vector<8x384xf32>
    %c1_90 = arith.constant 1 : index
    %c0_91 = arith.constant 0 : index
    %c0_92 = arith.constant 0 : index
    %204 = vector.load %arg5[%c1_90, %c0_91, %c0_92] : memref<2x1x384xf32, #tpu.memory_space<vmem>>, vector<1x1x384xf32>
    %205 = vector.shape_cast %204 : vector<1x1x384xf32> to vector<1x384xf32>
    %206 = vector.broadcast %205 : vector<1x384xf32> to vector<8x384xf32>
    %207 = arith.addf %203, %206 : vector<8x384xf32>
    %208 = vector.extract_strided_slice %207 {offsets = [0, 0], sizes = [8, 128], strides = [1, 1]} : vector<8x384xf32> to vector<8x128xf32>
    %209 = vector.extract_strided_slice %168 {offsets = [0, 0], sizes = [8, 128], strides = [1, 1]} : vector<8x384xf32> to vector<8x128xf32>
    %210 = arith.addf %208, %209 : vector<8x128xf32>
    %211 = arith.negf %210 : vector<8x128xf32>
    %212 = math.exp %211 : vector<8x128xf32>
    %cst_93 = arith.constant 1.000000e+00 : f32
    %213 = vector.broadcast %cst_93 : f32 to vector<8x128xf32>
    %214 = arith.addf %213, %212 : vector<8x128xf32>
    %215 = arith.divf %213, %214 : vector<8x128xf32>
    %216 = vector.extract_strided_slice %207 {offsets = [0, 128], sizes = [8, 128], strides = [1, 1]} : vector<8x384xf32> to vector<8x128xf32>
    %217 = vector.extract_strided_slice %168 {offsets = [0, 128], sizes = [8, 128], strides = [1, 1]} : vector<8x384xf32> to vector<8x128xf32>
    %218 = arith.addf %216, %217 : vector<8x128xf32>
    %219 = arith.negf %218 : vector<8x128xf32>
    %220 = math.exp %219 : vector<8x128xf32>
    %cst_94 = arith.constant 1.000000e+00 : f32
    %221 = vector.broadcast %cst_94 : f32 to vector<8x128xf32>
    %222 = arith.addf %221, %220 : vector<8x128xf32>
    %223 = arith.divf %221, %222 : vector<8x128xf32>
    %224 = vector.extract_strided_slice %207 {offsets = [0, 256], sizes = [8, 128], strides = [1, 1]} : vector<8x384xf32> to vector<8x128xf32>
    %225 = vector.extract_strided_slice %168 {offsets = [0, 256], sizes = [8, 128], strides = [1, 1]} : vector<8x384xf32> to vector<8x128xf32>
    %c1_95 = arith.constant 1 : index
    %c0_96 = arith.constant 0 : index
    %c0_97 = arith.constant 0 : index
    %226 = vector.load %arg6[%c1_95, %c0_96, %c0_97] : memref<2x1x128xf32, #tpu.memory_space<vmem>>, vector<1x1x128xf32>
    %227 = vector.shape_cast %226 : vector<1x1x128xf32> to vector<1x128xf32>
    %228 = vector.broadcast %227 : vector<1x128xf32> to vector<8x128xf32>
    %229 = arith.addf %225, %228 : vector<8x128xf32>
    %230 = arith.mulf %215, %229 : vector<8x128xf32>
    %231 = arith.addf %224, %230 : vector<8x128xf32>
    %232 = math.tanh %231 : vector<8x128xf32>
    %cst_98 = arith.constant 1.000000e+00 : f32
    %233 = vector.broadcast %cst_98 : f32 to vector<8x128xf32>
    %234 = arith.subf %233, %223 : vector<8x128xf32>
    %235 = arith.mulf %234, %232 : vector<8x128xf32>
    %236 = arith.mulf %223, %159 : vector<8x128xf32>
    %237 = arith.addf %235, %236 : vector<8x128xf32>
    %c2_99 = arith.constant 2 : index
    %c0_100 = arith.constant 0 : index
    %c0_101 = arith.constant 0 : index
    %238 = vector.load %arg7[%c2_99, %c0_100, %c0_101] : memref<8x8x128xf32, #tpu.memory_space<vmem>>, vector<1x8x128xf32>
    %239 = vector.shape_cast %238 : vector<1x8x128xf32> to vector<8x128xf32>
    %240 = vector.shape_cast %237 : vector<8x128xf32> to vector<1x8x128xf32>
    tpu.vector_store %arg7[%c2_99, %c0_100, %c0_101], %240 {strides = array<i32>} : memref<8x8x128xf32, #tpu.memory_space<vmem>>, vector<1x8x128xf32>,
    %c0_102 = arith.constant 0 : index
    %c0_103 = arith.constant 0 : index
    %c0_104 = arith.constant 0 : index
    %241 = vector.load %arg4[%c0_102, %c0_103, %c0_104] : memref<2x128x384xf32, #tpu.memory_space<vmem>>, vector<1x128x384xf32>
    %242 = vector.shape_cast %241 : vector<1x128x384xf32> to vector<128x384xf32>
    %cst_105 = arith.constant dense<0.000000e+00> : vector<8x384xf32>
    %243 = tpu.matmul %200, %242, %cst_105 {dimension_numbers = #tpu.dot_dimension_numbers<[1], [0], [0], [1], [0, 0, 1, 1], [], []>} : vector<8x128xf32>, vector<128x384xf32>, vector<8x384xf32> -> vector<8x384xf32>
    %c1_106 = arith.constant 1 : index
    %c0_107 = arith.constant 0 : index
    %c0_108 = arith.constant 0 : index
    %244 = vector.load %arg4[%c1_106, %c0_107, %c0_108] : memref<2x128x384xf32, #tpu.memory_space<vmem>>, vector<1x128x384xf32>
    %245 = vector.shape_cast %244 : vector<1x128x384xf32> to vector<128x384xf32>
    %cst_109 = arith.constant dense<0.000000e+00> : vector<8x384xf32>
    %246 = tpu.matmul %237, %245, %cst_109 {dimension_numbers = #tpu.dot_dimension_numbers<[1], [0], [0], [1], [0, 0, 1, 1], [], []>} : vector<8x128xf32>, vector<128x384xf32>, vector<8x384xf32> -> vector<8x384xf32>
    %c3 = arith.constant 3 : index
    %c0_110 = arith.constant 0 : index
    %c0_111 = arith.constant 0 : index
    %247 = vector.load %arg1[%c3, %c0_110, %c0_111] : memref<8x8x384xf32, #tpu.memory_space<vmem>>, vector<1x8x384xf32>
    %248 = vector.shape_cast %247 : vector<1x8x384xf32> to vector<8x384xf32>
    %249 = vector.extract_strided_slice %248 {offsets = [0, 0], sizes = [8, 128], strides = [1, 1]} : vector<8x384xf32> to vector<8x128xf32>
    %250 = vector.extract_strided_slice %243 {offsets = [0, 0], sizes = [8, 128], strides = [1, 1]} : vector<8x384xf32> to vector<8x128xf32>
    %251 = arith.addf %249, %250 : vector<8x128xf32>
    %252 = arith.negf %251 : vector<8x128xf32>
    %253 = math.exp %252 : vector<8x128xf32>
    %cst_112 = arith.constant 1.000000e+00 : f32
    %254 = vector.broadcast %cst_112 : f32 to vector<8x128xf32>
    %255 = arith.addf %254, %253 : vector<8x128xf32>
    %256 = arith.divf %254, %255 : vector<8x128xf32>
    %257 = vector.extract_strided_slice %248 {offsets = [0, 128], sizes = [8, 128], strides = [1, 1]} : vector<8x384xf32> to vector<8x128xf32>
    %258 = vector.extract_strided_slice %243 {offsets = [0, 128], sizes = [8, 128], strides = [1, 1]} : vector<8x384xf32> to vector<8x128xf32>
    %259 = arith.addf %257, %258 : vector<8x128xf32>
    %260 = arith.negf %259 : vector<8x128xf32>
    %261 = math.exp %260 : vector<8x128xf32>
    %cst_113 = arith.constant 1.000000e+00 : f32
    %262 = vector.broadcast %cst_113 : f32 to vector<8x128xf32>
    %263 = arith.addf %262, %261 : vector<8x128xf32>
    %264 = arith.divf %262, %263 : vector<8x128xf32>
    %265 = vector.extract_strided_slice %248 {offsets = [0, 256], sizes = [8, 128], strides = [1, 1]} : vector<8x384xf32> to vector<8x128xf32>
    %266 = vector.extract_strided_slice %243 {offsets = [0, 256], sizes = [8, 128], strides = [1, 1]} : vector<8x384xf32> to vector<8x128xf32>
    %c0_114 = arith.constant 0 : index
    %c0_115 = arith.constant 0 : index
    %c0_116 = arith.constant 0 : index
    %267 = vector.load %arg6[%c0_114, %c0_115, %c0_116] : memref<2x1x128xf32, #tpu.memory_space<vmem>>, vector<1x1x128xf32>
    %268 = vector.shape_cast %267 : vector<1x1x128xf32> to vector<1x128xf32>
    %269 = vector.broadcast %268 : vector<1x128xf32> to vector<8x128xf32>
    %270 = arith.addf %266, %269 : vector<8x128xf32>
    %271 = arith.mulf %256, %270 : vector<8x128xf32>
    %272 = arith.addf %265, %271 : vector<8x128xf32>
    %273 = math.tanh %272 : vector<8x128xf32>
    %cst_117 = arith.constant 1.000000e+00 : f32
    %274 = vector.broadcast %cst_117 : f32 to vector<8x128xf32>
    %275 = arith.subf %274, %264 : vector<8x128xf32>
    %276 = arith.mulf %275, %273 : vector<8x128xf32>
    %277 = arith.mulf %264, %200 : vector<8x128xf32>
    %278 = arith.addf %276, %277 : vector<8x128xf32>
    %c0_118 = arith.constant 0 : index
    %c0_119 = arith.constant 0 : index
    %c0_120 = arith.constant 0 : index
    %279 = vector.load %arg3[%c0_118, %c0_119, %c0_120] : memref<1x128x384xf32, #tpu.memory_space<vmem>>, vector<1x128x384xf32>
    %280 = vector.shape_cast %279 : vector<1x128x384xf32> to vector<128x384xf32>
    %cst_121 = arith.constant dense<0.000000e+00> : vector<8x384xf32>
    %281 = tpu.matmul %278, %280, %cst_121 {dimension_numbers = #tpu.dot_dimension_numbers<[1], [0], [0], [1], [0, 0, 1, 1], [], []>} : vector<8x128xf32>, vector<128x384xf32>, vector<8x384xf32> -> vector<8x384xf32>
    %c1_122 = arith.constant 1 : index
    %c0_123 = arith.constant 0 : index
    %c0_124 = arith.constant 0 : index
    %282 = vector.load %arg5[%c1_122, %c0_123, %c0_124] : memref<2x1x384xf32, #tpu.memory_space<vmem>>, vector<1x1x384xf32>
    %283 = vector.shape_cast %282 : vector<1x1x384xf32> to vector<1x384xf32>
    %284 = vector.broadcast %283 : vector<1x384xf32> to vector<8x384xf32>
    %285 = arith.addf %281, %284 : vector<8x384xf32>
    %286 = vector.extract_strided_slice %285 {offsets = [0, 0], sizes = [8, 128], strides = [1, 1]} : vector<8x384xf32> to vector<8x128xf32>
    %287 = vector.extract_strided_slice %246 {offsets = [0, 0], sizes = [8, 128], strides = [1, 1]} : vector<8x384xf32> to vector<8x128xf32>
    %288 = arith.addf %286, %287 : vector<8x128xf32>
    %289 = arith.negf %288 : vector<8x128xf32>
    %290 = math.exp %289 : vector<8x128xf32>
    %cst_125 = arith.constant 1.000000e+00 : f32
    %291 = vector.broadcast %cst_125 : f32 to vector<8x128xf32>
    %292 = arith.addf %291, %290 : vector<8x128xf32>
    %293 = arith.divf %291, %292 : vector<8x128xf32>
    %294 = vector.extract_strided_slice %285 {offsets = [0, 128], sizes = [8, 128], strides = [1, 1]} : vector<8x384xf32> to vector<8x128xf32>
    %295 = vector.extract_strided_slice %246 {offsets = [0, 128], sizes = [8, 128], strides = [1, 1]} : vector<8x384xf32> to vector<8x128xf32>
    %296 = arith.addf %294, %295 : vector<8x128xf32>
    %297 = arith.negf %296 : vector<8x128xf32>
    %298 = math.exp %297 : vector<8x128xf32>
    %cst_126 = arith.constant 1.000000e+00 : f32
    %299 = vector.broadcast %cst_126 : f32 to vector<8x128xf32>
    %300 = arith.addf %299, %298 : vector<8x128xf32>
    %301 = arith.divf %299, %300 : vector<8x128xf32>
    %302 = vector.extract_strided_slice %285 {offsets = [0, 256], sizes = [8, 128], strides = [1, 1]} : vector<8x384xf32> to vector<8x128xf32>
    %303 = vector.extract_strided_slice %246 {offsets = [0, 256], sizes = [8, 128], strides = [1, 1]} : vector<8x384xf32> to vector<8x128xf32>
    %c1_127 = arith.constant 1 : index
    %c0_128 = arith.constant 0 : index
    %c0_129 = arith.constant 0 : index
    %304 = vector.load %arg6[%c1_127, %c0_128, %c0_129] : memref<2x1x128xf32, #tpu.memory_space<vmem>>, vector<1x1x128xf32>
    %305 = vector.shape_cast %304 : vector<1x1x128xf32> to vector<1x128xf32>
    %306 = vector.broadcast %305 : vector<1x128xf32> to vector<8x128xf32>
    %307 = arith.addf %303, %306 : vector<8x128xf32>
    %308 = arith.mulf %293, %307 : vector<8x128xf32>
    %309 = arith.addf %302, %308 : vector<8x128xf32>
    %310 = math.tanh %309 : vector<8x128xf32>
    %cst_130 = arith.constant 1.000000e+00 : f32
    %311 = vector.broadcast %cst_130 : f32 to vector<8x128xf32>
    %312 = arith.subf %311, %301 : vector<8x128xf32>
    %313 = arith.mulf %312, %310 : vector<8x128xf32>
    %314 = arith.mulf %301, %237 : vector<8x128xf32>
    %315 = arith.addf %313, %314 : vector<8x128xf32>
    %c3_131 = arith.constant 3 : index
    %c0_132 = arith.constant 0 : index
    %c0_133 = arith.constant 0 : index
    %316 = vector.load %arg7[%c3_131, %c0_132, %c0_133] : memref<8x8x128xf32, #tpu.memory_space<vmem>>, vector<1x8x128xf32>
    %317 = vector.shape_cast %316 : vector<1x8x128xf32> to vector<8x128xf32>
    %318 = vector.shape_cast %315 : vector<8x128xf32> to vector<1x8x128xf32>
    tpu.vector_store %arg7[%c3_131, %c0_132, %c0_133], %318 {strides = array<i32>} : memref<8x8x128xf32, #tpu.memory_space<vmem>>, vector<1x8x128xf32>,
    %c0_134 = arith.constant 0 : index
    %c0_135 = arith.constant 0 : index
    %c0_136 = arith.constant 0 : index
    %319 = vector.load %arg4[%c0_134, %c0_135, %c0_136] : memref<2x128x384xf32, #tpu.memory_space<vmem>>, vector<1x128x384xf32>
    %320 = vector.shape_cast %319 : vector<1x128x384xf32> to vector<128x384xf32>
    %cst_137 = arith.constant dense<0.000000e+00> : vector<8x384xf32>
    %321 = tpu.matmul %278, %320, %cst_137 {dimension_numbers = #tpu.dot_dimension_numbers<[1], [0], [0], [1], [0, 0, 1, 1], [], []>} : vector<8x128xf32>, vector<128x384xf32>, vector<8x384xf32> -> vector<8x384xf32>
    %c1_138 = arith.constant 1 : index
    %c0_139 = arith.constant 0 : index
    %c0_140 = arith.constant 0 : index
    %322 = vector.load %arg4[%c1_138, %c0_139, %c0_140] : memref<2x128x384xf32, #tpu.memory_space<vmem>>, vector<1x128x384xf32>
    %323 = vector.shape_cast %322 : vector<1x128x384xf32> to vector<128x384xf32>
    %cst_141 = arith.constant dense<0.000000e+00> : vector<8x384xf32>
    %324 = tpu.matmul %315, %323, %cst_141 {dimension_numbers = #tpu.dot_dimension_numbers<[1], [0], [0], [1], [0, 0, 1, 1], [], []>} : vector<8x128xf32>, vector<128x384xf32>, vector<8x384xf32> -> vector<8x384xf32>
    %c4 = arith.constant 4 : index
    %c0_142 = arith.constant 0 : index
    %c0_143 = arith.constant 0 : index
    %325 = vector.load %arg1[%c4, %c0_142, %c0_143] : memref<8x8x384xf32, #tpu.memory_space<vmem>>, vector<1x8x384xf32>
    %326 = vector.shape_cast %325 : vector<1x8x384xf32> to vector<8x384xf32>
    %327 = vector.extract_strided_slice %326 {offsets = [0, 0], sizes = [8, 128], strides = [1, 1]} : vector<8x384xf32> to vector<8x128xf32>
    %328 = vector.extract_strided_slice %321 {offsets = [0, 0], sizes = [8, 128], strides = [1, 1]} : vector<8x384xf32> to vector<8x128xf32>
    %329 = arith.addf %327, %328 : vector<8x128xf32>
    %330 = arith.negf %329 : vector<8x128xf32>
    %331 = math.exp %330 : vector<8x128xf32>
    %cst_144 = arith.constant 1.000000e+00 : f32
    %332 = vector.broadcast %cst_144 : f32 to vector<8x128xf32>
    %333 = arith.addf %332, %331 : vector<8x128xf32>
    %334 = arith.divf %332, %333 : vector<8x128xf32>
    %335 = vector.extract_strided_slice %326 {offsets = [0, 128], sizes = [8, 128], strides = [1, 1]} : vector<8x384xf32> to vector<8x128xf32>
    %336 = vector.extract_strided_slice %321 {offsets = [0, 128], sizes = [8, 128], strides = [1, 1]} : vector<8x384xf32> to vector<8x128xf32>
    %337 = arith.addf %335, %336 : vector<8x128xf32>
    %338 = arith.negf %337 : vector<8x128xf32>
    %339 = math.exp %338 : vector<8x128xf32>
    %cst_145 = arith.constant 1.000000e+00 : f32
    %340 = vector.broadcast %cst_145 : f32 to vector<8x128xf32>
    %341 = arith.addf %340, %339 : vector<8x128xf32>
    %342 = arith.divf %340, %341 : vector<8x128xf32>
    %343 = vector.extract_strided_slice %326 {offsets = [0, 256], sizes = [8, 128], strides = [1, 1]} : vector<8x384xf32> to vector<8x128xf32>
    %344 = vector.extract_strided_slice %321 {offsets = [0, 256], sizes = [8, 128], strides = [1, 1]} : vector<8x384xf32> to vector<8x128xf32>
    %c0_146 = arith.constant 0 : index
    %c0_147 = arith.constant 0 : index
    %c0_148 = arith.constant 0 : index
    %345 = vector.load %arg6[%c0_146, %c0_147, %c0_148] : memref<2x1x128xf32, #tpu.memory_space<vmem>>, vector<1x1x128xf32>
    %346 = vector.shape_cast %345 : vector<1x1x128xf32> to vector<1x128xf32>
    %347 = vector.broadcast %346 : vector<1x128xf32> to vector<8x128xf32>
    %348 = arith.addf %344, %347 : vector<8x128xf32>
    %349 = arith.mulf %334, %348 : vector<8x128xf32>
    %350 = arith.addf %343, %349 : vector<8x128xf32>
    %351 = math.tanh %350 : vector<8x128xf32>
    %cst_149 = arith.constant 1.000000e+00 : f32
    %352 = vector.broadcast %cst_149 : f32 to vector<8x128xf32>
    %353 = arith.subf %352, %342 : vector<8x128xf32>
    %354 = arith.mulf %353, %351 : vector<8x128xf32>
    %355 = arith.mulf %342, %278 : vector<8x128xf32>
    %356 = arith.addf %354, %355 : vector<8x128xf32>
    %c0_150 = arith.constant 0 : index
    %c0_151 = arith.constant 0 : index
    %c0_152 = arith.constant 0 : index
    %357 = vector.load %arg3[%c0_150, %c0_151, %c0_152] : memref<1x128x384xf32, #tpu.memory_space<vmem>>, vector<1x128x384xf32>
    %358 = vector.shape_cast %357 : vector<1x128x384xf32> to vector<128x384xf32>
    %cst_153 = arith.constant dense<0.000000e+00> : vector<8x384xf32>
    %359 = tpu.matmul %356, %358, %cst_153 {dimension_numbers = #tpu.dot_dimension_numbers<[1], [0], [0], [1], [0, 0, 1, 1], [], []>} : vector<8x128xf32>, vector<128x384xf32>, vector<8x384xf32> -> vector<8x384xf32>
    %c1_154 = arith.constant 1 : index
    %c0_155 = arith.constant 0 : index
    %c0_156 = arith.constant 0 : index
    %360 = vector.load %arg5[%c1_154, %c0_155, %c0_156] : memref<2x1x384xf32, #tpu.memory_space<vmem>>, vector<1x1x384xf32>
    %361 = vector.shape_cast %360 : vector<1x1x384xf32> to vector<1x384xf32>
    %362 = vector.broadcast %361 : vector<1x384xf32> to vector<8x384xf32>
    %363 = arith.addf %359, %362 : vector<8x384xf32>
    %364 = vector.extract_strided_slice %363 {offsets = [0, 0], sizes = [8, 128], strides = [1, 1]} : vector<8x384xf32> to vector<8x128xf32>
    %365 = vector.extract_strided_slice %324 {offsets = [0, 0], sizes = [8, 128], strides = [1, 1]} : vector<8x384xf32> to vector<8x128xf32>
    %366 = arith.addf %364, %365 : vector<8x128xf32>
    %367 = arith.negf %366 : vector<8x128xf32>
    %368 = math.exp %367 : vector<8x128xf32>
    %cst_157 = arith.constant 1.000000e+00 : f32
    %369 = vector.broadcast %cst_157 : f32 to vector<8x128xf32>
    %370 = arith.addf %369, %368 : vector<8x128xf32>
    %371 = arith.divf %369, %370 : vector<8x128xf32>
    %372 = vector.extract_strided_slice %363 {offsets = [0, 128], sizes = [8, 128], strides = [1, 1]} : vector<8x384xf32> to vector<8x128xf32>
    %373 = vector.extract_strided_slice %324 {offsets = [0, 128], sizes = [8, 128], strides = [1, 1]} : vector<8x384xf32> to vector<8x128xf32>
    %374 = arith.addf %372, %373 : vector<8x128xf32>
    %375 = arith.negf %374 : vector<8x128xf32>
    %376 = math.exp %375 : vector<8x128xf32>
    %cst_158 = arith.constant 1.000000e+00 : f32
    %377 = vector.broadcast %cst_158 : f32 to vector<8x128xf32>
    %378 = arith.addf %377, %376 : vector<8x128xf32>
    %379 = arith.divf %377, %378 : vector<8x128xf32>
    %380 = vector.extract_strided_slice %363 {offsets = [0, 256], sizes = [8, 128], strides = [1, 1]} : vector<8x384xf32> to vector<8x128xf32>
    %381 = vector.extract_strided_slice %324 {offsets = [0, 256], sizes = [8, 128], strides = [1, 1]} : vector<8x384xf32> to vector<8x128xf32>
    %c1_159 = arith.constant 1 : index
    %c0_160 = arith.constant 0 : index
    %c0_161 = arith.constant 0 : index
    %382 = vector.load %arg6[%c1_159, %c0_160, %c0_161] : memref<2x1x128xf32, #tpu.memory_space<vmem>>, vector<1x1x128xf32>
    %383 = vector.shape_cast %382 : vector<1x1x128xf32> to vector<1x128xf32>
    %384 = vector.broadcast %383 : vector<1x128xf32> to vector<8x128xf32>
    %385 = arith.addf %381, %384 : vector<8x128xf32>
    %386 = arith.mulf %371, %385 : vector<8x128xf32>
    %387 = arith.addf %380, %386 : vector<8x128xf32>
    %388 = math.tanh %387 : vector<8x128xf32>
    %cst_162 = arith.constant 1.000000e+00 : f32
    %389 = vector.broadcast %cst_162 : f32 to vector<8x128xf32>
    %390 = arith.subf %389, %379 : vector<8x128xf32>
    %391 = arith.mulf %390, %388 : vector<8x128xf32>
    %392 = arith.mulf %379, %315 : vector<8x128xf32>
    %393 = arith.addf %391, %392 : vector<8x128xf32>
    %c4_163 = arith.constant 4 : index
    %c0_164 = arith.constant 0 : index
    %c0_165 = arith.constant 0 : index
    %394 = vector.load %arg7[%c4_163, %c0_164, %c0_165] : memref<8x8x128xf32, #tpu.memory_space<vmem>>, vector<1x8x128xf32>
    %395 = vector.shape_cast %394 : vector<1x8x128xf32> to vector<8x128xf32>
    %396 = vector.shape_cast %393 : vector<8x128xf32> to vector<1x8x128xf32>
    tpu.vector_store %arg7[%c4_163, %c0_164, %c0_165], %396 {strides = array<i32>} : memref<8x8x128xf32, #tpu.memory_space<vmem>>, vector<1x8x128xf32>,
    %c0_166 = arith.constant 0 : index
    %c0_167 = arith.constant 0 : index
    %c0_168 = arith.constant 0 : index
    %397 = vector.load %arg4[%c0_166, %c0_167, %c0_168] : memref<2x128x384xf32, #tpu.memory_space<vmem>>, vector<1x128x384xf32>
    %398 = vector.shape_cast %397 : vector<1x128x384xf32> to vector<128x384xf32>
    %cst_169 = arith.constant dense<0.000000e+00> : vector<8x384xf32>
    %399 = tpu.matmul %356, %398, %cst_169 {dimension_numbers = #tpu.dot_dimension_numbers<[1], [0], [0], [1], [0, 0, 1, 1], [], []>} : vector<8x128xf32>, vector<128x384xf32>, vector<8x384xf32> -> vector<8x384xf32>
    %c1_170 = arith.constant 1 : index
    %c0_171 = arith.constant 0 : index
    %c0_172 = arith.constant 0 : index
    %400 = vector.load %arg4[%c1_170, %c0_171, %c0_172] : memref<2x128x384xf32, #tpu.memory_space<vmem>>, vector<1x128x384xf32>
    %401 = vector.shape_cast %400 : vector<1x128x384xf32> to vector<128x384xf32>
    %cst_173 = arith.constant dense<0.000000e+00> : vector<8x384xf32>
    %402 = tpu.matmul %393, %401, %cst_173 {dimension_numbers = #tpu.dot_dimension_numbers<[1], [0], [0], [1], [0, 0, 1, 1], [], []>} : vector<8x128xf32>, vector<128x384xf32>, vector<8x384xf32> -> vector<8x384xf32>
    %c5 = arith.constant 5 : index
    %c0_174 = arith.constant 0 : index
    %c0_175 = arith.constant 0 : index
    %403 = vector.load %arg1[%c5, %c0_174, %c0_175] : memref<8x8x384xf32, #tpu.memory_space<vmem>>, vector<1x8x384xf32>
    %404 = vector.shape_cast %403 : vector<1x8x384xf32> to vector<8x384xf32>
    %405 = vector.extract_strided_slice %404 {offsets = [0, 0], sizes = [8, 128], strides = [1, 1]} : vector<8x384xf32> to vector<8x128xf32>
    %406 = vector.extract_strided_slice %399 {offsets = [0, 0], sizes = [8, 128], strides = [1, 1]} : vector<8x384xf32> to vector<8x128xf32>
    %407 = arith.addf %405, %406 : vector<8x128xf32>
    %408 = arith.negf %407 : vector<8x128xf32>
    %409 = math.exp %408 : vector<8x128xf32>
    %cst_176 = arith.constant 1.000000e+00 : f32
    %410 = vector.broadcast %cst_176 : f32 to vector<8x128xf32>
    %411 = arith.addf %410, %409 : vector<8x128xf32>
    %412 = arith.divf %410, %411 : vector<8x128xf32>
    %413 = vector.extract_strided_slice %404 {offsets = [0, 128], sizes = [8, 128], strides = [1, 1]} : vector<8x384xf32> to vector<8x128xf32>
    %414 = vector.extract_strided_slice %399 {offsets = [0, 128], sizes = [8, 128], strides = [1, 1]} : vector<8x384xf32> to vector<8x128xf32>
    %415 = arith.addf %413, %414 : vector<8x128xf32>
    %416 = arith.negf %415 : vector<8x128xf32>
    %417 = math.exp %416 : vector<8x128xf32>
    %cst_177 = arith.constant 1.000000e+00 : f32
    %418 = vector.broadcast %cst_177 : f32 to vector<8x128xf32>
    %419 = arith.addf %418, %417 : vector<8x128xf32>
    %420 = arith.divf %418, %419 : vector<8x128xf32>
    %421 = vector.extract_strided_slice %404 {offsets = [0, 256], sizes = [8, 128], strides = [1, 1]} : vector<8x384xf32> to vector<8x128xf32>
    %422 = vector.extract_strided_slice %399 {offsets = [0, 256], sizes = [8, 128], strides = [1, 1]} : vector<8x384xf32> to vector<8x128xf32>
    %c0_178 = arith.constant 0 : index
    %c0_179 = arith.constant 0 : index
    %c0_180 = arith.constant 0 : index
    %423 = vector.load %arg6[%c0_178, %c0_179, %c0_180] : memref<2x1x128xf32, #tpu.memory_space<vmem>>, vector<1x1x128xf32>
    %424 = vector.shape_cast %423 : vector<1x1x128xf32> to vector<1x128xf32>
    %425 = vector.broadcast %424 : vector<1x128xf32> to vector<8x128xf32>
    %426 = arith.addf %422, %425 : vector<8x128xf32>
    %427 = arith.mulf %412, %426 : vector<8x128xf32>
    %428 = arith.addf %421, %427 : vector<8x128xf32>
    %429 = math.tanh %428 : vector<8x128xf32>
    %cst_181 = arith.constant 1.000000e+00 : f32
    %430 = vector.broadcast %cst_181 : f32 to vector<8x128xf32>
    %431 = arith.subf %430, %420 : vector<8x128xf32>
    %432 = arith.mulf %431, %429 : vector<8x128xf32>
    %433 = arith.mulf %420, %356 : vector<8x128xf32>
    %434 = arith.addf %432, %433 : vector<8x128xf32>
    %c0_182 = arith.constant 0 : index
    %c0_183 = arith.constant 0 : index
    %c0_184 = arith.constant 0 : index
    %435 = vector.load %arg3[%c0_182, %c0_183, %c0_184] : memref<1x128x384xf32, #tpu.memory_space<vmem>>, vector<1x128x384xf32>
    %436 = vector.shape_cast %435 : vector<1x128x384xf32> to vector<128x384xf32>
    %cst_185 = arith.constant dense<0.000000e+00> : vector<8x384xf32>
    %437 = tpu.matmul %434, %436, %cst_185 {dimension_numbers = #tpu.dot_dimension_numbers<[1], [0], [0], [1], [0, 0, 1, 1], [], []>} : vector<8x128xf32>, vector<128x384xf32>, vector<8x384xf32> -> vector<8x384xf32>
    %c1_186 = arith.constant 1 : index
    %c0_187 = arith.constant 0 : index
    %c0_188 = arith.constant 0 : index
    %438 = vector.load %arg5[%c1_186, %c0_187, %c0_188] : memref<2x1x384xf32, #tpu.memory_space<vmem>>, vector<1x1x384xf32>
    %439 = vector.shape_cast %438 : vector<1x1x384xf32> to vector<1x384xf32>
    %440 = vector.broadcast %439 : vector<1x384xf32> to vector<8x384xf32>
    %441 = arith.addf %437, %440 : vector<8x384xf32>
    %442 = vector.extract_strided_slice %441 {offsets = [0, 0], sizes = [8, 128], strides = [1, 1]} : vector<8x384xf32> to vector<8x128xf32>
    %443 = vector.extract_strided_slice %402 {offsets = [0, 0], sizes = [8, 128], strides = [1, 1]} : vector<8x384xf32> to vector<8x128xf32>
    %444 = arith.addf %442, %443 : vector<8x128xf32>
    %445 = arith.negf %444 : vector<8x128xf32>
    %446 = math.exp %445 : vector<8x128xf32>
    %cst_189 = arith.constant 1.000000e+00 : f32
    %447 = vector.broadcast %cst_189 : f32 to vector<8x128xf32>
    %448 = arith.addf %447, %446 : vector<8x128xf32>
    %449 = arith.divf %447, %448 : vector<8x128xf32>
    %450 = vector.extract_strided_slice %441 {offsets = [0, 128], sizes = [8, 128], strides = [1, 1]} : vector<8x384xf32> to vector<8x128xf32>
    %451 = vector.extract_strided_slice %402 {offsets = [0, 128], sizes = [8, 128], strides = [1, 1]} : vector<8x384xf32> to vector<8x128xf32>
    %452 = arith.addf %450, %451 : vector<8x128xf32>
    %453 = arith.negf %452 : vector<8x128xf32>
    %454 = math.exp %453 : vector<8x128xf32>
    %cst_190 = arith.constant 1.000000e+00 : f32
    %455 = vector.broadcast %cst_190 : f32 to vector<8x128xf32>
    %456 = arith.addf %455, %454 : vector<8x128xf32>
    %457 = arith.divf %455, %456 : vector<8x128xf32>
    %458 = vector.extract_strided_slice %441 {offsets = [0, 256], sizes = [8, 128], strides = [1, 1]} : vector<8x384xf32> to vector<8x128xf32>
    %459 = vector.extract_strided_slice %402 {offsets = [0, 256], sizes = [8, 128], strides = [1, 1]} : vector<8x384xf32> to vector<8x128xf32>
    %c1_191 = arith.constant 1 : index
    %c0_192 = arith.constant 0 : index
    %c0_193 = arith.constant 0 : index
    %460 = vector.load %arg6[%c1_191, %c0_192, %c0_193] : memref<2x1x128xf32, #tpu.memory_space<vmem>>, vector<1x1x128xf32>
    %461 = vector.shape_cast %460 : vector<1x1x128xf32> to vector<1x128xf32>
    %462 = vector.broadcast %461 : vector<1x128xf32> to vector<8x128xf32>
    %463 = arith.addf %459, %462 : vector<8x128xf32>
    %464 = arith.mulf %449, %463 : vector<8x128xf32>
    %465 = arith.addf %458, %464 : vector<8x128xf32>
    %466 = math.tanh %465 : vector<8x128xf32>
    %cst_194 = arith.constant 1.000000e+00 : f32
    %467 = vector.broadcast %cst_194 : f32 to vector<8x128xf32>
    %468 = arith.subf %467, %457 : vector<8x128xf32>
    %469 = arith.mulf %468, %466 : vector<8x128xf32>
    %470 = arith.mulf %457, %393 : vector<8x128xf32>
    %471 = arith.addf %469, %470 : vector<8x128xf32>
    %c5_195 = arith.constant 5 : index
    %c0_196 = arith.constant 0 : index
    %c0_197 = arith.constant 0 : index
    %472 = vector.load %arg7[%c5_195, %c0_196, %c0_197] : memref<8x8x128xf32, #tpu.memory_space<vmem>>, vector<1x8x128xf32>
    %473 = vector.shape_cast %472 : vector<1x8x128xf32> to vector<8x128xf32>
    %474 = vector.shape_cast %471 : vector<8x128xf32> to vector<1x8x128xf32>
    tpu.vector_store %arg7[%c5_195, %c0_196, %c0_197], %474 {strides = array<i32>} : memref<8x8x128xf32, #tpu.memory_space<vmem>>, vector<1x8x128xf32>,
    %c0_198 = arith.constant 0 : index
    %c0_199 = arith.constant 0 : index
    %c0_200 = arith.constant 0 : index
    %475 = vector.load %arg4[%c0_198, %c0_199, %c0_200] : memref<2x128x384xf32, #tpu.memory_space<vmem>>, vector<1x128x384xf32>
    %476 = vector.shape_cast %475 : vector<1x128x384xf32> to vector<128x384xf32>
    %cst_201 = arith.constant dense<0.000000e+00> : vector<8x384xf32>
    %477 = tpu.matmul %434, %476, %cst_201 {dimension_numbers = #tpu.dot_dimension_numbers<[1], [0], [0], [1], [0, 0, 1, 1], [], []>} : vector<8x128xf32>, vector<128x384xf32>, vector<8x384xf32> -> vector<8x384xf32>
    %c1_202 = arith.constant 1 : index
    %c0_203 = arith.constant 0 : index
    %c0_204 = arith.constant 0 : index
    %478 = vector.load %arg4[%c1_202, %c0_203, %c0_204] : memref<2x128x384xf32, #tpu.memory_space<vmem>>, vector<1x128x384xf32>
    %479 = vector.shape_cast %478 : vector<1x128x384xf32> to vector<128x384xf32>
    %cst_205 = arith.constant dense<0.000000e+00> : vector<8x384xf32>
    %480 = tpu.matmul %471, %479, %cst_205 {dimension_numbers = #tpu.dot_dimension_numbers<[1], [0], [0], [1], [0, 0, 1, 1], [], []>} : vector<8x128xf32>, vector<128x384xf32>, vector<8x384xf32> -> vector<8x384xf32>
    %c6 = arith.constant 6 : index
    %c0_206 = arith.constant 0 : index
    %c0_207 = arith.constant 0 : index
    %481 = vector.load %arg1[%c6, %c0_206, %c0_207] : memref<8x8x384xf32, #tpu.memory_space<vmem>>, vector<1x8x384xf32>
    %482 = vector.shape_cast %481 : vector<1x8x384xf32> to vector<8x384xf32>
    %483 = vector.extract_strided_slice %482 {offsets = [0, 0], sizes = [8, 128], strides = [1, 1]} : vector<8x384xf32> to vector<8x128xf32>
    %484 = vector.extract_strided_slice %477 {offsets = [0, 0], sizes = [8, 128], strides = [1, 1]} : vector<8x384xf32> to vector<8x128xf32>
    %485 = arith.addf %483, %484 : vector<8x128xf32>
    %486 = arith.negf %485 : vector<8x128xf32>
    %487 = math.exp %486 : vector<8x128xf32>
    %cst_208 = arith.constant 1.000000e+00 : f32
    %488 = vector.broadcast %cst_208 : f32 to vector<8x128xf32>
    %489 = arith.addf %488, %487 : vector<8x128xf32>
    %490 = arith.divf %488, %489 : vector<8x128xf32>
    %491 = vector.extract_strided_slice %482 {offsets = [0, 128], sizes = [8, 128], strides = [1, 1]} : vector<8x384xf32> to vector<8x128xf32>
    %492 = vector.extract_strided_slice %477 {offsets = [0, 128], sizes = [8, 128], strides = [1, 1]} : vector<8x384xf32> to vector<8x128xf32>
    %493 = arith.addf %491, %492 : vector<8x128xf32>
    %494 = arith.negf %493 : vector<8x128xf32>
    %495 = math.exp %494 : vector<8x128xf32>
    %cst_209 = arith.constant 1.000000e+00 : f32
    %496 = vector.broadcast %cst_209 : f32 to vector<8x128xf32>
    %497 = arith.addf %496, %495 : vector<8x128xf32>
    %498 = arith.divf %496, %497 : vector<8x128xf32>
    %499 = vector.extract_strided_slice %482 {offsets = [0, 256], sizes = [8, 128], strides = [1, 1]} : vector<8x384xf32> to vector<8x128xf32>
    %500 = vector.extract_strided_slice %477 {offsets = [0, 256], sizes = [8, 128], strides = [1, 1]} : vector<8x384xf32> to vector<8x128xf32>
    %c0_210 = arith.constant 0 : index
    %c0_211 = arith.constant 0 : index
    %c0_212 = arith.constant 0 : index
    %501 = vector.load %arg6[%c0_210, %c0_211, %c0_212] : memref<2x1x128xf32, #tpu.memory_space<vmem>>, vector<1x1x128xf32>
    %502 = vector.shape_cast %501 : vector<1x1x128xf32> to vector<1x128xf32>
    %503 = vector.broadcast %502 : vector<1x128xf32> to vector<8x128xf32>
    %504 = arith.addf %500, %503 : vector<8x128xf32>
    %505 = arith.mulf %490, %504 : vector<8x128xf32>
    %506 = arith.addf %499, %505 : vector<8x128xf32>
    %507 = math.tanh %506 : vector<8x128xf32>
    %cst_213 = arith.constant 1.000000e+00 : f32
    %508 = vector.broadcast %cst_213 : f32 to vector<8x128xf32>
    %509 = arith.subf %508, %498 : vector<8x128xf32>
    %510 = arith.mulf %509, %507 : vector<8x128xf32>
    %511 = arith.mulf %498, %434 : vector<8x128xf32>
    %512 = arith.addf %510, %511 : vector<8x128xf32>
    %c0_214 = arith.constant 0 : index
    %c0_215 = arith.constant 0 : index
    %c0_216 = arith.constant 0 : index
    %513 = vector.load %arg3[%c0_214, %c0_215, %c0_216] : memref<1x128x384xf32, #tpu.memory_space<vmem>>, vector<1x128x384xf32>
    %514 = vector.shape_cast %513 : vector<1x128x384xf32> to vector<128x384xf32>
    %cst_217 = arith.constant dense<0.000000e+00> : vector<8x384xf32>
    %515 = tpu.matmul %512, %514, %cst_217 {dimension_numbers = #tpu.dot_dimension_numbers<[1], [0], [0], [1], [0, 0, 1, 1], [], []>} : vector<8x128xf32>, vector<128x384xf32>, vector<8x384xf32> -> vector<8x384xf32>
    %c1_218 = arith.constant 1 : index
    %c0_219 = arith.constant 0 : index
    %c0_220 = arith.constant 0 : index
    %516 = vector.load %arg5[%c1_218, %c0_219, %c0_220] : memref<2x1x384xf32, #tpu.memory_space<vmem>>, vector<1x1x384xf32>
    %517 = vector.shape_cast %516 : vector<1x1x384xf32> to vector<1x384xf32>
    %518 = vector.broadcast %517 : vector<1x384xf32> to vector<8x384xf32>
    %519 = arith.addf %515, %518 : vector<8x384xf32>
    %520 = vector.extract_strided_slice %519 {offsets = [0, 0], sizes = [8, 128], strides = [1, 1]} : vector<8x384xf32> to vector<8x128xf32>
    %521 = vector.extract_strided_slice %480 {offsets = [0, 0], sizes = [8, 128], strides = [1, 1]} : vector<8x384xf32> to vector<8x128xf32>
    %522 = arith.addf %520, %521 : vector<8x128xf32>
    %523 = arith.negf %522 : vector<8x128xf32>
    %524 = math.exp %523 : vector<8x128xf32>
    %cst_221 = arith.constant 1.000000e+00 : f32
    %525 = vector.broadcast %cst_221 : f32 to vector<8x128xf32>
    %526 = arith.addf %525, %524 : vector<8x128xf32>
    %527 = arith.divf %525, %526 : vector<8x128xf32>
    %528 = vector.extract_strided_slice %519 {offsets = [0, 128], sizes = [8, 128], strides = [1, 1]} : vector<8x384xf32> to vector<8x128xf32>
    %529 = vector.extract_strided_slice %480 {offsets = [0, 128], sizes = [8, 128], strides = [1, 1]} : vector<8x384xf32> to vector<8x128xf32>
    %530 = arith.addf %528, %529 : vector<8x128xf32>
    %531 = arith.negf %530 : vector<8x128xf32>
    %532 = math.exp %531 : vector<8x128xf32>
    %cst_222 = arith.constant 1.000000e+00 : f32
    %533 = vector.broadcast %cst_222 : f32 to vector<8x128xf32>
    %534 = arith.addf %533, %532 : vector<8x128xf32>
    %535 = arith.divf %533, %534 : vector<8x128xf32>
    %536 = vector.extract_strided_slice %519 {offsets = [0, 256], sizes = [8, 128], strides = [1, 1]} : vector<8x384xf32> to vector<8x128xf32>
    %537 = vector.extract_strided_slice %480 {offsets = [0, 256], sizes = [8, 128], strides = [1, 1]} : vector<8x384xf32> to vector<8x128xf32>
    %c1_223 = arith.constant 1 : index
    %c0_224 = arith.constant 0 : index
    %c0_225 = arith.constant 0 : index
    %538 = vector.load %arg6[%c1_223, %c0_224, %c0_225] : memref<2x1x128xf32, #tpu.memory_space<vmem>>, vector<1x1x128xf32>
    %539 = vector.shape_cast %538 : vector<1x1x128xf32> to vector<1x128xf32>
    %540 = vector.broadcast %539 : vector<1x128xf32> to vector<8x128xf32>
    %541 = arith.addf %537, %540 : vector<8x128xf32>
    %542 = arith.mulf %527, %541 : vector<8x128xf32>
    %543 = arith.addf %536, %542 : vector<8x128xf32>
    %544 = math.tanh %543 : vector<8x128xf32>
    %cst_226 = arith.constant 1.000000e+00 : f32
    %545 = vector.broadcast %cst_226 : f32 to vector<8x128xf32>
    %546 = arith.subf %545, %535 : vector<8x128xf32>
    %547 = arith.mulf %546, %544 : vector<8x128xf32>
    %548 = arith.mulf %535, %471 : vector<8x128xf32>
    %549 = arith.addf %547, %548 : vector<8x128xf32>
    %c6_227 = arith.constant 6 : index
    %c0_228 = arith.constant 0 : index
    %c0_229 = arith.constant 0 : index
    %550 = vector.load %arg7[%c6_227, %c0_228, %c0_229] : memref<8x8x128xf32, #tpu.memory_space<vmem>>, vector<1x8x128xf32>
    %551 = vector.shape_cast %550 : vector<1x8x128xf32> to vector<8x128xf32>
    %552 = vector.shape_cast %549 : vector<8x128xf32> to vector<1x8x128xf32>
    tpu.vector_store %arg7[%c6_227, %c0_228, %c0_229], %552 {strides = array<i32>} : memref<8x8x128xf32, #tpu.memory_space<vmem>>, vector<1x8x128xf32>,
    %c0_230 = arith.constant 0 : index
    %c0_231 = arith.constant 0 : index
    %c0_232 = arith.constant 0 : index
    %553 = vector.load %arg4[%c0_230, %c0_231, %c0_232] : memref<2x128x384xf32, #tpu.memory_space<vmem>>, vector<1x128x384xf32>
    %554 = vector.shape_cast %553 : vector<1x128x384xf32> to vector<128x384xf32>
    %cst_233 = arith.constant dense<0.000000e+00> : vector<8x384xf32>
    %555 = tpu.matmul %512, %554, %cst_233 {dimension_numbers = #tpu.dot_dimension_numbers<[1], [0], [0], [1], [0, 0, 1, 1], [], []>} : vector<8x128xf32>, vector<128x384xf32>, vector<8x384xf32> -> vector<8x384xf32>
    %c1_234 = arith.constant 1 : index
    %c0_235 = arith.constant 0 : index
    %c0_236 = arith.constant 0 : index
    %556 = vector.load %arg4[%c1_234, %c0_235, %c0_236] : memref<2x128x384xf32, #tpu.memory_space<vmem>>, vector<1x128x384xf32>
    %557 = vector.shape_cast %556 : vector<1x128x384xf32> to vector<128x384xf32>
    %cst_237 = arith.constant dense<0.000000e+00> : vector<8x384xf32>
    %558 = tpu.matmul %549, %557, %cst_237 {dimension_numbers = #tpu.dot_dimension_numbers<[1], [0], [0], [1], [0, 0, 1, 1], [], []>} : vector<8x128xf32>, vector<128x384xf32>, vector<8x384xf32> -> vector<8x384xf32>
    %c7 = arith.constant 7 : index
    %c0_238 = arith.constant 0 : index
    %c0_239 = arith.constant 0 : index
    %559 = vector.load %arg1[%c7, %c0_238, %c0_239] : memref<8x8x384xf32, #tpu.memory_space<vmem>>, vector<1x8x384xf32>
    %560 = vector.shape_cast %559 : vector<1x8x384xf32> to vector<8x384xf32>
    %561 = vector.extract_strided_slice %560 {offsets = [0, 0], sizes = [8, 128], strides = [1, 1]} : vector<8x384xf32> to vector<8x128xf32>
    %562 = vector.extract_strided_slice %555 {offsets = [0, 0], sizes = [8, 128], strides = [1, 1]} : vector<8x384xf32> to vector<8x128xf32>
    %563 = arith.addf %561, %562 : vector<8x128xf32>
    %564 = arith.negf %563 : vector<8x128xf32>
    %565 = math.exp %564 : vector<8x128xf32>
    %cst_240 = arith.constant 1.000000e+00 : f32
    %566 = vector.broadcast %cst_240 : f32 to vector<8x128xf32>
    %567 = arith.addf %566, %565 : vector<8x128xf32>
    %568 = arith.divf %566, %567 : vector<8x128xf32>
    %569 = vector.extract_strided_slice %560 {offsets = [0, 128], sizes = [8, 128], strides = [1, 1]} : vector<8x384xf32> to vector<8x128xf32>
    %570 = vector.extract_strided_slice %555 {offsets = [0, 128], sizes = [8, 128], strides = [1, 1]} : vector<8x384xf32> to vector<8x128xf32>
    %571 = arith.addf %569, %570 : vector<8x128xf32>
    %572 = arith.negf %571 : vector<8x128xf32>
    %573 = math.exp %572 : vector<8x128xf32>
    %cst_241 = arith.constant 1.000000e+00 : f32
    %574 = vector.broadcast %cst_241 : f32 to vector<8x128xf32>
    %575 = arith.addf %574, %573 : vector<8x128xf32>
    %576 = arith.divf %574, %575 : vector<8x128xf32>
    %577 = vector.extract_strided_slice %560 {offsets = [0, 256], sizes = [8, 128], strides = [1, 1]} : vector<8x384xf32> to vector<8x128xf32>
    %578 = vector.extract_strided_slice %555 {offsets = [0, 256], sizes = [8, 128], strides = [1, 1]} : vector<8x384xf32> to vector<8x128xf32>
    %c0_242 = arith.constant 0 : index
    %c0_243 = arith.constant 0 : index
    %c0_244 = arith.constant 0 : index
    %579 = vector.load %arg6[%c0_242, %c0_243, %c0_244] : memref<2x1x128xf32, #tpu.memory_space<vmem>>, vector<1x1x128xf32>
    %580 = vector.shape_cast %579 : vector<1x1x128xf32> to vector<1x128xf32>
    %581 = vector.broadcast %580 : vector<1x128xf32> to vector<8x128xf32>
    %582 = arith.addf %578, %581 : vector<8x128xf32>
    %583 = arith.mulf %568, %582 : vector<8x128xf32>
    %584 = arith.addf %577, %583 : vector<8x128xf32>
    %585 = math.tanh %584 : vector<8x128xf32>
    %cst_245 = arith.constant 1.000000e+00 : f32
    %586 = vector.broadcast %cst_245 : f32 to vector<8x128xf32>
    %587 = arith.subf %586, %576 : vector<8x128xf32>
    %588 = arith.mulf %587, %585 : vector<8x128xf32>
    %589 = arith.mulf %576, %512 : vector<8x128xf32>
    %590 = arith.addf %588, %589 : vector<8x128xf32>
    %c0_246 = arith.constant 0 : index
    %c0_247 = arith.constant 0 : index
    %c0_248 = arith.constant 0 : index
    %591 = vector.load %arg3[%c0_246, %c0_247, %c0_248] : memref<1x128x384xf32, #tpu.memory_space<vmem>>, vector<1x128x384xf32>
    %592 = vector.shape_cast %591 : vector<1x128x384xf32> to vector<128x384xf32>
    %cst_249 = arith.constant dense<0.000000e+00> : vector<8x384xf32>
    %593 = tpu.matmul %590, %592, %cst_249 {dimension_numbers = #tpu.dot_dimension_numbers<[1], [0], [0], [1], [0, 0, 1, 1], [], []>} : vector<8x128xf32>, vector<128x384xf32>, vector<8x384xf32> -> vector<8x384xf32>
    %c1_250 = arith.constant 1 : index
    %c0_251 = arith.constant 0 : index
    %c0_252 = arith.constant 0 : index
    %594 = vector.load %arg5[%c1_250, %c0_251, %c0_252] : memref<2x1x384xf32, #tpu.memory_space<vmem>>, vector<1x1x384xf32>
    %595 = vector.shape_cast %594 : vector<1x1x384xf32> to vector<1x384xf32>
    %596 = vector.broadcast %595 : vector<1x384xf32> to vector<8x384xf32>
    %597 = arith.addf %593, %596 : vector<8x384xf32>
    %598 = vector.extract_strided_slice %597 {offsets = [0, 0], sizes = [8, 128], strides = [1, 1]} : vector<8x384xf32> to vector<8x128xf32>
    %599 = vector.extract_strided_slice %558 {offsets = [0, 0], sizes = [8, 128], strides = [1, 1]} : vector<8x384xf32> to vector<8x128xf32>
    %600 = arith.addf %598, %599 : vector<8x128xf32>
    %601 = arith.negf %600 : vector<8x128xf32>
    %602 = math.exp %601 : vector<8x128xf32>
    %cst_253 = arith.constant 1.000000e+00 : f32
    %603 = vector.broadcast %cst_253 : f32 to vector<8x128xf32>
    %604 = arith.addf %603, %602 : vector<8x128xf32>
    %605 = arith.divf %603, %604 : vector<8x128xf32>
    %606 = vector.extract_strided_slice %597 {offsets = [0, 128], sizes = [8, 128], strides = [1, 1]} : vector<8x384xf32> to vector<8x128xf32>
    %607 = vector.extract_strided_slice %558 {offsets = [0, 128], sizes = [8, 128], strides = [1, 1]} : vector<8x384xf32> to vector<8x128xf32>
    %608 = arith.addf %606, %607 : vector<8x128xf32>
    %609 = arith.negf %608 : vector<8x128xf32>
    %610 = math.exp %609 : vector<8x128xf32>
    %cst_254 = arith.constant 1.000000e+00 : f32
    %611 = vector.broadcast %cst_254 : f32 to vector<8x128xf32>
    %612 = arith.addf %611, %610 : vector<8x128xf32>
    %613 = arith.divf %611, %612 : vector<8x128xf32>
    %614 = vector.extract_strided_slice %597 {offsets = [0, 256], sizes = [8, 128], strides = [1, 1]} : vector<8x384xf32> to vector<8x128xf32>
    %615 = vector.extract_strided_slice %558 {offsets = [0, 256], sizes = [8, 128], strides = [1, 1]} : vector<8x384xf32> to vector<8x128xf32>
    %c1_255 = arith.constant 1 : index
    %c0_256 = arith.constant 0 : index
    %c0_257 = arith.constant 0 : index
    %616 = vector.load %arg6[%c1_255, %c0_256, %c0_257] : memref<2x1x128xf32, #tpu.memory_space<vmem>>, vector<1x1x128xf32>
    %617 = vector.shape_cast %616 : vector<1x1x128xf32> to vector<1x128xf32>
    %618 = vector.broadcast %617 : vector<1x128xf32> to vector<8x128xf32>
    %619 = arith.addf %615, %618 : vector<8x128xf32>
    %620 = arith.mulf %605, %619 : vector<8x128xf32>
    %621 = arith.addf %614, %620 : vector<8x128xf32>
    %622 = math.tanh %621 : vector<8x128xf32>
    %cst_258 = arith.constant 1.000000e+00 : f32
    %623 = vector.broadcast %cst_258 : f32 to vector<8x128xf32>
    %624 = arith.subf %623, %613 : vector<8x128xf32>
    %625 = arith.mulf %624, %622 : vector<8x128xf32>
    %626 = arith.mulf %613, %549 : vector<8x128xf32>
    %627 = arith.addf %625, %626 : vector<8x128xf32>
    %c7_259 = arith.constant 7 : index
    %c0_260 = arith.constant 0 : index
    %c0_261 = arith.constant 0 : index
    %628 = vector.load %arg7[%c7_259, %c0_260, %c0_261] : memref<8x8x128xf32, #tpu.memory_space<vmem>>, vector<1x8x128xf32>
    %629 = vector.shape_cast %628 : vector<1x8x128xf32> to vector<8x128xf32>
    %630 = vector.shape_cast %627 : vector<8x128xf32> to vector<1x8x128xf32>
    tpu.vector_store %arg7[%c7_259, %c0_260, %c0_261], %630 {strides = array<i32>} : memref<8x8x128xf32, #tpu.memory_space<vmem>>, vector<1x8x128xf32>,
    %c0_262 = arith.constant 0 : index
    %c0_263 = arith.constant 0 : index
    %c0_264 = arith.constant 0 : index
    %631 = vector.load %arg8[%c0_262, %c0_263, %c0_264] : memref<2x8x128xf32, #tpu.memory_space<vmem>>, vector<1x8x128xf32>
    %632 = vector.shape_cast %631 : vector<1x8x128xf32> to vector<8x128xf32>
    %633 = vector.shape_cast %590 : vector<8x128xf32> to vector<1x8x128xf32>
    tpu.vector_store %arg8[%c0_262, %c0_263, %c0_264], %633 {strides = array<i32>} : memref<2x8x128xf32, #tpu.memory_space<vmem>>, vector<1x8x128xf32>,
    %c1_265 = arith.constant 1 : index
    %c0_266 = arith.constant 0 : index
    %c0_267 = arith.constant 0 : index
    %634 = vector.load %arg8[%c1_265, %c0_266, %c0_267] : memref<2x8x128xf32, #tpu.memory_space<vmem>>, vector<1x8x128xf32>
    %635 = vector.shape_cast %634 : vector<1x8x128xf32> to vector<8x128xf32>
    %636 = vector.shape_cast %627 : vector<8x128xf32> to vector<1x8x128xf32>
    tpu.vector_store %arg8[%c1_265, %c0_266, %c0_267], %636 {strides = array<i32>} : memref<2x8x128xf32, #tpu.memory_space<vmem>>, vector<1x8x128xf32>,
    return
  }
  func.func @transform_0(%arg0: i32) -> (i32, i32, i32) {
    %c0_i32 = arith.constant 0 : i32
    %c0_i32_0 = arith.constant 0 : i32
    %c0_i32_1 = arith.constant 0 : i32
    return %arg0, %c0_i32, %c0_i32_0 : i32, i32, i32
  }
  func.func @transform_1(%arg0: i32) -> (i32, i32, i32) {
    %c0_i32 = arith.constant 0 : i32
    %c0_i32_0 = arith.constant 0 : i32
    %c0_i32_1 = arith.constant 0 : i32
    %c0_i32_2 = arith.constant 0 : i32
    return %c0_i32, %c0_i32_0, %c0_i32_1 : i32, i32, i32
  }
  func.func @transform_2(%arg0: i32) -> (i32, i32, i32) {
    %c0_i32 = arith.constant 0 : i32
    %c0_i32_0 = arith.constant 0 : i32
    %c0_i32_1 = arith.constant 0 : i32
    %c0_i32_2 = arith.constant 0 : i32
    return %c0_i32, %c0_i32_0, %c0_i32_1 : i32, i32, i32
  }
  func.func @transform_3(%arg0: i32) -> (i32, i32, i32) {
    %c0_i32 = arith.constant 0 : i32
    %c0_i32_0 = arith.constant 0 : i32
    %c0_i32_1 = arith.constant 0 : i32
    %c0_i32_2 = arith.constant 0 : i32
    return %c0_i32, %c0_i32_0, %c0_i32_1 : i32, i32, i32
  }
  func.func @transform_4(%arg0: i32) -> (i32, i32, i32) {
    %c0_i32 = arith.constant 0 : i32
    %c0_i32_0 = arith.constant 0 : i32
    %c0_i32_1 = arith.constant 0 : i32
    %c0_i32_2 = arith.constant 0 : i32
    return %c0_i32, %c0_i32_0, %c0_i32_1 : i32, i32, i32
  }
  func.func @transform_5(%arg0: i32) -> (i32, i32, i32) {
    %c0_i32 = arith.constant 0 : i32
    %c0_i32_0 = arith.constant 0 : i32
    %c0_i32_1 = arith.constant 0 : i32
    %c0_i32_2 = arith.constant 0 : i32
    return %c0_i32, %c0_i32_0, %c0_i32_1 : i32, i32, i32
  }
  func.func @transform_6(%arg0: i32) -> (i32, i32, i32) {
    %c0_i32 = arith.constant 0 : i32
    %c0_i32_0 = arith.constant 0 : i32
    %c0_i32_1 = arith.constant 0 : i32
    return %arg0, %c0_i32, %c0_i32_0 : i32, i32, i32
  }
  func.func @transform_7(%arg0: i32) -> (i32, i32, i32) {
    %c0_i32 = arith.constant 0 : i32
    %c0_i32_0 = arith.constant 0 : i32
    %c0_i32_1 = arith.constant 0 : i32
    %c0_i32_2 = arith.constant 0 : i32
    return %c0_i32, %c0_i32_0, %c0_i32_1 : i32, i32, i32
  }
}

</mosaic_0001>

<bundles_post_ra>
// kernel: tpu_custom_call.1
= control target key start
LH: loop header
LB: loop body
LE: loop exit
PB: predicated region body
PF: predicated region fallthrough
CT: control target
= control target key end

     0   :  { %13 = vsyncpa [#allocation3], 0  ;;  %s6954_s0 = inlined_call_operand.hbm [shape: f32[8,8,384], index: 0, kind: input, shape index: {}]   ;;  %s6955_s1 = inlined_call_operand.hbm [shape: f32[2,8,128], index: 1, kind: input, shape index: {}]   ;;  %s6956_s2 = inlined_call_operand.hbm [shape: f32[1,128,384], index: 2, kind: input, shape index: {}]   ;;  %s6957_s3 = inlined_call_operand.hbm [shape: f32[2,128,384], index: 3, kind: input, shape index: {}]   ;;  %s6958_s4 = inlined_call_operand.hbm [shape: f32[2,1,384], index: 4, kind: input, shape index: {}]   ;;  %s6959_s5 = inlined_call_operand.vmem [shape: f32[2,1,128], index: 5, kind: input, shape index: {}]   ;;  %s6960_s6 = inlined_call_operand.hbm [shape: f32[8,8,128], index: 6, kind: output, shape index: {0}]   ;;  %s6961_s7 = inlined_call_operand.hbm [shape: f32[2,8,128], index: 7, kind: output, shape index: {1}]  }
   0x1   :  { %14 = vsyncpa [#allocation6], 0 }
   0x2   :  { %15 = vsyncpa [#allocation9], 0 }
   0x3   :  { %16 = vsyncpa [#allocation4], 0  ;;  %s35_s26 = sshll.u32 %s6955_s1, 4  ;;  %s36_s26 = int_to_ptr.hbm [resolvable:$true] %s35_s26 }
   0x4   :  { %17 = vsyncpa [#allocation13], 0  ;;  %s4101_s27 = smov [#allocation5]   ;;  %s4102_s29 = smov 128  }
   0x5   :  { %s37_s28 = sshll.u32 %s4101_s27, 4  ;;  %s4103_s30 = smov 8   ;;  %s38_s28 = int_to_ptr.vmem [resolvable:$true] %s37_s28 }
   0x6   :  { %43 = dma.hbm_to_vmem [thread:$0]  %s36_s26, 256, %s38_s28, [#allocation6], %s4102_s29, %s4102_s29, %s4103_s30  }
   0x7   :  { %s61_s10 = sshll.u32 %s6957_s3, 4  ;;  %s4104_s11 = smov [#allocation8]   ;;  %s62_s10 = int_to_ptr.hbm [resolvable:$true] %s61_s10 }
   0x8   :  { %s63_s12 = sshll.u32 %s4104_s11, 4  ;;  %s22_s14 = sshll.u32 %s6954_s0, 4  ;;  %s64_s12 = int_to_ptr.vmem [resolvable:$true] %s63_s12  ;;  %s23_s14 = int_to_ptr.hbm [resolvable:$true] %s22_s14 }
   0x9   :  { %s4105_s15 = smov 384   ;;  %s4106_s16 = smov 24  }
   0xa   :  { %69 = dma.hbm_to_vmem [thread:$0]  %s62_s10, 12288, %s64_s12, [#allocation9], %s4105_s15, %s4105_s15, %s4106_s16  }
   0xb   :  { %s48_s19 = sshll.u32 %s6956_s2, 4  ;;  %s4107_s20 = smov [#allocation2]   ;;  %s49_s19 = int_to_ptr.hbm [resolvable:$true] %s48_s19 }
   0xc   :  { %s24_s21 = sshll.u32 %s4107_s20, 4  ;;  %s4108_s3 = smov [#allocation7]   ;;  %s25_s21 = int_to_ptr.vmem [resolvable:$true] %s24_s21 }
   0xd   :  { %30 = dma.hbm_to_vmem [thread:$0]  %s23_s14, 3072, %s25_s21, [#allocation3], %s4105_s15, %s4105_s15, %s4106_s16  }
   0xe   :  { %s50_s22 = sshll.u32 %s4108_s3, 4  ;;  %s74_s0 = sshll.u32 %s6958_s4, 4  ;;  %s51_s22 = int_to_ptr.vmem [resolvable:$true] %s50_s22  ;;  %s75_s0 = int_to_ptr.hbm [resolvable:$true] %s74_s0 }
   0xf   :  { %56 = dma.hbm_to_vmem [thread:$0]  %s49_s19, 6144, %s51_s22, [#allocation6], %s4105_s15, %s4105_s15, %s4106_s16  }
  0x10   :  { %s4109_s25 = smov [#allocation10]   ;;  %s4110_s27 = smov 48  }
  0x11   :  { %s76_s26 = sshll.u32 %s4109_s25, 4  ;;  %s4111_s28 = smov 3   ;;  %s77_s26 = int_to_ptr.vmem [resolvable:$true] %s76_s26 }
  0x12   :  { %82 = dma.hbm_to_vmem [thread:$0]  %s75_s0, 96, %s77_s26, [#allocation9], %s4110_s27, %s4110_s27, %s4111_s28  }
  0x13   :  { %4091 = dma.done.wait [#allocation3], 3072  }
  0x14   :  { %4092 = vsyncadd [#allocation3], 4294964224 }
  0x15   :  { %4093 = dma.done.wait [#allocation6], 6400  }
  0x16   :  { %4094 = vsyncadd [#allocation6], 4294960896 }
  0x17   :  { %4095 = dma.done.wait [#allocation9], 12384  }
  0x18   :  { %4096 = vsyncadd [#allocation9], 4294954912  ;;  %v4172_v0 = vld [vmem:[#allocation8 + $0x168] sm:$0xff]  ;;  %v4174_v1 = vld [vmem:[#allocation8 + $0x170] sm:$0xff]  ;;  %s3661_s14 = sshll.u32 %s6960_s6, 4  ;;  %s4113_s15 = smov [#allocation12]   ;;  %s3662_s14 = int_to_ptr.hbm [resolvable:$true] %s3661_s14 }
  0x19   :  { %v4176_v2 = vld [vmem:[#allocation8 + $0x150] sm:$0xff]  ;;  %164 = vmatpush.msra.mxu0 %v4172_v0  ;;  %184 = vmatpush.msra.mxu1 %v4174_v1  ;;  %v4180_v3 = vld [vmem:[#allocation8 + $0x158] sm:$0xff]  ;;  %v4184_v5 = vld [vmem:[#allocation8 + $0x140] sm:$0xff]  ;;  %s3672_s16 = sshll.u32 %s4113_s15, 4  ;;  %s3674_s19 = sshll.u32 %s6961_s7, 4  ;;  %s3673_s16 = int_to_ptr.vmem [resolvable:$true] %s3672_s16  ;;  %s3675_s19 = int_to_ptr.hbm [resolvable:$true] %s3674_s19 }
  0x1a   :  { %v4182_v4 = vld [vmem:[#allocation8 + $0x138] sm:$0xff]  ;;  %v4188_v6 = vld [vmem:[#allocation8 + $0x120] sm:$0xff]  ;;  %v4190_v7 = vld [vmem:[#allocation8 + $0x128] sm:$0xff] }
  0x1b   :  { %165 = vmatpush.msra.mxu0 %v4176_v2  ;;  %185 = vmatpush.msra.mxu1 %v4180_v3  ;;  %v4194_v8 = vld [vmem:[#allocation8 + $0x108] sm:$0xff]  ;;  %v4196_v9 = vld [vmem:[#allocation8 + $0x110] sm:$0xff]  ;;  %v4202_v11 = vld [vmem:[#allocation8 + $0xf8] sm:$0xff] }
  0x1c   :  { %v4200_v10 = vld [vmem:[#allocation8 + $0xf0] sm:$0xff]  ;;  %v4204_v12 = vld [vmem:[#allocation8 + $0x178] sm:$0xff]  ;;  %v4208_v13 = vld [vmem:[#allocation8 + $0x160] sm:$0xff] }
  0x1d   :  { %166 = vmatpush.msra.mxu0 %v4182_v4  ;;  %186 = vmatpush.msra.mxu1 %v4184_v5  ;;  %v4210_v14 = vld [vmem:[#allocation8 + $0xd8] sm:$0xff]  ;;  %v4212_v15 = vld [vmem:[#allocation8 + $0xe0] sm:$0xff]  ;;  %v4217_v16 = vld [vmem:[#allocation8 + $0x148] sm:$0xff] }
  0x1e   :  { %204 = vmatpush.msra.mxu2 %v4204_v12  ;;  %v4219_v17 = vld [vmem:[#allocation8 + $0xc0] sm:$0xff]  ;;  %v4221_v18 = vld [vmem:[#allocation8 + $0xc8] sm:$0xff]  ;;  %v4226_v19 = vld [vmem:[#allocation8 + $0x130] sm:$0xff] }
  0x1f   :  { %167 = vmatpush.msra.mxu0 %v4188_v6  ;;  %187 = vmatpush.msra.mxu1 %v4190_v7  ;;  %v4228_v20 = vld [vmem:[#allocation8 + $0xa8] sm:$0xff]  ;;  %v4230_v21 = vld [vmem:[#allocation8 + $0xb0] sm:$0xff]  ;;  %v4235_v22 = vld [vmem:[#allocation8 + $0x118] sm:$0xff] }
  0x20   :  { %205 = vmatpush.msra.mxu2 %v4208_v13  ;;  %v4237_v23 = vld [vmem:[#allocation8 + $0x90] sm:$0xff]  ;;  %v4239_v24 = vld [vmem:[#allocation8 + $0x98] sm:$0xff]  ;;  %v4242_v25 = vld [vmem:[#allocation8 + $0x2e8] sm:$0xff] }
  0x21   :  { %168 = vmatpush.msra.mxu0 %v4194_v8  ;;  %188 = vmatpush.msra.mxu1 %v4196_v9  ;;  %v4246_v26 = vld [vmem:[#allocation8 + $0x100] sm:$0xff]  ;;  %v4248_v27 = vld [vmem:[#allocation8 + $0x2d0] sm:$0xff]  ;;  %v4250_v28 = vld [vmem:[#allocation8 + $0x78] sm:$0xff] }
  0x22   :  { %206 = vmatpush.msra.mxu2 %v4217_v16  ;;  %v4252_v29 = vld [vmem:[#allocation8 + $0x80] sm:$0xff]  ;;  %273 = vmatpush.msra.mxu3 %v4242_v25  ;;  %v4258_v30 = vld [vmem:[#allocation8 + $0xe8] sm:$0xff]  ;;  %v4260_v31 = vld [vmem:[#allocation8 + $0x2b8] sm:$0xff] }
  0x23   :  { %169 = vmatpush.msra.mxu0 %v4200_v10  ;;  %189 = vmatpush.msra.mxu1 %v4202_v11  ;;  %v4262_v32 = vld [vmem:[#allocation8 + $0x60] sm:$0xff]  ;;  %v4264_v33 = vld [vmem:[#allocation8 + $0x68] sm:$0xff]  ;;  %v4270_v34 = vld [vmem:[#allocation8 + $0xd0] sm:$0xff] }
  0x24   :  { %207 = vmatpush.msra.mxu2 %v4226_v19  ;;  %274 = vmatpush.msra.mxu3 %v4248_v27  ;;  %v4272_v35 = vld [vmem:[#allocation8 + $0x2a0] sm:$0xff]  ;;  %v4274_v36 = vld [vmem:[#allocation8 + $0x48] sm:$0xff]  ;;  %v4276_v37 = vld [vmem:[#allocation8 + $0x50] sm:$0xff] }
  0x25   :  { %170 = vmatpush.msra.mxu0 %v4210_v14  ;;  %190 = vmatpush.msra.mxu1 %v4212_v15  ;;  %7266 = vst [vmem:[#allocation19_spill] sm:$0xff] %v4272_v35  ;;  %v4282_v38 = vld [vmem:[#allocation8 + $0xb8] sm:$0xff]  ;;  %v4284_v39 = vld [vmem:[#allocation8 + $0x288] sm:$0xff]  ;;  %v4286_v40 = vld [vmem:[#allocation8 + $0x30] sm:$0xff] }
  0x26   :  { %208 = vmatpush.msra.mxu2 %v4235_v22  ;;  %275 = vmatpush.msra.mxu3 %v4260_v31  ;;  %7267 = vst [vmem:[#allocation20_spill] sm:$0xff] %v4284_v39  ;;  %v4288_v41 = vld [vmem:[#allocation8 + $0x38] sm:$0xff]  ;;  %v4294_v42 = vld [vmem:[#allocation8 + $0xa0] sm:$0xff]  ;;  %v4296_v43 = vld [vmem:[#allocation8 + $0x270] sm:$0xff] }
  0x27   :  { %171 = vmatpush.msra.mxu0 %v4219_v17  ;;  %191 = vmatpush.msra.mxu1 %v4221_v18  ;;  %7268 = vst [vmem:[#allocation21_spill] sm:$0xff] %v4296_v43  ;;  %v4298_v44 = vld [vmem:[#allocation8 + $0x18] sm:$0xff]  ;;  %v4300_v45 = vld [vmem:[#allocation8 + $0x20] sm:$0xff]  ;;  %v4308_v47 = vld [vmem:[#allocation8 + $0x8] sm:$0xff] }
  0x28   :  { %209 = vmatpush.msra.mxu2 %v4246_v26  ;;  %276 = vmatpush.msra.mxu3 %v4272_v35  ;;  %v4302_v46 = vld [vmem:[#allocation8] sm:$0xff]  ;;  %7269 = vst [vmem:[#allocation22_spill] sm:$0xff] %v4308_v47  ;;  %v4310_v48 = vld [vmem:[#allocation8 + $0x88] sm:$0xff]  ;;  %v4312_v49 = vld [vmem:[#allocation8 + $0x258] sm:$0xff] }
  0x29   :  { %172 = vmatpush.msra.mxu0 %v4228_v20  ;;  %192 = vmatpush.msra.mxu1 %v4230_v21  ;;  %7270 = vst [vmem:[#allocation23_spill] sm:$0xff] %v4312_v49  ;;  %v4314_v50 = vld [vmem:[#allocation5] sm:$0xff]  ;;  %v4320_v52 = vld [vmem:[#allocation8 + $0x240] sm:$0xff]  ;;  %v4326_v54 = vld [vmem:[#allocation8 + $0x2f8] sm:$0xff] }
  0x2a   :  { %210 = vmatpush.msra.mxu2 %v4258_v30  ;;  %277 = vmatpush.msra.mxu3 %v4284_v39  ;;  %7271 = vst [vmem:[#allocation24_spill] sm:$0xff] %v4314_v50  ;;  %v4317_v51 = vld [vmem:[#allocation8 + $0x70] sm:$0xff]  ;;  %v4329_v55 = vld [vmem:[#allocation8 + $0x58] sm:$0xff]  ;;  %v4332_v56 = vld [vmem:[#allocation8 + $0x228] sm:$0xff] }
  0x2b   :  { %173 = vmatpush.msra.mxu0 %v4237_v23  ;;  %193 = vmatpush.msra.mxu1 %v4239_v24  ;;  %7272 = vst [vmem:[#allocation25_spill] sm:$0xff] %v4320_v52  ;;  %v4324_v53 = vld [vmem:[#allocation8 + $0x2f0] sm:$0xff]  ;;  %v4336_v57 = vld [vmem:[#allocation8 + $0x2d8] sm:$0xff]  ;;  %v4338_v58 = vld [vmem:[#allocation8 + $0x2e0] sm:$0xff] }
  0x2c   :  { %211 = vmatpush.msra.mxu2 %v4270_v34  ;;  %278 = vmatpush.msra.mxu3 %v4296_v43  ;;  %7273 = vst [vmem:[#allocation26_spill] sm:$0xff] %v4326_v54  ;;  %v4342_v59 = vld [vmem:[#allocation8 + $0x40] sm:$0xff]  ;;  %v4344_v60 = vld [vmem:[#allocation8 + $0x210] sm:$0xff]  ;;  %v4354_v62 = vld [vmem:[#allocation8 + $0x2c8] sm:$0xff] }
  0x2d   :  { %174 = vmatpush.msra.mxu0 %v4250_v28  ;;  %194 = vmatpush.msra.mxu1 %v4252_v29  ;;  %7274 = vst [vmem:[#allocation27_spill] sm:$0xff] %v4332_v56  ;;  %v4352_v61 = vld [vmem:[#allocation8 + $0x2c0] sm:$0xff]  ;;  %v4356_v63 = vld [vmem:[#allocation8 + $0x28] sm:$0xff] }
  0x2e   :  { %212 = vmatpush.msra.mxu2 %v4282_v38  ;;  %279 = vmatpush.msra.mxu3 %v4312_v49  ;;  %7275 = vst [vmem:[#allocation28_spill] sm:$0xff] %v4338_v58  ;;  %v4358_v49 = vld [vmem:[#allocation8 + $0x1f8] sm:$0xff]  ;;  %v4370_v43 = vld [vmem:[#allocation8 + $0x1e0] sm:$0xff]  ;;  %v4378_v39 = vld [vmem:[#allocation8 + $0x1c8] sm:$0xff] }
  0x2f   :  { %175 = vmatpush.msra.mxu0 %v4262_v32  ;;  %195 = vmatpush.msra.mxu1 %v4264_v33  ;;  %7276 = vst [vmem:[#allocation29_spill] sm:$0xff] %v4344_v60  ;;  %v4394_v35 = vld [vmem:[#allocation8 + $0x280] sm:$0xff] }
  0x30   :  { %213 = vmatpush.msra.mxu2 %v4294_v42  ;;  %280 = vmatpush.msra.mxu3 %v4320_v52  ;;  %7277 = vst [vmem:[#allocation30_spill] sm:$0xff] %v4354_v62  ;;  %v4366_v52 = vld [vmem:[#allocation8 + $0x2b0] sm:$0xff] }
  0x31   :  { %176 = vmatpush.msra.mxu0 %v4274_v36  ;;  %196 = vmatpush.msra.mxu1 %v4276_v37  ;;  %7278 = vst [vmem:[#allocation31_spill] sm:$0xff] %v4358_v49 }
  0x32   :  { %214 = vmatpush.msra.mxu2 %v4310_v48  ;;  %281 = vmatpush.msra.mxu3 %v4332_v56  ;;  %7280 = vst [vmem:[#allocation33_spill] sm:$0xff] %v4366_v52  ;;  %v4368_v56 = vld [vmem:[#allocation8 + $0x10] sm:$0xff] }
  0x33   :  { %177 = vmatpush.msra.mxu0 %v4286_v40  ;;  %197 = vmatpush.msra.mxu1 %v4288_v41  ;;  %7281 = vst [vmem:[#allocation34_spill] sm:$0xff] %v4368_v56 }
  0x34   :  { %215 = vmatpush.msra.mxu2 %v4317_v51  ;;  %282 = vmatpush.msra.mxu3 %v4344_v60  ;;  %7282 = vst [vmem:[#allocation35_spill] sm:$0xff] %v4370_v43  ;;  %v4382_v60 = vld [vmem:[#allocation8 + $0x298] sm:$0xff] }
  0x35   :  { %178 = vmatpush.msra.mxu0 %v4298_v44  ;;  %198 = vmatpush.msra.mxu1 %v4300_v45  ;;  %7284 = vst [vmem:[#allocation37_spill] sm:$0xff] %v4378_v39 }
  0x36   :  { %216 = vmatpush.msra.mxu2 %v4329_v55  ;;  %283 = vmatpush.msra.mxu3 %v4358_v49  ;;  %7285 = vst [vmem:[#allocation38_spill] sm:$0xff] %v4382_v60  ;;  %v4391_v49 = vld [vmem:[#allocation8 + $0x1b0] sm:$0xff] }
  0x37   :  { %179 = vmatpush.msra.mxu0 %v4302_v46  ;;  %199 = vmatpush.msra.mxu1 %v4308_v47  ;;  %v4386_v47 = vld [vmem:[#allocation7 + $0x168] sm:$0xff]  ;;  %7287 = vst [vmem:[#allocation40_spill] sm:$0xff] %v4391_v49 }
  0x38   :  { %180 = vmatmul.f32.vlgmr.msra.gmra.mxu0 %v4314_v50  ;;  %200 = vmatmul.f32.vlgmr.msra.gmra.mxu1 %v4314_v50  ;;  %7286 = vst [vmem:[#allocation39_spill] sm:$0xff] %v4386_v47 }
  0x39   :  { %293 = vmatpush.msrb.mxu0 %v4324_v53  ;;  %313 = vmatpush.msrb.mxu1 %v4326_v54  ;;  %v4364_v54 = vld [vmem:[#allocation8 + $0x2a8] sm:$0xff]  ;;  %7288 = vst [vmem:[#allocation41_spill] sm:$0xff] %v4394_v35 }
  0x3a   :  { %217 = vmatpush.msra.mxu2 %v4342_v59  ;;  %7279 = vst [vmem:[#allocation32_spill] sm:$0xff] %v4364_v54  ;;  %284 = vmatpush.msra.mxu3 %v4370_v43  ;;  %v4402_v43 = vld [vmem:[#allocation8 + $0x198] sm:$0xff] }
  0x3b   :  { %294 = vmatpush.msrb.mxu0 %v4336_v57  ;;  %314 = vmatpush.msrb.mxu1 %v4338_v58  ;;  %v4376_v58 = vld [vmem:[#allocation8 + $0x290] sm:$0xff]  ;;  %7290 = vst [vmem:[#allocation43_spill] sm:$0xff] %v4402_v43 }
  0x3c   :  { %218 = vmatpush.msra.mxu2 %v4356_v63  ;;  %7283 = vst [vmem:[#allocation36_spill] sm:$0xff] %v4376_v58  ;;  %285 = vmatpush.msra.mxu3 %v4378_v39  ;;  %v4412_v39 = vld [vmem:[#allocation8 + $0x248] sm:$0xff] }
  0x3d   :  { %295 = vmatpush.msrb.mxu0 %v4352_v61  ;;  %315 = vmatpush.msrb.mxu1 %v4354_v62  ;;  %v4388_v62 = vld [vmem:[#allocation8 + $0x278] sm:$0xff] }
  0x3e   :  { %219 = vmatpush.msra.mxu2 %v4368_v56  ;;  %v4400_v56 = vld [vmem:[#allocation8 + $0x260] sm:$0xff]  ;;  %286 = vmatpush.msra.mxu3 %v4391_v49 }
  0x3f   :  { %296 = vmatpush.msrb.mxu0 %v4364_v54  ;;  %316 = vmatpush.msrb.mxu1 %v4366_v52  ;;  %v4398_v52 = vld [vmem:[#allocation7 + $0x150] sm:$0xff]  ;;  %v4424_v49 = vld [vmem:[#allocation7 + $0x120] sm:$0xff] }
  0x40   :  { %220 = vmatmul.f32.vlgmr.msra.gmra.mxu2 %v4314_v50  ;;  %7289 = vst [vmem:[#allocation42_spill] sm:$0xff] %v4398_v52  ;;  %v4406_v50 = vld [vmem:[#allocation8 + $0x268] sm:$0xff]  ;;  %v4418_v54 = vld [vmem:[#allocation8 + $0x250] sm:$0xff]  ;;  %287 = vmatpush.msra.mxu3 %v4402_v43  ;;  %v4464_v43 = vld [vmem:[#allocation8 + $0x200] sm:$0xff] }
  0x41   :  { %297 = vmatpush.msrb.mxu0 %v4376_v58  ;;  %317 = vmatpush.msrb.mxu1 %v4382_v60  ;;  %7291 = vst [vmem:[#allocation44_spill] sm:$0xff] %v4406_v50  ;;  %v4410_v58 = vld [vmem:[#allocation7 + $0x138] sm:$0xff]  ;;  %v4414_v60 = vld [vmem:[#allocation8 + $0x180] sm:$0xff] }
  0x42   :  { %445 = vmatpush.msrb.mxu2 %v4386_v47  ;;  %7292 = vst [vmem:[#allocation45_spill] sm:$0xff] %v4410_v58  ;;  %v4421_v47 = vld [vmem:[#allocation7 + $0x170] sm:$0xff]  ;;  %288 = vmatpush.msra.mxu3 %v4414_v60 }
  0x43   :  { %298 = vmatpush.msrb.mxu0 %v4388_v62  ;;  %318 = vmatpush.msrb.mxu1 %v4394_v35  ;;  %7293 = vst [vmem:[#allocation46_spill] sm:$0xff] %v4414_v60  ;;  %v4429_v35 = vld [vmem:[#allocation7 + $0x158] sm:$0xff] }
  0x44   :  { %446 = vmatpush.msrb.mxu2 %v4398_v52  ;;  %7294 = vst [vmem:[#allocation47_spill] sm:$0xff] %v4418_v54  ;;  %465 = vmatpush.msrb.mxu3 %v4421_v47  ;;  %v4434_v52 = vld [vmem:[#allocation7 + $0x140] sm:$0xff]  ;;  %v4444_v60 = vld [vmem:[#allocation8 + $0x238] sm:$0xff] }
  0x45   :  { %299 = vmatpush.msrb.mxu0 %v4400_v56  ;;  %7295 = vst [vmem:[#allocation48_spill] sm:$0xff] %v4421_v47  ;;  %319 = vmatpush.msrb.mxu1 %v4406_v50  ;;  %v4437_v50 = vld [vmem:[#allocation7 + $0x128] sm:$0xff]  ;;  %v4448_v47 = vld [vmem:[#allocation7 + $0x110] sm:$0xff] }
  0x46   :  { %7296 = vst [vmem:[#allocation49_spill] sm:$0xff] %v4424_v49  ;;  %447 = vmatpush.msrb.mxu2 %v4410_v58  ;;  %466 = vmatpush.msrb.mxu3 %v4429_v35  ;;  %v4441_v58 = vld [vmem:[#allocation8 + $0x230] sm:$0xff] }
  0x47   :  { %300 = vmatpush.msrb.mxu0 %v4412_v39  ;;  %7297 = vst [vmem:[#allocation50_spill] sm:$0xff] %v4429_v35  ;;  %320 = vmatpush.msrb.mxu1 %v4418_v54  ;;  %v4446_v54 = vld [vmem:[#allocation7 + $0x108] sm:$0xff]  ;;  %v4452_v35 = vld [vmem:[#allocation8 + $0x218] sm:$0xff] }
  0x48   :  { %448 = vmatpush.msrb.mxu2 %v4424_v49  ;;  %7298 = vst [vmem:[#allocation51_spill] sm:$0xff] %v4434_v52  ;;  %467 = vmatpush.msrb.mxu3 %v4434_v52  ;;  %v4454_v49 = vld [vmem:[#allocation8 + $0x220] sm:$0xff]  ;;  %v4456_v52 = vld [vmem:[#allocation7 + $0xf0] sm:$0xff] }
  0x49   :  { %7299 = vst [vmem:[#allocation52_spill] sm:$0xff] %v4437_v50  ;;  %301 = vmatpush.msrb.mxu0 %v4441_v58  ;;  %321 = vmatpush.msrb.mxu1 %v4444_v60 }
  0x4a   :  { %468 = vmatpush.msrb.mxu3 %v4437_v50  ;;  %7300 = vst [vmem:[#allocation53_spill] sm:$0xff] %v4441_v58  ;;  %449 = vmatpush.msrb.mxu2 %v4446_v54  ;;  %v4460_v50 = vld [vmem:[#allocation7 + $0xf8] sm:$0xff]  ;;  %v4472_v58 = vld [vmem:[#allocation7 + $0xe0] sm:$0xff] }
  0x4b   :  { %7301 = vst [vmem:[#allocation54_spill] sm:$0xff] %v4444_v60  ;;  %302 = vmatpush.msrb.mxu0 %v4452_v35  ;;  %322 = vmatpush.msrb.mxu1 %v4454_v49  ;;  %v4466_v60 = vld [vmem:[#allocation8 + $0x208] sm:$0xff] }
  0x4c   :  { %7302 = vst [vmem:[#allocation55_spill] sm:$0xff] %v4446_v54  ;;  %469 = vmatpush.msrb.mxu3 %v4448_v47  ;;  %450 = vmatpush.msrb.mxu2 %v4456_v52  ;;  %v4468_v54 = vld [vmem:[#allocation7 + $0xd8] sm:$0xff] }
  0x4d   :  { %7303 = vst [vmem:[#allocation56_spill] sm:$0xff] %v4448_v47  ;;  %303 = vmatpush.msrb.mxu0 %v4464_v43  ;;  %323 = vmatpush.msrb.mxu1 %v4466_v60  ;;  %v4476_v47 = vld [vmem:[#allocation8 + $0x1e8] sm:$0xff] }
  0x4e   :  { %7304 = vst [vmem:[#allocation57_spill] sm:$0xff] %v4452_v35  ;;  %470 = vmatpush.msrb.mxu3 %v4460_v50  ;;  %451 = vmatpush.msrb.mxu2 %v4468_v54  ;;  %v4484_v35 = vld [vmem:[#allocation7 + $0xc8] sm:$0xff] }
  0x4f   :  { %7305 = vst [vmem:[#allocation58_spill] sm:$0xff] %v4454_v49  ;;  %v4478_v49 = vld [vmem:[#allocation8 + $0x1f0] sm:$0xff]  ;;  %304 = vmatpush.msrb.mxu0 %v4476_v47 }
  0x50   :  { %7306 = vst [vmem:[#allocation59_spill] sm:$0xff] %v4456_v52  ;;  %v4480_v52 = vld [vmem:[#allocation7 + $0xc0] sm:$0xff]  ;;  %471 = vmatpush.msrb.mxu3 %v4472_v58  ;;  %324 = vmatpush.msrb.mxu1 %v4478_v49 }
  0x51   :  { %7307 = vst [vmem:[#allocation60_spill] sm:$0xff] %v4460_v50  ;;  %452 = vmatpush.msrb.mxu2 %v4480_v52  ;;  %v4488_v50 = vld [vmem:[#allocation8 + $0x1d0] sm:$0xff] }
  0x52   :  { %7308 = vst [vmem:[#allocation61_spill] sm:$0xff] %v4464_v43  ;;  %472 = vmatpush.msrb.mxu3 %v4484_v35  ;;  %305 = vmatpush.msrb.mxu0 %v4488_v50  ;;  %v4496_v43 = vld [vmem:[#allocation7 + $0xb0] sm:$0xff] }
  0x53   :  { %7309 = vst [vmem:[#allocation62_spill] sm:$0xff] %v4466_v60  ;;  %v4490_v60 = vld [vmem:[#allocation8 + $0x1d8] sm:$0xff] }
  0x54   :  { %7310 = vst [vmem:[#allocation63_spill] sm:$0xff] %v4468_v54  ;;  %v4492_v54 = vld [vmem:[#allocation7 + $0xa8] sm:$0xff]  ;;  %325 = vmatpush.msrb.mxu1 %v4490_v60  ;;  %473 = vmatpush.msrb.mxu3 %v4496_v43 }
  0x55   :  { %7311 = vst [vmem:[#allocation64_spill] sm:$0xff] %v4472_v58  ;;  %453 = vmatpush.msrb.mxu2 %v4492_v54  ;;  %v4500_v58 = vld [vmem:[#allocation8 + $0x1b8] sm:$0xff] }
  0x56   :  { %7312 = vst [vmem:[#allocation65_spill] sm:$0xff] %v4476_v47  ;;  %306 = vmatpush.msrb.mxu0 %v4500_v58  ;;  %v4508_v47 = vld [vmem:[#allocation7 + $0x98] sm:$0xff] }
  0x57   :  { %7313 = vst [vmem:[#allocation66_spill] sm:$0xff] %v4478_v49  ;;  %v4502_v49 = vld [vmem:[#allocation8 + $0x1c0] sm:$0xff]  ;;  %474 = vmatpush.msrb.mxu3 %v4508_v47 }
  0x58   :  { %7314 = vst [vmem:[#allocation67_spill] sm:$0xff] %v4480_v52  ;;  %v4504_v52 = vld [vmem:[#allocation7 + $0x90] sm:$0xff]  ;;  %326 = vmatpush.msrb.mxu1 %v4502_v49 }
  0x59   :  { %7315 = vst [vmem:[#allocation68_spill] sm:$0xff] %v4484_v35  ;;  %454 = vmatpush.msrb.mxu2 %v4504_v52  ;;  %v4512_v35 = vld [vmem:[#allocation8 + $0x1a0] sm:$0xff] }
  0x5a   :  { %7316 = vst [vmem:[#allocation69_spill] sm:$0xff] %v4488_v50  ;;  %307 = vmatpush.msrb.mxu0 %v4512_v35  ;;  %v4520_v50 = vld [vmem:[#allocation7 + $0x80] sm:$0xff] }
  0x5b   :  { %7317 = vst [vmem:[#allocation70_spill] sm:$0xff] %v4490_v60  ;;  %v4514_v60 = vld [vmem:[#allocation8 + $0x1a8] sm:$0xff]  ;;  %475 = vmatpush.msrb.mxu3 %v4520_v50 }
  0x5c   :  { %7318 = vst [vmem:[#allocation71_spill] sm:$0xff] %v4492_v54  ;;  %v4516_v54 = vld [vmem:[#allocation7 + $0x78] sm:$0xff]  ;;  %327 = vmatpush.msrb.mxu1 %v4514_v60 }
  0x5d   :  { %7319 = vst [vmem:[#allocation72_spill] sm:$0xff] %v4496_v43  ;;  %455 = vmatpush.msrb.mxu2 %v4516_v54  ;;  %v4524_v43 = vld [vmem:[#allocation8 + $0x188] sm:$0xff] }
  0x5e   :  { %7320 = vst [vmem:[#allocation73_spill] sm:$0xff] %v4500_v58  ;;  %308 = vmatpush.msrb.mxu0 %v4524_v43  ;;  %v4532_v58 = vld [vmem:[#allocation7 + $0x68] sm:$0xff] }
  0x5f   :  { %7321 = vst [vmem:[#allocation74_spill] sm:$0xff] %v4502_v49  ;;  %v4526_v49 = vld [vmem:[#allocation8 + $0x190] sm:$0xff]  ;;  %476 = vmatpush.msrb.mxu3 %v4532_v58 }
  0x60   :  { %7322 = vst [vmem:[#allocation75_spill] sm:$0xff] %v4504_v52  ;;  %v4528_v52 = vld [vmem:[#allocation7 + $0x60] sm:$0xff]  ;;  %328 = vmatpush.msrb.mxu1 %v4526_v49 }
  0x61   :  { %7323 = vst [vmem:[#allocation76_spill] sm:$0xff] %v4508_v47  ;;  %v4534_v47 = vld [vmem:[#allocation7 + $0x178] sm:$0xff]  ;;  %456 = vmatpush.msrb.mxu2 %v4528_v52 }
  0x62   :  { %7324 = vst [vmem:[#allocation77_spill] sm:$0xff] %v4512_v35  ;;  %485 = vmatpush.msra.mxu0 %v4534_v47  ;;  %v4544_v35 = vld [vmem:[#allocation7 + $0x160] sm:$0xff]  ;;  %607 = vmatpush.msra.mxu1 %v4172_v0  ;;  %v4564_v0 = vld [vmem:[#allocation7 + $0x130] sm:$0xff] }
  0x63   :  { %7325 = vst [vmem:[#allocation78_spill] sm:$0xff] %v4514_v60  ;;  %v4538_v60 = vld [vmem:[#allocation7 + $0x48] sm:$0xff] }
  0x64   :  { %7326 = vst [vmem:[#allocation79_spill] sm:$0xff] %v4516_v54  ;;  %v4540_v54 = vld [vmem:[#allocation7 + $0x50] sm:$0xff]  ;;  %457 = vmatpush.msrb.mxu2 %v4538_v60  ;;  %486 = vmatpush.msra.mxu0 %v4544_v35 }
  0x65   :  { %7327 = vst [vmem:[#allocation80_spill] sm:$0xff] %v4520_v50  ;;  %v4548_v50 = vld [vmem:[#allocation7 + $0x30] sm:$0xff]  ;;  %477 = vmatpush.msrb.mxu3 %v4540_v54  ;;  %608 = vmatpush.msra.mxu1 %v4176_v2  ;;  %v4574_v2 = vld [vmem:[#allocation5 + $0x8] sm:$0xff] }
  0x66   :  { %7328 = vst [vmem:[#allocation81_spill] sm:$0xff] %v4524_v43  ;;  %v4550_v43 = vld [vmem:[#allocation7 + $0x38] sm:$0xff]  ;;  %458 = vmatpush.msrb.mxu2 %v4548_v50  ;;  %289 = vmatmul.f32.vlgmr.msra.gmra.mxu3 %v4574_v2 }
  0x67   :  { %7329 = vst [vmem:[#allocation82_spill] sm:$0xff] %v4526_v49  ;;  %v4554_v49 = vld [vmem:[#allocation7 + $0x148] sm:$0xff]  ;;  %478 = vmatpush.msrb.mxu3 %v4550_v43  ;;  %609 = vmatpush.msra.mxu1 %v4182_v4  ;;  %v4582_v4 = vld [vmem:[#allocation7 + $0x100] sm:$0xff] }
  0x68   :  { %7330 = vst [vmem:[#allocation83_spill] sm:$0xff] %v4528_v52  ;;  %v4560_v52 = vld [vmem:[#allocation7 + $0x20] sm:$0xff]  ;;  %487 = vmatpush.msra.mxu0 %v4554_v49  ;;  %329 = vmatmul.f32.vlgmr.msrb.gmra.mxu1 %v4574_v2 }
  0x69   :  { %7331 = vst [vmem:[#allocation84_spill] sm:$0xff] %v4532_v58  ;;  %v4558_v58 = vld [vmem:[#allocation7 + $0x18] sm:$0xff]  ;;  %479 = vmatpush.msrb.mxu3 %v4560_v52  ;;  %610 = vmatpush.msra.mxu1 %v4188_v6  ;;  %v4594_v6 = vld [vmem:[#allocation7 + $0xd0] sm:$0xff] }
  0x6a   :  { %7332 = vst [vmem:[#allocation85_spill] sm:$0xff] %v4538_v60  ;;  %459 = vmatpush.msrb.mxu2 %v4558_v58  ;;  %v4570_v60 = vld [vmem:[#allocation7 + $0x8] sm:$0xff]  ;;  %488 = vmatpush.msra.mxu0 %v4564_v0 }
  0x6b   :  { %7333 = vst [vmem:[#allocation86_spill] sm:$0xff] %v4540_v54  ;;  %v4568_v54 = vld [vmem:[#allocation7] sm:$0xff]  ;;  %480 = vmatpush.msrb.mxu3 %v4570_v60  ;;  %611 = vmatpush.msra.mxu1 %v4194_v8 }
  0x6c   :  { %7334 = vst [vmem:[#allocation87_spill] sm:$0xff] %v4548_v50  ;;  %v4576_v50 = vld [vmem:[#allocation7 + $0x118] sm:$0xff]  ;;  %460 = vmatpush.msrb.mxu2 %v4568_v54  ;;  %309 = vmatmul.f32.vlgmr.msrb.gmra.mxu0 %v4574_v2 }
  0x6d   :  { %7335 = vst [vmem:[#allocation88_spill] sm:$0xff] %v4550_v43  ;;  %489 = vmatpush.msra.mxu0 %v4576_v50  ;;  %647 = vmatpush.msra.mxu3 %v4204_v12  ;;  %v334_v43 = vld [vmem:[#allocation2 + $0x8] sm:$0xff] }
  0x6e   :  { %7336 = vst [vmem:[#allocation89_spill] sm:$0xff] %v4560_v52  ;;  %627 = vmatpush.msra.mxu2 %v4174_v1  ;;  %v4588_v52 = vld [vmem:[#allocation7 + $0xe8] sm:$0xff]  ;;  %612 = vmatpush.msra.mxu1 %v4200_v10  ;;  %v4600_v1 = vld [vmem:[#allocation7 + $0xb8] sm:$0xff] }
  0x6f   :  { %7337 = vst [vmem:[#allocation90_spill] sm:$0xff] %v4570_v60  ;;  %490 = vmatpush.msra.mxu0 %v4582_v4  ;;  %648 = vmatpush.msra.mxu3 %v4208_v13  ;;  %v333_v60 = vld [vmem:[#allocation2] sm:$0xff]  ;;  %v4606_v13 = vld [vmem:[#allocation7 + $0xa0] sm:$0xff] }
  0x70   :  { %628 = vmatpush.msra.mxu2 %v4180_v3  ;;  %613 = vmatpush.msra.mxu1 %v4210_v14 }
  0x71   :  { %491 = vmatpush.msra.mxu0 %v4588_v52  ;;  %649 = vmatpush.msra.mxu3 %v4217_v16  ;;  %v4612_v16 = vld [vmem:[#allocation7 + $0x88] sm:$0xff] }
  0x72   :  { %629 = vmatpush.msra.mxu2 %v4184_v5  ;;  %614 = vmatpush.msra.mxu1 %v4219_v17 }
  0x73   :  { %492 = vmatpush.msra.mxu0 %v4594_v6  ;;  %650 = vmatpush.msra.mxu3 %v4226_v19 }
  0x74   :  { %630 = vmatpush.msra.mxu2 %v4190_v7  ;;  %615 = vmatpush.msra.mxu1 %v4228_v20  ;;  %v4618_v7 = vld [vmem:[#allocation7 + $0x70] sm:$0xff] }
  0x75   :  { %493 = vmatpush.msra.mxu0 %v4600_v1  ;;  %651 = vmatpush.msra.mxu3 %v4235_v22  ;;  %v4646_v22 = vld [vmem:[#allocation7 + $0x10] sm:$0xff] }
  0x76   :  { %631 = vmatpush.msra.mxu2 %v4196_v9  ;;  %616 = vmatpush.msra.mxu1 %v4237_v23  ;;  %v4626_v9 = vld [vmem:[#allocation7 + $0x58] sm:$0xff] }
  0x77   :  { %494 = vmatpush.msra.mxu0 %v4606_v13  ;;  %652 = vmatpush.msra.mxu3 %v4246_v26 }
  0x78   :  { %632 = vmatpush.msra.mxu2 %v4202_v11  ;;  %617 = vmatpush.msra.mxu1 %v4250_v28  ;;  %v4632_v11 = vld [vmem:[#allocation7 + $0x40] sm:$0xff]  ;;  %v3747_v28 = vld [vmem:[%s6959_s5] ss:$0 sm:$0xff] }
  0x79   :  { %495 = vmatpush.msra.mxu0 %v4612_v16  ;;  %653 = vmatpush.msra.mxu3 %v4258_v30 }
  0x7a   :  { %633 = vmatpush.msra.mxu2 %v4212_v15  ;;  %618 = vmatpush.msra.mxu1 %v4262_v32 }
  0x7b   :  { %496 = vmatpush.msra.mxu0 %v4618_v7  ;;  %654 = vmatpush.msra.mxu3 %v4270_v34  ;;  %v7338_v34 = vld [vmem:[#allocation19_spill] sm:$0xff] }
  0x7c   :  { %634 = vmatpush.msra.mxu2 %v4221_v18  ;;  %619 = vmatpush.msra.mxu1 %v4274_v36  ;;  %v4638_v18 = vld [vmem:[#allocation7 + $0x28] sm:$0xff]  ;;  %v7339_v36 = vld [vmem:[#allocation32_spill] sm:$0xff] }
  0x7d   :  { %497 = vmatpush.msra.mxu0 %v4626_v9  ;;  %655 = vmatpush.msra.mxu3 %v4282_v38  ;;  %v7340_v38 = vld [vmem:[#allocation22_spill] sm:$0xff] }
  0x7e   :  { %635 = vmatpush.msra.mxu2 %v4230_v21  ;;  %620 = vmatpush.msra.mxu1 %v4286_v40 }
  0x7f   :  { %498 = vmatpush.msra.mxu0 %v4632_v11  ;;  %656 = vmatpush.msra.mxu3 %v4294_v42  ;;  %v7342_v42 = vld [vmem:[#allocation20_spill] sm:$0xff] }
  0x80   :  { %636 = vmatpush.msra.mxu2 %v4239_v24  ;;  %621 = vmatpush.msra.mxu1 %v4298_v44 }
  0x81   :  { %499 = vmatpush.msra.mxu0 %v4638_v18  ;;  %657 = vmatpush.msra.mxu3 %v4310_v48 }
  0x82   :  { %637 = vmatpush.msra.mxu2 %v4252_v29  ;;  %622 = vmatpush.msra.mxu1 %v4302_v46  ;;  %v7344_v46 = vld [vmem:[#allocation21_spill] sm:$0xff] }
  0x83   :  { %500 = vmatpush.msra.mxu0 %v4646_v22  ;;  %658 = vmatpush.msra.mxu3 %v4317_v51  ;;  %v335_v51 = vld [vmem:[#allocation2 + $0x10] sm:$0xff] }
  0x84   :  { %638 = vmatpush.msra.mxu2 %v4264_v33  ;;  %735 = vmatpush.msrb.mxu1 %v4324_v53 }
  0x85   :  { %715 = vmatpush.msrb.mxu0 %v4242_v25  ;;  %659 = vmatpush.msra.mxu3 %v4329_v55 }
  0x86   :  { %639 = vmatpush.msra.mxu2 %v4276_v37  ;;  %736 = vmatpush.msrb.mxu1 %v4336_v57 }
  0x87   :  { %716 = vmatpush.msrb.mxu0 %v4248_v27  ;;  %660 = vmatpush.msra.mxu3 %v4342_v59  ;;  %v7345_v59 = vld [vmem:[#allocation23_spill] sm:$0xff] }
  0x88   :  { %640 = vmatpush.msra.mxu2 %v4288_v41  ;;  %737 = vmatpush.msrb.mxu1 %v4352_v61 }
  0x89   :  { %717 = vmatpush.msrb.mxu0 %v4260_v31  ;;  %661 = vmatpush.msra.mxu3 %v4356_v63  ;;  %v7341_v31 = vld [vmem:[#allocation34_spill] sm:$0xff]  ;;  %v7346_v63 = vld [vmem:[#allocation25_spill] sm:$0xff] }
  0x8a   :  { %641 = vmatpush.msra.mxu2 %v4300_v45  ;;  %738 = vmatpush.msrb.mxu1 %v7339_v36  ;;  %v7364_v36 = vld [vmem:[#allocation42_spill] sm:$0xff] }
  0x8b   :  { %718 = vmatpush.msrb.mxu0 %v7338_v34  ;;  %662 = vmatpush.msra.mxu3 %v7341_v31  ;;  %v7363_v34 = vld [vmem:[#allocation77_spill] sm:$0xff] }
  0x8c   :  { %642 = vmatpush.msra.mxu2 %v7340_v38  ;;  %v7366_v38 = vld [vmem:[#allocation46_spill] sm:$0xff]  ;;  %v7367_v31 = vld [vmem:[#allocation81_spill] sm:$0xff] }
  0x8d   :  { %719 = vmatpush.msrb.mxu0 %v7342_v42  ;;  %v7370_v42 = vld [vmem:[#allocation48_spill] sm:$0xff] }
  0x8f   :  { %720 = vmatpush.msrb.mxu0 %v7344_v46  ;;  %v7374_v46 = vld [vmem:[#allocation55_spill] sm:$0xff] }
  0x91   :  { %721 = vmatpush.msrb.mxu0 %v7345_v59  ;;  %v7381_v59 = vld [vmem:[#allocation44_spill] sm:$0xff] }
  0x93   :  { %722 = vmatpush.msrb.mxu0 %v7346_v63  ;;  %v7386_v63 = vld [vmem:[#allocation71_spill] sm:$0xff] }
  0xb5   :  { %v181_v8 = vpop.f32.mrf.mxu0  ;;  %v201_v10 = vpop.f32.mrf.mxu1 }
  0xb6   :  { %v336_v3 = vadd.f32 %v333_v60, %v181_v8  ;;  %v356_v12 = vadd.f32 %v334_v43, %v201_v10  ;;  %v7343_v43 = vld [vmem:[#allocation36_spill] sm:$0xff]  ;;  %v7347_v10 = vld [vmem:[#allocation27_spill] sm:$0xff] }
  0xb7   :  { %739 = vmatpush.msrb.mxu1 %v7343_v43  ;;  %723 = vmatpush.msrb.mxu0 %v7347_v10  ;;  %v7371_v43 = vld [vmem:[#allocation49_spill] sm:$0xff]  ;;  %v7390_v10 = vld [vmem:[#allocation58_spill] sm:$0xff] }
  0xb8   :  { %v3694_v5 = vmul.f32 -1.442695, %v336_v3  ;;  %v3695_v14 = vmul.f32 -1.442695, %v356_v12  ;;  %v7348_v3 = vld [vmem:[#allocation53_spill] sm:$0xff] }
  0xb9   :  { %740 = vmatpush.msrb.mxu1 %v4388_v62 }
  0xba   :  { %3763 = vpow2.f32 %v3694_v5  ;;  %v7349_v5 = vld [vmem:[#allocation29_spill] sm:$0xff] }
  0xbb   :  { %3765 = vpow2.f32 %v3695_v14  ;;  %741 = vmatpush.msrb.mxu1 %v4400_v56  ;;  %724 = vmatpush.msrb.mxu0 %v7349_v5  ;;  %v7350_v56 = vld [vmem:[#allocation57_spill] sm:$0xff]  ;;  %v7351_v14 = vld [vmem:[#allocation31_spill] sm:$0xff] }
  0xbc   :  { %v7395_v5 = vld [vmem:[#allocation83_spill] sm:$0xff] }
  0xbd   :  { %742 = vmatpush.msrb.mxu1 %v4412_v39  ;;  %725 = vmatpush.msrb.mxu0 %v7351_v14  ;;  %v7353_v39 = vld [vmem:[#allocation35_spill] sm:$0xff]  ;;  %v7398_v14 = vld [vmem:[#allocation85_spill] sm:$0xff] }
  0xbf   :  { %743 = vmatpush.msrb.mxu1 %v7348_v3  ;;  %726 = vmatpush.msrb.mxu0 %v7353_v39  ;;  %v7392_v3 = vld [vmem:[#allocation79_spill] sm:$0xff]  ;;  %v7404_v39 = vld [vmem:[#allocation78_spill] sm:$0xff] }
  0xc0   :  { %v3764_v17 = vpop.eup %3763 }
  0xc1   :  { %v3766_v15 = vpop.eup %3765  ;;  %v340_v19 = vadd.f32 1.0, %v3764_v17  ;;  %744 = vmatpush.msrb.mxu1 %v7350_v56  ;;  %v7352_v17 = vld [vmem:[#allocation61_spill] sm:$0xff]  ;;  %v7396_v56 = vld [vmem:[#allocation66_spill] sm:$0xff] }
  0xc2   :  { %v4640_v20 = vadd.f32 1.0, %v3766_v15 }
  0xc3   :  { %3767 = vrcp.f32 %v340_v19  ;;  %v221_v30 = vpop.f32.mrf.mxu2  ;;  %v352_v27 = vand.u32 2147483648, %v340_v19  ;;  %v350_v33 = vand.u32 2147483647, %v340_v19  ;;  %vm346_vm1 = vweird.f32 %v340_v19  ;;  %745 = vmatpush.msrb.mxu1 %v7352_v17  ;;  %v7399_v17 = vld [vmem:[#allocation70_spill] sm:$0xff] }
  0xc4   :  { %3769 = vrcp.f32 %v4640_v20  ;;  %v380_v41 = vadd.f32 %v3747_v28, %v221_v30  ;;  %vm366_vm4 = vweird.f32 %v4640_v20  ;;  %v372_v55 = vand.u32 2147483648, %v4640_v20  ;;  %v7359_v30 = vld [vmem:[#allocation73_spill] sm:$0xff] }
  0xc5   :  { %v353_v44 = vor.u32 1.1754944e-38, %v352_v27  ;;  %vm351_vm3 = vcmp.eq.f32.partialorder %v350_v33, 8.507059e+37  ;;  %v370_v60 = vand.u32 2147483647, %v4640_v20  ;;  %v7360_v27 = vld [vmem:[#allocation39_spill] sm:$0xff] }
  0xc6   :  { %v373_v8 = vor.u32 1.1754944e-38, %v372_v55  ;;  %v7362_v33 = vld [vmem:[#allocation43_spill] sm:$0xff]  ;;  %v7379_v55 = vld [vmem:[#allocation52_spill] sm:$0xff] }
  0xc7   :  { %vm371_vm7 = vcmp.eq.f32.partialorder %v370_v60, 8.507059e+37  ;;  %v7383_v60 = vld [vmem:[#allocation67_spill] sm:$0xff] }
  0xc9   :  { %v3768_v21 = vpop.eup %3767 }
  0xca   :  { %v3770_v23 = vpop.eup %3769  ;;  %v342_v24 = vmul.f32 %v3768_v21, %v340_v19  ;;  %vm347_vm0 = vweird.f32 %v3768_v21 }
  0xcb   :  { %v362_v26 = vmul.f32 %v3770_v23, %v4640_v20  ;;  %vm348_vm2 = vmor %vm346_vm1, %vm347_vm0  ;;  %vm367_vm5 = vweird.f32 %v3770_v23  ;;  %v7354_v20 = vld [vmem:[#allocation65_spill] sm:$0xff] }
  0xcc   :  { %v343_v25 = vsub.f32 1.0, %v342_v24  ;;  %vm368_vm6 = vmor %vm366_vm4, %vm367_vm5  ;;  %746 = vmatpush.msrb.mxu1 %v7354_v20  ;;  %v7406_v20 = vld [vmem:[#allocation82_spill] sm:$0xff] }
  0xcd   :  { %v363_v29 = vsub.f32 1.0, %v362_v26  ;;  %v7356_v26 = vld [vmem:[#allocation37_spill] sm:$0xff] }
  0xce   :  { %v344_v32 = vmul.f32 %v3768_v21, %v343_v25  ;;  %727 = vmatpush.msrb.mxu0 %v7356_v26  ;;  %v7357_v25 = vld [vmem:[#allocation69_spill] sm:$0xff] }
  0xcf   :  { %v364_v37 = vmul.f32 %v3770_v23, %v363_v29  ;;  %747 = vmatpush.msrb.mxu1 %v7357_v25  ;;  %v7358_v29 = vld [vmem:[#allocation40_spill] sm:$0xff] }
  0xd0   :  { %v345_v40 = vadd.f32 %v3768_v21, %v344_v32  ;;  %728 = vmatpush.msrb.mxu0 %v7358_v29  ;;  %v7361_v32 = vld [vmem:[#allocation26_spill] sm:$0xff] }
  0xd1   :  { %v365_v48 = vadd.f32 %v3770_v23, %v364_v37  ;;  %748 = vmatpush.msrb.mxu1 %v7359_v30  ;;  %v7365_v37 = vld [vmem:[#allocation28_spill] sm:$0xff] }
  0xd2   :  { %v349_v45 = vsel %vm348_vm2, %v3768_v21, %v345_v40  ;;  %729 = vmatpush.msrb.mxu0 %v7362_v33  ;;  %v7368_v40 = vld [vmem:[#allocation45_spill] sm:$0xff] }
  0xd3   :  { %v354_v53 = vsel %vm351_vm3, %v353_v44, %v349_v45  ;;  %v369_v62 = vsel %vm368_vm6, %v3770_v23, %v365_v48  ;;  %v7355_v23 = vld [vmem:[#allocation24_spill] sm:$0xff]  ;;  %749 = vmatpush.msrb.mxu1 %v7363_v34  ;;  %v7372_v44 = vld [vmem:[#allocation33_spill] sm:$0xff]  ;;  %v7373_v45 = vld [vmem:[#allocation50_spill] sm:$0xff] }
  0xd4   :  { %v381_v57 = vmul.f32 %v380_v41, %v354_v53  ;;  %v374_v12 = vsel %vm371_vm7, %v373_v8, %v369_v62  ;;  %730 = vmatpush.msrb.mxu0 %v7366_v38  ;;  %v7369_v41 = vld [vmem:[#allocation30_spill] sm:$0xff]  ;;  %v7378_v53 = vld [vmem:[#allocation41_spill] sm:$0xff]  ;;  %v7389_v8 = vld [vmem:[#allocation75_spill] sm:$0xff] }
  0xd5   :  { %v384_v15 = vsub.f32 1.0, %v374_v12  ;;  %v386_v24 = vmul.f32 %v374_v12, %v7355_v23  ;;  %750 = vmatpush.msrb.mxu1 %v7367_v31  ;;  %v7375_v48 = vld [vmem:[#allocation38_spill] sm:$0xff]  ;;  %v4801_v34 = vld [vmem:[#allocation8 + $0x138] sm:$0xff] }
  0xd6   :  { %v382_v61 = vadd.f32 %v381_v57, %v335_v51  ;;  %v7376_v51 = vld [vmem:[#allocation51_spill] sm:$0xff]  ;;  %v7387_v62 = vld [vmem:[#allocation54_spill] sm:$0xff] }
  0xd7   :  { %v7380_v57 = vld [vmem:[#allocation63_spill] sm:$0xff]  ;;  %v7393_v12 = vld [vmem:[#allocation62_spill] sm:$0xff] }
  0xd8   :  { %3771 = vtanh.f32 %v382_v61  ;;  %v7384_v61 = vld [vmem:[#allocation47_spill] sm:$0xff]  ;;  %v4798_v33 = vld [vmem:[#allocation8 + $0x128] sm:$0xff] }
  0xd9   :  { %v4804_v38 = vld [vmem:[#allocation8 + $0x110] sm:$0xff] }
  0xde   :  { %v3772_v19 = vpop.eup %3771 }
  0xdf   :  { %v385_v21 = vmul.f32 %v3772_v19, %v384_v15  ;;  %v7401_v15 = vld [vmem:[#allocation87_spill] sm:$0xff]  ;;  %v7402_v19 = vld [vmem:[#allocation74_spill] sm:$0xff] }
  0xe1   :  { %v4699_v28 = vadd.f32 %v386_v24, %v385_v21  ;;  %v7408_v21 = vld [vmem:[#allocation89_spill] sm:$0xff]  ;;  %v4782_v24 = vld [vmem:[#allocation8 + $0x158] sm:$0xff] }
  0xe3   :  { %461 = vmatmul.f32.vlgmr.msrb.gmra.mxu2 %v4699_v28  ;;  %481 = vmatmul.f32.vlgmr.msrb.gmra.mxu3 %v4699_v28 }
  0xe4   :  { %501 = vmatmul.f32.vlgmr.msra.gmra.mxu0 %v4699_v28  ;;  %623 = vmatmul.f32.vlgmr.msra.gmra.mxu1 %v4699_v28 }
  0xe5   :  { %887 = vmatpush.msrb.mxu3 %v7360_v27  ;;  %755 = vmatpush.msrb.mxu2 %v7361_v32  ;;  %v4795_v27 = vld [vmem:[#allocation8 + $0x150] sm:$0xff] }
  0xe6   :  { %907 = vmatpush.msra.mxu0 %v7370_v42  ;;  %927 = vmatpush.msra.mxu1 %v4534_v47  ;;  %v7377_v47 = vld [vmem:[#allocation59_spill] sm:$0xff] }
  0xe7   :  { %888 = vmatpush.msrb.mxu3 %v7364_v36  ;;  %756 = vmatpush.msrb.mxu2 %v7365_v37 }
  0xe8   :  { %908 = vmatpush.msra.mxu0 %v7373_v45  ;;  %928 = vmatpush.msra.mxu1 %v4544_v35  ;;  %v7382_v35 = vld [vmem:[#allocation56_spill] sm:$0xff] }
  0xe9   :  { %889 = vmatpush.msrb.mxu3 %v7368_v40  ;;  %757 = vmatpush.msrb.mxu2 %v7369_v41  ;;  %v290_v23 = vpop.f32.mrf.mxu3  ;;  %v4807_v41 = vld [vmem:[#allocation8 + $0x120] sm:$0xff]  ;;  %v310_v42 = vpop.f32.mrf.mxu0 }
  0xea   :  { %909 = vmatpush.msra.mxu0 %v7376_v51  ;;  %929 = vmatpush.msra.mxu1 %v4554_v49  ;;  %v7385_v49 = vld [vmem:[#allocation60_spill] sm:$0xff] }
  0xeb   :  { %643 = vmatmul.f32.vlgmr.msra.gmra.mxu2 %v4699_v28  ;;  %663 = vmatmul.f32.vlgmr.msra.gmra.mxu3 %v4699_v28 }
  0xec   :  { %890 = vmatpush.msrb.mxu3 %v7371_v43  ;;  %758 = vmatpush.msrb.mxu2 %v7372_v44  ;;  %v4810_v43 = vld [vmem:[#allocation8 + $0xf8] sm:$0xff] }
  0xed   :  { %910 = vmatpush.msra.mxu0 %v7379_v55  ;;  %930 = vmatpush.msra.mxu1 %v4564_v0  ;;  %v7388_v0 = vld [vmem:[#allocation64_spill] sm:$0xff] }
  0xee   :  { %891 = vmatpush.msrb.mxu3 %v7374_v46  ;;  %759 = vmatpush.msrb.mxu2 %v7375_v48  ;;  %v4813_v46 = vld [vmem:[#allocation8 + $0x108] sm:$0xff]  ;;  %v4816_v48 = vld [vmem:[#allocation8 + $0xe0] sm:$0xff] }
  0xef   :  { %911 = vmatpush.msra.mxu0 %v7382_v35  ;;  %931 = vmatpush.msra.mxu1 %v4576_v50  ;;  %v7391_v50 = vld [vmem:[#allocation68_spill] sm:$0xff] }
  0xf0   :  { %892 = vmatpush.msrb.mxu3 %v7377_v47  ;;  %760 = vmatpush.msrb.mxu2 %v7378_v53  ;;  %v4819_v53 = vld [vmem:[#allocation8 + $0xf0] sm:$0xff] }
  0xf1   :  { %912 = vmatpush.msra.mxu0 %v7385_v49  ;;  %932 = vmatpush.msra.mxu1 %v4582_v4  ;;  %v7394_v4 = vld [vmem:[#allocation72_spill] sm:$0xff]  ;;  %v4830_v49 = vld [vmem:[#allocation8 + $0xb0] sm:$0xff] }
  0xf2   :  { %893 = vmatpush.msrb.mxu3 %v7380_v57  ;;  %761 = vmatpush.msrb.mxu2 %v7381_v59  ;;  %v777_v57 = vld [vmem:[#allocation2 + $0x20] sm:$0xff]  ;;  %v4822_v59 = vld [vmem:[#allocation8 + $0xc8] sm:$0xff] }
  0xf3   :  { %913 = vmatpush.msra.mxu0 %v7388_v0  ;;  %933 = vmatpush.msra.mxu1 %v4588_v52  ;;  %v7397_v52 = vld [vmem:[#allocation76_spill] sm:$0xff] }
  0xf4   :  { %894 = vmatpush.msrb.mxu3 %v7383_v60  ;;  %762 = vmatpush.msrb.mxu2 %v7384_v61  ;;  %v4827_v60 = vld [vmem:[#allocation8 + $0xd8] sm:$0xff] }
  0xf5   :  { %914 = vmatpush.msra.mxu0 %v7391_v50  ;;  %934 = vmatpush.msra.mxu1 %v4594_v6  ;;  %v7400_v6 = vld [vmem:[#allocation80_spill] sm:$0xff] }
  0xf6   :  { %895 = vmatpush.msrb.mxu3 %v7386_v63  ;;  %763 = vmatpush.msrb.mxu2 %v7387_v62  ;;  %v4834_v62 = vld [vmem:[#allocation8 + $0xc0] sm:$0xff]  ;;  %v4837_v0 = vld [vmem:[#allocation8 + $0x98] sm:$0xff] }
  0xf7   :  { %915 = vmatpush.msra.mxu0 %v7394_v4  ;;  %935 = vmatpush.msra.mxu1 %v4600_v1  ;;  %v7403_v1 = vld [vmem:[#allocation84_spill] sm:$0xff] }
  0xf8   :  { %896 = vmatpush.msrb.mxu3 %v7389_v8  ;;  %764 = vmatpush.msrb.mxu2 %v7390_v10  ;;  %v4840_v10 = vld [vmem:[#allocation8 + $0xa8] sm:$0xff]  ;;  %v4842_v50 = vld [vmem:[#allocation8 + $0x80] sm:$0xff] }
  0xf9   :  { %916 = vmatpush.msra.mxu0 %v7397_v52  ;;  %936 = vmatpush.msra.mxu1 %v4606_v13  ;;  %v7405_v13 = vld [vmem:[#allocation86_spill] sm:$0xff] }
  0xfa   :  { %897 = vmatpush.msrb.mxu3 %v7392_v3  ;;  %765 = vmatpush.msrb.mxu2 %v7393_v12  ;;  %v4844_v3 = vld [vmem:[#allocation8 + $0x90] sm:$0xff]  ;;  %v4847_v12 = vld [vmem:[#allocation8 + $0x68] sm:$0xff] }
  0xfb   :  { %917 = vmatpush.msra.mxu0 %v7400_v6  ;;  %937 = vmatpush.msra.mxu1 %v4612_v16  ;;  %v7407_v16 = vld [vmem:[#allocation88_spill] sm:$0xff] }
  0xfc   :  { %898 = vmatpush.msrb.mxu3 %v7395_v5  ;;  %766 = vmatpush.msrb.mxu2 %v7396_v56  ;;  %v4850_v5 = vld [vmem:[#allocation8 + $0x78] sm:$0xff] }
  0xfd   :  { %918 = vmatpush.msra.mxu0 %v7403_v1  ;;  %938 = vmatpush.msra.mxu1 %v4618_v7  ;;  %v7409_v7 = vld [vmem:[#allocation90_spill] sm:$0xff]  ;;  %v4867_v1 = vld [vmem:[#allocation8 + $0x38] sm:$0xff] }
  0xfe   :  { %899 = vmatpush.msrb.mxu3 %v7398_v14  ;;  %767 = vmatpush.msrb.mxu2 %v7399_v17  ;;  %v4855_v14 = vld [vmem:[#allocation8 + $0x50] sm:$0xff] }
  0xff   :  { %919 = vmatpush.msra.mxu0 %v7405_v13  ;;  %939 = vmatpush.msra.mxu1 %v4626_v9  ;;  %v4779_v9 = vld [vmem:[#allocation8 + $0x170] sm:$0xff]  ;;  %v4872_v13 = vld [vmem:[#allocation8 + $0x20] sm:$0xff] }
 0x100   :  { %900 = vmatpush.msrb.mxu3 %v7401_v15  ;;  %768 = vmatpush.msrb.mxu2 %v7402_v19  ;;  %v4860_v15 = vld [vmem:[#allocation8 + $0x60] sm:$0xff] }
 0x101   :  { %920 = vmatpush.msra.mxu0 %v7407_v16  ;;  %940 = vmatpush.msra.mxu1 %v4632_v11  ;;  %v4785_v11 = vld [vmem:[#allocation8 + $0x168] sm:$0xff] }
 0x102   :  { %901 = vmatpush.msrb.mxu3 %v4558_v58  ;;  %769 = vmatpush.msrb.mxu2 %v7404_v39  ;;  %v4777_v58 = vpop.f32.mrf.mxu1  ;;  %v4869_v39 = vld [vmem:[#allocation8 + $0x48] sm:$0xff] }
 0x103   :  { %921 = vmatpush.msra.mxu0 %v7408_v21  ;;  %941 = vmatpush.msra.mxu1 %v4638_v18  ;;  %v4787_v18 = vld [vmem:[#allocation10 + $0x3] sm:$0x7]  ;;  %v4875_v21 = vld [vmem:[#allocation8 + $0x30] sm:$0xff] }
 0x104   :  { %902 = vmatpush.msrb.mxu3 %v4568_v54  ;;  %770 = vmatpush.msrb.mxu2 %v7406_v20  ;;  %v776_v54 = vld [vmem:[#allocation2 + $0x18] sm:$0xff]  ;;  %v439_v29 = vperm.slane %v4787_v18, 0  ;;  %v440_v30 = vperm.slane %v4787_v18, 1 }
 0x105   :  { %922 = vmatpush.msra.mxu0 %v7409_v7  ;;  %942 = vmatpush.msra.mxu1 %v4646_v22  ;;  %v4790_v22 = vld [vmem:[#allocation8 + $0x140] sm:$0xff] }
 0x106   :  { %1069 = vmatpush.msra.mxu3 %v4779_v9  ;;  %1049 = vmatpush.msra.mxu2 %v4785_v11 }
 0x108   :  { %1070 = vmatpush.msra.mxu3 %v4782_v24  ;;  %1050 = vmatpush.msra.mxu2 %v4795_v27 }
 0x10a   :  { %1071 = vmatpush.msra.mxu3 %v4790_v22  ;;  %1051 = vmatpush.msra.mxu2 %v4801_v34 }
 0x10c   :  { %1072 = vmatpush.msra.mxu3 %v4798_v33  ;;  %1052 = vmatpush.msra.mxu2 %v4807_v41 }
 0x10e   :  { %1073 = vmatpush.msra.mxu3 %v4804_v38  ;;  %1053 = vmatpush.msra.mxu2 %v4813_v46 }
 0x110   :  { %1074 = vmatpush.msra.mxu3 %v4810_v43  ;;  %1054 = vmatpush.msra.mxu2 %v4819_v53 }
 0x112   :  { %1075 = vmatpush.msra.mxu3 %v4816_v48  ;;  %1055 = vmatpush.msra.mxu2 %v4827_v60 }
 0x114   :  { %1076 = vmatpush.msra.mxu3 %v4822_v59  ;;  %1056 = vmatpush.msra.mxu2 %v4834_v62 }
 0x116   :  { %1077 = vmatpush.msra.mxu3 %v4830_v49  ;;  %1057 = vmatpush.msra.mxu2 %v4840_v10 }
 0x118   :  { %1078 = vmatpush.msra.mxu3 %v4837_v0  ;;  %1058 = vmatpush.msra.mxu2 %v4844_v3 }
 0x11a   :  { %1079 = vmatpush.msra.mxu3 %v4842_v50  ;;  %1059 = vmatpush.msra.mxu2 %v4850_v5 }
 0x11c   :  { %1080 = vmatpush.msra.mxu3 %v4847_v12  ;;  %1060 = vmatpush.msra.mxu2 %v4860_v15 }
 0x11e   :  { %1081 = vmatpush.msra.mxu3 %v4855_v14  ;;  %1061 = vmatpush.msra.mxu2 %v4869_v39 }
 0x120   :  { %1082 = vmatpush.msra.mxu3 %v4867_v1  ;;  %1062 = vmatpush.msra.mxu2 %v4875_v21 }
 0x122   :  { %1083 = vmatpush.msra.mxu3 %v4872_v13 }
 0x161   :  { %v624_v26 = vpop.f32.mrf.mxu1 }
 0x162   :  { %v779_v25 = vadd.f32 %v776_v54, %v624_v26  ;;  %v4881_v54 = vld [vmem:[#allocation8 + $0x8] sm:$0xff] }
 0x163   :  { %1084 = vmatpush.msra.mxu3 %v4881_v54 }
 0x164   :  { %v3699_v32 = vmul.f32 -1.442695, %v779_v25 }
 0x166   :  { %3773 = vpow2.f32 %v3699_v32  ;;  %v462_v36 = vpop.f32.mrf.mxu2  ;;  %v482_v37 = vpop.f32.mrf.mxu3 }
 0x167   :  { %v463_v31 = vadd.f32 %v462_v36, %v439_v29  ;;  %v483_v40 = vadd.f32 %v482_v37, %v440_v30  ;;  %v3749_v29 = vld [vmem:[%s6959_s5] ss:$0 sm:$0xff]  ;;  %v4888_v30 = vld [vmem:[#allocation8 + $0x18] sm:$0xff] }
 0x168   :  { %1063 = vmatpush.msra.mxu2 %v4888_v30 }
 0x169   :  { %v505_v44 = vadd.f32 %v463_v31, %v290_v23  ;;  %v525_v45 = vadd.f32 %v483_v40, %v310_v42  ;;  %v4897_v42 = vld [vmem:[#allocation8] sm:$0xff] }
 0x16a   :  { %1064 = vmatpush.msra.mxu2 %v4897_v42 }
 0x16b   :  { %v3696_v51 = vmul.f32 -1.442695, %v505_v44  ;;  %v3697_v47 = vmul.f32 -1.442695, %v525_v45 }
 0x16c   :  { %v3774_v55 = vpop.eup %3773 }
 0x16d   :  { %v4824_v35 = vadd.f32 1.0, %v3774_v55  ;;  %3775 = vpow2.f32 %v3696_v51 }
 0x16e   :  { %3777 = vpow2.f32 %v3697_v47  ;;  %v644_v61 = vpop.f32.mrf.mxu2  ;;  %v664_v36 = vpop.f32.mrf.mxu3 }
 0x16f   :  { %3779 = vrcp.f32 %v4824_v35  ;;  %v799_v63 = vadd.f32 %v777_v57, %v644_v61  ;;  %v795_v23 = vand.u32 2147483648, %v4824_v35  ;;  %v793_v25 = vand.u32 2147483647, %v4824_v35  ;;  %v3748_v57 = vld [vmem:[%s6959_s5 + $0x1] ss:$0 sm:$0xff] }
 0x170   :  { %vm789_vm9 = vweird.f32 %v4824_v35  ;;  %v823_v55 = vadd.f32 %v3749_v29, %v664_v36 }
 0x171   :  { %v3700_v8 = vmul.f32 -1.442695, %v799_v63  ;;  %v796_v45 = vor.u32 1.1754944e-38, %v795_v23  ;;  %vm794_vm11 = vcmp.eq.f32.partialorder %v793_v25, 8.507059e+37  ;;  %v550_v25 = vadd.f32 %v3748_v57, %v4777_v58 }
 0x173   :  { %v3776_v4 = vpop.eup %3775  ;;  %3781 = vpow2.f32 %v3700_v8 }
 0x174   :  { %v3778_v56 = vpop.eup %3777  ;;  %v4852_v52 = vadd.f32 1.0, %v3776_v4  ;;  %v502_v4 = vpop.f32.mrf.mxu0 }
 0x175   :  { %v3780_v17 = vpop.eup %3779  ;;  %v4857_v6 = vadd.f32 1.0, %v3778_v56 }
 0x176   :  { %3783 = vrcp.f32 %v4852_v52  ;;  %v785_v19 = vmul.f32 %v3780_v17, %v4824_v35  ;;  %vm790_vm8 = vweird.f32 %v3780_v17  ;;  %v441_v35 = vperm.slane %v4787_v18, 2 }
 0x177   :  { %3785 = vrcp.f32 %v4857_v6  ;;  %vm791_vm10 = vmor %vm789_vm9, %vm790_vm8  ;;  %v521_v61 = vand.u32 2147483648, %v4852_v52  ;;  %vm515_vm13 = vweird.f32 %v4852_v52  ;;  %vm535_vm2 = vweird.f32 %v4857_v6 }
 0x178   :  { %v786_v16 = vsub.f32 1.0, %v785_v19  ;;  %v519_v19 = vand.u32 2147483647, %v4852_v52  ;;  %v503_v29 = vadd.f32 %v502_v4, %v441_v35 }
 0x179   :  { %v3782_v20 = vpop.eup %3781  ;;  %v522_v36 = vor.u32 1.1754944e-38, %v521_v61 }
 0x17a   :  { %v4877_v7 = vadd.f32 1.0, %v3782_v20  ;;  %v787_v26 = vmul.f32 %v3780_v17, %v786_v16  ;;  %vm520_vm15 = vcmp.eq.f32.partialorder %v519_v19, 8.507059e+37 }
 0x17c   :  { %v3784_v32 = vpop.eup %3783  ;;  %3787 = vrcp.f32 %v4877_v7  ;;  %v788_v40 = vadd.f32 %v3780_v17, %v787_v26  ;;  %v813_v58 = vand.u32 2147483647, %v4877_v7  ;;  %vm809_vm4 = vweird.f32 %v4877_v7 }
 0x17d   :  { %v4892_v37 = vpop.eup %3785  ;;  %v511_v31 = vmul.f32 %v3784_v32, %v4852_v52  ;;  %vm516_vm12 = vweird.f32 %v3784_v32 }
 0x17e   :  { %v531_v44 = vmul.f32 %v4892_v37, %v4857_v6  ;;  %v792_v47 = vsel %vm791_vm10, %v3780_v17, %v788_v40  ;;  %v778_v17 = vld [vmem:[#allocation2 + $0x28] sm:$0xff]  ;;  %vm517_vm14 = vmor %vm515_vm13, %vm516_vm12  ;;  %vm536_vm0 = vweird.f32 %v4892_v37  ;;  %vm814_vm6 = vcmp.eq.f32.partialorder %v813_v58, 8.507059e+37  ;;  %v4972_v58 = vld [vmem:[#allocation8 + $0x288] sm:$0xff] }
 0x17f   :  { %v512_v51 = vsub.f32 1.0, %v511_v31  ;;  %v797_v8 = vsel %vm794_vm11, %v796_v45, %v792_v47  ;;  %v815_v47 = vand.u32 2147483648, %v4877_v7  ;;  %vm537_vm3 = vmor %vm535_vm2, %vm536_vm0 }
 0x180   :  { %v532_v63 = vsub.f32 1.0, %v531_v44  ;;  %v824_v20 = vmul.f32 %v823_v55, %v797_v8  ;;  %v541_v44 = vand.u32 2147483648, %v4857_v6 }
 0x181   :  { %v513_v56 = vmul.f32 %v3784_v32, %v512_v51  ;;  %v816_v61 = vor.u32 1.1754944e-38, %v815_v47  ;;  %v4955_v47 = vld [vmem:[#allocation8 + $0x130] sm:$0xff] }
 0x182   :  { %v3788_v16 = vpop.eup %3787  ;;  %v533_v23 = vmul.f32 %v4892_v37, %v532_v63  ;;  %v825_v31 = vadd.f32 %v824_v20, %v778_v17  ;;  %v542_v4 = vor.u32 1.1754944e-38, %v541_v44  ;;  %v4945_v44 = vld [vmem:[#allocation8 + $0x148] sm:$0xff] }
 0x183   :  { %v514_v26 = vadd.f32 %v3784_v32, %v513_v56  ;;  %v805_v18 = vmul.f32 %v3788_v16, %v4877_v7  ;;  %vm810_vm1 = vweird.f32 %v3788_v16 }
 0x184   :  { %v534_v52 = vadd.f32 %v4892_v37, %v533_v23  ;;  %3789 = vtanh.f32 %v825_v31  ;;  %vm811_vm5 = vmor %vm809_vm4, %vm810_vm1  ;;  %v4937_v31 = vld [vmem:[#allocation8 + $0x2e8] sm:$0xff] }
 0x185   :  { %v518_v40 = vsel %vm517_vm14, %v3784_v32, %v514_v26  ;;  %v806_v45 = vsub.f32 1.0, %v805_v18  ;;  %v539_v32 = vand.u32 2147483647, %v4857_v6 }
 0x186   :  { %v523_v51 = vsel %vm520_vm15, %v522_v36, %v518_v40  ;;  %v538_v8 = vsel %vm537_vm3, %v4892_v37, %v534_v52  ;;  %v4943_v40 = vld [vmem:[#allocation8 + $0x2f0] sm:$0xff]  ;;  %v4960_v52 = vld [vmem:[#allocation8 + $0x118] sm:$0xff] }
 0x187   :  { %v551_v55 = vmul.f32 %v550_v25, %v523_v51  ;;  %v807_v63 = vmul.f32 %v3788_v16, %v806_v45  ;;  %vm540_vm7 = vcmp.eq.f32.partialorder %v539_v32, 8.507059e+37  ;;  %v4949_v45 = vld [vmem:[#allocation8 + $0x2f8] sm:$0xff]  ;;  %v4974_v32 = vld [vmem:[#allocation8 + $0xe8] sm:$0xff] }
 0x188   :  { %v543_v20 = vsel %vm540_vm7, %v542_v4, %v538_v8  ;;  %v4952_v51 = vld [vmem:[#allocation8 + $0x2b8] sm:$0xff]  ;;  %v4988_v8 = vld [vmem:[#allocation8 + $0xa0] sm:$0xff]  ;;  %v4991_v4 = vld [vmem:[#allocation8 + $0x88] sm:$0xff] }
 0x189   :  { %v808_v57 = vadd.f32 %v3788_v16, %v807_v63  ;;  %v552_v35 = vadd.f32 %v551_v55, %v503_v29  ;;  %v554_v18 = vsub.f32 1.0, %v543_v20  ;;  %v556_v36 = vmul.f32 %v543_v20, %v4574_v2  ;;  %v4941_v2 = vld [vmem:[#allocation8 + $0x2d0] sm:$0xff]  ;;  %v4964_v55 = vld [vmem:[#allocation8 + $0x2a0] sm:$0xff]  ;;  %7412 = vst [vmem:[#allocation22_spill] sm:$0xff] %v4988_v8  ;;  %v5003_v20 = vld [vmem:[#allocation8 + $0x28] sm:$0xff] }
 0x18a   :  { %v3790_v23 = vpop.eup %3789  ;;  %v4968_v63 = vld [vmem:[#allocation8 + $0x100] sm:$0xff]  ;;  %7413 = vst [vmem:[#allocation34_spill] sm:$0xff] %v4991_v4 }
 0x18b   :  { %v812_v56 = vsel %vm811_vm5, %v3788_v16, %v808_v57  ;;  %3791 = vtanh.f32 %v552_v35  ;;  %v4930_v16 = vld [vmem:[#allocation8 + $0x178] sm:$0xff]  ;;  %v4978_v57 = vld [vmem:[#allocation8 + $0x270] sm:$0xff]  ;;  %7417 = vst [vmem:[#allocation23_spill] sm:$0xff] %v5003_v20 }
 0x18c   :  { %v817_v19 = vsel %vm814_vm6, %v816_v61, %v812_v56  ;;  %v4980_v35 = vld [vmem:[#allocation8 + $0xd0] sm:$0xff]  ;;  %v4984_v61 = vld [vmem:[#allocation8 + $0xb8] sm:$0xff] }
 0x18d   :  { %v827_v17 = vsub.f32 1.0, %v817_v19  ;;  %v829_v6 = vmul.f32 %v817_v19, %v4699_v28  ;;  %v4935_v28 = vld [vmem:[#allocation8 + $0x160] sm:$0xff]  ;;  %7410 = vst [vmem:[#allocation19_spill] sm:$0xff] %v4980_v35  ;;  %v4994_v56 = vld [vmem:[#allocation8 + $0x70] sm:$0xff]  ;;  %v4997_v19 = vld [vmem:[#allocation8 + $0x58] sm:$0xff] }
 0x18e   :  { %7411 = vst [vmem:[#allocation32_spill] sm:$0xff] %v4984_v61 }
 0x18f   :  { %v828_v26 = vmul.f32 %v3790_v23, %v827_v17  ;;  %7414 = vst [vmem:[#allocation20_spill] sm:$0xff] %v4994_v56  ;;  %v5000_v17 = vld [vmem:[#allocation8 + $0x40] sm:$0xff]  ;;  %v5006_v23 = vld [vmem:[#allocation8 + $0x10] sm:$0xff] }
 0x190   :  { %7415 = vst [vmem:[#allocation36_spill] sm:$0xff] %v4997_v19 }
 0x191   :  { %v3792_v25 = vpop.eup %3791  ;;  %v4924_v7 = vadd.f32 %v829_v6, %v828_v26  ;;  %7416 = vst [vmem:[#allocation21_spill] sm:$0xff] %v5000_v17  ;;  %v5011_v26 = vld [vmem:[#allocation8 + $0x2d8] sm:$0xff]  ;;  %v5013_v6 = vld [vmem:[#allocation8 + $0x2e0] sm:$0xff] }
 0x192   :  { %v555_v29 = vmul.f32 %v3792_v25, %v554_v18  ;;  %7418 = vst [vmem:[#allocation25_spill] sm:$0xff] %v5006_v23  ;;  %v5015_v18 = vld [vmem:[#allocation8 + $0x258] sm:$0xff]  ;;  %v5019_v25 = vld [vmem:[#allocation8 + $0x2c0] sm:$0xff] }
 0x193   :  { %903 = vmatmul.f32.vlgmr.msrb.gmra.mxu3 %v4924_v7  ;;  %7419 = vst [vmem:[#allocation27_spill] sm:$0xff] %v5013_v6 }
 0x194   :  { %v4928_v37 = vadd.f32 %v556_v36, %v555_v29  ;;  %1197 = vmatpush.msrb.mxu3 %v4949_v45  ;;  %7420 = vst [vmem:[#allocation53_spill] sm:$0xff] %v5015_v18  ;;  %v5021_v29 = vld [vmem:[#allocation8 + $0x2c8] sm:$0xff]  ;;  %v5026_v36 = vld [vmem:[#allocation8 + $0x240] sm:$0xff] }
 0x195   :  { %7421 = vst [vmem:[#allocation29_spill] sm:$0xff] %v5021_v29 }
 0x196   :  { %558 = vst [vmem:[#allocation11] sm:$0xff] %v4928_v37  ;;  %731 = vmatmul.f32.vlgmr.msrb.gmra.mxu0 %v4928_v37  ;;  %751 = vmatmul.f32.vlgmr.msrb.gmra.mxu1 %v4928_v37 }
 0x197   :  { %771 = vmatmul.f32.vlgmr.msrb.gmra.mxu2 %v4928_v37  ;;  %1089 = vmatpush.msrb.mxu0 %v4930_v16  ;;  %7422 = vst [vmem:[#allocation57_spill] sm:$0xff] %v5026_v36 }
 0x198   :  { %1157 = vmatpush.msrb.mxu1 %v4937_v31  ;;  %1177 = vmatpush.msrb.mxu2 %v4943_v40 }
 0x199   :  { %1090 = vmatpush.msrb.mxu0 %v4935_v28  ;;  %1198 = vmatpush.msrb.mxu3 %v5013_v6  ;;  %v5199_v6 = vld [vmem:[#allocation7 + $0xe0] sm:$0xff] }
 0x19a   :  { %1158 = vmatpush.msrb.mxu1 %v4941_v2  ;;  %1178 = vmatpush.msrb.mxu2 %v5011_v26  ;;  %7477 = vst [vmem:[#allocation86_spill] sm:$0xff] %v5199_v6 }
 0x19b   :  { %1091 = vmatpush.msrb.mxu0 %v4945_v44  ;;  %1085 = vmatmul.f32.vlgmr.msra.gmra.mxu3 %v4924_v7 }
 0x19c   :  { %1159 = vmatpush.msrb.mxu1 %v4952_v51  ;;  %1179 = vmatpush.msrb.mxu2 %v5019_v25 }
 0x19d   :  { %1092 = vmatpush.msrb.mxu0 %v4955_v47  ;;  %1199 = vmatpush.msrb.mxu3 %v5021_v29  ;;  %v5070_v29 = vld [vmem:[#allocation8 + $0x1e0] sm:$0xff] }
 0x19e   :  { %923 = vmatmul.f32.vlgmr.msra.gmra.mxu0 %v4924_v7  ;;  %943 = vmatmul.f32.vlgmr.msra.gmra.mxu1 %v4924_v7  ;;  %7435 = vst [vmem:[#allocation77_spill] sm:$0xff] %v5070_v29 }
 0x19f   :  { %1065 = vmatmul.f32.vlgmr.msra.gmra.mxu2 %v4924_v7  ;;  %1093 = vmatpush.msrb.mxu0 %v4960_v52 }
 0x1a0   :  { %1160 = vmatpush.msrb.mxu1 %v4964_v55 }
 0x1a1   :  { %1094 = vmatpush.msrb.mxu0 %v4968_v63 }
 0x1a2   :  { %1161 = vmatpush.msrb.mxu1 %v4972_v58 }
 0x1a3   :  { %1095 = vmatpush.msrb.mxu0 %v4974_v32 }
 0x1a4   :  { %1162 = vmatpush.msrb.mxu1 %v4978_v57 }
 0x1a5   :  { %1096 = vmatpush.msrb.mxu0 %v4980_v35  ;;  %v5180_v35 = vld [vmem:[#allocation7 + $0x110] sm:$0xff] }
 0x1a6   :  { %1163 = vmatpush.msrb.mxu1 %v5015_v18  ;;  %v5082_v18 = vld [vmem:[#allocation8 + $0x1c8] sm:$0xff]  ;;  %7471 = vst [vmem:[#allocation70_spill] sm:$0xff] %v5180_v35 }
 0x1a7   :  { %1097 = vmatpush.msrb.mxu0 %v4984_v61  ;;  %v5058_v61 = vld [vmem:[#allocation8 + $0x1f8] sm:$0xff]  ;;  %7439 = vst [vmem:[#allocation81_spill] sm:$0xff] %v5082_v18 }
 0x1a8   :  { %1164 = vmatpush.msrb.mxu1 %v5026_v36  ;;  %v5052_v36 = vld [vmem:[#allocation8 + $0x280] sm:$0xff]  ;;  %7431 = vst [vmem:[#allocation73_spill] sm:$0xff] %v5058_v61 }
 0x1a9   :  { %1098 = vmatpush.msrb.mxu0 %v4988_v8  ;;  %v5046_v8 = vld [vmem:[#allocation8 + $0x210] sm:$0xff]  ;;  %7429 = vst [vmem:[#allocation69_spill] sm:$0xff] %v5052_v36 }
 0x1aa   :  { %7427 = vst [vmem:[#allocation24_spill] sm:$0xff] %v5046_v8 }
 0x1ab   :  { %1099 = vmatpush.msrb.mxu0 %v4991_v4  ;;  %v5044_v4 = vld [vmem:[#allocation7 + $0x168] sm:$0xff] }
 0x1ac   :  { %7426 = vst [vmem:[#allocation65_spill] sm:$0xff] %v5044_v4 }
 0x1ad   :  { %1100 = vmatpush.msrb.mxu0 %v4994_v56  ;;  %v5040_v56 = vld [vmem:[#allocation8 + $0x298] sm:$0xff] }
 0x1ae   :  { %7425 = vst [vmem:[#allocation35_spill] sm:$0xff] %v5040_v56 }
 0x1af   :  { %1101 = vmatpush.msrb.mxu0 %v4997_v19  ;;  %v5038_v19 = vld [vmem:[#allocation8 + $0x290] sm:$0xff] }
 0x1b1   :  { %1102 = vmatpush.msrb.mxu0 %v5000_v17  ;;  %v5035_v17 = vld [vmem:[#allocation8 + $0x228] sm:$0xff] }
 0x1b2   :  { %7424 = vst [vmem:[#allocation61_spill] sm:$0xff] %v5035_v17  ;;  %1165 = vmatpush.msrb.mxu1 %v5035_v17  ;;  %v5054_v17 = vld [vmem:[#allocation7 + $0x150] sm:$0xff] }
 0x1b3   :  { %1103 = vmatpush.msrb.mxu0 %v5003_v20  ;;  %v5031_v20 = vld [vmem:[#allocation8 + $0x2b0] sm:$0xff]  ;;  %7430 = vst [vmem:[#allocation40_spill] sm:$0xff] %v5054_v17 }
 0x1b4   :  { %7423 = vst [vmem:[#allocation31_spill] sm:$0xff] %v5031_v20  ;;  %1200 = vmatpush.msrb.mxu3 %v5031_v20  ;;  %1166 = vmatpush.msrb.mxu1 %v5046_v8  ;;  %v5050_v20 = vld [vmem:[#allocation8 + $0x278] sm:$0xff] }
 0x1b5   :  { %1104 = vmatpush.msrb.mxu0 %v5006_v23  ;;  %v5029_v23 = vld [vmem:[#allocation8 + $0x2a8] sm:$0xff]  ;;  %7428 = vst [vmem:[#allocation37_spill] sm:$0xff] %v5050_v20  ;;  %v5066_v8 = vld [vmem:[#allocation7 + $0x138] sm:$0xff] }
 0x1b6   :  { %1105 = vmatmul.f32.vlgmr.msrb.gmra.mxu0 %v4924_v7  ;;  %1180 = vmatpush.msrb.mxu2 %v5029_v23  ;;  %7434 = vst [vmem:[#allocation43_spill] sm:$0xff] %v5066_v8 }
 0x1b7   :  { %1201 = vmatpush.msrb.mxu3 %v5040_v56  ;;  %1329 = vmatpush.msra.mxu0 %v5044_v4  ;;  %v5062_v56 = vld [vmem:[#allocation8 + $0x260] sm:$0xff]  ;;  %v5064_v4 = vld [vmem:[#allocation8 + $0x268] sm:$0xff] }
 0x1b8   :  { %1181 = vmatpush.msrb.mxu2 %v5038_v19  ;;  %1167 = vmatpush.msrb.mxu1 %v5058_v61  ;;  %7432 = vst [vmem:[#allocation39_spill] sm:$0xff] %v5062_v56  ;;  %v5080_v61 = vld [vmem:[#allocation7 + $0x120] sm:$0xff] }
 0x1b9   :  { %1202 = vmatpush.msrb.mxu3 %v5052_v36  ;;  %1330 = vmatpush.msra.mxu0 %v5054_v17  ;;  %7433 = vst [vmem:[#allocation26_spill] sm:$0xff] %v5064_v4  ;;  %v5074_v36 = vld [vmem:[#allocation8 + $0x248] sm:$0xff]  ;;  %v5076_v17 = vld [vmem:[#allocation8 + $0x250] sm:$0xff] }
 0x1ba   :  { %1182 = vmatpush.msrb.mxu2 %v5050_v20  ;;  %1168 = vmatpush.msrb.mxu1 %v5070_v29  ;;  %7436 = vst [vmem:[#allocation42_spill] sm:$0xff] %v5074_v36  ;;  %v5090_v29 = vld [vmem:[#allocation7 + $0x108] sm:$0xff] }
 0x1bb   :  { %1203 = vmatpush.msrb.mxu3 %v5064_v4  ;;  %1331 = vmatpush.msra.mxu0 %v5066_v8  ;;  %7437 = vst [vmem:[#allocation28_spill] sm:$0xff] %v5076_v17  ;;  %v5086_v4 = vld [vmem:[#allocation8 + $0x230] sm:$0xff]  ;;  %v5088_v8 = vld [vmem:[#allocation8 + $0x238] sm:$0xff] }
 0x1bc   :  { %1183 = vmatpush.msrb.mxu2 %v5062_v56  ;;  %7438 = vst [vmem:[#allocation46_spill] sm:$0xff] %v5080_v61  ;;  %1169 = vmatpush.msrb.mxu1 %v5082_v18  ;;  %v5102_v18 = vld [vmem:[#allocation7 + $0xf0] sm:$0xff]  ;;  %v5106_v56 = vld [vmem:[#allocation8 + $0x198] sm:$0xff] }
 0x1bd   :  { %1204 = vmatpush.msrb.mxu3 %v5076_v17  ;;  %1332 = vmatpush.msra.mxu0 %v5080_v61  ;;  %7440 = vst [vmem:[#allocation45_spill] sm:$0xff] %v5086_v4  ;;  %v5098_v17 = vld [vmem:[#allocation8 + $0x218] sm:$0xff]  ;;  %v5100_v61 = vld [vmem:[#allocation8 + $0x220] sm:$0xff] }
 0x1be   :  { %1184 = vmatpush.msrb.mxu2 %v5074_v36  ;;  %7441 = vst [vmem:[#allocation30_spill] sm:$0xff] %v5088_v8  ;;  %v5094_v36 = vld [vmem:[#allocation8 + $0x1b0] sm:$0xff] }
 0x1bf   :  { %7442 = vst [vmem:[#allocation48_spill] sm:$0xff] %v5090_v29  ;;  %1205 = vmatpush.msrb.mxu3 %v5088_v8  ;;  %1333 = vmatpush.msra.mxu0 %v5090_v29  ;;  %v5110_v8 = vld [vmem:[#allocation8 + $0x200] sm:$0xff]  ;;  %v5112_v29 = vld [vmem:[#allocation8 + $0x208] sm:$0xff] }
 0x1c0   :  { %1185 = vmatpush.msrb.mxu2 %v5086_v4  ;;  %7443 = vst [vmem:[#allocation49_spill] sm:$0xff] %v5094_v36  ;;  %1170 = vmatpush.msrb.mxu1 %v5094_v36  ;;  %v5114_v36 = vld [vmem:[#allocation7 + $0xd8] sm:$0xff]  ;;  %v5118_v4 = vld [vmem:[#allocation8 + $0x180] sm:$0xff] }
 0x1c1   :  { %7444 = vst [vmem:[#allocation33_spill] sm:$0xff] %v5098_v17  ;;  %1206 = vmatpush.msrb.mxu3 %v5100_v61  ;;  %1334 = vmatpush.msra.mxu0 %v5102_v18 }
 0x1c2   :  { %7445 = vst [vmem:[#allocation50_spill] sm:$0xff] %v5100_v61  ;;  %1186 = vmatpush.msrb.mxu2 %v5098_v17  ;;  %1171 = vmatpush.msrb.mxu1 %v5106_v56  ;;  %v5122_v61 = vld [vmem:[#allocation8 + $0x1e8] sm:$0xff]  ;;  %v5130_v17 = vld [vmem:[#allocation7 + $0x170] sm:$0xff] }
 0x1c3   :  { %7446 = vst [vmem:[#allocation55_spill] sm:$0xff] %v5102_v18  ;;  %1207 = vmatpush.msrb.mxu3 %v5112_v29  ;;  %1335 = vmatpush.msra.mxu0 %v5114_v36  ;;  %v5124_v18 = vld [vmem:[#allocation8 + $0x1f0] sm:$0xff] }
 0x1c4   :  { %7447 = vst [vmem:[#allocation38_spill] sm:$0xff] %v5106_v56  ;;  %1187 = vmatpush.msrb.mxu2 %v5110_v8  ;;  %1172 = vmatpush.msrb.mxu1 %v5118_v4  ;;  %v5126_v56 = vld [vmem:[#allocation7 + $0xc0] sm:$0xff] }
 0x1c5   :  { %7448 = vst [vmem:[#allocation51_spill] sm:$0xff] %v5110_v8  ;;  %1208 = vmatpush.msrb.mxu3 %v5124_v18  ;;  %1336 = vmatpush.msra.mxu0 %v5126_v56  ;;  %v5142_v8 = vld [vmem:[#allocation7 + $0x158] sm:$0xff] }
 0x1c6   :  { %7449 = vst [vmem:[#allocation59_spill] sm:$0xff] %v5112_v29  ;;  %1188 = vmatpush.msrb.mxu2 %v5122_v61  ;;  %1349 = vmatpush.msra.mxu1 %v5130_v17  ;;  %v5134_v29 = vld [vmem:[#allocation8 + $0x1d0] sm:$0xff] }
 0x1c7   :  { %7450 = vst [vmem:[#allocation41_spill] sm:$0xff] %v5114_v36  ;;  %v5136_v36 = vld [vmem:[#allocation8 + $0x1d8] sm:$0xff] }
 0x1c8   :  { %7451 = vst [vmem:[#allocation52_spill] sm:$0xff] %v5118_v4  ;;  %v5138_v4 = vld [vmem:[#allocation7 + $0xa8] sm:$0xff]  ;;  %1189 = vmatpush.msrb.mxu2 %v5134_v29  ;;  %1209 = vmatpush.msrb.mxu3 %v5136_v36 }
 0x1c9   :  { %7452 = vst [vmem:[#allocation63_spill] sm:$0xff] %v5122_v61  ;;  %1337 = vmatpush.msra.mxu0 %v5138_v4  ;;  %1350 = vmatpush.msra.mxu1 %v5142_v8  ;;  %v5154_v61 = vld [vmem:[#allocation7 + $0x140] sm:$0xff] }
 0x1ca   :  { %7453 = vst [vmem:[#allocation44_spill] sm:$0xff] %v5124_v18  ;;  %v5146_v18 = vld [vmem:[#allocation8 + $0x1b8] sm:$0xff] }
 0x1cb   :  { %7454 = vst [vmem:[#allocation56_spill] sm:$0xff] %v5126_v56  ;;  %v5148_v56 = vld [vmem:[#allocation8 + $0x1c0] sm:$0xff]  ;;  %1190 = vmatpush.msrb.mxu2 %v5146_v18  ;;  %1351 = vmatpush.msra.mxu1 %v5154_v61 }
 0x1cc   :  { %7455 = vst [vmem:[#allocation67_spill] sm:$0xff] %v5130_v17  ;;  %v5150_v17 = vld [vmem:[#allocation7 + $0x90] sm:$0xff]  ;;  %1210 = vmatpush.msrb.mxu3 %v5148_v56 }
 0x1cd   :  { %7456 = vst [vmem:[#allocation47_spill] sm:$0xff] %v5134_v29  ;;  %1338 = vmatpush.msra.mxu0 %v5150_v17  ;;  %v5164_v29 = vld [vmem:[#allocation10 + $0x3] sm:$0x7] }
 0x1ce   :  { %7457 = vst [vmem:[#allocation60_spill] sm:$0xff] %v5136_v36  ;;  %v5158_v36 = vld [vmem:[#allocation8 + $0x1a0] sm:$0xff]  ;;  %v881_v20 = vperm.slane %v5164_v29, 0 }
 0x1cf   :  { %7458 = vst [vmem:[#allocation71_spill] sm:$0xff] %v5138_v4  ;;  %v5160_v4 = vld [vmem:[#allocation8 + $0x1a8] sm:$0xff]  ;;  %1191 = vmatpush.msrb.mxu2 %v5158_v36 }
 0x1d0   :  { %7459 = vst [vmem:[#allocation54_spill] sm:$0xff] %v5142_v8  ;;  %v5162_v8 = vld [vmem:[#allocation7 + $0x78] sm:$0xff]  ;;  %1211 = vmatpush.msrb.mxu3 %v5160_v4 }
 0x1d1   :  { %7460 = vst [vmem:[#allocation64_spill] sm:$0xff] %v5146_v18  ;;  %v5168_v18 = vld [vmem:[#allocation7 + $0x128] sm:$0xff]  ;;  %1339 = vmatpush.msra.mxu0 %v5162_v8 }
 0x1d2   :  { %7461 = vst [vmem:[#allocation75_spill] sm:$0xff] %v5148_v56  ;;  %1352 = vmatpush.msra.mxu1 %v5168_v18  ;;  %v5176_v56 = vld [vmem:[#allocation7 + $0x60] sm:$0xff] }
 0x1d3   :  { %7462 = vst [vmem:[#allocation58_spill] sm:$0xff] %v5150_v17  ;;  %v5172_v17 = vld [vmem:[#allocation8 + $0x188] sm:$0xff]  ;;  %1340 = vmatpush.msra.mxu0 %v5176_v56 }
 0x1d4   :  { %7463 = vst [vmem:[#allocation68_spill] sm:$0xff] %v5154_v61  ;;  %v5174_v61 = vld [vmem:[#allocation8 + $0x190] sm:$0xff]  ;;  %1192 = vmatpush.msrb.mxu2 %v5172_v17  ;;  %1353 = vmatpush.msra.mxu1 %v5180_v35  ;;  %v5203_v35 = vld [vmem:[#allocation7 + $0x148] sm:$0xff] }
 0x1d5   :  { %7464 = vst [vmem:[#allocation79_spill] sm:$0xff] %v5158_v36  ;;  %1212 = vmatpush.msrb.mxu3 %v5174_v61  ;;  %v5182_v36 = vld [vmem:[#allocation7 + $0x178] sm:$0xff] }
 0x1d6   :  { %7465 = vst [vmem:[#allocation62_spill] sm:$0xff] %v5160_v4  ;;  %1369 = vmatpush.msra.mxu2 %v5182_v36 }
 0x1d7   :  { %7466 = vst [vmem:[#allocation72_spill] sm:$0xff] %v5162_v8  ;;  %v5187_v8 = vld [vmem:[#allocation7 + $0x48] sm:$0xff]  ;;  %1491 = vmatpush.msra.mxu3 %v4785_v11  ;;  %v5207_v11 = vld [vmem:[#allocation7 + $0x18] sm:$0xff] }
 0x1d8   :  { %7467 = vst [vmem:[#allocation83_spill] sm:$0xff] %v5168_v18  ;;  %v5189_v18 = vld [vmem:[#allocation7 + $0xf8] sm:$0xff]  ;;  %1341 = vmatpush.msra.mxu0 %v5187_v8 }
 0x1d9   :  { %7468 = vst [vmem:[#allocation66_spill] sm:$0xff] %v5172_v17  ;;  %1354 = vmatpush.msra.mxu1 %v5189_v18  ;;  %v5197_v17 = vld [vmem:[#allocation7 + $0x30] sm:$0xff]  ;;  %1492 = vmatpush.msra.mxu3 %v4795_v27 }
 0x1da   :  { %7469 = vst [vmem:[#allocation76_spill] sm:$0xff] %v5174_v61  ;;  %v5193_v61 = vld [vmem:[#allocation7 + $0x160] sm:$0xff]  ;;  %1342 = vmatpush.msra.mxu0 %v5197_v17 }
 0x1db   :  { %7470 = vst [vmem:[#allocation85_spill] sm:$0xff] %v5176_v56  ;;  %1370 = vmatpush.msra.mxu2 %v5193_v61  ;;  %1355 = vmatpush.msra.mxu1 %v5199_v6  ;;  %v5226_v6 = vld [vmem:[#allocation7 + $0x118] sm:$0xff] }
 0x1dc   :  { %7472 = vst [vmem:[#allocation80_spill] sm:$0xff] %v5182_v36  ;;  %1493 = vmatpush.msra.mxu3 %v4801_v34  ;;  %1343 = vmatpush.msra.mxu0 %v5207_v11 }
 0x1dd   :  { %7473 = vst [vmem:[#allocation87_spill] sm:$0xff] %v5187_v8  ;;  %v5209_v8 = vld [vmem:[#allocation7 + $0xc8] sm:$0xff]  ;;  %1371 = vmatpush.msra.mxu2 %v5203_v35 }
 0x1de   :  { %7474 = vst [vmem:[#allocation74_spill] sm:$0xff] %v5189_v18  ;;  %v882_v18 = vperm.slane %v5164_v29, 1  ;;  %1356 = vmatpush.msra.mxu1 %v5209_v8  ;;  %1494 = vmatpush.msra.mxu3 %v4807_v41  ;;  %v5238_v41 = vld [vmem:[#allocation7 + $0x80] sm:$0xff] }
 0x1df   :  { %7475 = vst [vmem:[#allocation84_spill] sm:$0xff] %v5193_v61  ;;  %v5214_v61 = vld [vmem:[#allocation7 + $0x130] sm:$0xff] }
 0x1e0   :  { %7476 = vst [vmem:[#allocation78_spill] sm:$0xff] %v5197_v17  ;;  %1372 = vmatpush.msra.mxu2 %v5214_v61  ;;  %1495 = vmatpush.msra.mxu3 %v4813_v46  ;;  %v5246_v46 = vld [vmem:[#allocation7 + $0x68] sm:$0xff] }
 0x1e1   :  { %7478 = vst [vmem:[#allocation82_spill] sm:$0xff] %v5203_v35 }
 0x1e2   :  { %7479 = vst [vmem:[#allocation88_spill] sm:$0xff] %v5207_v11  ;;  %v1219_v11 = vld [vmem:[#allocation2 + $0x38] sm:$0xff]  ;;  %1373 = vmatpush.msra.mxu2 %v5226_v6  ;;  %1496 = vmatpush.msra.mxu3 %v4819_v53  ;;  %v5254_v53 = vld [vmem:[#allocation7 + $0x50] sm:$0xff] }
 0x1e3   :  { %7480 = vst [vmem:[#allocation89_spill] sm:$0xff] %v5209_v8  ;;  %v5234_v8 = vld [vmem:[#allocation7 + $0x100] sm:$0xff] }
 0x1e4   :  { %7481 = vst [vmem:[#allocation90_spill] sm:$0xff] %v5214_v61  ;;  %1374 = vmatpush.msra.mxu2 %v5234_v8  ;;  %1497 = vmatpush.msra.mxu3 %v4827_v60 }
 0x1e6   :  { %1498 = vmatpush.msra.mxu3 %v4834_v62 }
 0x1e8   :  { %1499 = vmatpush.msra.mxu3 %v4840_v10  ;;  %v5281_v10 = vld [vmem:[#allocation7 + $0x8] sm:$0xff] }
 0x1e9   :  { %7484 = vst [vmem:[#allocation93_spill] sm:$0xff] %v5281_v10 }
 0x1ea   :  { %1500 = vmatpush.msra.mxu3 %v4844_v3 }
 0x1ec   :  { %1501 = vmatpush.msra.mxu3 %v4850_v5 }
 0x1ee   :  { %1502 = vmatpush.msra.mxu3 %v4860_v15 }
 0x1f0   :  { %1503 = vmatpush.msra.mxu3 %v4869_v39 }
 0x1f2   :  { %1504 = vmatpush.msra.mxu3 %v4875_v21 }
 0x1f4   :  { %1505 = vmatpush.msra.mxu3 %v4888_v30 }
 0x1f6   :  { %1506 = vmatpush.msra.mxu3 %v4897_v42 }
 0x213   :  { %v732_v4 = vpop.f32.mrf.mxu0  ;;  %v752_v61 = vpop.f32.mrf.mxu1 }
 0x216   :  { %v904_v56 = vpop.f32.mrf.mxu3 }
 0x217   :  { %v905_v36 = vadd.f32 %v904_v56, %v881_v20  ;;  %v5218_v56 = vld [vmem:[#allocation7] sm:$0xff]  ;;  %v5220_v20 = vld [vmem:[#allocation7 + $0xb0] sm:$0xff] }
 0x218   :  { %7482 = vst [vmem:[#allocation91_spill] sm:$0xff] %v5218_v56  ;;  %1344 = vmatpush.msra.mxu0 %v5218_v56  ;;  %1357 = vmatpush.msra.mxu1 %v5220_v20 }
 0x219   :  { %v947_v27 = vadd.f32 %v905_v36, %v732_v4  ;;  %v5230_v4 = vld [vmem:[#allocation7 + $0x98] sm:$0xff] }
 0x21a   :  { %v5222_v17 = vpop.f32.mrf.mxu2  ;;  %1511 = vmatpush.msrb.mxu0 %v4779_v9  ;;  %1358 = vmatpush.msra.mxu1 %v5230_v4 }
 0x21b   :  { %v3701_v34 = vmul.f32 -1.442695, %v947_v27  ;;  %v924_v35 = vpop.f32.mrf.mxu0 }
 0x21c   :  { %v925_v36 = vadd.f32 %v924_v35, %v882_v18  ;;  %v5242_v35 = vld [vmem:[#allocation7 + $0xe8] sm:$0xff]  ;;  %1512 = vmatpush.msrb.mxu0 %v4782_v24  ;;  %1359 = vmatpush.msra.mxu1 %v5238_v41 }
 0x21d   :  { %3793 = vpow2.f32 %v3701_v34  ;;  %v1218_v34 = vld [vmem:[#allocation2 + $0x30] sm:$0xff]  ;;  %1375 = vmatpush.msra.mxu2 %v5242_v35 }
 0x21e   :  { %v967_v27 = vadd.f32 %v925_v36, %v752_v61  ;;  %v1086_v56 = vpop.f32.mrf.mxu3  ;;  %v5250_v61 = vld [vmem:[#allocation7 + $0xd0] sm:$0xff]  ;;  %1513 = vmatpush.msrb.mxu0 %v4790_v22  ;;  %1360 = vmatpush.msra.mxu1 %v5246_v46  ;;  %v5262_v22 = vld [vmem:[#allocation7 + $0x38] sm:$0xff] }
 0x21f   :  { %v1241_v18 = vadd.f32 %v1219_v11, %v1086_v56  ;;  %1376 = vmatpush.msra.mxu2 %v5250_v61  ;;  %v5258_v11 = vld [vmem:[#allocation7 + $0xb8] sm:$0xff] }
 0x220   :  { %v3702_v9 = vmul.f32 -1.442695, %v967_v27  ;;  %1514 = vmatpush.msrb.mxu0 %v4798_v33  ;;  %1361 = vmatpush.msra.mxu1 %v5254_v53  ;;  %v5277_v33 = vld [vmem:[#allocation7 + $0x88] sm:$0xff] }
 0x221   :  { %v3705_v36 = vmul.f32 -1.442695, %v1241_v18  ;;  %1377 = vmatpush.msra.mxu2 %v5258_v11  ;;  %v5268_v18 = vld [vmem:[#allocation7 + $0xa0] sm:$0xff] }
 0x222   :  { %3795 = vpow2.f32 %v3702_v9  ;;  %v1066_v24 = vpop.f32.mrf.mxu2  ;;  %1515 = vmatpush.msrb.mxu0 %v4804_v38  ;;  %1362 = vmatpush.msra.mxu1 %v5262_v22  ;;  %v5272_v9 = vld [vmem:[#allocation7 + $0x20] sm:$0xff] }
 0x223   :  { %v3794_v56 = vpop.eup %3793  ;;  %3797 = vpow2.f32 %v3705_v36  ;;  %v1221_v60 = vadd.f32 %v1218_v34, %v1066_v24  ;;  %7483 = vst [vmem:[#allocation92_spill] sm:$0xff] %v5272_v9  ;;  %1378 = vmatpush.msra.mxu2 %v5268_v18  ;;  %v5285_v34 = vld [vmem:[#allocation7 + $0x70] sm:$0xff] }
 0x224   :  { %v5264_v27 = vadd.f32 1.0, %v3794_v56  ;;  %1516 = vmatpush.msrb.mxu0 %v4810_v43  ;;  %1363 = vmatpush.msra.mxu1 %v5272_v9  ;;  %v5295_v43 = vld [vmem:[#allocation7 + $0x58] sm:$0xff] }
 0x225   :  { %v3704_v62 = vmul.f32 -1.442695, %v1221_v60  ;;  %1379 = vmatpush.msra.mxu2 %v5277_v33  ;;  %7485 = vst [vmem:[#allocation94_spill] sm:$0xff] %v5295_v43 }
 0x226   :  { %3799 = vrcp.f32 %v5264_v27  ;;  %1517 = vmatpush.msrb.mxu0 %v4816_v48  ;;  %1364 = vmatpush.msra.mxu1 %v5281_v10  ;;  %v5302_v48 = vld [vmem:[#allocation7 + $0x40] sm:$0xff]  ;;  %v963_v39 = vand.u32 2147483648, %v5264_v27  ;;  %v961_v21 = vand.u32 2147483647, %v5264_v27  ;;  %vm957_vm9 = vweird.f32 %v5264_v27 }
 0x227   :  { %3801 = vpow2.f32 %v3704_v62  ;;  %1380 = vmatpush.msra.mxu2 %v5285_v34  ;;  %7486 = vst [vmem:[#allocation95_spill] sm:$0xff] %v5302_v48 }
 0x228   :  { %v3796_v38 = vpop.eup %3795  ;;  %1518 = vmatpush.msrb.mxu0 %v4822_v59  ;;  %v5310_v59 = vld [vmem:[#allocation7 + $0x28] sm:$0xff]  ;;  %vm962_vm11 = vcmp.eq.f32.partialorder %v961_v21, 8.507059e+37 }
 0x229   :  { %v3798_v36 = vpop.eup %3797  ;;  %v5287_v24 = vadd.f32 1.0, %v3796_v38  ;;  %1381 = vmatpush.msra.mxu2 %v5295_v43  ;;  %7487 = vst [vmem:[#allocation96_spill] sm:$0xff] %v5310_v59  ;;  %v5313_v38 = vld [vmem:[#allocation7 + $0x10] sm:$0xff] }
 0x22a   :  { %v5291_v3 = vadd.f32 1.0, %v3798_v36  ;;  %1519 = vmatpush.msrb.mxu0 %v4830_v49  ;;  %7488 = vst [vmem:[#allocation97_spill] sm:$0xff] %v5313_v38 }
 0x22b   :  { %3803 = vrcp.f32 %v5287_v24  ;;  %1382 = vmatpush.msra.mxu2 %v5302_v48  ;;  %v944_v48 = vpop.f32.mrf.mxu1  ;;  %vm977_vm13 = vweird.f32 %v5287_v24  ;;  %v981_v21 = vand.u32 2147483647, %v5287_v24 }
 0x22c   :  { %v3800_v5 = vpop.eup %3799  ;;  %3805 = vrcp.f32 %v5291_v3  ;;  %1520 = vmatpush.msrb.mxu0 %v4837_v0  ;;  %vm1251_vm5 = vweird.f32 %v5291_v3 }
 0x22d   :  { %v3802_v56 = vpop.eup %3801  ;;  %v953_v60 = vmul.f32 %v3800_v5, %v5264_v27  ;;  %1383 = vmatpush.msra.mxu2 %v5310_v59  ;;  %vm958_vm8 = vweird.f32 %v3800_v5  ;;  %v964_v59 = vor.u32 1.1754944e-38, %v963_v39  ;;  %vm982_vm0 = vcmp.eq.f32.partialorder %v981_v21, 8.507059e+37 }
 0x22e   :  { %v5306_v15 = vadd.f32 1.0, %v3802_v56  ;;  %v3750_v56 = vld [vmem:[%s6959_s5 + $0x1] ss:$0 sm:$0xff]  ;;  %1521 = vmatpush.msrb.mxu0 %v4842_v50  ;;  %vm959_vm10 = vmor %vm957_vm9, %vm958_vm8 }
 0x22f   :  { %v954_v62 = vsub.f32 1.0, %v953_v60  ;;  %1384 = vmatpush.msra.mxu2 %v5313_v38  ;;  %v991_v38 = vadd.f32 %v3750_v56, %v5222_v17  ;;  %v3751_v56 = vld [vmem:[%s6959_s5] ss:$0 sm:$0xff] }
 0x230   :  { %3807 = vrcp.f32 %v5306_v15  ;;  %1522 = vmatpush.msrb.mxu0 %v4847_v12  ;;  %vm1231_vm1 = vweird.f32 %v5306_v15 }
 0x231   :  { %v3804_v49 = vpop.eup %3803  ;;  %v955_v36 = vmul.f32 %v3800_v5, %v954_v62  ;;  %v883_v62 = vperm.slane %v5164_v29, 2  ;;  %v983_v29 = vand.u32 2147483648, %v5287_v24 }
 0x232   :  { %v5324_v0 = vpop.eup %3805  ;;  %v973_v60 = vmul.f32 %v3804_v49, %v5287_v24  ;;  %1523 = vmatpush.msrb.mxu0 %v4855_v14  ;;  %vm978_vm12 = vweird.f32 %v3804_v49  ;;  %v1235_v24 = vand.u32 2147483647, %v5306_v15 }
 0x233   :  { %v956_v30 = vadd.f32 %v3800_v5, %v955_v36  ;;  %v1247_v50 = vmul.f32 %v5324_v0, %v5291_v3  ;;  %v945_v43 = vadd.f32 %v944_v48, %v883_v62  ;;  %vm5341_vm14 = vmor %vm977_vm13, %vm978_vm12  ;;  %vm1252_vm4 = vweird.f32 %v5324_v0 }
 0x234   :  { %v974_v10 = vsub.f32 1.0, %v973_v60  ;;  %1524 = vmatpush.msrb.mxu0 %v4867_v1  ;;  %v1237_v1 = vand.u32 2147483648, %v5306_v15  ;;  %vm1236_vm3 = vcmp.eq.f32.partialorder %v1235_v24, 8.507059e+37  ;;  %vm1253_vm6 = vmor %vm1251_vm5, %vm1252_vm4  ;;  %v7512_v24 = vld [vmem:[#allocation36_spill] sm:$0xff] }
 0x235   :  { %v960_v9 = vsel %vm959_vm10, %v3800_v5, %v956_v30  ;;  %v1248_v17 = vsub.f32 1.0, %v1247_v50 }
 0x236   :  { %v3808_v42 = vpop.eup %3807  ;;  %v965_v36 = vsel %vm962_vm11, %v964_v59, %v960_v9  ;;  %v975_v27 = vmul.f32 %v3804_v49, %v974_v10  ;;  %1525 = vmatpush.msrb.mxu0 %v4872_v13  ;;  %v984_v59 = vor.u32 1.1754944e-38, %v983_v29  ;;  %v1238_v30 = vor.u32 1.1754944e-38, %v1237_v1  ;;  %v1220_v29 = vld [vmem:[#allocation2 + $0x40] sm:$0xff]  ;;  %v7510_v1 = vld [vmem:[#allocation73_spill] sm:$0xff] }
 0x237   :  { %v992_v12 = vmul.f32 %v991_v38, %v965_v36  ;;  %v1227_v39 = vmul.f32 %v3808_v42, %v5306_v15  ;;  %vm1232_vm15 = vweird.f32 %v3808_v42  ;;  %v1249_v13 = vmul.f32 %v5324_v0, %v1248_v17 }
 0x238   :  { %v976_v5 = vadd.f32 %v3804_v49, %v975_v27  ;;  %1526 = vmatpush.msrb.mxu0 %v4881_v54  ;;  %vm1233_vm2 = vmor %vm1231_vm1, %vm1232_vm15  ;;  %v1255_v15 = vand.u32 2147483647, %v5291_v3 }
 0x239   :  { %v993_v9 = vadd.f32 %v992_v12, %v945_v43  ;;  %v1228_v10 = vsub.f32 1.0, %v1227_v39  ;;  %v1106_v43 = vpop.f32.mrf.mxu0  ;;  %v1250_v27 = vadd.f32 %v5324_v0, %v1249_v13  ;;  %v1257_v39 = vand.u32 2147483648, %v5291_v3  ;;  %v7514_v13 = vld [vmem:[#allocation77_spill] sm:$0xff] }
 0x23a   :  { %v980_v48 = vsel %vm5341_vm14, %v3804_v49, %v976_v5  ;;  %v1265_v50 = vadd.f32 %v3751_v56, %v1106_v43  ;;  %vm1256_vm7 = vcmp.eq.f32.partialorder %v1255_v15, 8.507059e+37  ;;  %v7513_v56 = vld [vmem:[#allocation51_spill] sm:$0xff]  ;;  %v7515_v43 = vld [vmem:[#allocation28_spill] sm:$0xff] }
 0x23b   :  { %3809 = vtanh.f32 %v993_v9  ;;  %v1229_v38 = vmul.f32 %v3808_v42, %v1228_v10  ;;  %v985_v60 = vsel %vm982_vm0, %v984_v59, %v980_v48  ;;  %v1254_v14 = vsel %vm1253_vm6, %v5324_v0, %v1250_v27  ;;  %v7522_v27 = vld [vmem:[#allocation49_spill] sm:$0xff]  ;;  %v7529_v15 = vld [vmem:[#allocation52_spill] sm:$0xff] }
 0x23c   :  { %v995_v36 = vsub.f32 1.0, %v985_v60  ;;  %v1258_v10 = vor.u32 1.1754944e-38, %v1257_v39  ;;  %v7526_v39 = vld [vmem:[#allocation38_spill] sm:$0xff] }
 0x23d   :  { %v1230_v49 = vadd.f32 %v3808_v42, %v1229_v38  ;;  %v7511_v38 = vld [vmem:[#allocation26_spill] sm:$0xff] }
 0x23e   :  { %v1259_v48 = vsel %vm1256_vm7, %v1258_v10, %v1254_v14  ;;  %v7532_v14 = vld [vmem:[#allocation44_spill] sm:$0xff]  ;;  %v7533_v10 = vld [vmem:[#allocation67_spill] sm:$0xff] }
 0x23f   :  { %v1234_v62 = vsel %vm1233_vm2, %v3808_v42, %v1230_v49  ;;  %v997_v42 = vmul.f32 %v985_v60, %v4928_v37  ;;  %v1269_v37 = vsub.f32 1.0, %v1259_v48  ;;  %v1271_v59 = vmul.f32 %v1259_v48, %v4924_v7  ;;  %v7491_v7 = vld [vmem:[#allocation27_spill] sm:$0xff]  ;;  %v7516_v60 = vld [vmem:[#allocation21_spill] sm:$0xff]  ;;  %v7534_v48 = vld [vmem:[#allocation66_spill] sm:$0xff] }
 0x240   :  { %v1239_v54 = vsel %vm1236_vm3, %v1238_v30, %v1234_v62  ;;  %v7517_v49 = vld [vmem:[#allocation63_spill] sm:$0xff]  ;;  %v7518_v30 = vld [vmem:[#allocation81_spill] sm:$0xff]  ;;  %v7519_v62 = vld [vmem:[#allocation30_spill] sm:$0xff] }
 0x241   :  { %v3810_v12 = vpop.eup %3809  ;;  %v1266_v5 = vmul.f32 %v1265_v50, %v1239_v54  ;;  %v7520_v50 = vld [vmem:[#allocation23_spill] sm:$0xff]  ;;  %v7524_v54 = vld [vmem:[#allocation25_spill] sm:$0xff] }
 0x242   :  { %v996_v21 = vmul.f32 %v3810_v12, %v995_v36  ;;  %v7521_v36 = vld [vmem:[#allocation47_spill] sm:$0xff]  ;;  %v7525_v12 = vld [vmem:[#allocation64_spill] sm:$0xff] }
 0x243   :  { %v1267_v17 = vadd.f32 %v1266_v5, %v1220_v29  ;;  %v7523_v29 = vld [vmem:[#allocation50_spill] sm:$0xff]  ;;  %v7527_v5 = vld [vmem:[#allocation65_spill] sm:$0xff] }
 0x244   :  { %v5363_v9 = vadd.f32 %v997_v42, %v996_v21  ;;  %v7528_v21 = vld [vmem:[#allocation59_spill] sm:$0xff] }
 0x245   :  { %3811 = vtanh.f32 %v1267_v17  ;;  %v7530_v42 = vld [vmem:[#allocation79_spill] sm:$0xff]  ;;  %v7531_v17 = vld [vmem:[#allocation40_spill] sm:$0xff] }
 0x246   :  { %1000 = vst [vmem:[#allocation11 + $0x8] sm:$0xff] %v5363_v9  ;;  %1173 = vmatmul.f32.vlgmr.msrb.gmra.mxu1 %v5363_v9  ;;  %1193 = vmatmul.f32.vlgmr.msrb.gmra.mxu2 %v5363_v9 }
 0x247   :  { %1213 = vmatmul.f32.vlgmr.msrb.gmra.mxu3 %v5363_v9  ;;  %1531 = vmatpush.msrb.mxu1 %v4930_v16 }
 0x248   :  { %1599 = vmatpush.msrb.mxu2 %v4937_v31  ;;  %1619 = vmatpush.msrb.mxu3 %v4943_v40  ;;  %v7493_v31 = vld [vmem:[#allocation19_spill] sm:$0xff]  ;;  %v7495_v40 = vld [vmem:[#allocation29_spill] sm:$0xff] }
 0x249   :  { %1532 = vmatpush.msrb.mxu1 %v4935_v28  ;;  %v7492_v28 = vld [vmem:[#allocation37_spill] sm:$0xff] }
 0x24a   :  { %1600 = vmatpush.msrb.mxu2 %v4941_v2  ;;  %1620 = vmatpush.msrb.mxu3 %v5011_v26  ;;  %v7494_v2 = vld [vmem:[#allocation53_spill] sm:$0xff]  ;;  %v7508_v26 = vld [vmem:[#allocation20_spill] sm:$0xff] }
 0x24b   :  { %v3812_v3 = vpop.eup %3811  ;;  %1533 = vmatpush.msrb.mxu1 %v4945_v44  ;;  %v7496_v44 = vld [vmem:[#allocation39_spill] sm:$0xff] }
 0x24c   :  { %v1270_v0 = vmul.f32 %v3812_v3, %v1269_v37  ;;  %1601 = vmatpush.msrb.mxu2 %v4952_v51  ;;  %1621 = vmatpush.msrb.mxu3 %v5019_v25  ;;  %v7497_v51 = vld [vmem:[#allocation32_spill] sm:$0xff]  ;;  %v7509_v25 = vld [vmem:[#allocation33_spill] sm:$0xff]  ;;  %v7535_v37 = vld [vmem:[#allocation43_spill] sm:$0xff] }
 0x24d   :  { %1534 = vmatpush.msrb.mxu1 %v4955_v47  ;;  %v7499_v47 = vld [vmem:[#allocation31_spill] sm:$0xff]  ;;  %v7536_v3 = vld [vmem:[#allocation60_spill] sm:$0xff] }
 0x24e   :  { %v5380_v16 = vadd.f32 %v1271_v59, %v1270_v0  ;;  %1602 = vmatpush.msrb.mxu2 %v4964_v55  ;;  %1622 = vmatpush.msrb.mxu3 %v5029_v23  ;;  %v7501_v55 = vld [vmem:[#allocation42_spill] sm:$0xff]  ;;  %v7507_v23 = vld [vmem:[#allocation69_spill] sm:$0xff]  ;;  %v7538_v59 = vld [vmem:[#allocation80_spill] sm:$0xff] }
 0x24f   :  { %1535 = vmatpush.msrb.mxu1 %v4960_v52  ;;  %v7500_v52 = vld [vmem:[#allocation22_spill] sm:$0xff] }
 0x250   :  { %1345 = vmatmul.f32.vlgmr.msra.gmra.mxu0 %v5380_v16  ;;  %1365 = vmatmul.f32.vlgmr.msra.gmra.mxu1 %v5380_v16  ;;  %v7537_v0 = vld [vmem:[#allocation54_spill] sm:$0xff] }
 0x251   :  { %1385 = vmatmul.f32.vlgmr.msra.gmra.mxu2 %v5380_v16  ;;  %1507 = vmatmul.f32.vlgmr.msra.gmra.mxu3 %v5380_v16 }
 0x252   :  { %1536 = vmatpush.msrb.mxu1 %v4968_v63  ;;  %1603 = vmatpush.msrb.mxu2 %v4972_v58  ;;  %v7502_v63 = vld [vmem:[#allocation61_spill] sm:$0xff]  ;;  %v7503_v58 = vld [vmem:[#allocation35_spill] sm:$0xff] }
 0x253   :  { %1639 = vmatpush.msra.mxu0 %v4949_v45  ;;  %1623 = vmatpush.msrb.mxu3 %v5038_v19  ;;  %v7498_v45 = vld [vmem:[#allocation57_spill] sm:$0xff]  ;;  %v7506_v19 = vld [vmem:[#allocation24_spill] sm:$0xff] }
 0x254   :  { %1537 = vmatpush.msrb.mxu1 %v4974_v32  ;;  %1604 = vmatpush.msrb.mxu2 %v4978_v57  ;;  %v7504_v32 = vld [vmem:[#allocation34_spill] sm:$0xff]  ;;  %v7505_v57 = vld [vmem:[#allocation45_spill] sm:$0xff] }
 0x255   :  { %1640 = vmatpush.msra.mxu0 %v7491_v7  ;;  %1624 = vmatpush.msrb.mxu3 %v7492_v28  ;;  %v7539_v7 = vld [vmem:[#allocation46_spill] sm:$0xff]  ;;  %v7540_v28 = vld [vmem:[#allocation75_spill] sm:$0xff] }
 0x256   :  { %1538 = vmatpush.msrb.mxu1 %v7493_v31  ;;  %1605 = vmatpush.msrb.mxu2 %v7494_v2  ;;  %v7541_v31 = vld [vmem:[#allocation68_spill] sm:$0xff] }
 0x257   :  { %1641 = vmatpush.msra.mxu0 %v7495_v40  ;;  %1625 = vmatpush.msrb.mxu3 %v7496_v44  ;;  %v7542_v2 = vld [vmem:[#allocation84_spill] sm:$0xff]  ;;  %v7544_v44 = vld [vmem:[#allocation62_spill] sm:$0xff] }
 0x258   :  { %1539 = vmatpush.msrb.mxu1 %v7497_v51  ;;  %1527 = vmatmul.f32.vlgmr.msrb.gmra.mxu0 %v5380_v16  ;;  %v7543_v40 = vld [vmem:[#allocation48_spill] sm:$0xff]  ;;  %v7545_v51 = vld [vmem:[#allocation83_spill] sm:$0xff] }
 0x259   :  { %1606 = vmatpush.msrb.mxu2 %v7498_v45  ;;  %1642 = vmatpush.msra.mxu0 %v7499_v47  ;;  %v7546_v45 = vld [vmem:[#allocation82_spill] sm:$0xff]  ;;  %v7547_v47 = vld [vmem:[#allocation55_spill] sm:$0xff] }
 0x25a   :  { %1540 = vmatpush.msrb.mxu1 %v7500_v52  ;;  %1626 = vmatpush.msrb.mxu3 %v7501_v55  ;;  %v7548_v52 = vld [vmem:[#allocation76_spill] sm:$0xff]  ;;  %v7549_v55 = vld [vmem:[#allocation70_spill] sm:$0xff] }
 0x25b   :  { %1607 = vmatpush.msrb.mxu2 %v7502_v63  ;;  %1643 = vmatpush.msra.mxu0 %v7503_v58  ;;  %v7550_v63 = vld [vmem:[#allocation90_spill] sm:$0xff]  ;;  %v7551_v58 = vld [vmem:[#allocation41_spill] sm:$0xff] }
 0x25c   :  { %1541 = vmatpush.msrb.mxu1 %v7504_v32  ;;  %1627 = vmatpush.msrb.mxu3 %v7505_v57  ;;  %v7552_v32 = vld [vmem:[#allocation74_spill] sm:$0xff]  ;;  %v7553_v57 = vld [vmem:[#allocation56_spill] sm:$0xff] }
 0x25d   :  { %1608 = vmatpush.msrb.mxu2 %v7506_v19  ;;  %1644 = vmatpush.msra.mxu0 %v7507_v23  ;;  %v7554_v19 = vld [vmem:[#allocation86_spill] sm:$0xff]  ;;  %v7555_v23 = vld [vmem:[#allocation71_spill] sm:$0xff] }
 0x25e   :  { %1542 = vmatpush.msrb.mxu1 %v7508_v26  ;;  %1628 = vmatpush.msrb.mxu3 %v7509_v25  ;;  %v7556_v26 = vld [vmem:[#allocation89_spill] sm:$0xff]  ;;  %v7557_v25 = vld [vmem:[#allocation58_spill] sm:$0xff] }
 0x25f   :  { %1609 = vmatpush.msrb.mxu2 %v7510_v1  ;;  %1645 = vmatpush.msra.mxu0 %v7511_v38  ;;  %v7558_v1 = vld [vmem:[#allocation72_spill] sm:$0xff]  ;;  %v5492_v38 = vld [vmem:[#allocation8 + $0x168] sm:$0xff] }
 0x260   :  { %1543 = vmatpush.msrb.mxu1 %v7512_v24  ;;  %1629 = vmatpush.msrb.mxu3 %v7513_v56 }
 0x261   :  { %1610 = vmatpush.msrb.mxu2 %v7514_v13  ;;  %1646 = vmatpush.msra.mxu0 %v7515_v43  ;;  %v5502_v43 = vld [vmem:[#allocation8 + $0x138] sm:$0xff] }
 0x262   :  { %1544 = vmatpush.msrb.mxu1 %v7516_v60  ;;  %1630 = vmatpush.msrb.mxu3 %v7517_v49  ;;  %v5504_v60 = vld [vmem:[#allocation8 + $0x170] sm:$0xff] }
 0x263   :  { %1611 = vmatpush.msrb.mxu2 %v7518_v30  ;;  %1647 = vmatpush.msra.mxu0 %v7519_v62  ;;  %v5508_v62 = vld [vmem:[#allocation8 + $0x120] sm:$0xff] }
 0x264   :  { %1545 = vmatpush.msrb.mxu1 %v7520_v50  ;;  %1631 = vmatpush.msrb.mxu3 %v7521_v36  ;;  %v5510_v50 = vld [vmem:[#allocation8 + $0x158] sm:$0xff] }
 0x265   :  { %1612 = vmatpush.msrb.mxu2 %v7522_v27  ;;  %1648 = vmatpush.msra.mxu0 %v7523_v29 }
 0x266   :  { %1546 = vmatpush.msrb.mxu1 %v7524_v54  ;;  %1632 = vmatpush.msrb.mxu3 %v7525_v12  ;;  %v5514_v54 = vld [vmem:[#allocation8 + $0x108] sm:$0xff]  ;;  %v5516_v12 = vld [vmem:[#allocation8 + $0x140] sm:$0xff] }
 0x267   :  { %1547 = vmatmul.f32.vlgmr.msrb.gmra.mxu1 %v5380_v16  ;;  %1613 = vmatpush.msrb.mxu2 %v7526_v39 }
 0x268   :  { %1771 = vmatpush.msra.mxu1 %v7527_v5  ;;  %1649 = vmatpush.msra.mxu0 %v7528_v21  ;;  %v5520_v21 = vld [vmem:[#allocation8 + $0xf0] sm:$0xff] }
 0x269   :  { %1614 = vmatpush.msrb.mxu2 %v7529_v15  ;;  %1633 = vmatpush.msrb.mxu3 %v7530_v42  ;;  %v5522_v15 = vld [vmem:[#allocation8 + $0x128] sm:$0xff] }
 0x26a   :  { %1772 = vmatpush.msra.mxu1 %v7531_v17  ;;  %1650 = vmatpush.msra.mxu0 %v7532_v14  ;;  %v1660_v14 = vld [vmem:[#allocation2 + $0x48] sm:$0xff] }
 0x26b   :  { %1791 = vmatpush.msra.mxu2 %v7533_v10  ;;  %1634 = vmatpush.msrb.mxu3 %v7534_v48  ;;  %v1661_v10 = vld [vmem:[#allocation2 + $0x50] sm:$0xff]  ;;  %v5526_v48 = vld [vmem:[#allocation8 + $0xd8] sm:$0xff] }
 0x26c   :  { %1773 = vmatpush.msra.mxu1 %v7535_v37  ;;  %1651 = vmatpush.msra.mxu0 %v7536_v3  ;;  %v5528_v37 = vld [vmem:[#allocation8 + $0x110] sm:$0xff] }
 0x26d   :  { %1792 = vmatpush.msra.mxu2 %v7537_v0  ;;  %1811 = vmatpush.msra.mxu3 %v7538_v59 }
 0x26e   :  { %1774 = vmatpush.msra.mxu1 %v7539_v7  ;;  %1652 = vmatpush.msra.mxu0 %v7540_v28  ;;  %v5532_v7 = vld [vmem:[#allocation8 + $0xc0] sm:$0xff]  ;;  %v5534_v28 = vld [vmem:[#allocation8 + $0xf8] sm:$0xff] }
 0x26f   :  { %1793 = vmatpush.msra.mxu2 %v7541_v31  ;;  %1812 = vmatpush.msra.mxu3 %v7542_v2 }
 0x270   :  { %1775 = vmatpush.msra.mxu1 %v7543_v40  ;;  %1653 = vmatpush.msra.mxu0 %v7544_v44  ;;  %v5538_v40 = vld [vmem:[#allocation8 + $0xa8] sm:$0xff]  ;;  %v5540_v44 = vld [vmem:[#allocation8 + $0xe0] sm:$0xff] }
 0x271   :  { %1794 = vmatpush.msra.mxu2 %v7545_v51  ;;  %1813 = vmatpush.msra.mxu3 %v7546_v45  ;;  %v5544_v45 = vld [vmem:[#allocation8 + $0x90] sm:$0xff] }
 0x272   :  { %1776 = vmatpush.msra.mxu1 %v7547_v47  ;;  %1654 = vmatpush.msra.mxu0 %v7548_v52  ;;  %v5546_v47 = vld [vmem:[#allocation8 + $0xc8] sm:$0xff] }
 0x273   :  { %1795 = vmatpush.msra.mxu2 %v7549_v55  ;;  %1814 = vmatpush.msra.mxu3 %v7550_v63 }
 0x274   :  { %1777 = vmatpush.msra.mxu1 %v7551_v58  ;;  %1933 = vmatpush.msrb.mxu0 %v5492_v38  ;;  %v5550_v58 = vld [vmem:[#allocation8 + $0x78] sm:$0xff] }
 0x275   :  { %1796 = vmatpush.msra.mxu2 %v7552_v32  ;;  %1815 = vmatpush.msra.mxu3 %v5226_v6  ;;  %v7559_v6 = vld [vmem:[#allocation85_spill] sm:$0xff]  ;;  %v5552_v32 = vld [vmem:[#allocation8 + $0xb0] sm:$0xff] }
 0x276   :  { %1778 = vmatpush.msra.mxu1 %v7553_v57 }
 0x277   :  { %1797 = vmatpush.msra.mxu2 %v7554_v19  ;;  %1816 = vmatpush.msra.mxu3 %v5234_v8  ;;  %v7560_v8 = vld [vmem:[#allocation87_spill] sm:$0xff]  ;;  %v5558_v19 = vld [vmem:[#allocation8 + $0x60] sm:$0xff] }
 0x278   :  { %1779 = vmatpush.msra.mxu1 %v7555_v23  ;;  %v5560_v23 = vld [vmem:[#allocation8 + $0x98] sm:$0xff] }
 0x279   :  { %1798 = vmatpush.msra.mxu2 %v7556_v26  ;;  %1817 = vmatpush.msra.mxu3 %v5242_v35  ;;  %v7563_v35 = vld [vmem:[#allocation94_spill] sm:$0xff] }
 0x27a   :  { %1780 = vmatpush.msra.mxu1 %v7557_v25  ;;  %v5565_v25 = vld [vmem:[#allocation8 + $0x48] sm:$0xff] }
 0x27b   :  { %1799 = vmatpush.msra.mxu2 %v5220_v20  ;;  %1818 = vmatpush.msra.mxu3 %v5250_v61  ;;  %v7561_v20 = vld [vmem:[#allocation78_spill] sm:$0xff]  ;;  %v7565_v61 = vld [vmem:[#allocation92_spill] sm:$0xff] }
 0x27c   :  { %1781 = vmatpush.msra.mxu1 %v7558_v1  ;;  %v5567_v1 = vld [vmem:[#allocation8 + $0x80] sm:$0xff] }
 0x27d   :  { %1800 = vmatpush.msra.mxu2 %v5230_v4  ;;  %1819 = vmatpush.msra.mxu3 %v5258_v11  ;;  %v7562_v4 = vld [vmem:[#allocation88_spill] sm:$0xff]  ;;  %v7566_v11 = vld [vmem:[#allocation95_spill] sm:$0xff] }
 0x27e   :  { %1782 = vmatpush.msra.mxu1 %v7559_v6 }
 0x27f   :  { %1801 = vmatpush.msra.mxu2 %v5238_v41  ;;  %1820 = vmatpush.msra.mxu3 %v5268_v18  ;;  %v7564_v41 = vld [vmem:[#allocation91_spill] sm:$0xff]  ;;  %v7568_v18 = vld [vmem:[#allocation96_spill] sm:$0xff] }
 0x280   :  { %1783 = vmatpush.msra.mxu1 %v7560_v8 }
 0x281   :  { %1802 = vmatpush.msra.mxu2 %v5246_v46  ;;  %1821 = vmatpush.msra.mxu3 %v5277_v33  ;;  %v7567_v46 = vld [vmem:[#allocation93_spill] sm:$0xff] }
 0x282   :  { %1784 = vmatpush.msra.mxu1 %v7561_v20  ;;  %v7569_v33 = vld [vmem:[#allocation97_spill] sm:$0xff]  ;;  %v5573_v20 = vld [vmem:[#allocation8 + $0x30] sm:$0xff] }
 0x283   :  { %1803 = vmatpush.msra.mxu2 %v5254_v53  ;;  %1822 = vmatpush.msra.mxu3 %v5285_v34  ;;  %v5490_v34 = vld [vmem:[#allocation10 + $0x3] sm:$0x7] }
 0x284   :  { %1785 = vmatpush.msra.mxu1 %v7562_v4  ;;  %v1323_v56 = vperm.slane %v5490_v34, 0  ;;  %v1324_v13 = vperm.slane %v5490_v34, 1  ;;  %v5575_v4 = vld [vmem:[#allocation8 + $0x68] sm:$0xff] }
 0x285   :  { %1804 = vmatpush.msra.mxu2 %v5262_v22  ;;  %1823 = vmatpush.msra.mxu3 %v7563_v35  ;;  %v5495_v22 = vld [vmem:[#allocation8 + $0x150] sm:$0xff] }
 0x286   :  { %1786 = vmatpush.msra.mxu1 %v7564_v41  ;;  %1934 = vmatpush.msrb.mxu0 %v5495_v22  ;;  %v5582_v41 = vld [vmem:[#allocation8 + $0x18] sm:$0xff] }
 0x287   :  { %1805 = vmatpush.msra.mxu2 %v7565_v61  ;;  %1824 = vmatpush.msra.mxu3 %v7566_v11  ;;  %v5584_v61 = vld [vmem:[#allocation8 + $0x50] sm:$0xff] }
 0x288   :  { %1935 = vmatpush.msrb.mxu0 %v5502_v43  ;;  %1953 = vmatpush.msrb.mxu1 %v5504_v60 }
 0x289   :  { %1806 = vmatpush.msra.mxu2 %v7567_v46  ;;  %1825 = vmatpush.msra.mxu3 %v7568_v18 }
 0x28a   :  { %1936 = vmatpush.msrb.mxu0 %v5508_v62  ;;  %1954 = vmatpush.msrb.mxu1 %v5510_v50 }
 0x28b   :  { %1826 = vmatpush.msra.mxu3 %v7569_v33  ;;  %v5591_v33 = vld [vmem:[#allocation8] sm:$0xff] }
 0x28c   :  { %1937 = vmatpush.msrb.mxu0 %v5514_v54  ;;  %1955 = vmatpush.msrb.mxu1 %v5516_v12 }
 0x28e   :  { %1938 = vmatpush.msrb.mxu0 %v5520_v21  ;;  %1956 = vmatpush.msrb.mxu1 %v5522_v15 }
 0x290   :  { %1939 = vmatpush.msrb.mxu0 %v5526_v48  ;;  %1957 = vmatpush.msrb.mxu1 %v5528_v37 }
 0x292   :  { %1940 = vmatpush.msrb.mxu0 %v5532_v7  ;;  %1958 = vmatpush.msrb.mxu1 %v5534_v28 }
 0x294   :  { %1941 = vmatpush.msrb.mxu0 %v5538_v40  ;;  %1959 = vmatpush.msrb.mxu1 %v5540_v44 }
 0x296   :  { %1942 = vmatpush.msrb.mxu0 %v5544_v45  ;;  %1960 = vmatpush.msrb.mxu1 %v5546_v47 }
 0x298   :  { %1943 = vmatpush.msrb.mxu0 %v5550_v58  ;;  %1961 = vmatpush.msrb.mxu1 %v5552_v32 }
 0x29a   :  { %1944 = vmatpush.msrb.mxu0 %v5558_v19  ;;  %1962 = vmatpush.msrb.mxu1 %v5560_v23 }
 0x29c   :  { %1945 = vmatpush.msrb.mxu0 %v5565_v25  ;;  %1963 = vmatpush.msrb.mxu1 %v5567_v1 }
 0x29e   :  { %1946 = vmatpush.msrb.mxu0 %v5573_v20  ;;  %1964 = vmatpush.msrb.mxu1 %v5575_v4 }
 0x2a0   :  { %1947 = vmatpush.msrb.mxu0 %v5582_v41  ;;  %1965 = vmatpush.msrb.mxu1 %v5584_v61 }
 0x2a2   :  { %1948 = vmatpush.msrb.mxu0 %v5591_v33 }
 0x2c3   :  { %v1174_v53 = vpop.f32.mrf.mxu1 }
 0x2c9   :  { %v1194_v29 = vpop.f32.mrf.mxu2 }
 0x2ca   :  { %v5497_v24 = vpop.f32.mrf.mxu3 }
 0x2cd   :  { %v1346_v49 = vpop.f32.mrf.mxu0  ;;  %v1366_v30 = vpop.f32.mrf.mxu1 }
 0x2ce   :  { %v1347_v36 = vadd.f32 %v1346_v49, %v1323_v56  ;;  %v1367_v27 = vadd.f32 %v1366_v30, %v1324_v13  ;;  %v3752_v56 = vld [vmem:[%s6959_s5 + $0x1] ss:$0 sm:$0xff]  ;;  %v5602_v30 = vld [vmem:[#allocation8 + $0x20] sm:$0xff] }
 0x2d0   :  { %v1389_v39 = vadd.f32 %v1347_v36, %v1174_v53  ;;  %v1409_v5 = vadd.f32 %v1367_v27, %v1194_v29  ;;  %v5593_v53 = vld [vmem:[#allocation8 + $0x38] sm:$0xff] }
 0x2d1   :  { %1966 = vmatpush.msrb.mxu1 %v5593_v53 }
 0x2d2   :  { %v3706_v42 = vmul.f32 -1.442695, %v1389_v39  ;;  %v3707_v17 = vmul.f32 -1.442695, %v1409_v5 }
 0x2d3   :  { %1967 = vmatpush.msrb.mxu1 %v5602_v30 }
 0x2d4   :  { %3813 = vpow2.f32 %v3706_v42  ;;  %v1508_v3 = vpop.f32.mrf.mxu3  ;;  %v5605_v42 = vld [vmem:[#allocation8 + $0x8] sm:$0xff] }
 0x2d5   :  { %3815 = vpow2.f32 %v3707_v17  ;;  %v1663_v0 = vadd.f32 %v1660_v14, %v1508_v3  ;;  %v1528_v59 = vpop.f32.mrf.mxu0  ;;  %v1433_v14 = vadd.f32 %v3752_v56, %v5497_v24  ;;  %v1325_v3 = vperm.slane %v5490_v34, 2  ;;  %1968 = vmatpush.msrb.mxu1 %v5605_v42 }
 0x2d6   :  { %v1683_v31 = vadd.f32 %v1661_v10, %v1528_v59 }
 0x2d7   :  { %v3709_v2 = vmul.f32 -1.442695, %v1663_v0 }
 0x2d8   :  { %v3710_v51 = vmul.f32 -1.442695, %v1683_v31 }
 0x2d9   :  { %3817 = vpow2.f32 %v3709_v2 }
 0x2da   :  { %v3814_v52 = vpop.eup %3813  ;;  %3819 = vpow2.f32 %v3710_v51  ;;  %v1386_v51 = vpop.f32.mrf.mxu2 }
 0x2db   :  { %v3816_v55 = vpop.eup %3815  ;;  %v1393_v63 = vadd.f32 1.0, %v3814_v52 }
 0x2dc   :  { %v5554_v57 = vadd.f32 1.0, %v3816_v55 }
 0x2dd   :  { %3821 = vrcp.f32 %v1393_v63  ;;  %v1403_v27 = vand.u32 2147483647, %v1393_v63  ;;  %v1405_v29 = vand.u32 2147483648, %v1393_v63  ;;  %vm1399_vm9 = vweird.f32 %v1393_v63 }
 0x2de   :  { %3823 = vrcp.f32 %v5554_v57  ;;  %v1425_v59 = vand.u32 2147483648, %v5554_v57  ;;  %vm1419_vm14 = vweird.f32 %v5554_v57 }
 0x2df   :  { %v3818_v26 = vpop.eup %3817  ;;  %vm1404_vm11 = vcmp.eq.f32.partialorder %v1403_v27, 8.507059e+37  ;;  %v1406_v52 = vor.u32 1.1754944e-38, %v1405_v29 }
 0x2e0   :  { %v3820_v6 = vpop.eup %3819  ;;  %v5569_v8 = vadd.f32 1.0, %v3818_v26 }
 0x2e1   :  { %v5577_v35 = vadd.f32 1.0, %v3820_v6 }
 0x2e2   :  { %3825 = vrcp.f32 %v5569_v8  ;;  %v1677_v55 = vand.u32 2147483647, %v5569_v8  ;;  %v1679_v6 = vand.u32 2147483648, %v5569_v8  ;;  %vm1673_vm0 = vweird.f32 %v5569_v8 }
 0x2e3   :  { %v3822_v11 = vpop.eup %3821  ;;  %3827 = vrcp.f32 %v5577_v35  ;;  %vm1693_vm5 = vweird.f32 %v5577_v35 }
 0x2e4   :  { %v5587_v46 = vpop.eup %3823  ;;  %v1395_v18 = vmul.f32 %v3822_v11, %v1393_v63  ;;  %vm1400_vm8 = vweird.f32 %v3822_v11  ;;  %v1548_v27 = vpop.f32.mrf.mxu1  ;;  %vm1678_vm2 = vcmp.eq.f32.partialorder %v1677_v55, 8.507059e+37 }
 0x2e5   :  { %v1415_v13 = vmul.f32 %v5587_v46, %v5554_v57  ;;  %vm1401_vm10 = vmor %vm1399_vm9, %vm1400_vm8  ;;  %vm1420_vm12 = vweird.f32 %v5587_v46 }
 0x2e6   :  { %v1396_v49 = vsub.f32 1.0, %v1395_v18  ;;  %vm5626_vm15 = vmor %vm1419_vm14, %vm1420_vm12 }
 0x2e7   :  { %v1416_v36 = vsub.f32 1.0, %v1415_v13  ;;  %v3753_v13 = vld [vmem:[%s6959_s5] ss:$0 sm:$0xff] }
 0x2e8   :  { %v3826_v39 = vpop.eup %3825  ;;  %v1397_v5 = vmul.f32 %v3822_v11, %v1396_v49  ;;  %v1387_v49 = vadd.f32 %v1386_v51, %v1325_v3  ;;  %v1707_v51 = vadd.f32 %v3753_v13, %v1548_v27 }
 0x2e9   :  { %v5607_v17 = vpop.eup %3827  ;;  %v1417_v10 = vmul.f32 %v5587_v46, %v1416_v36  ;;  %v1669_v0 = vmul.f32 %v3826_v39, %v5569_v8  ;;  %vm1674_vm13 = vweird.f32 %v3826_v39  ;;  %v1699_v8 = vand.u32 2147483648, %v5577_v35 }
 0x2ea   :  { %v1398_v31 = vadd.f32 %v3822_v11, %v1397_v5  ;;  %v1689_v2 = vmul.f32 %v5607_v17, %v5577_v35  ;;  %v1423_v5 = vand.u32 2147483647, %v5554_v57  ;;  %vm1675_vm1 = vmor %vm1673_vm0, %vm1674_vm13  ;;  %vm1694_vm3 = vweird.f32 %v5607_v17  ;;  %v1662_v57 = vld [vmem:[#allocation2 + $0x58] sm:$0xff] }
 0x2eb   :  { %v1670_v24 = vsub.f32 1.0, %v1669_v0  ;;  %v1418_v63 = vadd.f32 %v5587_v46, %v1417_v10  ;;  %v1426_v0 = vor.u32 1.1754944e-38, %v1425_v59  ;;  %vm1695_vm6 = vmor %vm1693_vm5, %vm1694_vm3 }
 0x2ec   :  { %v1402_v26 = vsel %vm1401_vm10, %v3822_v11, %v1398_v31  ;;  %v1690_v34 = vsub.f32 1.0, %v1689_v2  ;;  %v1680_v2 = vor.u32 1.1754944e-38, %v1679_v6  ;;  %vm1424_vm4 = vcmp.eq.f32.partialorder %v1423_v5, 8.507059e+37 }
 0x2ed   :  { %v1407_v18 = vsel %vm1404_vm11, %v1406_v52, %v1402_v26  ;;  %v1671_v56 = vmul.f32 %v3826_v39, %v1670_v24  ;;  %v1700_v6 = vor.u32 1.1754944e-38, %v1699_v8  ;;  %v5695_v8 = vld [vmem:[#allocation8 + $0xd0] sm:$0xff] }
 0x2ee   :  { %v1434_v36 = vmul.f32 %v1433_v14, %v1407_v18  ;;  %v1691_v11 = vmul.f32 %v5607_v17, %v1690_v34  ;;  %v1422_v14 = vsel %vm5626_vm15, %v5587_v46, %v1418_v63  ;;  %v1697_v34 = vand.u32 2147483647, %v5577_v35  ;;  %v5649_v35 = vld [vmem:[#allocation8 + $0x160] sm:$0xff]  ;;  %7572 = vst [vmem:[#allocation27_spill] sm:$0xff] %v5695_v8 }
 0x2ef   :  { %v1672_v10 = vadd.f32 %v3826_v39, %v1671_v56  ;;  %v1427_v26 = vsel %vm1424_vm4, %v1426_v0, %v1422_v14  ;;  %v5660_v0 = vld [vmem:[#allocation8 + $0x148] sm:$0xff]  ;;  %v5671_v14 = vld [vmem:[#allocation8 + $0x130] sm:$0xff] }
 0x2f0   :  { %v1435_v31 = vadd.f32 %v1434_v36, %v1387_v49  ;;  %v1692_v52 = vadd.f32 %v5607_v17, %v1691_v11  ;;  %v1437_v55 = vsub.f32 1.0, %v1427_v26  ;;  %vm1698_vm7 = vcmp.eq.f32.partialorder %v1697_v34, 8.507059e+37  ;;  %v5644_v36 = vld [vmem:[#allocation8 + $0x178] sm:$0xff]  ;;  %v5706_v34 = vld [vmem:[#allocation8 + $0x88] sm:$0xff] }
 0x2f1   :  { %v1676_v3 = vsel %vm1675_vm1, %v3826_v39, %v1672_v10  ;;  %v1439_v13 = vmul.f32 %v1427_v26, %v5363_v9  ;;  %v5656_v9 = vld [vmem:[#allocation8 + $0x2d0] sm:$0xff]  ;;  %v5703_v26 = vld [vmem:[#allocation8 + $0xa0] sm:$0xff]  ;;  %7575 = vst [vmem:[#allocation53_spill] sm:$0xff] %v5706_v34 }
 0x2f2   :  { %3829 = vtanh.f32 %v1435_v31  ;;  %v1681_v24 = vsel %vm1678_vm2, %v1680_v2, %v1676_v3  ;;  %v1696_v39 = vsel %vm1695_vm6, %v5607_v17, %v1692_v52  ;;  %v5651_v17 = vld [vmem:[#allocation8 + $0x2e8] sm:$0xff]  ;;  %v5658_v10 = vld [vmem:[#allocation8 + $0x2f0] sm:$0xff]  ;;  %v5667_v2 = vld [vmem:[#allocation8 + $0x2b8] sm:$0xff]  ;;  %7574 = vst [vmem:[#allocation19_spill] sm:$0xff] %v5703_v26 }
 0x2f3   :  { %v1708_v59 = vmul.f32 %v1707_v51, %v1681_v24  ;;  %v1701_v56 = vsel %vm1698_vm7, %v1700_v6, %v1696_v39  ;;  %v5676_v3 = vld [vmem:[#allocation8 + $0x118] sm:$0xff]  ;;  %v5681_v51 = vld [vmem:[#allocation8 + $0x2a0] sm:$0xff]  ;;  %v5691_v24 = vld [vmem:[#allocation8 + $0xe8] sm:$0xff] }
 0x2f4   :  { %v1711_v11 = vsub.f32 1.0, %v1701_v56  ;;  %v1713_v5 = vmul.f32 %v1701_v56, %v5380_v16  ;;  %v5669_v16 = vld [vmem:[#allocation8 + $0x2f8] sm:$0xff]  ;;  %v5685_v52 = vld [vmem:[#allocation8 + $0x100] sm:$0xff]  ;;  %v5718_v6 = vld [vmem:[#allocation8 + $0x28] sm:$0xff] }
 0x2f5   :  { %v1709_v46 = vadd.f32 %v1708_v59, %v1662_v57  ;;  %v5689_v57 = vld [vmem:[#allocation8 + $0x288] sm:$0xff]  ;;  %v5700_v59 = vld [vmem:[#allocation8 + $0xb8] sm:$0xff]  ;;  %7579 = vst [vmem:[#allocation57_spill] sm:$0xff] %v5718_v6 }
 0x2f6   :  { %7573 = vst [vmem:[#allocation37_spill] sm:$0xff] %v5700_v59  ;;  %v5712_v39 = vld [vmem:[#allocation8 + $0x58] sm:$0xff] }
 0x2f7   :  { %3831 = vtanh.f32 %v1709_v46  ;;  %v5709_v46 = vld [vmem:[#allocation8 + $0x70] sm:$0xff]  ;;  %7577 = vst [vmem:[#allocation39_spill] sm:$0xff] %v5712_v39  ;;  %v5728_v56 = vld [vmem:[#allocation8 + $0x2d8] sm:$0xff] }
 0x2f8   :  { %v3830_v18 = vpop.eup %3829  ;;  %7576 = vst [vmem:[#allocation29_spill] sm:$0xff] %v5709_v46 }
 0x2f9   :  { %v1438_v63 = vmul.f32 %v3830_v18, %v1437_v55  ;;  %v5715_v55 = vld [vmem:[#allocation8 + $0x40] sm:$0xff]  ;;  %v5721_v18 = vld [vmem:[#allocation8 + $0x10] sm:$0xff] }
 0x2fa   :  { %7578 = vst [vmem:[#allocation32_spill] sm:$0xff] %v5715_v55 }
 0x2fb   :  { %v5642_v49 = vadd.f32 %v1439_v13, %v1438_v63  ;;  %7580 = vst [vmem:[#allocation31_spill] sm:$0xff] %v5721_v18  ;;  %v5726_v63 = vld [vmem:[#allocation8 + $0x270] sm:$0xff]  ;;  %v5730_v13 = vld [vmem:[#allocation8 + $0x2e0] sm:$0xff] }
 0x2fc   :  { %7581 = vst [vmem:[#allocation22_spill] sm:$0xff] %v5726_v63 }
 0x2fd   :  { %v3832_v27 = vpop.eup %3831  ;;  %1442 = vst [vmem:[#allocation11 + $0x10] sm:$0xff] %v5642_v49  ;;  %1615 = vmatmul.f32.vlgmr.msrb.gmra.mxu2 %v5642_v49  ;;  %1635 = vmatmul.f32.vlgmr.msrb.gmra.mxu3 %v5642_v49 }
 0x2fe   :  { %v1712_v29 = vmul.f32 %v3832_v27, %v1711_v11  ;;  %1655 = vmatmul.f32.vlgmr.msra.gmra.mxu0 %v5642_v49  ;;  %1973 = vmatpush.msrb.mxu2 %v5644_v36  ;;  %v5734_v11 = vld [vmem:[#allocation7 + $0x168] sm:$0xff]  ;;  %v5736_v27 = vld [vmem:[#allocation8 + $0x258] sm:$0xff] }
 0x2ff   :  { %2041 = vmatpush.msrb.mxu3 %v5651_v17  ;;  %2061 = vmatpush.msra.mxu0 %v5658_v10  ;;  %7582 = vst [vmem:[#allocation42_spill] sm:$0xff] %v5734_v11 }
 0x300   :  { %v5664_v31 = vadd.f32 %v1713_v5, %v1712_v29  ;;  %1974 = vmatpush.msrb.mxu2 %v5649_v35  ;;  %7583 = vst [vmem:[#allocation61_spill] sm:$0xff] %v5736_v27  ;;  %v5738_v29 = vld [vmem:[#allocation8 + $0x2c0] sm:$0xff]  ;;  %v5742_v5 = vld [vmem:[#allocation8 + $0x2c8] sm:$0xff] }
 0x301   :  { %2042 = vmatpush.msrb.mxu3 %v5656_v9  ;;  %2062 = vmatpush.msra.mxu0 %v5728_v56 }
 0x302   :  { %1787 = vmatmul.f32.vlgmr.msra.gmra.mxu1 %v5664_v31  ;;  %1975 = vmatpush.msrb.mxu2 %v5660_v0 }
 0x303   :  { %2043 = vmatpush.msrb.mxu3 %v5667_v2  ;;  %2081 = vmatpush.msra.mxu1 %v5669_v16 }
 0x304   :  { %1976 = vmatpush.msrb.mxu2 %v5671_v14  ;;  %2063 = vmatpush.msra.mxu0 %v5738_v29 }
 0x305   :  { %1807 = vmatmul.f32.vlgmr.msra.gmra.mxu2 %v5664_v31  ;;  %1827 = vmatmul.f32.vlgmr.msra.gmra.mxu3 %v5664_v31 }
 0x306   :  { %1949 = vmatmul.f32.vlgmr.msrb.gmra.mxu0 %v5664_v31  ;;  %1977 = vmatpush.msrb.mxu2 %v5676_v3 }
 0x307   :  { %2044 = vmatpush.msrb.mxu3 %v5681_v51  ;;  %2082 = vmatpush.msra.mxu1 %v5730_v13 }
 0x308   :  { %1978 = vmatpush.msrb.mxu2 %v5685_v52 }
 0x309   :  { %2045 = vmatpush.msrb.mxu3 %v5689_v57  ;;  %2083 = vmatpush.msra.mxu1 %v5742_v5 }
 0x30a   :  { %1969 = vmatmul.f32.vlgmr.msrb.gmra.mxu1 %v5664_v31  ;;  %1979 = vmatpush.msrb.mxu2 %v5691_v24 }
 0x30b   :  { %2046 = vmatpush.msrb.mxu3 %v5726_v63  ;;  %v5918_v63 = vld [vmem:[#allocation7 + $0xf8] sm:$0xff] }
 0x30c   :  { %1980 = vmatpush.msrb.mxu2 %v5695_v8  ;;  %v5806_v8 = vld [vmem:[#allocation7 + $0xd8] sm:$0xff]  ;;  %7638 = vst [vmem:[#allocation58_spill] sm:$0xff] %v5918_v63 }
 0x30d   :  { %2047 = vmatpush.msrb.mxu3 %v5736_v27  ;;  %v5782_v27 = vld [vmem:[#allocation7 + $0x108] sm:$0xff]  ;;  %7602 = vst [vmem:[#allocation47_spill] sm:$0xff] %v5806_v8 }
 0x30e   :  { %1981 = vmatpush.msrb.mxu2 %v5700_v59  ;;  %v5776_v59 = vld [vmem:[#allocation8 + $0x278] sm:$0xff]  ;;  %7594 = vst [vmem:[#allocation51_spill] sm:$0xff] %v5782_v27 }
 0x30f   :  { %7592 = vst [vmem:[#allocation26_spill] sm:$0xff] %v5776_v59 }
 0x310   :  { %1982 = vmatpush.msrb.mxu2 %v5703_v26  ;;  %v5770_v26 = vld [vmem:[#allocation7 + $0x120] sm:$0xff] }
 0x311   :  { %7590 = vst [vmem:[#allocation33_spill] sm:$0xff] %v5770_v26 }
 0x312   :  { %1983 = vmatpush.msrb.mxu2 %v5706_v34  ;;  %v5764_v34 = vld [vmem:[#allocation8 + $0x290] sm:$0xff] }
 0x313   :  { %7588 = vst [vmem:[#allocation69_spill] sm:$0xff] %v5764_v34 }
 0x314   :  { %1984 = vmatpush.msrb.mxu2 %v5709_v46  ;;  %v5762_v46 = vld [vmem:[#allocation8 + $0x228] sm:$0xff] }
 0x315   :  { %7587 = vst [vmem:[#allocation24_spill] sm:$0xff] %v5762_v46 }
 0x316   :  { %1985 = vmatpush.msrb.mxu2 %v5712_v39  ;;  %v5754_v39 = vld [vmem:[#allocation8 + $0x2b0] sm:$0xff] }
 0x317   :  { %2084 = vmatpush.msra.mxu1 %v5754_v39 }
 0x318   :  { %1986 = vmatpush.msrb.mxu2 %v5715_v55  ;;  %v5752_v55 = vld [vmem:[#allocation8 + $0x2a8] sm:$0xff] }
 0x319   :  { %2064 = vmatpush.msra.mxu0 %v5752_v55 }
 0x31a   :  { %1987 = vmatpush.msrb.mxu2 %v5718_v6  ;;  %v5750_v6 = vld [vmem:[#allocation8 + $0x240] sm:$0xff] }
 0x31b   :  { %7585 = vst [vmem:[#allocation34_spill] sm:$0xff] %v5750_v6  ;;  %2048 = vmatpush.msrb.mxu3 %v5750_v6  ;;  %2065 = vmatpush.msra.mxu0 %v5764_v34  ;;  %v5774_v6 = vld [vmem:[#allocation8 + $0x210] sm:$0xff]  ;;  %v5880_v34 = vld [vmem:[#allocation7 + $0x140] sm:$0xff] }
 0x31c   :  { %1988 = vmatpush.msrb.mxu2 %v5721_v18  ;;  %v5744_v18 = vld [vmem:[#allocation7 + $0x150] sm:$0xff]  ;;  %7591 = vst [vmem:[#allocation73_spill] sm:$0xff] %v5774_v6 }
 0x31d   :  { %1989 = vmatmul.f32.vlgmr.msrb.gmra.mxu2 %v5664_v31  ;;  %7584 = vst [vmem:[#allocation35_spill] sm:$0xff] %v5744_v18  ;;  %2049 = vmatpush.msrb.mxu3 %v5762_v46  ;;  %v5786_v46 = vld [vmem:[#allocation8 + $0x1f8] sm:$0xff] }
 0x31e   :  { %2213 = vmatpush.msra.mxu2 %v5734_v11  ;;  %v5758_v11 = vld [vmem:[#allocation7 + $0x138] sm:$0xff]  ;;  %2066 = vmatpush.msra.mxu0 %v5776_v59  ;;  %7595 = vst [vmem:[#allocation77_spill] sm:$0xff] %v5786_v46  ;;  %v5798_v59 = vld [vmem:[#allocation8 + $0x1e0] sm:$0xff] }
 0x31f   :  { %7586 = vst [vmem:[#allocation45_spill] sm:$0xff] %v5758_v11  ;;  %2050 = vmatpush.msrb.mxu3 %v5774_v6  ;;  %v5794_v6 = vld [vmem:[#allocation7 + $0xf0] sm:$0xff] }
 0x320   :  { %2214 = vmatpush.msra.mxu2 %v5744_v18  ;;  %v5766_v18 = vld [vmem:[#allocation8 + $0x298] sm:$0xff]  ;;  %7598 = vst [vmem:[#allocation63_spill] sm:$0xff] %v5794_v6 }
 0x321   :  { %7589 = vst [vmem:[#allocation20_spill] sm:$0xff] %v5766_v18  ;;  %2085 = vmatpush.msra.mxu1 %v5766_v18  ;;  %v5788_v18 = vld [vmem:[#allocation8 + $0x260] sm:$0xff]  ;;  %2051 = vmatpush.msrb.mxu3 %v5786_v46  ;;  %v5810_v46 = vld [vmem:[#allocation8 + $0x1c8] sm:$0xff] }
 0x322   :  { %2215 = vmatpush.msra.mxu2 %v5758_v11  ;;  %v5780_v11 = vld [vmem:[#allocation8 + $0x280] sm:$0xff]  ;;  %7596 = vst [vmem:[#allocation28_spill] sm:$0xff] %v5788_v18  ;;  %2067 = vmatpush.msra.mxu0 %v5788_v18  ;;  %v5830_v18 = vld [vmem:[#allocation7 + $0xa8] sm:$0xff] }
 0x323   :  { %7593 = vst [vmem:[#allocation36_spill] sm:$0xff] %v5780_v11  ;;  %2086 = vmatpush.msra.mxu1 %v5780_v11  ;;  %v5800_v11 = vld [vmem:[#allocation8 + $0x248] sm:$0xff]  ;;  %2052 = vmatpush.msrb.mxu3 %v5798_v59 }
 0x324   :  { %2216 = vmatpush.msra.mxu2 %v5770_v26  ;;  %v5790_v26 = vld [vmem:[#allocation8 + $0x268] sm:$0xff]  ;;  %7599 = vst [vmem:[#allocation81_spill] sm:$0xff] %v5798_v59  ;;  %2068 = vmatpush.msra.mxu0 %v5800_v11  ;;  %v5818_v59 = vld [vmem:[#allocation7 + $0xc0] sm:$0xff] }
 0x325   :  { %7597 = vst [vmem:[#allocation21_spill] sm:$0xff] %v5790_v26  ;;  %2087 = vmatpush.msra.mxu1 %v5790_v26  ;;  %v5812_v26 = vld [vmem:[#allocation8 + $0x230] sm:$0xff]  ;;  %2053 = vmatpush.msrb.mxu3 %v5810_v46 }
 0x326   :  { %2217 = vmatpush.msra.mxu2 %v5782_v27  ;;  %7600 = vst [vmem:[#allocation30_spill] sm:$0xff] %v5800_v11  ;;  %v5804_v27 = vld [vmem:[#allocation8 + $0x250] sm:$0xff]  ;;  %2069 = vmatpush.msra.mxu0 %v5812_v26 }
 0x327   :  { %7601 = vst [vmem:[#allocation23_spill] sm:$0xff] %v5804_v27  ;;  %2088 = vmatpush.msra.mxu1 %v5804_v27  ;;  %v5822_v11 = vld [vmem:[#allocation8 + $0x1b0] sm:$0xff]  ;;  %v5824_v27 = vld [vmem:[#allocation8 + $0x218] sm:$0xff] }
 0x328   :  { %2218 = vmatpush.msra.mxu2 %v5794_v6  ;;  %7603 = vst [vmem:[#allocation49_spill] sm:$0xff] %v5810_v46  ;;  %v5814_v6 = vld [vmem:[#allocation8 + $0x238] sm:$0xff]  ;;  %2054 = vmatpush.msrb.mxu3 %v5822_v11 }
 0x329   :  { %7604 = vst [vmem:[#allocation50_spill] sm:$0xff] %v5812_v26  ;;  %2089 = vmatpush.msra.mxu1 %v5814_v6  ;;  %2070 = vmatpush.msra.mxu0 %v5824_v27  ;;  %v5834_v46 = vld [vmem:[#allocation8 + $0x198] sm:$0xff]  ;;  %v5842_v26 = vld [vmem:[#allocation7 + $0x90] sm:$0xff] }
 0x32a   :  { %2219 = vmatpush.msra.mxu2 %v5806_v8  ;;  %7605 = vst [vmem:[#allocation25_spill] sm:$0xff] %v5814_v6  ;;  %v5826_v8 = vld [vmem:[#allocation8 + $0x220] sm:$0xff]  ;;  %2055 = vmatpush.msrb.mxu3 %v5834_v46 }
 0x32b   :  { %7606 = vst [vmem:[#allocation64_spill] sm:$0xff] %v5818_v59  ;;  %2090 = vmatpush.msra.mxu1 %v5826_v8  ;;  %v5836_v6 = vld [vmem:[#allocation8 + $0x200] sm:$0xff] }
 0x32c   :  { %2220 = vmatpush.msra.mxu2 %v5818_v59  ;;  %7607 = vst [vmem:[#allocation38_spill] sm:$0xff] %v5822_v11  ;;  %v5838_v59 = vld [vmem:[#allocation8 + $0x208] sm:$0xff]  ;;  %2071 = vmatpush.msra.mxu0 %v5836_v6  ;;  %v5846_v11 = vld [vmem:[#allocation8 + $0x180] sm:$0xff] }
 0x32d   :  { %7608 = vst [vmem:[#allocation65_spill] sm:$0xff] %v5824_v27  ;;  %2091 = vmatpush.msra.mxu1 %v5838_v59  ;;  %2056 = vmatpush.msrb.mxu3 %v5846_v11  ;;  %v5854_v27 = vld [vmem:[#allocation7 + $0x78] sm:$0xff] }
 0x32e   :  { %7609 = vst [vmem:[#allocation59_spill] sm:$0xff] %v5826_v8  ;;  %2221 = vmatpush.msra.mxu2 %v5830_v18  ;;  %v5848_v8 = vld [vmem:[#allocation8 + $0x1e8] sm:$0xff] }
 0x32f   :  { %7610 = vst [vmem:[#allocation52_spill] sm:$0xff] %v5830_v18  ;;  %v5850_v18 = vld [vmem:[#allocation8 + $0x1f0] sm:$0xff]  ;;  %2072 = vmatpush.msra.mxu0 %v5848_v8 }
 0x330   :  { %7611 = vst [vmem:[#allocation79_spill] sm:$0xff] %v5834_v46  ;;  %2222 = vmatpush.msra.mxu2 %v5842_v26  ;;  %v5856_v46 = vld [vmem:[#allocation7 + $0x170] sm:$0xff]  ;;  %2092 = vmatpush.msra.mxu1 %v5850_v18 }
 0x331   :  { %7612 = vst [vmem:[#allocation40_spill] sm:$0xff] %v5836_v6  ;;  %v5864_v6 = vld [vmem:[#allocation7 + $0x60] sm:$0xff]  ;;  %2233 = vmatpush.msra.mxu3 %v5856_v46 }
 0x332   :  { %7613 = vst [vmem:[#allocation44_spill] sm:$0xff] %v5838_v59  ;;  %2223 = vmatpush.msra.mxu2 %v5854_v27  ;;  %v5860_v59 = vld [vmem:[#allocation8 + $0x1d0] sm:$0xff] }
 0x333   :  { %7614 = vst [vmem:[#allocation67_spill] sm:$0xff] %v5842_v26  ;;  %v5862_v26 = vld [vmem:[#allocation8 + $0x1d8] sm:$0xff]  ;;  %2073 = vmatpush.msra.mxu0 %v5860_v59 }
 0x334   :  { %7615 = vst [vmem:[#allocation66_spill] sm:$0xff] %v5846_v11  ;;  %v5868_v11 = vld [vmem:[#allocation7 + $0x158] sm:$0xff]  ;;  %2093 = vmatpush.msra.mxu1 %v5862_v26  ;;  %2224 = vmatpush.msra.mxu2 %v5864_v6 }
 0x335   :  { %7616 = vst [vmem:[#allocation43_spill] sm:$0xff] %v5848_v8  ;;  %v5872_v8 = vld [vmem:[#allocation8 + $0x1b8] sm:$0xff]  ;;  %2234 = vmatpush.msra.mxu3 %v5868_v11 }
 0x336   :  { %7617 = vst [vmem:[#allocation60_spill] sm:$0xff] %v5850_v18  ;;  %v5874_v18 = vld [vmem:[#allocation8 + $0x1c0] sm:$0xff]  ;;  %2074 = vmatpush.msra.mxu0 %v5872_v8 }
 0x337   :  { %7618 = vst [vmem:[#allocation54_spill] sm:$0xff] %v5854_v27  ;;  %v5876_v27 = vld [vmem:[#allocation7 + $0x48] sm:$0xff]  ;;  %2094 = vmatpush.msra.mxu1 %v5874_v18  ;;  %2235 = vmatpush.msra.mxu3 %v5880_v34 }
 0x338   :  { %7619 = vst [vmem:[#allocation80_spill] sm:$0xff] %v5856_v46  ;;  %2225 = vmatpush.msra.mxu2 %v5876_v27  ;;  %v5884_v46 = vld [vmem:[#allocation8 + $0x1a0] sm:$0xff] }
 0x339   :  { %7620 = vst [vmem:[#allocation46_spill] sm:$0xff] %v5860_v59  ;;  %2075 = vmatpush.msra.mxu0 %v5884_v46  ;;  %v5892_v59 = vld [vmem:[#allocation7 + $0x128] sm:$0xff] }
 0x33a   :  { %7621 = vst [vmem:[#allocation75_spill] sm:$0xff] %v5862_v26  ;;  %v5886_v26 = vld [vmem:[#allocation8 + $0x1a8] sm:$0xff]  ;;  %2236 = vmatpush.msra.mxu3 %v5892_v59 }
 0x33b   :  { %7622 = vst [vmem:[#allocation68_spill] sm:$0xff] %v5864_v6  ;;  %v5888_v6 = vld [vmem:[#allocation7 + $0x30] sm:$0xff]  ;;  %2095 = vmatpush.msra.mxu1 %v5886_v26 }
 0x33c   :  { %7623 = vst [vmem:[#allocation84_spill] sm:$0xff] %v5868_v11  ;;  %2226 = vmatpush.msra.mxu2 %v5888_v6  ;;  %v5896_v11 = vld [vmem:[#allocation8 + $0x188] sm:$0xff] }
 0x33d   :  { %7624 = vst [vmem:[#allocation48_spill] sm:$0xff] %v5872_v8  ;;  %v5902_v8 = vld [vmem:[#allocation10 + $0x3] sm:$0x7]  ;;  %2076 = vmatpush.msra.mxu0 %v5896_v11 }
 0x33e   :  { %7625 = vst [vmem:[#allocation62_spill] sm:$0xff] %v5874_v18  ;;  %v5898_v18 = vld [vmem:[#allocation8 + $0x190] sm:$0xff] }
 0x33f   :  { %7626 = vst [vmem:[#allocation83_spill] sm:$0xff] %v5876_v27  ;;  %v5900_v27 = vld [vmem:[#allocation7 + $0x18] sm:$0xff]  ;;  %2096 = vmatpush.msra.mxu1 %v5898_v18 }
 0x340   :  { %7627 = vst [vmem:[#allocation82_spill] sm:$0xff] %v5880_v34  ;;  %v5906_v34 = vld [vmem:[#allocation7 + $0x110] sm:$0xff]  ;;  %2227 = vmatpush.msra.mxu2 %v5900_v27 }
 0x341   :  { %7628 = vst [vmem:[#allocation55_spill] sm:$0xff] %v5884_v46  ;;  %v5908_v46 = vld [vmem:[#allocation7 + $0x178] sm:$0xff]  ;;  %2237 = vmatpush.msra.mxu3 %v5906_v34  ;;  %2375 = vmatpush.msrb.mxu1 %v5492_v38  ;;  %v5935_v38 = vld [vmem:[#allocation7 + $0xc8] sm:$0xff] }
 0x342   :  { %7629 = vst [vmem:[#allocation76_spill] sm:$0xff] %v5886_v26  ;;  %2253 = vmatpush.msrb.mxu0 %v5908_v46 }
 0x343   :  { %7630 = vst [vmem:[#allocation70_spill] sm:$0xff] %v5888_v6  ;;  %v5912_v6 = vld [vmem:[#allocation7] sm:$0xff]  ;;  %2238 = vmatpush.msra.mxu3 %v5918_v63  ;;  %2376 = vmatpush.msrb.mxu1 %v5495_v22  ;;  %v5943_v22 = vld [vmem:[#allocation7 + $0xb0] sm:$0xff] }
 0x344   :  { %7631 = vst [vmem:[#allocation90_spill] sm:$0xff] %v5892_v59  ;;  %v5920_v59 = vld [vmem:[#allocation7 + $0x160] sm:$0xff]  ;;  %2228 = vmatpush.msra.mxu2 %v5912_v6 }
 0x345   :  { %7632 = vst [vmem:[#allocation41_spill] sm:$0xff] %v5896_v11  ;;  %v1765_v11 = vperm.slane %v5902_v8, 0  ;;  %2254 = vmatpush.msrb.mxu0 %v5920_v59  ;;  %2377 = vmatpush.msrb.mxu1 %v5502_v43  ;;  %v5951_v43 = vld [vmem:[#allocation7 + $0x98] sm:$0xff] }
 0x346   :  { %7633 = vst [vmem:[#allocation74_spill] sm:$0xff] %v5898_v18  ;;  %v5929_v18 = vld [vmem:[#allocation7 + $0x148] sm:$0xff]  ;;  %2395 = vmatpush.msrb.mxu2 %v5504_v60  ;;  %v5945_v60 = vld [vmem:[#allocation7 + $0x118] sm:$0xff] }
 0x347   :  { %7634 = vst [vmem:[#allocation56_spill] sm:$0xff] %v5900_v27  ;;  %v5927_v27 = vld [vmem:[#allocation7 + $0xe0] sm:$0xff]  ;;  %2255 = vmatpush.msrb.mxu0 %v5929_v18  ;;  %2378 = vmatpush.msrb.mxu1 %v5508_v62  ;;  %v1766_v62 = vperm.slane %v5902_v8, 1 }
 0x348   :  { %7635 = vst [vmem:[#allocation86_spill] sm:$0xff] %v5906_v34  ;;  %2239 = vmatpush.msra.mxu3 %v5927_v27  ;;  %2396 = vmatpush.msrb.mxu2 %v5510_v50  ;;  %v5953_v50 = vld [vmem:[#allocation7 + $0x100] sm:$0xff] }
 0x349   :  { %7636 = vst [vmem:[#allocation71_spill] sm:$0xff] %v5908_v46  ;;  %2379 = vmatpush.msrb.mxu1 %v5514_v54 }
 0x34a   :  { %7637 = vst [vmem:[#allocation89_spill] sm:$0xff] %v5912_v6  ;;  %v5937_v6 = vld [vmem:[#allocation7 + $0x130] sm:$0xff]  ;;  %2240 = vmatpush.msra.mxu3 %v5935_v38  ;;  %2397 = vmatpush.msrb.mxu2 %v5516_v12  ;;  %v5960_v12 = vld [vmem:[#allocation7 + $0x80] sm:$0xff] }
 0x34b   :  { %7639 = vst [vmem:[#allocation72_spill] sm:$0xff] %v5920_v59  ;;  %v2102_v59 = vld [vmem:[#allocation2 + $0x60] sm:$0xff]  ;;  %2256 = vmatpush.msrb.mxu0 %v5937_v6  ;;  %2380 = vmatpush.msrb.mxu1 %v5520_v21 }
 0x34c   :  { %7640 = vst [vmem:[#allocation85_spill] sm:$0xff] %v5927_v27  ;;  %2241 = vmatpush.msra.mxu3 %v5943_v22  ;;  %2398 = vmatpush.msrb.mxu2 %v5522_v15  ;;  %v5968_v15 = vld [vmem:[#allocation7 + $0x68] sm:$0xff]  ;;  %v5976_v21 = vld [vmem:[#allocation7 + $0x50] sm:$0xff] }
 0x34d   :  { %7641 = vst [vmem:[#allocation87_spill] sm:$0xff] %v5935_v38  ;;  %2257 = vmatpush.msrb.mxu0 %v5945_v60  ;;  %2381 = vmatpush.msrb.mxu1 %v5526_v48  ;;  %v5984_v48 = vld [vmem:[#allocation7 + $0x38] sm:$0xff] }
 0x34e   :  { %7642 = vst [vmem:[#allocation78_spill] sm:$0xff] %v5943_v22  ;;  %2242 = vmatpush.msra.mxu3 %v5951_v43  ;;  %2399 = vmatpush.msrb.mxu2 %v5528_v37  ;;  %v5978_v37 = vld [vmem:[#allocation7 + $0xb8] sm:$0xff] }
 0x34f   :  { %2258 = vmatpush.msrb.mxu0 %v5953_v50  ;;  %7643 = vst [vmem:[#allocation88_spill] sm:$0xff] %v5960_v12  ;;  %2382 = vmatpush.msrb.mxu1 %v5532_v7 }
 0x350   :  { %2243 = vmatpush.msra.mxu3 %v5960_v12  ;;  %2400 = vmatpush.msrb.mxu2 %v5534_v28  ;;  %v5986_v28 = vld [vmem:[#allocation7 + $0xa0] sm:$0xff] }
 0x351   :  { %2383 = vmatpush.msrb.mxu1 %v5538_v40 }
 0x352   :  { %2244 = vmatpush.msra.mxu3 %v5968_v15  ;;  %2401 = vmatpush.msrb.mxu2 %v5540_v44  ;;  %v5994_v44 = vld [vmem:[#allocation7 + $0x20] sm:$0xff] }
 0x353   :  { %7644 = vst [vmem:[#allocation94_spill] sm:$0xff] %v5994_v44  ;;  %2384 = vmatpush.msrb.mxu1 %v5544_v45  ;;  %v6014_v45 = vld [vmem:[#allocation7 + $0x58] sm:$0xff] }
 0x354   :  { %2245 = vmatpush.msra.mxu3 %v5976_v21  ;;  %2402 = vmatpush.msrb.mxu2 %v5546_v47  ;;  %v6005_v47 = vld [vmem:[#allocation7 + $0x8] sm:$0xff]  ;;  %7646 = vst [vmem:[#allocation92_spill] sm:$0xff] %v6014_v45 }
 0x355   :  { %7645 = vst [vmem:[#allocation91_spill] sm:$0xff] %v6005_v47  ;;  %2385 = vmatpush.msrb.mxu1 %v5550_v58  ;;  %v6021_v58 = vld [vmem:[#allocation7 + $0x40] sm:$0xff] }
 0x356   :  { %2246 = vmatpush.msra.mxu3 %v5984_v48  ;;  %2403 = vmatpush.msrb.mxu2 %v5552_v32  ;;  %7647 = vst [vmem:[#allocation95_spill] sm:$0xff] %v6021_v58 }
 0x357   :  { %2386 = vmatpush.msrb.mxu1 %v5558_v19 }
 0x358   :  { %2247 = vmatpush.msra.mxu3 %v5994_v44  ;;  %2404 = vmatpush.msrb.mxu2 %v5560_v23 }
 0x359   :  { %2387 = vmatpush.msrb.mxu1 %v5565_v25  ;;  %v6035_v25 = vld [vmem:[#allocation7 + $0x10] sm:$0xff] }
 0x35a   :  { %2248 = vmatpush.msra.mxu3 %v6005_v47  ;;  %2405 = vmatpush.msrb.mxu2 %v5567_v1  ;;  %7649 = vst [vmem:[#allocation96_spill] sm:$0xff] %v6035_v25 }
 0x35b   :  { %2388 = vmatpush.msrb.mxu1 %v5573_v20  ;;  %v3754_v20 = vld [vmem:[%s6959_s5 + $0x1] ss:$0 sm:$0xff] }
 0x35c   :  { %2406 = vmatpush.msrb.mxu2 %v5575_v4 }
 0x35d   :  { %2389 = vmatpush.msrb.mxu1 %v5582_v41 }
 0x35e   :  { %2407 = vmatpush.msrb.mxu2 %v5584_v61 }
 0x35f   :  { %2390 = vmatpush.msrb.mxu1 %v5591_v33 }
 0x360   :  { %2408 = vmatpush.msrb.mxu2 %v5593_v53  ;;  %v1767_v53 = vperm.slane %v5902_v8, 2  ;;  %v3755_v8 = vld [vmem:[%s6959_s5] ss:$0 sm:$0xff] }
 0x362   :  { %2409 = vmatpush.msrb.mxu2 %v5602_v30 }
 0x364   :  { %2410 = vmatpush.msrb.mxu2 %v5605_v42 }
 0x37b   :  { %v5914_v26 = vpop.f32.mrf.mxu0 }
 0x37c   :  { %v1875_v33 = vadd.f32 %v3754_v20, %v5914_v26 }
 0x37f   :  { %v1788_v34 = vpop.f32.mrf.mxu1 }
 0x380   :  { %v1789_v63 = vadd.f32 %v1788_v34, %v1765_v11  ;;  %v1616_v46 = vpop.f32.mrf.mxu2 }
 0x382   :  { %v1831_v27 = vadd.f32 %v1789_v63, %v1616_v46  ;;  %v2103_v46 = vld [vmem:[#allocation2 + $0x68] sm:$0xff]  ;;  %v5962_v63 = vld [vmem:[#allocation7 + $0xe8] sm:$0xff] }
 0x383   :  { %v1950_v34 = vpop.f32.mrf.mxu0  ;;  %2259 = vmatpush.msrb.mxu0 %v5962_v63 }
 0x384   :  { %v3711_v11 = vmul.f32 -1.442695, %v1831_v27  ;;  %v2105_v38 = vadd.f32 %v2102_v59, %v1950_v34  ;;  %v5970_v59 = vld [vmem:[#allocation7 + $0xd0] sm:$0xff] }
 0x385   :  { %2260 = vmatpush.msrb.mxu0 %v5970_v59 }
 0x386   :  { %3833 = vpow2.f32 %v3711_v11  ;;  %v3714_v22 = vmul.f32 -1.442695, %v2105_v38  ;;  %v1636_v11 = vpop.f32.mrf.mxu3 }
 0x387   :  { %v1970_v54 = vpop.f32.mrf.mxu1  ;;  %2261 = vmatpush.msrb.mxu0 %v5978_v37 }
 0x388   :  { %3835 = vpow2.f32 %v3714_v22  ;;  %v2125_v27 = vadd.f32 %v2103_v46, %v1970_v54  ;;  %v1808_v34 = vpop.f32.mrf.mxu2  ;;  %v5996_v54 = vld [vmem:[#allocation7 + $0x88] sm:$0xff] }
 0x389   :  { %v1809_v38 = vadd.f32 %v1808_v34, %v1766_v62  ;;  %2262 = vmatpush.msrb.mxu0 %v5986_v28 }
 0x38a   :  { %v3715_v12 = vmul.f32 -1.442695, %v2125_v27 }
 0x38b   :  { %v1851_v22 = vadd.f32 %v1809_v38, %v1636_v11  ;;  %2263 = vmatpush.msrb.mxu0 %v5996_v54  ;;  %v6027_v38 = vld [vmem:[#allocation7 + $0x28] sm:$0xff] }
 0x38c   :  { %v3834_v46 = vpop.eup %3833  ;;  %3837 = vpow2.f32 %v3715_v12  ;;  %v6007_v12 = vld [vmem:[#allocation7 + $0x70] sm:$0xff]  ;;  %7648 = vst [vmem:[#allocation93_spill] sm:$0xff] %v6027_v38 }
 0x38d   :  { %v5990_v62 = vadd.f32 1.0, %v3834_v46  ;;  %v3712_v7 = vmul.f32 -1.442695, %v1851_v22  ;;  %2264 = vmatpush.msrb.mxu0 %v6007_v12 }
 0x38e   :  { %v3836_v27 = vpop.eup %3835 }
 0x38f   :  { %3839 = vrcp.f32 %v5990_v62  ;;  %v6001_v40 = vadd.f32 1.0, %v3836_v27  ;;  %2265 = vmatpush.msrb.mxu0 %v6014_v45  ;;  %v1847_v61 = vand.u32 2147483648, %v5990_v62  ;;  %v1845_v27 = vand.u32 2147483647, %v5990_v62 }
 0x390   :  { %3841 = vpow2.f32 %v3712_v7  ;;  %vm1841_vm9 = vweird.f32 %v5990_v62 }
 0x391   :  { %3843 = vrcp.f32 %v6001_v40  ;;  %2266 = vmatpush.msrb.mxu0 %v6021_v58  ;;  %v2121_v58 = vand.u32 2147483648, %v6001_v40  ;;  %v1848_v30 = vor.u32 1.1754944e-38, %v1847_v61  ;;  %vm1846_vm12 = vcmp.eq.f32.partialorder %v1845_v27, 8.507059e+37 }
 0x392   :  { %v3838_v32 = vpop.eup %3837  ;;  %vm2115_vm13 = vweird.f32 %v6001_v40 }
 0x393   :  { %v6018_v34 = vadd.f32 1.0, %v3838_v32  ;;  %2267 = vmatpush.msrb.mxu0 %v6027_v38  ;;  %v1828_v38 = vpop.f32.mrf.mxu3  ;;  %v2122_v44 = vor.u32 1.1754944e-38, %v2121_v58 }
 0x395   :  { %v3840_v23 = vpop.eup %3839  ;;  %3845 = vrcp.f32 %v6018_v34  ;;  %2268 = vmatpush.msrb.mxu0 %v6035_v25  ;;  %vm2135_vm0 = vweird.f32 %v6018_v34 }
 0x396   :  { %v3842_v19 = vpop.eup %3841  ;;  %v1837_v1 = vmul.f32 %v3840_v23, %v5990_v62  ;;  %vm1842_vm8 = vweird.f32 %v3840_v23 }
 0x397   :  { %v3844_v11 = vpop.eup %3843  ;;  %v6032_v22 = vadd.f32 1.0, %v3842_v19  ;;  %v2119_v19 = vand.u32 2147483647, %v6001_v40  ;;  %vm1843_vm10 = vmor %vm1841_vm9, %vm1842_vm8 }
 0x398   :  { %v1838_v4 = vsub.f32 1.0, %v1837_v1  ;;  %v2111_v46 = vmul.f32 %v3844_v11, %v6001_v40  ;;  %vm2116_vm11 = vweird.f32 %v3844_v11  ;;  %v2139_v40 = vand.u32 2147483647, %v6018_v34 }
 0x399   :  { %3847 = vrcp.f32 %v6032_v22  ;;  %vm2120_vm14 = vcmp.eq.f32.partialorder %v2119_v19, 8.507059e+37  ;;  %vm2117_vm15 = vmor %vm2115_vm13, %vm2116_vm11  ;;  %v2141_v19 = vand.u32 2147483648, %v6018_v34  ;;  %v1865_v58 = vand.u32 2147483647, %v6032_v22 }
 0x39a   :  { %v1839_v7 = vmul.f32 %v3840_v23, %v1838_v4  ;;  %v2112_v32 = vsub.f32 1.0, %v2111_v46  ;;  %vm1861_vm4 = vweird.f32 %v6032_v22  ;;  %vm2140_vm6 = vcmp.eq.f32.partialorder %v2139_v40, 8.507059e+37  ;;  %v7676_v40 = vld [vmem:[#allocation32_spill] sm:$0xff] }
 0x39b   :  { %v3846_v41 = vpop.eup %3845  ;;  %vm1866_vm7 = vcmp.eq.f32.partialorder %v1865_v58, 8.507059e+37  ;;  %v7681_v58 = vld [vmem:[#allocation60_spill] sm:$0xff] }
 0x39c   :  { %v2131_v1 = vmul.f32 %v3846_v41, %v6018_v34  ;;  %v1840_v25 = vadd.f32 %v3840_v23, %v1839_v7  ;;  %v2113_v4 = vmul.f32 %v3844_v11, %v2112_v32  ;;  %v1829_v32 = vadd.f32 %v1828_v38, %v1767_v53  ;;  %v2104_v53 = vld [vmem:[#allocation2 + $0x70] sm:$0xff] }
 0x39d   :  { %vm2136_vm1 = vweird.f32 %v3846_v41 }
 0x39e   :  { %v2132_v62 = vsub.f32 1.0, %v2131_v1  ;;  %v1844_v46 = vsel %vm1843_vm10, %v3840_v23, %v1840_v25  ;;  %v2114_v47 = vadd.f32 %v3844_v11, %v2113_v4  ;;  %vm2137_vm3 = vmor %vm2135_vm0, %vm2136_vm1 }
 0x39f   :  { %v3848_v7 = vpop.eup %3847  ;;  %v1849_v45 = vsel %vm1846_vm12, %v1848_v30, %v1844_v46 }
 0x3a0   :  { %v2133_v42 = vmul.f32 %v3846_v41, %v2132_v62  ;;  %v1857_v26 = vmul.f32 %v3848_v7, %v6032_v22  ;;  %v1876_v20 = vmul.f32 %v1875_v33, %v1849_v45  ;;  %v1990_v61 = vpop.f32.mrf.mxu2  ;;  %v2118_v23 = vsel %vm2117_vm15, %v3844_v11, %v2114_v47 }
 0x3a1   :  { %v2149_v25 = vadd.f32 %v3755_v8, %v1990_v61  ;;  %v2123_v4 = vsel %vm2120_vm14, %v2122_v44, %v2118_v23  ;;  %v1867_v45 = vand.u32 2147483648, %v6032_v22  ;;  %vm1862_vm2 = vweird.f32 %v3848_v7 }
 0x3a2   :  { %v2134_v27 = vadd.f32 %v3846_v41, %v2133_v42  ;;  %v1858_v1 = vsub.f32 1.0, %v1857_v26  ;;  %v1877_v38 = vadd.f32 %v1876_v20, %v1829_v32  ;;  %v2142_v8 = vor.u32 1.1754944e-38, %v2141_v19  ;;  %vm1863_vm5 = vmor %vm1861_vm4, %vm1862_vm2  ;;  %v7677_v19 = vld [vmem:[#allocation44_spill] sm:$0xff] }
 0x3a3   :  { %v2150_v33 = vmul.f32 %v2149_v25, %v2123_v4  ;;  %v1868_v62 = vor.u32 1.1754944e-38, %v1867_v45  ;;  %v7675_v4 = vld [vmem:[#allocation40_spill] sm:$0xff]  ;;  %v7678_v45 = vld [vmem:[#allocation49_spill] sm:$0xff] }
 0x3a4   :  { %v1859_v30 = vmul.f32 %v3848_v7, %v1858_v1  ;;  %3849 = vtanh.f32 %v1877_v38  ;;  %v2138_v11 = vsel %vm2137_vm3, %v3846_v41, %v2134_v27  ;;  %v7673_v38 = vld [vmem:[#allocation59_spill] sm:$0xff] }
 0x3a5   :  { %v2151_v47 = vadd.f32 %v2150_v33, %v2104_v53  ;;  %v2143_v42 = vsel %vm2140_vm6, %v2142_v8, %v2138_v11  ;;  %v7674_v53 = vld [vmem:[#allocation81_spill] sm:$0xff]  ;;  %v7679_v33 = vld [vmem:[#allocation43_spill] sm:$0xff] }
 0x3a6   :  { %v1860_v44 = vadd.f32 %v3848_v7, %v1859_v30  ;;  %v2153_v23 = vsub.f32 1.0, %v2143_v42  ;;  %v2155_v22 = vmul.f32 %v2143_v42, %v5664_v31  ;;  %v7657_v31 = vld [vmem:[#allocation36_spill] sm:$0xff]  ;;  %v7680_v30 = vld [vmem:[#allocation57_spill] sm:$0xff]  ;;  %v7684_v11 = vld [vmem:[#allocation31_spill] sm:$0xff] }
 0x3a7   :  { %3851 = vtanh.f32 %v2151_v47  ;;  %v7682_v47 = vld [vmem:[#allocation38_spill] sm:$0xff]  ;;  %v7685_v8 = vld [vmem:[#allocation75_spill] sm:$0xff] }
 0x3a8   :  { %v1864_v46 = vsel %vm1863_vm5, %v3848_v7, %v1860_v44  ;;  %v7672_v7 = vld [vmem:[#allocation39_spill] sm:$0xff]  ;;  %v7683_v44 = vld [vmem:[#allocation46_spill] sm:$0xff] }
 0x3a9   :  { %v1869_v32 = vsel %vm1866_vm7, %v1868_v62, %v1864_v46  ;;  %v7686_v62 = vld [vmem:[#allocation79_spill] sm:$0xff]  ;;  %v7687_v46 = vld [vmem:[#allocation42_spill] sm:$0xff] }
 0x3aa   :  { %v3850_v26 = vpop.eup %3849  ;;  %v1879_v20 = vsub.f32 1.0, %v1869_v32  ;;  %v1881_v34 = vmul.f32 %v1869_v32, %v5642_v49  ;;  %v7650_v49 = vld [vmem:[#allocation22_spill] sm:$0xff]  ;;  %v7688_v32 = vld [vmem:[#allocation48_spill] sm:$0xff] }
 0x3ab   :  { %v7689_v42 = vld [vmem:[#allocation66_spill] sm:$0xff] }
 0x3ac   :  { %v1880_v61 = vmul.f32 %v3850_v26, %v1879_v20  ;;  %v7690_v26 = vld [vmem:[#allocation62_spill] sm:$0xff]  ;;  %v7691_v20 = vld [vmem:[#allocation35_spill] sm:$0xff] }
 0x3ad   :  { %v3852_v25 = vpop.eup %3851 }
 0x3ae   :  { %v2154_v1 = vmul.f32 %v3852_v25, %v2153_v23  ;;  %v6074_v41 = vadd.f32 %v1881_v34, %v1880_v61  ;;  %v7692_v61 = vld [vmem:[#allocation80_spill] sm:$0xff]  ;;  %v7693_v23 = vld [vmem:[#allocation55_spill] sm:$0xff]  ;;  %v7695_v25 = vld [vmem:[#allocation45_spill] sm:$0xff] }
 0x3af   :  { %v7694_v34 = vld [vmem:[#allocation76_spill] sm:$0xff] }
 0x3b0   :  { %v6076_v27 = vadd.f32 %v2155_v22, %v2154_v1  ;;  %1884 = vst [vmem:[#allocation11 + $0x18] sm:$0xff] %v6074_v41  ;;  %2057 = vmatmul.f32.vlgmr.msrb.gmra.mxu3 %v6074_v41  ;;  %2077 = vmatmul.f32.vlgmr.msra.gmra.mxu0 %v6074_v41  ;;  %v7696_v1 = vld [vmem:[#allocation84_spill] sm:$0xff]  ;;  %v7697_v22 = vld [vmem:[#allocation41_spill] sm:$0xff] }
 0x3b1   :  { %2097 = vmatmul.f32.vlgmr.msra.gmra.mxu1 %v6074_v41  ;;  %2415 = vmatpush.msrb.mxu3 %v5644_v36  ;;  %v7651_v36 = vld [vmem:[#allocation69_spill] sm:$0xff] }
 0x3b2   :  { %2229 = vmatmul.f32.vlgmr.msra.gmra.mxu2 %v6076_v27  ;;  %2483 = vmatpush.msra.mxu0 %v5651_v17  ;;  %v7653_v17 = vld [vmem:[#allocation20_spill] sm:$0xff] }
 0x3b3   :  { %2416 = vmatpush.msrb.mxu3 %v5649_v35  ;;  %2503 = vmatpush.msra.mxu1 %v5658_v10  ;;  %v7652_v35 = vld [vmem:[#allocation27_spill] sm:$0xff]  ;;  %v7655_v10 = vld [vmem:[#allocation26_spill] sm:$0xff] }
 0x3b4   :  { %2484 = vmatpush.msra.mxu0 %v5656_v9  ;;  %2523 = vmatpush.msra.mxu2 %v5669_v16  ;;  %v7654_v9 = vld [vmem:[#allocation61_spill] sm:$0xff]  ;;  %v7659_v16 = vld [vmem:[#allocation28_spill] sm:$0xff] }
 0x3b5   :  { %2417 = vmatpush.msrb.mxu3 %v5660_v0  ;;  %2504 = vmatpush.msra.mxu1 %v5728_v56  ;;  %v7656_v0 = vld [vmem:[#allocation37_spill] sm:$0xff] }
 0x3b6   :  { %2485 = vmatpush.msra.mxu0 %v5667_v2  ;;  %2524 = vmatpush.msra.mxu2 %v5730_v13  ;;  %v7658_v2 = vld [vmem:[#allocation34_spill] sm:$0xff]  ;;  %v7668_v56 = vld [vmem:[#allocation29_spill] sm:$0xff] }
 0x3b7   :  { %2418 = vmatpush.msrb.mxu3 %v5671_v14  ;;  %2505 = vmatpush.msra.mxu1 %v5738_v29  ;;  %v7660_v14 = vld [vmem:[#allocation19_spill] sm:$0xff]  ;;  %v7669_v13 = vld [vmem:[#allocation25_spill] sm:$0xff] }
 0x3b8   :  { %2249 = vmatmul.f32.vlgmr.msra.gmra.mxu3 %v6076_v27  ;;  %2269 = vmatmul.f32.vlgmr.msrb.gmra.mxu0 %v6076_v27  ;;  %v7670_v29 = vld [vmem:[#allocation77_spill] sm:$0xff] }
 0x3b9   :  { %2391 = vmatmul.f32.vlgmr.msrb.gmra.mxu1 %v6076_v27  ;;  %2419 = vmatpush.msrb.mxu3 %v5676_v3  ;;  %v7661_v3 = vld [vmem:[#allocation21_spill] sm:$0xff] }
 0x3ba   :  { %2411 = vmatmul.f32.vlgmr.msrb.gmra.mxu2 %v6076_v27  ;;  %2486 = vmatpush.msra.mxu0 %v5681_v51  ;;  %v7662_v51 = vld [vmem:[#allocation24_spill] sm:$0xff] }
 0x3bb   :  { %2420 = vmatpush.msrb.mxu3 %v5685_v52  ;;  %2525 = vmatpush.msra.mxu2 %v5742_v5  ;;  %v7663_v52 = vld [vmem:[#allocation30_spill] sm:$0xff]  ;;  %v7671_v5 = vld [vmem:[#allocation65_spill] sm:$0xff] }
 0x3bc   :  { %2487 = vmatpush.msra.mxu0 %v5689_v57  ;;  %2506 = vmatpush.msra.mxu1 %v5752_v55  ;;  %v7664_v57 = vld [vmem:[#allocation53_spill] sm:$0xff]  ;;  %v7667_v55 = vld [vmem:[#allocation50_spill] sm:$0xff] }
 0x3bd   :  { %2421 = vmatpush.msrb.mxu3 %v5691_v24  ;;  %2526 = vmatpush.msra.mxu2 %v5754_v39  ;;  %v7665_v24 = vld [vmem:[#allocation23_spill] sm:$0xff]  ;;  %v7666_v39 = vld [vmem:[#allocation73_spill] sm:$0xff] }
 0x3be   :  { %2488 = vmatpush.msra.mxu0 %v7650_v49  ;;  %2507 = vmatpush.msra.mxu1 %v7651_v36  ;;  %v7698_v49 = vld [vmem:[#allocation74_spill] sm:$0xff]  ;;  %v7699_v36 = vld [vmem:[#allocation33_spill] sm:$0xff] }
 0x3bf   :  { %2422 = vmatpush.msrb.mxu3 %v7652_v35  ;;  %2527 = vmatpush.msra.mxu2 %v7653_v17  ;;  %v7700_v35 = vld [vmem:[#allocation82_spill] sm:$0xff]  ;;  %v7701_v17 = vld [vmem:[#allocation71_spill] sm:$0xff] }
 0x3c0   :  { %2489 = vmatpush.msra.mxu0 %v7654_v9  ;;  %2508 = vmatpush.msra.mxu1 %v7655_v10  ;;  %v7702_v9 = vld [vmem:[#allocation51_spill] sm:$0xff]  ;;  %v7703_v10 = vld [vmem:[#allocation90_spill] sm:$0xff] }
 0x3c1   :  { %2423 = vmatpush.msrb.mxu3 %v7656_v0  ;;  %2528 = vmatpush.msra.mxu2 %v7657_v31  ;;  %v7704_v0 = vld [vmem:[#allocation72_spill] sm:$0xff]  ;;  %v7705_v31 = vld [vmem:[#allocation63_spill] sm:$0xff] }
 0x3c2   :  { %2490 = vmatpush.msra.mxu0 %v7658_v2  ;;  %2509 = vmatpush.msra.mxu1 %v7659_v16  ;;  %v7706_v2 = vld [vmem:[#allocation86_spill] sm:$0xff]  ;;  %v7707_v16 = vld [vmem:[#allocation47_spill] sm:$0xff] }
 0x3c3   :  { %2424 = vmatpush.msrb.mxu3 %v7660_v14  ;;  %2529 = vmatpush.msra.mxu2 %v7661_v3  ;;  %v7708_v14 = vld [vmem:[#allocation58_spill] sm:$0xff]  ;;  %v7709_v3 = vld [vmem:[#allocation64_spill] sm:$0xff] }
 0x3c4   :  { %2491 = vmatpush.msra.mxu0 %v7662_v51  ;;  %2510 = vmatpush.msra.mxu1 %v7663_v52  ;;  %v7710_v51 = vld [vmem:[#allocation85_spill] sm:$0xff]  ;;  %v7711_v52 = vld [vmem:[#allocation52_spill] sm:$0xff] }
 0x3c5   :  { %2425 = vmatpush.msrb.mxu3 %v7664_v57  ;;  %2530 = vmatpush.msra.mxu2 %v7665_v24  ;;  %v7712_v57 = vld [vmem:[#allocation87_spill] sm:$0xff] }
 0x3c6   :  { %2492 = vmatpush.msra.mxu0 %v7666_v39  ;;  %2511 = vmatpush.msra.mxu1 %v7667_v55  ;;  %v7713_v24 = vld [vmem:[#allocation67_spill] sm:$0xff]  ;;  %v7715_v39 = vld [vmem:[#allocation54_spill] sm:$0xff] }
 0x3c7   :  { %2426 = vmatpush.msrb.mxu3 %v7668_v56  ;;  %2531 = vmatpush.msra.mxu2 %v7669_v13  ;;  %v7718_v55 = vld [vmem:[#allocation83_spill] sm:$0xff]  ;;  %v7726_v56 = vld [vmem:[#allocation93_spill] sm:$0xff] }
 0x3c8   :  { %2493 = vmatpush.msra.mxu0 %v7670_v29  ;;  %2512 = vmatpush.msra.mxu1 %v7671_v5  ;;  %v6202_v13 = vld [vmem:[#allocation8 + $0x170] sm:$0xff]  ;;  %v6210_v29 = vld [vmem:[#allocation8 + $0x158] sm:$0xff] }
 0x3c9   :  { %2427 = vmatpush.msrb.mxu3 %v7672_v7  ;;  %2532 = vmatpush.msra.mxu2 %v7673_v38  ;;  %v6213_v5 = vld [vmem:[#allocation8 + $0x150] sm:$0xff]  ;;  %v6217_v38 = vld [vmem:[#allocation8 + $0x140] sm:$0xff] }
 0x3ca   :  { %2494 = vmatpush.msra.mxu0 %v7674_v53  ;;  %2513 = vmatpush.msra.mxu1 %v7675_v4  ;;  %v2544_v4 = vld [vmem:[#allocation2 + $0x78] sm:$0xff] }
 0x3cb   :  { %2428 = vmatpush.msrb.mxu3 %v7676_v40  ;;  %2533 = vmatpush.msra.mxu2 %v7677_v19  ;;  %v6220_v19 = vld [vmem:[#allocation8 + $0x138] sm:$0xff] }
 0x3cc   :  { %2495 = vmatpush.msra.mxu0 %v7678_v45  ;;  %2514 = vmatpush.msra.mxu1 %v7679_v33 }
 0x3cd   :  { %2429 = vmatpush.msrb.mxu3 %v7680_v30  ;;  %2534 = vmatpush.msra.mxu2 %v7681_v58  ;;  %v6223_v30 = vld [vmem:[#allocation8 + $0x128] sm:$0xff] }
 0x3ce   :  { %2496 = vmatpush.msra.mxu0 %v7682_v47  ;;  %2515 = vmatpush.msra.mxu1 %v7683_v44  ;;  %v6226_v47 = vld [vmem:[#allocation8 + $0x120] sm:$0xff] }
 0x3cf   :  { %2430 = vmatpush.msrb.mxu3 %v7684_v11  ;;  %2535 = vmatpush.msra.mxu2 %v7685_v8  ;;  %v6230_v8 = vld [vmem:[#allocation8 + $0x110] sm:$0xff] }
 0x3d0   :  { %2431 = vmatmul.f32.vlgmr.msrb.gmra.mxu3 %v6076_v27  ;;  %2497 = vmatpush.msra.mxu0 %v7686_v62 }
 0x3d1   :  { %2655 = vmatpush.msra.mxu3 %v7687_v46  ;;  %2516 = vmatpush.msra.mxu1 %v7688_v32  ;;  %v6233_v46 = vld [vmem:[#allocation8 + $0x108] sm:$0xff] }
 0x3d2   :  { %2498 = vmatpush.msra.mxu0 %v7689_v42  ;;  %2536 = vmatpush.msra.mxu2 %v7690_v26  ;;  %v6236_v42 = vld [vmem:[#allocation8 + $0xf8] sm:$0xff] }
 0x3d3   :  { %2656 = vmatpush.msra.mxu3 %v7691_v20  ;;  %2517 = vmatpush.msra.mxu1 %v7693_v23  ;;  %v2545_v20 = vld [vmem:[#allocation2 + $0x80] sm:$0xff] }
 0x3d4   :  { %2675 = vmatpush.msrb.mxu0 %v7692_v61  ;;  %2537 = vmatpush.msra.mxu2 %v7694_v34  ;;  %v6239_v61 = vld [vmem:[#allocation8 + $0xf0] sm:$0xff]  ;;  %v6242_v34 = vld [vmem:[#allocation8 + $0xe0] sm:$0xff] }
 0x3d5   :  { %2657 = vmatpush.msra.mxu3 %v7695_v25  ;;  %2518 = vmatpush.msra.mxu1 %v7697_v22  ;;  %v6245_v22 = vld [vmem:[#allocation8 + $0xd8] sm:$0xff] }
 0x3d6   :  { %2676 = vmatpush.msrb.mxu0 %v7696_v1  ;;  %2538 = vmatpush.msra.mxu2 %v7698_v49 }
 0x3d7   :  { %2658 = vmatpush.msra.mxu3 %v7699_v36  ;;  %2695 = vmatpush.msrb.mxu1 %v7701_v17  ;;  %v6251_v17 = vld [vmem:[#allocation8 + $0xc0] sm:$0xff] }
 0x3d8   :  { %2677 = vmatpush.msrb.mxu0 %v7700_v35  ;;  %v6248_v35 = vld [vmem:[#allocation8 + $0xc8] sm:$0xff] }
 0x3d9   :  { %2659 = vmatpush.msra.mxu3 %v7702_v9  ;;  %2696 = vmatpush.msrb.mxu1 %v7704_v0  ;;  %v6254_v0 = vld [vmem:[#allocation8 + $0xb0] sm:$0xff] }
 0x3da   :  { %2678 = vmatpush.msrb.mxu0 %v7703_v10 }
 0x3db   :  { %2660 = vmatpush.msra.mxu3 %v7705_v31  ;;  %2697 = vmatpush.msrb.mxu1 %v5929_v18  ;;  %v7714_v18 = vld [vmem:[#allocation78_spill] sm:$0xff] }
 0x3dc   :  { %2679 = vmatpush.msrb.mxu0 %v7706_v2  ;;  %v6257_v2 = vld [vmem:[#allocation8 + $0xa8] sm:$0xff] }
 0x3dd   :  { %2661 = vmatpush.msra.mxu3 %v7707_v16  ;;  %2698 = vmatpush.msrb.mxu1 %v5937_v6  ;;  %v7716_v6 = vld [vmem:[#allocation68_spill] sm:$0xff] }
 0x3de   :  { %2680 = vmatpush.msrb.mxu0 %v7708_v14 }
 0x3df   :  { %2662 = vmatpush.msra.mxu3 %v7709_v3  ;;  %2699 = vmatpush.msrb.mxu1 %v5945_v60  ;;  %v7717_v60 = vld [vmem:[#allocation88_spill] sm:$0xff] }
 0x3e0   :  { %2681 = vmatpush.msrb.mxu0 %v7710_v51  ;;  %v6262_v3 = vld [vmem:[#allocation8 + $0x98] sm:$0xff] }
 0x3e1   :  { %2663 = vmatpush.msra.mxu3 %v7711_v52  ;;  %2700 = vmatpush.msrb.mxu1 %v5953_v50  ;;  %v7719_v50 = vld [vmem:[#allocation70_spill] sm:$0xff] }
 0x3e2   :  { %2682 = vmatpush.msrb.mxu0 %v7712_v57  ;;  %v6267_v52 = vld [vmem:[#allocation8 + $0x90] sm:$0xff]  ;;  %v6271_v57 = vld [vmem:[#allocation8 + $0x80] sm:$0xff] }
 0x3e3   :  { %2664 = vmatpush.msra.mxu3 %v7713_v24  ;;  %2701 = vmatpush.msrb.mxu1 %v5962_v63  ;;  %v7721_v63 = vld [vmem:[#allocation89_spill] sm:$0xff]  ;;  %v6273_v24 = vld [vmem:[#allocation8 + $0x78] sm:$0xff] }
 0x3e4   :  { %2683 = vmatpush.msrb.mxu0 %v7714_v18  ;;  %v6275_v18 = vld [vmem:[#allocation8 + $0x68] sm:$0xff] }
 0x3e5   :  { %2665 = vmatpush.msra.mxu3 %v7715_v39  ;;  %2702 = vmatpush.msrb.mxu1 %v5970_v59  ;;  %v7722_v59 = vld [vmem:[#allocation94_spill] sm:$0xff]  ;;  %v6280_v39 = vld [vmem:[#allocation8 + $0x60] sm:$0xff] }
 0x3e6   :  { %2684 = vmatpush.msrb.mxu0 %v5951_v43  ;;  %v7720_v43 = vld [vmem:[#allocation56_spill] sm:$0xff] }
 0x3e7   :  { %2666 = vmatpush.msra.mxu3 %v7716_v6  ;;  %2703 = vmatpush.msrb.mxu1 %v5978_v37  ;;  %v7723_v37 = vld [vmem:[#allocation92_spill] sm:$0xff]  ;;  %v6282_v6 = vld [vmem:[#allocation8 + $0x50] sm:$0xff] }
 0x3e8   :  { %2685 = vmatpush.msrb.mxu0 %v7717_v60  ;;  %v6285_v60 = vld [vmem:[#allocation8 + $0x48] sm:$0xff] }
 0x3e9   :  { %2667 = vmatpush.msra.mxu3 %v7718_v55  ;;  %2704 = vmatpush.msrb.mxu1 %v5986_v28  ;;  %v7725_v28 = vld [vmem:[#allocation95_spill] sm:$0xff] }
 0x3ea   :  { %2686 = vmatpush.msrb.mxu0 %v5968_v15  ;;  %v7724_v15 = vld [vmem:[#allocation91_spill] sm:$0xff] }
 0x3eb   :  { %2668 = vmatpush.msra.mxu3 %v7719_v50  ;;  %2705 = vmatpush.msrb.mxu1 %v5996_v54  ;;  %v6288_v50 = vld [vmem:[#allocation8 + $0x38] sm:$0xff] }
 0x3ec   :  { %2687 = vmatpush.msrb.mxu0 %v5976_v21  ;;  %v7727_v21 = vld [vmem:[#allocation96_spill] sm:$0xff] }
 0x3ed   :  { %2669 = vmatpush.msra.mxu3 %v7720_v43  ;;  %2706 = vmatpush.msrb.mxu1 %v6007_v12  ;;  %v6207_v12 = vld [vmem:[#allocation8 + $0x168] sm:$0xff] }
 0x3ee   :  { %2688 = vmatpush.msrb.mxu0 %v5984_v48  ;;  %v6204_v48 = vld [vmem:[#allocation10 + $0x3] sm:$0x7]  ;;  %2817 = vmatpush.msrb.mxu2 %v6207_v12 }
 0x3ef   :  { %2670 = vmatpush.msra.mxu3 %v7721_v63  ;;  %2707 = vmatpush.msrb.mxu1 %v7723_v37  ;;  %v2207_v7 = vperm.slane %v6204_v48, 0  ;;  %v2208_v11 = vperm.slane %v6204_v48, 1 }
 0x3f0   :  { %2689 = vmatpush.msrb.mxu0 %v7722_v59  ;;  %2818 = vmatpush.msrb.mxu2 %v6213_v5  ;;  %v6293_v59 = vld [vmem:[#allocation8 + $0x30] sm:$0xff] }
 0x3f1   :  { %2708 = vmatpush.msrb.mxu1 %v7725_v28  ;;  %2837 = vmatpush.msrb.mxu3 %v6202_v13  ;;  %v6298_v28 = vld [vmem:[#allocation8 + $0x20] sm:$0xff] }
 0x3f2   :  { %2690 = vmatpush.msrb.mxu0 %v7724_v15  ;;  %2819 = vmatpush.msrb.mxu2 %v6220_v19 }
 0x3f3   :  { %2709 = vmatpush.msrb.mxu1 %v7726_v56  ;;  %2838 = vmatpush.msrb.mxu3 %v6210_v29 }
 0x3f4   :  { %2820 = vmatpush.msrb.mxu2 %v6226_v47 }
 0x3f5   :  { %2710 = vmatpush.msrb.mxu1 %v7727_v21  ;;  %2839 = vmatpush.msrb.mxu3 %v6217_v38 }
 0x3f6   :  { %2821 = vmatpush.msrb.mxu2 %v6233_v46 }
 0x3f7   :  { %2840 = vmatpush.msrb.mxu3 %v6223_v30 }
 0x3f8   :  { %2822 = vmatpush.msrb.mxu2 %v6239_v61 }
 0x3f9   :  { %2841 = vmatpush.msrb.mxu3 %v6230_v8 }
 0x3fa   :  { %2823 = vmatpush.msrb.mxu2 %v6245_v22 }
 0x3fb   :  { %2842 = vmatpush.msrb.mxu3 %v6236_v42 }
 0x3fc   :  { %2824 = vmatpush.msrb.mxu2 %v6251_v17 }
 0x3fd   :  { %2843 = vmatpush.msrb.mxu3 %v6242_v34 }
 0x3fe   :  { %2825 = vmatpush.msrb.mxu2 %v6257_v2 }
 0x3ff   :  { %2844 = vmatpush.msrb.mxu3 %v6248_v35 }
 0x400   :  { %2826 = vmatpush.msrb.mxu2 %v6267_v52 }
 0x401   :  { %2845 = vmatpush.msrb.mxu3 %v6254_v0 }
 0x402   :  { %2827 = vmatpush.msrb.mxu2 %v6273_v24 }
 0x403   :  { %2846 = vmatpush.msrb.mxu3 %v6262_v3 }
 0x404   :  { %2828 = vmatpush.msrb.mxu2 %v6280_v39 }
 0x405   :  { %2847 = vmatpush.msrb.mxu3 %v6271_v57 }
 0x406   :  { %2829 = vmatpush.msrb.mxu2 %v6285_v60 }
 0x407   :  { %2848 = vmatpush.msrb.mxu3 %v6275_v18 }
 0x408   :  { %2830 = vmatpush.msrb.mxu2 %v6293_v59 }
 0x409   :  { %2849 = vmatpush.msrb.mxu3 %v6282_v6 }
 0x40b   :  { %2850 = vmatpush.msrb.mxu3 %v6288_v50 }
 0x40d   :  { %2851 = vmatpush.msrb.mxu3 %v6298_v28 }
 0x42d   :  { %v2078_v25 = vpop.f32.mrf.mxu0 }
 0x42e   :  { %v6200_v54 = vpop.f32.mrf.mxu1 }
 0x433   :  { %v2058_v53 = vpop.f32.mrf.mxu3 }
 0x435   :  { %v2230_v40 = vpop.f32.mrf.mxu2 }
 0x436   :  { %v2231_v45 = vadd.f32 %v2230_v40, %v2207_v7  ;;  %v2392_v33 = vpop.f32.mrf.mxu1  ;;  %v6303_v7 = vld [vmem:[#allocation8 + $0x18] sm:$0xff]  ;;  %v6311_v40 = vld [vmem:[#allocation8 + $0x8] sm:$0xff] }
 0x437   :  { %v2547_v58 = vadd.f32 %v2544_v4, %v2392_v33  ;;  %2831 = vmatpush.msrb.mxu2 %v6303_v7  ;;  %2852 = vmatpush.msrb.mxu3 %v6311_v40 }
 0x438   :  { %v2273_v44 = vadd.f32 %v2231_v45, %v2058_v53  ;;  %v3756_v53 = vld [vmem:[%s6959_s5 + $0x1] ss:$0 sm:$0xff]  ;;  %v2209_v45 = vperm.slane %v6204_v48, 2 }
 0x439   :  { %v3719_v62 = vmul.f32 -1.442695, %v2547_v58  ;;  %v6315_v58 = vld [vmem:[#allocation8] sm:$0xff]  ;;  %v2317_v48 = vadd.f32 %v3756_v53, %v6200_v54 }
 0x43a   :  { %v3716_v32 = vmul.f32 -1.442695, %v2273_v44  ;;  %v2270_v44 = vpop.f32.mrf.mxu0  ;;  %2832 = vmatpush.msrb.mxu2 %v6315_v58 }
 0x43b   :  { %3853 = vpow2.f32 %v3719_v62  ;;  %v2250_v26 = vpop.f32.mrf.mxu3 }
 0x43c   :  { %3855 = vpow2.f32 %v3716_v32  ;;  %v2251_v23 = vadd.f32 %v2250_v26, %v2208_v11 }
 0x43d   :  { %v2412_v1 = vpop.f32.mrf.mxu2 }
 0x43e   :  { %v2293_v49 = vadd.f32 %v2251_v23, %v2078_v25  ;;  %v2567_v36 = vadd.f32 %v2545_v20, %v2412_v1  ;;  %v3757_v1 = vld [vmem:[%s6959_s5] ss:$0 sm:$0xff] }
 0x440   :  { %v3717_v9 = vmul.f32 -1.442695, %v2293_v49  ;;  %v3720_v10 = vmul.f32 -1.442695, %v2567_v36  ;;  %v2271_v36 = vadd.f32 %v2270_v44, %v2209_v45 }
 0x441   :  { %v3854_v31 = vpop.eup %3853 }
 0x442   :  { %v3856_v16 = vpop.eup %3855  ;;  %v6259_v14 = vadd.f32 1.0, %v3854_v31  ;;  %3857 = vpow2.f32 %v3717_v9 }
 0x443   :  { %v6264_v51 = vadd.f32 1.0, %v3856_v16  ;;  %3859 = vpow2.f32 %v3720_v10 }
 0x444   :  { %3861 = vrcp.f32 %v6259_v14  ;;  %v2561_v62 = vand.u32 2147483647, %v6259_v14  ;;  %v2563_v32 = vand.u32 2147483648, %v6259_v14  ;;  %vm2557_vm11 = vweird.f32 %v6259_v14 }
 0x445   :  { %3863 = vrcp.f32 %v6264_v51  ;;  %v2287_v26 = vand.u32 2147483647, %v6264_v51  ;;  %v2289_v20 = vand.u32 2147483648, %v6264_v51  ;;  %vm2283_vm10 = vweird.f32 %v6264_v51 }
 0x446   :  { %vm2562_vm13 = vcmp.eq.f32.partialorder %v2561_v62, 8.507059e+37  ;;  %v2564_v54 = vor.u32 1.1754944e-38, %v2563_v32 }
 0x447   :  { %vm2288_vm15 = vcmp.eq.f32.partialorder %v2287_v26, 8.507059e+37 }
 0x448   :  { %v3858_v55 = vpop.eup %3857 }
 0x449   :  { %v3860_v43 = vpop.eup %3859  ;;  %v6290_v63 = vadd.f32 1.0, %v3858_v55  ;;  %v2290_v55 = vor.u32 1.1754944e-38, %v2289_v20 }
 0x44a   :  { %v3862_v37 = vpop.eup %3861  ;;  %v6295_v15 = vadd.f32 1.0, %v3860_v43 }
 0x44b   :  { %v3864_v56 = vpop.eup %3863  ;;  %3865 = vrcp.f32 %v6290_v63  ;;  %v2553_v21 = vmul.f32 %v3862_v37, %v6259_v14  ;;  %vm2558_vm8 = vweird.f32 %v3862_v37  ;;  %vm2303_vm0 = vweird.f32 %v6290_v63 }
 0x44c   :  { %v2279_v4 = vmul.f32 %v3864_v56, %v6264_v51  ;;  %3867 = vrcp.f32 %v6295_v15  ;;  %vm2284_vm9 = vweird.f32 %v3864_v56  ;;  %vm2559_vm12 = vmor %vm2557_vm11, %vm2558_vm8  ;;  %v2309_v44 = vand.u32 2147483648, %v6290_v63 }
 0x44d   :  { %v2554_v33 = vsub.f32 1.0, %v2553_v21  ;;  %vm2285_vm14 = vmor %vm2283_vm10, %vm2284_vm9  ;;  %vm2577_vm4 = vweird.f32 %v6295_v15 }
 0x44e   :  { %v2280_v11 = vsub.f32 1.0, %v2279_v4 }
 0x44f   :  { %v2555_v23 = vmul.f32 %v3862_v37, %v2554_v33 }
 0x450   :  { %v2281_v25 = vmul.f32 %v3864_v56, %v2280_v11 }
 0x451   :  { %v3866_v49 = vpop.eup %3865  ;;  %v2556_v9 = vadd.f32 %v3862_v37, %v2555_v23  ;;  %v2546_v23 = vld [vmem:[#allocation2 + $0x88] sm:$0xff] }
 0x452   :  { %v3868_v10 = vpop.eup %3867  ;;  %v2282_v31 = vadd.f32 %v3864_v56, %v2281_v25  ;;  %v2299_v16 = vmul.f32 %v3866_v49, %v6290_v63  ;;  %vm2304_vm1 = vweird.f32 %v3866_v49  ;;  %v2583_v25 = vand.u32 2147483648, %v6295_v15 }
 0x453   :  { %v2573_v43 = vmul.f32 %v3868_v10, %v6295_v15  ;;  %v2432_v21 = vpop.f32.mrf.mxu3  ;;  %v2560_v53 = vsel %vm2559_vm12, %v3862_v37, %v2556_v9  ;;  %vm2578_vm2 = vweird.f32 %v3868_v10  ;;  %v2307_v37 = vand.u32 2147483647, %v6290_v63  ;;  %vm2305_vm3 = vmor %vm2303_vm0, %vm2304_vm1 }
 0x454   :  { %v2286_v4 = vsel %vm2285_vm14, %v3864_v56, %v2282_v31  ;;  %v2300_v51 = vsub.f32 1.0, %v2299_v16  ;;  %v2565_v45 = vsel %vm2562_vm13, %v2564_v54, %v2560_v53  ;;  %v2591_v33 = vadd.f32 %v3757_v1, %v2432_v21  ;;  %vm2579_vm5 = vmor %vm2577_vm4, %vm2578_vm2 }
 0x455   :  { %v2291_v14 = vsel %vm2288_vm15, %v2290_v55, %v2286_v4  ;;  %v2574_v11 = vsub.f32 1.0, %v2573_v43  ;;  %v2581_v1 = vand.u32 2147483647, %v6295_v15  ;;  %v2584_v55 = vor.u32 1.1754944e-38, %v2583_v25  ;;  %v6375_v25 = vld [vmem:[#allocation8 + $0x118] sm:$0xff] }
 0x456   :  { %v2318_v62 = vmul.f32 %v2317_v48, %v2291_v14  ;;  %v2301_v32 = vmul.f32 %v3866_v49, %v2300_v51  ;;  %v2592_v26 = vmul.f32 %v2591_v33, %v2565_v45  ;;  %v2310_v48 = vor.u32 1.1754944e-38, %v2309_v44 }
 0x457   :  { %v2575_v20 = vmul.f32 %v3868_v10, %v2574_v11  ;;  %vm2308_vm6 = vcmp.eq.f32.partialorder %v2307_v37, 8.507059e+37  ;;  %vm2582_vm7 = vcmp.eq.f32.partialorder %v2581_v1, 8.507059e+37  ;;  %v6356_v11 = vld [vmem:[#allocation8 + $0x2e8] sm:$0xff]  ;;  %v6379_v37 = vld [vmem:[#allocation8 + $0x2a0] sm:$0xff] }
 0x458   :  { %v2319_v56 = vadd.f32 %v2318_v62, %v2271_v36  ;;  %v2593_v9 = vadd.f32 %v2592_v26, %v2546_v23  ;;  %v2302_v31 = vadd.f32 %v3866_v49, %v2301_v32  ;;  %v6362_v23 = vld [vmem:[#allocation8 + $0x2f0] sm:$0xff]  ;;  %v6364_v62 = vld [vmem:[#allocation8 + $0x148] sm:$0xff]  ;;  %v6366_v32 = vld [vmem:[#allocation8 + $0x2b8] sm:$0xff] }
 0x459   :  { %v2576_v16 = vadd.f32 %v3868_v10, %v2575_v20  ;;  %v2924_v26 = vld [vmem:[#allocation8 + $0x2f8] sm:$0xff]  ;;  %v6371_v20 = vld [vmem:[#allocation8 + $0x130] sm:$0xff]  ;;  %v6387_v1 = vld [vmem:[#allocation8 + $0x288] sm:$0xff] }
 0x45a   :  { %3869 = vtanh.f32 %v2319_v56  ;;  %v2306_v54 = vsel %vm2305_vm3, %v3866_v49, %v2302_v31  ;;  %v6383_v56 = vld [vmem:[#allocation8 + $0x100] sm:$0xff]  ;;  %v6393_v31 = vld [vmem:[#allocation8 + $0xd0] sm:$0xff] }
 0x45b   :  { %v2580_v43 = vsel %vm2579_vm5, %v3868_v10, %v2576_v16  ;;  %3871 = vtanh.f32 %v2593_v9  ;;  %v2311_v36 = vsel %vm2308_vm6, %v2310_v48, %v2306_v54  ;;  %v6347_v10 = vld [vmem:[#allocation8 + $0x178] sm:$0xff]  ;;  %v6389_v9 = vld [vmem:[#allocation8 + $0xe8] sm:$0xff]  ;;  %7728 = vst [vmem:[#allocation97_spill] sm:$0xff] %v6393_v31  ;;  %v6400_v48 = vld [vmem:[#allocation8 + $0xa0] sm:$0xff] }
 0x45c   :  { %v2585_v21 = vsel %vm2582_vm7, %v2584_v55, %v2580_v43  ;;  %v2321_v53 = vsub.f32 1.0, %v2311_v36  ;;  %v2323_v33 = vmul.f32 %v2311_v36, %v6074_v41  ;;  %v6354_v41 = vld [vmem:[#allocation8 + $0x160] sm:$0xff]  ;;  %v6397_v16 = vld [vmem:[#allocation8 + $0xb8] sm:$0xff]  ;;  %7730 = vst [vmem:[#allocation69_spill] sm:$0xff] %v6400_v48  ;;  %v6403_v54 = vld [vmem:[#allocation8 + $0x88] sm:$0xff] }
 0x45d   :  { %v2595_v51 = vsub.f32 1.0, %v2585_v21  ;;  %v2597_v15 = vmul.f32 %v2585_v21, %v6076_v27  ;;  %v6358_v27 = vld [vmem:[#allocation8 + $0x2d0] sm:$0xff]  ;;  %7729 = vst [vmem:[#allocation22_spill] sm:$0xff] %v6397_v16  ;;  %v6409_v43 = vld [vmem:[#allocation8 + $0x58] sm:$0xff]  ;;  %v6412_v36 = vld [vmem:[#allocation8 + $0x40] sm:$0xff] }
 0x45e   :  { %7731 = vst [vmem:[#allocation27_spill] sm:$0xff] %v6403_v54  ;;  %v6406_v55 = vld [vmem:[#allocation8 + $0x70] sm:$0xff]  ;;  %v6415_v21 = vld [vmem:[#allocation8 + $0x28] sm:$0xff] }
 0x45f   :  { %7732 = vst [vmem:[#allocation20_spill] sm:$0xff] %v6406_v55 }
 0x460   :  { %v3870_v4 = vpop.eup %3869  ;;  %7733 = vst [vmem:[#allocation61_spill] sm:$0xff] %v6409_v43 }
 0x461   :  { %v3872_v45 = vpop.eup %3871  ;;  %v2322_v63 = vmul.f32 %v3870_v4, %v2321_v53  ;;  %7734 = vst [vmem:[#allocation26_spill] sm:$0xff] %v6412_v36  ;;  %v6418_v53 = vld [vmem:[#allocation8 + $0x10] sm:$0xff] }
 0x462   :  { %v2596_v14 = vmul.f32 %v3872_v45, %v2595_v51  ;;  %7735 = vst [vmem:[#allocation37_spill] sm:$0xff] %v6415_v21  ;;  %v6423_v4 = vld [vmem:[#allocation8 + $0x270] sm:$0xff]  ;;  %v6425_v51 = vld [vmem:[#allocation8 + $0x2d8] sm:$0xff]  ;;  %v2921_v45 = vld [vmem:[#allocation8 + $0x2e0] sm:$0xff] }
 0x463   :  { %v6343_v44 = vadd.f32 %v2323_v33, %v2322_v63  ;;  %7736 = vst [vmem:[#allocation36_spill] sm:$0xff] %v6418_v53  ;;  %v6429_v63 = vld [vmem:[#allocation8 + $0x258] sm:$0xff]  ;;  %v6431_v33 = vld [vmem:[#allocation8 + $0x2c0] sm:$0xff] }
 0x464   :  { %v6345_v49 = vadd.f32 %v2597_v15, %v2596_v14  ;;  %7737 = vst [vmem:[#allocation34_spill] sm:$0xff] %v6423_v4  ;;  %v2918_v14 = vld [vmem:[#allocation8 + $0x2c8] sm:$0xff]  ;;  %v6435_v15 = vld [vmem:[#allocation8 + $0x240] sm:$0xff] }
 0x465   :  { %2326 = vst [vmem:[#allocation11 + $0x20] sm:$0xff] %v6343_v44  ;;  %2499 = vmatmul.f32.vlgmr.msra.gmra.mxu0 %v6343_v44  ;;  %2519 = vmatmul.f32.vlgmr.msra.gmra.mxu1 %v6343_v44 }
 0x466   :  { %2671 = vmatmul.f32.vlgmr.msra.gmra.mxu3 %v6345_v49  ;;  %2539 = vmatmul.f32.vlgmr.msra.gmra.mxu2 %v6343_v44  ;;  %7738 = vst [vmem:[#allocation28_spill] sm:$0xff] %v6429_v63 }
 0x467   :  { %2857 = vmatpush.msra.mxu0 %v6347_v10  ;;  %2925 = vmatpush.msra.mxu1 %v6356_v11  ;;  %7739 = vst [vmem:[#allocation19_spill] sm:$0xff] %v6435_v15 }
 0x468   :  { %2945 = vmatpush.msra.mxu2 %v6362_v23  ;;  %2965 = vmatpush.msra.mxu3 %v2924_v26  ;;  %v6437_v26 = vld [vmem:[#allocation8 + $0x2a8] sm:$0xff] }
 0x469   :  { %2858 = vmatpush.msra.mxu0 %v6354_v41  ;;  %2926 = vmatpush.msra.mxu1 %v6358_v27 }
 0x46a   :  { %2946 = vmatpush.msra.mxu2 %v6425_v51  ;;  %2966 = vmatpush.msra.mxu3 %v2921_v45  ;;  %v6447_v45 = vld [vmem:[#allocation8 + $0x228] sm:$0xff] }
 0x46b   :  { %2859 = vmatpush.msra.mxu0 %v6364_v62  ;;  %2927 = vmatpush.msra.mxu1 %v6366_v32  ;;  %7742 = vst [vmem:[#allocation30_spill] sm:$0xff] %v6447_v45 }
 0x46c   :  { %2947 = vmatpush.msra.mxu2 %v6431_v33  ;;  %2967 = vmatpush.msra.mxu3 %v2918_v14  ;;  %v2912_v14 = vld [vmem:[#allocation8 + $0x298] sm:$0xff] }
 0x46d   :  { %2860 = vmatpush.msra.mxu0 %v6371_v20  ;;  %2711 = vmatmul.f32.vlgmr.msrb.gmra.mxu1 %v6345_v49 }
 0x46e   :  { %2853 = vmatmul.f32.vlgmr.msrb.gmra.mxu3 %v6345_v49  ;;  %2691 = vmatmul.f32.vlgmr.msrb.gmra.mxu0 %v6345_v49 }
 0x46f   :  { %2833 = vmatmul.f32.vlgmr.msrb.gmra.mxu2 %v6345_v49  ;;  %2861 = vmatpush.msra.mxu0 %v6375_v25 }
 0x470   :  { %2928 = vmatpush.msra.mxu1 %v6379_v37  ;;  %2948 = vmatpush.msra.mxu2 %v6437_v26 }
 0x471   :  { %2862 = vmatpush.msra.mxu0 %v6383_v56 }
 0x472   :  { %2929 = vmatpush.msra.mxu1 %v6387_v1 }
 0x473   :  { %2863 = vmatpush.msra.mxu0 %v6389_v9 }
 0x474   :  { %2930 = vmatpush.msra.mxu1 %v6423_v4 }
 0x475   :  { %2864 = vmatpush.msra.mxu0 %v6393_v31 }
 0x476   :  { %2931 = vmatpush.msra.mxu1 %v6429_v63  ;;  %v6590_v63 = vld [vmem:[#allocation7 + $0x178] sm:$0xff] }
 0x477   :  { %2865 = vmatpush.msra.mxu0 %v6397_v16  ;;  %v6500_v16 = vld [vmem:[#allocation7 + $0xf0] sm:$0xff]  ;;  %7789 = vst [vmem:[#allocation85_spill] sm:$0xff] %v6590_v63 }
 0x478   :  { %2932 = vmatpush.msra.mxu1 %v6435_v15  ;;  %v6488_v15 = vld [vmem:[#allocation7 + $0x108] sm:$0xff]  ;;  %7759 = vst [vmem:[#allocation57_spill] sm:$0xff] %v6500_v16 }
 0x479   :  { %2866 = vmatpush.msra.mxu0 %v6400_v48  ;;  %v6476_v48 = vld [vmem:[#allocation7 + $0x120] sm:$0xff]  ;;  %7755 = vst [vmem:[#allocation32_spill] sm:$0xff] %v6488_v15 }
 0x47a   :  { %2933 = vmatpush.msra.mxu1 %v6447_v45  ;;  %v6468_v45 = vld [vmem:[#allocation8 + $0x1f8] sm:$0xff]  ;;  %7751 = vst [vmem:[#allocation39_spill] sm:$0xff] %v6476_v48 }
 0x47b   :  { %2867 = vmatpush.msra.mxu0 %v6403_v54  ;;  %v6458_v54 = vld [vmem:[#allocation8 + $0x278] sm:$0xff]  ;;  %7748 = vst [vmem:[#allocation25_spill] sm:$0xff] %v6468_v45 }
 0x47c   :  { %7745 = vst [vmem:[#allocation73_spill] sm:$0xff] %v6458_v54 }
 0x47d   :  { %2868 = vmatpush.msra.mxu0 %v6406_v55  ;;  %v6456_v55 = vld [vmem:[#allocation8 + $0x210] sm:$0xff] }
 0x47e   :  { %7744 = vst [vmem:[#allocation23_spill] sm:$0xff] %v6456_v55  ;;  %2934 = vmatpush.msra.mxu1 %v6456_v55  ;;  %v6480_v55 = vld [vmem:[#allocation8 + $0x1e0] sm:$0xff] }
 0x47f   :  { %2869 = vmatpush.msra.mxu0 %v6409_v43  ;;  %v6453_v43 = vld [vmem:[#allocation7 + $0x150] sm:$0xff]  ;;  %7752 = vst [vmem:[#allocation59_spill] sm:$0xff] %v6480_v55 }
 0x480   :  { %7743 = vst [vmem:[#allocation53_spill] sm:$0xff] %v6453_v43  ;;  %2935 = vmatpush.msra.mxu1 %v6468_v45  ;;  %v6492_v45 = vld [vmem:[#allocation8 + $0x1c8] sm:$0xff] }
 0x481   :  { %2870 = vmatpush.msra.mxu0 %v6412_v36  ;;  %v6449_v36 = vld [vmem:[#allocation8 + $0x290] sm:$0xff]  ;;  %7756 = vst [vmem:[#allocation44_spill] sm:$0xff] %v6492_v45 }
 0x482   :  { %2949 = vmatpush.msra.mxu2 %v6449_v36  ;;  %2936 = vmatpush.msra.mxu1 %v6480_v55  ;;  %v6504_v55 = vld [vmem:[#allocation8 + $0x1b0] sm:$0xff] }
 0x483   :  { %2871 = vmatpush.msra.mxu0 %v6415_v21  ;;  %v6443_v21 = vld [vmem:[#allocation7 + $0x168] sm:$0xff]  ;;  %7760 = vst [vmem:[#allocation60_spill] sm:$0xff] %v6504_v55 }
 0x484   :  { %7741 = vst [vmem:[#allocation24_spill] sm:$0xff] %v6443_v21  ;;  %2950 = vmatpush.msra.mxu2 %v6458_v54  ;;  %2937 = vmatpush.msra.mxu1 %v6492_v45  ;;  %v6512_v45 = vld [vmem:[#allocation7 + $0xd8] sm:$0xff] }
 0x485   :  { %2872 = vmatpush.msra.mxu0 %v6418_v53  ;;  %v6439_v53 = vld [vmem:[#allocation8 + $0x2b0] sm:$0xff]  ;;  %7763 = vst [vmem:[#allocation31_spill] sm:$0xff] %v6512_v45 }
 0x486   :  { %2873 = vmatmul.f32.vlgmr.msra.gmra.mxu0 %v6345_v49  ;;  %7740 = vst [vmem:[#allocation21_spill] sm:$0xff] %v6439_v53  ;;  %2968 = vmatpush.msra.mxu3 %v6439_v53  ;;  %v6460_v53 = vld [vmem:[#allocation8 + $0x280] sm:$0xff] }
 0x487   :  { %3097 = vmatpush.msrb.mxu0 %v6443_v21  ;;  %7746 = vst [vmem:[#allocation50_spill] sm:$0xff] %v6460_v53  ;;  %v6464_v21 = vld [vmem:[#allocation7 + $0x138] sm:$0xff]  ;;  %2938 = vmatpush.msra.mxu1 %v6504_v55  ;;  %v6528_v55 = vld [vmem:[#allocation8 + $0x180] sm:$0xff] }
 0x488   :  { %2969 = vmatpush.msra.mxu3 %v2912_v14  ;;  %7747 = vst [vmem:[#allocation29_spill] sm:$0xff] %v6464_v21  ;;  %v6470_v14 = vld [vmem:[#allocation8 + $0x260] sm:$0xff] }
 0x489   :  { %3098 = vmatpush.msrb.mxu0 %v6453_v43  ;;  %7749 = vst [vmem:[#allocation77_spill] sm:$0xff] %v6470_v14  ;;  %v6472_v43 = vld [vmem:[#allocation8 + $0x268] sm:$0xff]  ;;  %2951 = vmatpush.msra.mxu2 %v6470_v14  ;;  %v6576_v14 = vld [vmem:[#allocation10 + $0x3] sm:$0x7] }
 0x48a   :  { %2970 = vmatpush.msra.mxu3 %v6460_v53  ;;  %7750 = vst [vmem:[#allocation65_spill] sm:$0xff] %v6472_v43  ;;  %v6482_v53 = vld [vmem:[#allocation8 + $0x248] sm:$0xff] }
 0x48b   :  { %3099 = vmatpush.msrb.mxu0 %v6464_v21  ;;  %7753 = vst [vmem:[#allocation81_spill] sm:$0xff] %v6482_v53  ;;  %v6484_v21 = vld [vmem:[#allocation8 + $0x250] sm:$0xff]  ;;  %2952 = vmatpush.msra.mxu2 %v6482_v53  ;;  %v6524_v53 = vld [vmem:[#allocation7 + $0xc0] sm:$0xff] }
 0x48c   :  { %2971 = vmatpush.msra.mxu3 %v6472_v43  ;;  %7754 = vst [vmem:[#allocation40_spill] sm:$0xff] %v6484_v21  ;;  %v6494_v43 = vld [vmem:[#allocation8 + $0x230] sm:$0xff] }
 0x48d   :  { %3100 = vmatpush.msrb.mxu0 %v6476_v48  ;;  %7757 = vst [vmem:[#allocation49_spill] sm:$0xff] %v6494_v43  ;;  %2953 = vmatpush.msra.mxu2 %v6494_v43  ;;  %v6498_v48 = vld [vmem:[#allocation8 + $0x238] sm:$0xff] }
 0x48e   :  { %2972 = vmatpush.msra.mxu3 %v6484_v21  ;;  %7758 = vst [vmem:[#allocation43_spill] sm:$0xff] %v6498_v48  ;;  %v6506_v21 = vld [vmem:[#allocation8 + $0x218] sm:$0xff] }
 0x48f   :  { %3101 = vmatpush.msrb.mxu0 %v6488_v15  ;;  %7761 = vst [vmem:[#allocation38_spill] sm:$0xff] %v6506_v21  ;;  %v6508_v15 = vld [vmem:[#allocation8 + $0x220] sm:$0xff]  ;;  %2954 = vmatpush.msra.mxu2 %v6506_v21  ;;  %v6516_v43 = vld [vmem:[#allocation8 + $0x198] sm:$0xff]  ;;  %v6536_v21 = vld [vmem:[#allocation7 + $0xa8] sm:$0xff] }
 0x490   :  { %2973 = vmatpush.msra.mxu3 %v6498_v48  ;;  %7762 = vst [vmem:[#allocation46_spill] sm:$0xff] %v6508_v15  ;;  %v6518_v48 = vld [vmem:[#allocation8 + $0x200] sm:$0xff]  ;;  %2939 = vmatpush.msra.mxu1 %v6516_v43 }
 0x491   :  { %3102 = vmatpush.msrb.mxu0 %v6500_v16  ;;  %7764 = vst [vmem:[#allocation75_spill] sm:$0xff] %v6516_v43  ;;  %v6520_v16 = vld [vmem:[#allocation8 + $0x208] sm:$0xff]  ;;  %2955 = vmatpush.msra.mxu2 %v6518_v48  ;;  %v6538_v43 = vld [vmem:[#allocation7 + $0x170] sm:$0xff] }
 0x492   :  { %2974 = vmatpush.msra.mxu3 %v6508_v15  ;;  %7765 = vst [vmem:[#allocation79_spill] sm:$0xff] %v6518_v48  ;;  %v6530_v15 = vld [vmem:[#allocation8 + $0x1e8] sm:$0xff]  ;;  %2940 = vmatpush.msra.mxu1 %v6528_v55  ;;  %v6548_v48 = vld [vmem:[#allocation7 + $0x90] sm:$0xff] }
 0x493   :  { %3103 = vmatpush.msrb.mxu0 %v6512_v45  ;;  %7766 = vst [vmem:[#allocation42_spill] sm:$0xff] %v6520_v16  ;;  %v6532_v45 = vld [vmem:[#allocation8 + $0x1f0] sm:$0xff]  ;;  %2956 = vmatpush.msra.mxu2 %v6530_v15 }
 0x494   :  { %7767 = vst [vmem:[#allocation48_spill] sm:$0xff] %v6524_v53  ;;  %2975 = vmatpush.msra.mxu3 %v6520_v16  ;;  %v6542_v16 = vld [vmem:[#allocation8 + $0x1d0] sm:$0xff]  ;;  %3117 = vmatpush.msrb.mxu1 %v6538_v43 }
 0x495   :  { %3104 = vmatpush.msrb.mxu0 %v6524_v53  ;;  %7768 = vst [vmem:[#allocation66_spill] sm:$0xff] %v6528_v55  ;;  %v6544_v53 = vld [vmem:[#allocation8 + $0x1d8] sm:$0xff]  ;;  %2957 = vmatpush.msra.mxu2 %v6542_v16 }
 0x496   :  { %7769 = vst [vmem:[#allocation62_spill] sm:$0xff] %v6530_v15  ;;  %2976 = vmatpush.msra.mxu3 %v6532_v45  ;;  %v6550_v55 = vld [vmem:[#allocation7 + $0x158] sm:$0xff] }
 0x497   :  { %7770 = vst [vmem:[#allocation35_spill] sm:$0xff] %v6532_v45  ;;  %3105 = vmatpush.msrb.mxu0 %v6536_v21  ;;  %v6554_v15 = vld [vmem:[#allocation8 + $0x1b8] sm:$0xff]  ;;  %v6556_v45 = vld [vmem:[#allocation8 + $0x1c0] sm:$0xff]  ;;  %3118 = vmatpush.msrb.mxu1 %v6550_v55 }
 0x498   :  { %7771 = vst [vmem:[#allocation80_spill] sm:$0xff] %v6536_v21  ;;  %2977 = vmatpush.msra.mxu3 %v6544_v53  ;;  %2958 = vmatpush.msra.mxu2 %v6554_v15  ;;  %v6560_v21 = vld [vmem:[#allocation7 + $0x78] sm:$0xff] }
 0x499   :  { %7772 = vst [vmem:[#allocation55_spill] sm:$0xff] %v6538_v43  ;;  %3106 = vmatpush.msrb.mxu0 %v6548_v48  ;;  %v6562_v43 = vld [vmem:[#allocation7 + $0x140] sm:$0xff] }
 0x49a   :  { %7773 = vst [vmem:[#allocation76_spill] sm:$0xff] %v6542_v16  ;;  %2978 = vmatpush.msra.mxu3 %v6556_v45  ;;  %v6566_v16 = vld [vmem:[#allocation8 + $0x1a0] sm:$0xff]  ;;  %3119 = vmatpush.msrb.mxu1 %v6562_v43 }
 0x49b   :  { %7774 = vst [vmem:[#allocation45_spill] sm:$0xff] %v6544_v53  ;;  %3107 = vmatpush.msrb.mxu0 %v6560_v21  ;;  %v6568_v53 = vld [vmem:[#allocation8 + $0x1a8] sm:$0xff]  ;;  %2959 = vmatpush.msra.mxu2 %v6566_v16 }
 0x49c   :  { %7775 = vst [vmem:[#allocation84_spill] sm:$0xff] %v6548_v48  ;;  %v6572_v48 = vld [vmem:[#allocation7 + $0x60] sm:$0xff]  ;;  %2979 = vmatpush.msra.mxu3 %v6568_v53 }
 0x49d   :  { %7776 = vst [vmem:[#allocation41_spill] sm:$0xff] %v6550_v55  ;;  %v6574_v55 = vld [vmem:[#allocation7 + $0x128] sm:$0xff]  ;;  %3108 = vmatpush.msrb.mxu0 %v6572_v48 }
 0x49e   :  { %7777 = vst [vmem:[#allocation74_spill] sm:$0xff] %v6554_v15  ;;  %3120 = vmatpush.msrb.mxu1 %v6574_v55 }
 0x49f   :  { %7778 = vst [vmem:[#allocation33_spill] sm:$0xff] %v6556_v45  ;;  %v6580_v45 = vld [vmem:[#allocation8 + $0x188] sm:$0xff] }
 0x4a0   :  { %7779 = vst [vmem:[#allocation82_spill] sm:$0xff] %v6560_v21  ;;  %v6582_v21 = vld [vmem:[#allocation8 + $0x190] sm:$0xff]  ;;  %2960 = vmatpush.msra.mxu2 %v6580_v45 }
 0x4a1   :  { %7780 = vst [vmem:[#allocation71_spill] sm:$0xff] %v6562_v43  ;;  %v6586_v43 = vld [vmem:[#allocation7 + $0x48] sm:$0xff]  ;;  %2980 = vmatpush.msra.mxu3 %v6582_v21 }
 0x4a2   :  { %7781 = vst [vmem:[#allocation51_spill] sm:$0xff] %v6566_v16  ;;  %v6588_v16 = vld [vmem:[#allocation7 + $0x110] sm:$0xff]  ;;  %3109 = vmatpush.msrb.mxu0 %v6586_v43  ;;  %3137 = vmatpush.msrb.mxu2 %v6590_v63  ;;  %v2650_v63 = vperm.slane %v6576_v14, 1 }
 0x4a3   :  { %7782 = vst [vmem:[#allocation90_spill] sm:$0xff] %v6568_v53  ;;  %3121 = vmatpush.msrb.mxu1 %v6588_v16  ;;  %v6596_v53 = vld [vmem:[#allocation7 + $0x30] sm:$0xff]  ;;  %3259 = vmatpush.msrb.mxu3 %v6207_v12 }
 0x4a4   :  { %7783 = vst [vmem:[#allocation72_spill] sm:$0xff] %v6572_v48  ;;  %v6598_v48 = vld [vmem:[#allocation7 + $0xf8] sm:$0xff]  ;;  %3110 = vmatpush.msrb.mxu0 %v6596_v53 }
 0x4a5   :  { %7784 = vst [vmem:[#allocation63_spill] sm:$0xff] %v6574_v55  ;;  %v6600_v55 = vld [vmem:[#allocation7 + $0x160] sm:$0xff]  ;;  %3122 = vmatpush.msrb.mxu1 %v6598_v48  ;;  %3260 = vmatpush.msrb.mxu3 %v6213_v5 }
 0x4a6   :  { %7785 = vst [vmem:[#allocation86_spill] sm:$0xff] %v6580_v45  ;;  %v2649_v45 = vperm.slane %v6576_v14, 0  ;;  %3138 = vmatpush.msrb.mxu2 %v6600_v55 }
 0x4a7   :  { %7786 = vst [vmem:[#allocation47_spill] sm:$0xff] %v6582_v21  ;;  %v6607_v21 = vld [vmem:[#allocation7 + $0x18] sm:$0xff]  ;;  %3261 = vmatpush.msrb.mxu3 %v6220_v19 }
 0x4a8   :  { %7787 = vst [vmem:[#allocation58_spill] sm:$0xff] %v6586_v43  ;;  %v6609_v43 = vld [vmem:[#allocation7 + $0xe0] sm:$0xff]  ;;  %3111 = vmatpush.msrb.mxu0 %v6607_v21  ;;  %v6638_v19 = vld [vmem:[#allocation7 + $0x98] sm:$0xff] }
 0x4a9   :  { %7788 = vst [vmem:[#allocation64_spill] sm:$0xff] %v6588_v16  ;;  %v6611_v16 = vld [vmem:[#allocation7 + $0x148] sm:$0xff]  ;;  %3123 = vmatpush.msrb.mxu1 %v6609_v43  ;;  %3262 = vmatpush.msrb.mxu3 %v6226_v47 }
 0x4aa   :  { %7790 = vst [vmem:[#allocation52_spill] sm:$0xff] %v6596_v53  ;;  %3139 = vmatpush.msrb.mxu2 %v6611_v16  ;;  %v6620_v53 = vld [vmem:[#allocation7] sm:$0xff]  ;;  %v6648_v47 = vld [vmem:[#allocation7 + $0xe8] sm:$0xff] }
 0x4ab   :  { %7791 = vst [vmem:[#allocation87_spill] sm:$0xff] %v6598_v48  ;;  %v6622_v48 = vld [vmem:[#allocation7 + $0xc8] sm:$0xff]  ;;  %3112 = vmatpush.msrb.mxu0 %v6620_v53  ;;  %3263 = vmatpush.msrb.mxu3 %v6233_v46  ;;  %v6656_v46 = vld [vmem:[#allocation7 + $0xd0] sm:$0xff] }
 0x4ac   :  { %7792 = vst [vmem:[#allocation67_spill] sm:$0xff] %v6600_v55  ;;  %v6624_v55 = vld [vmem:[#allocation7 + $0x130] sm:$0xff]  ;;  %3124 = vmatpush.msrb.mxu1 %v6622_v48 }
 0x4ad   :  { %7793 = vst [vmem:[#allocation78_spill] sm:$0xff] %v6607_v21  ;;  %3140 = vmatpush.msrb.mxu2 %v6624_v55  ;;  %v6630_v21 = vld [vmem:[#allocation7 + $0xb0] sm:$0xff]  ;;  %3279 = vmatpush.msra.mxu0 %v6202_v13  ;;  %v6646_v13 = vld [vmem:[#allocation7 + $0x80] sm:$0xff] }
 0x4ae   :  { %7794 = vst [vmem:[#allocation54_spill] sm:$0xff] %v6609_v43  ;;  %v6632_v43 = vld [vmem:[#allocation7 + $0x118] sm:$0xff]  ;;  %3125 = vmatpush.msrb.mxu1 %v6630_v21  ;;  %3264 = vmatpush.msrb.mxu3 %v6239_v61 }
 0x4af   :  { %7795 = vst [vmem:[#allocation68_spill] sm:$0xff] %v6611_v16  ;;  %3141 = vmatpush.msrb.mxu2 %v6632_v43  ;;  %3280 = vmatpush.msra.mxu0 %v6210_v29  ;;  %v6654_v29 = vld [vmem:[#allocation7 + $0x68] sm:$0xff]  ;;  %v6664_v61 = vld [vmem:[#allocation7 + $0xb8] sm:$0xff] }
 0x4b0   :  { %7796 = vst [vmem:[#allocation88_spill] sm:$0xff] %v6620_v53  ;;  %3126 = vmatpush.msrb.mxu1 %v6638_v19  ;;  %3265 = vmatpush.msrb.mxu3 %v6245_v22  ;;  %v6672_v22 = vld [vmem:[#allocation7 + $0xa0] sm:$0xff] }
 0x4b1   :  { %7797 = vst [vmem:[#allocation83_spill] sm:$0xff] %v6622_v48  ;;  %3281 = vmatpush.msra.mxu0 %v6217_v38  ;;  %v6662_v38 = vld [vmem:[#allocation7 + $0x50] sm:$0xff] }
 0x4b2   :  { %3127 = vmatpush.msrb.mxu1 %v6646_v13  ;;  %3266 = vmatpush.msrb.mxu3 %v6251_v17  ;;  %v6682_v17 = vld [vmem:[#allocation7 + $0x88] sm:$0xff] }
 0x4b3   :  { %3282 = vmatpush.msra.mxu0 %v6223_v30  ;;  %v6670_v30 = vld [vmem:[#allocation7 + $0x38] sm:$0xff] }
 0x4b4   :  { %3128 = vmatpush.msrb.mxu1 %v6654_v29  ;;  %3267 = vmatpush.msrb.mxu3 %v6257_v2  ;;  %v6691_v2 = vld [vmem:[#allocation7 + $0x70] sm:$0xff] }
 0x4b5   :  { %3283 = vmatpush.msra.mxu0 %v6230_v8  ;;  %v6680_v8 = vld [vmem:[#allocation7 + $0x20] sm:$0xff] }
 0x4b6   :  { %3129 = vmatpush.msrb.mxu1 %v6662_v38  ;;  %7798 = vst [vmem:[#allocation70_spill] sm:$0xff] %v6680_v8  ;;  %3268 = vmatpush.msrb.mxu3 %v6267_v52 }
 0x4b7   :  { %3284 = vmatpush.msra.mxu0 %v6236_v42  ;;  %v6689_v42 = vld [vmem:[#allocation7 + $0x8] sm:$0xff] }
 0x4b8   :  { %3130 = vmatpush.msrb.mxu1 %v6670_v30  ;;  %7799 = vst [vmem:[#allocation56_spill] sm:$0xff] %v6689_v42  ;;  %3269 = vmatpush.msrb.mxu3 %v6273_v24  ;;  %v6707_v24 = vld [vmem:[#allocation7 + $0x40] sm:$0xff] }
 0x4b9   :  { %3285 = vmatpush.msra.mxu0 %v6242_v34  ;;  %v6699_v34 = vld [vmem:[#allocation7 + $0x58] sm:$0xff]  ;;  %7800 = vst [vmem:[#allocation89_spill] sm:$0xff] %v6707_v24 }
 0x4ba   :  { %3131 = vmatpush.msrb.mxu1 %v6680_v8  ;;  %3270 = vmatpush.msrb.mxu3 %v6280_v39  ;;  %v6721_v39 = vld [vmem:[#allocation7 + $0x10] sm:$0xff] }
 0x4bb   :  { %3286 = vmatpush.msra.mxu0 %v6248_v35  ;;  %7802 = vst [vmem:[#allocation92_spill] sm:$0xff] %v6721_v39 }
 0x4bc   :  { %3132 = vmatpush.msrb.mxu1 %v6689_v42  ;;  %3271 = vmatpush.msrb.mxu3 %v6285_v60 }
 0x4bd   :  { %3287 = vmatpush.msra.mxu0 %v6254_v0 }
 0x4be   :  { %3272 = vmatpush.msrb.mxu3 %v6293_v59 }
 0x4bf   :  { %3288 = vmatpush.msra.mxu0 %v6262_v3 }
 0x4c0   :  { %3273 = vmatpush.msrb.mxu3 %v6303_v7 }
 0x4c1   :  { %3289 = vmatpush.msra.mxu0 %v6271_v57 }
 0x4c2   :  { %3274 = vmatpush.msrb.mxu3 %v6315_v58 }
 0x4c3   :  { %3290 = vmatpush.msra.mxu0 %v6275_v18 }
 0x4c5   :  { %3291 = vmatpush.msra.mxu0 %v6282_v6 }
 0x4c7   :  { %3292 = vmatpush.msra.mxu0 %v6288_v50 }
 0x4c9   :  { %3293 = vmatpush.msra.mxu0 %v6298_v28 }
 0x4cb   :  { %3294 = vmatpush.msra.mxu0 %v6311_v40 }
 0x4e2   :  { %v2500_v15 = vpop.f32.mrf.mxu0 }
 0x4e9   :  { %v2672_v31 = vpop.f32.mrf.mxu3  ;;  %v6616_v12 = vpop.f32.mrf.mxu2 }
 0x4ea   :  { %v2673_v54 = vadd.f32 %v2672_v31, %v2649_v45  ;;  %v2520_v31 = vpop.f32.mrf.mxu1  ;;  %v6640_v45 = vld [vmem:[#allocation7 + $0x100] sm:$0xff] }
 0x4eb   :  { %v2692_v5 = vpop.f32.mrf.mxu0  ;;  %3142 = vmatpush.msrb.mxu2 %v6640_v45 }
 0x4ec   :  { %v2715_v16 = vadd.f32 %v2673_v54, %v2500_v15  ;;  %v2693_v4 = vadd.f32 %v2692_v5, %v2650_v63  ;;  %v2987_v54 = vld [vmem:[#allocation2 + $0x98] sm:$0xff]  ;;  %v2986_v15 = vld [vmem:[#allocation2 + $0x90] sm:$0xff] }
 0x4ed   :  { %3143 = vmatpush.msrb.mxu2 %v6648_v47 }
 0x4ee   :  { %v3721_v53 = vmul.f32 -1.442695, %v2715_v16  ;;  %v2735_v48 = vadd.f32 %v2693_v4, %v2520_v31 }
 0x4ef   :  { %3144 = vmatpush.msrb.mxu2 %v6656_v46 }
 0x4f0   :  { %3873 = vpow2.f32 %v3721_v53  ;;  %v3722_v63 = vmul.f32 -1.442695, %v2735_v48 }
 0x4f1   :  { %v2854_v16 = vpop.f32.mrf.mxu3  ;;  %3145 = vmatpush.msrb.mxu2 %v6664_v61 }
 0x4f2   :  { %3875 = vpow2.f32 %v3722_v63  ;;  %v3009_v4 = vadd.f32 %v2987_v54, %v2854_v16  ;;  %v2834_v5 = vpop.f32.mrf.mxu2 }
 0x4f3   :  { %v2989_v48 = vadd.f32 %v2986_v15, %v2834_v5  ;;  %3146 = vmatpush.msrb.mxu2 %v6672_v22 }
 0x4f4   :  { %v3725_v53 = vmul.f32 -1.442695, %v3009_v4 }
 0x4f5   :  { %v3724_v31 = vmul.f32 -1.442695, %v2989_v48  ;;  %3147 = vmatpush.msrb.mxu2 %v6682_v17  ;;  %v6713_v48 = vld [vmem:[#allocation7 + $0x28] sm:$0xff] }
 0x4f6   :  { %v3874_v54 = vpop.eup %3873  ;;  %3877 = vpow2.f32 %v3725_v53  ;;  %7801 = vst [vmem:[#allocation94_spill] sm:$0xff] %v6713_v48 }
 0x4f7   :  { %v6676_v63 = vadd.f32 1.0, %v3874_v54  ;;  %3879 = vpow2.f32 %v3724_v31  ;;  %3148 = vmatpush.msrb.mxu2 %v6691_v2  ;;  %v3758_v54 = vld [vmem:[%s6959_s5 + $0x1] ss:$0 sm:$0xff] }
 0x4f8   :  { %v3876_v15 = vpop.eup %3875 }
 0x4f9   :  { %3881 = vrcp.f32 %v6676_v63  ;;  %v6693_v16 = vadd.f32 1.0, %v3876_v15  ;;  %3149 = vmatpush.msrb.mxu2 %v6699_v34  ;;  %v2731_v31 = vand.u32 2147483648, %v6676_v63  ;;  %v2729_v15 = vand.u32 2147483647, %v6676_v63 }
 0x4fa   :  { %vm2725_vm9 = vweird.f32 %v6676_v63 }
 0x4fb   :  { %3883 = vrcp.f32 %v6693_v16  ;;  %3150 = vmatpush.msrb.mxu2 %v6707_v24  ;;  %vm2730_vm11 = vcmp.eq.f32.partialorder %v2729_v15, 8.507059e+37  ;;  %vm2745_vm13 = vweird.f32 %v6693_v16 }
 0x4fc   :  { %v3878_v52 = vpop.eup %3877 }
 0x4fd   :  { %v3880_v4 = vpop.eup %3879  ;;  %v6704_v5 = vadd.f32 1.0, %v3878_v52  ;;  %3151 = vmatpush.msrb.mxu2 %v6713_v48  ;;  %v2651_v52 = vperm.slane %v6576_v14, 2  ;;  %v2759_v14 = vadd.f32 %v3758_v54, %v6616_v12  ;;  %v2751_v12 = vand.u32 2147483648, %v6693_v16 }
 0x4fe   :  { %v6709_v35 = vadd.f32 1.0, %v3880_v4  ;;  %v2712_v4 = vpop.f32.mrf.mxu1 }
 0x4ff   :  { %v3882_v53 = vpop.eup %3881  ;;  %3885 = vrcp.f32 %v6704_v5  ;;  %3152 = vmatpush.msrb.mxu2 %v6721_v39  ;;  %v2732_v39 = vor.u32 1.1754944e-38, %v2731_v31  ;;  %vm3019_vm5 = vweird.f32 %v6704_v5 }
 0x500   :  { %v2721_v0 = vmul.f32 %v3882_v53, %v6676_v63  ;;  %3887 = vrcp.f32 %v6709_v35  ;;  %vm2726_vm8 = vweird.f32 %v3882_v53  ;;  %v3005_v31 = vand.u32 2147483648, %v6709_v35 }
 0x501   :  { %v6724_v3 = vpop.eup %3883  ;;  %vm2727_vm10 = vmor %vm2725_vm9, %vm2726_vm8  ;;  %v3003_v28 = vand.u32 2147483647, %v6709_v35  ;;  %vm2999_vm0 = vweird.f32 %v6709_v35 }
 0x502   :  { %v2722_v60 = vsub.f32 1.0, %v2721_v0  ;;  %v2741_v57 = vmul.f32 %v6724_v3, %v6693_v16  ;;  %vm2746_vm12 = vweird.f32 %v6724_v3 }
 0x503   :  { %vm6760_vm15 = vmor %vm2745_vm13, %vm2746_vm12  ;;  %vm3004_vm3 = vcmp.eq.f32.partialorder %v3003_v28, 8.507059e+37 }
 0x504   :  { %v2723_v59 = vmul.f32 %v3882_v53, %v2722_v60  ;;  %v2742_v7 = vsub.f32 1.0, %v2741_v57  ;;  %v2713_v57 = vadd.f32 %v2712_v4, %v2651_v52  ;;  %v2874_v52 = vpop.f32.mrf.mxu0  ;;  %v3006_v4 = vor.u32 1.1754944e-38, %v3005_v31 }
 0x505   :  { %v6739_v18 = vpop.eup %3885 }
 0x506   :  { %v3888_v0 = vpop.eup %3887  ;;  %v2724_v42 = vadd.f32 %v3882_v53, %v2723_v59  ;;  %v3015_v60 = vmul.f32 %v6739_v18, %v6704_v5  ;;  %v2743_v58 = vmul.f32 %v6724_v3, %v2742_v7  ;;  %v2752_v7 = vor.u32 1.1754944e-38, %v2751_v12 }
 0x507   :  { %v2995_v6 = vmul.f32 %v3888_v0, %v6709_v35  ;;  %vm3000_vm14 = vweird.f32 %v3888_v0  ;;  %vm3020_vm4 = vweird.f32 %v6739_v18  ;;  %v3023_v35 = vand.u32 2147483647, %v6704_v5 }
 0x508   :  { %v2728_v48 = vsel %vm2727_vm10, %v3882_v53, %v2724_v42  ;;  %v3016_v8 = vsub.f32 1.0, %v3015_v60  ;;  %v2744_v59 = vadd.f32 %v6724_v3, %v2743_v58  ;;  %v2749_v42 = vand.u32 2147483647, %v6693_v16  ;;  %vm3001_vm1 = vmor %vm2999_vm0, %vm3000_vm14 }
 0x509   :  { %v2733_v63 = vsel %vm2730_vm11, %v2732_v39, %v2728_v48  ;;  %v2996_v50 = vsub.f32 1.0, %v2995_v6  ;;  %v3759_v48 = vld [vmem:[%s6959_s5] ss:$0 sm:$0xff]  ;;  %vm3021_vm6 = vmor %vm3019_vm5, %vm3020_vm4  ;;  %vm3024_vm7 = vcmp.eq.f32.partialorder %v3023_v35, 8.507059e+37  ;;  %v7838_v35 = vld [vmem:[#allocation55_spill] sm:$0xff] }
 0x50a   :  { %v2760_v24 = vmul.f32 %v2759_v14, %v2733_v63  ;;  %v3017_v15 = vmul.f32 %v6739_v18, %v3016_v8  ;;  %v2748_v40 = vsel %vm6760_vm15, %v6724_v3, %v2744_v59  ;;  %vm2750_vm2 = vcmp.eq.f32.partialorder %v2749_v42, 8.507059e+37  ;;  %v2988_v8 = vld [vmem:[#allocation2 + $0xa0] sm:$0xff] }
 0x50b   :  { %v2997_v53 = vmul.f32 %v3888_v0, %v2996_v50  ;;  %v3033_v14 = vadd.f32 %v3759_v48, %v2874_v52  ;;  %v2753_v58 = vsel %vm2750_vm2, %v2752_v7, %v2748_v40  ;;  %v3025_v3 = vand.u32 2147483648, %v6704_v5  ;;  %v7825_v52 = vld [vmem:[#allocation26_spill] sm:$0xff]  ;;  %v7826_v40 = vld [vmem:[#allocation44_spill] sm:$0xff]  ;;  %v7828_v7 = vld [vmem:[#allocation37_spill] sm:$0xff] }
 0x50c   :  { %v2761_v54 = vadd.f32 %v2760_v24, %v2713_v57  ;;  %v3018_v24 = vadd.f32 %v6739_v18, %v3017_v15  ;;  %v2763_v63 = vsub.f32 1.0, %v2753_v58  ;;  %v2765_v42 = vmul.f32 %v2753_v58, %v6343_v44  ;;  %v7824_v15 = vld [vmem:[#allocation62_spill] sm:$0xff]  ;;  %v7832_v58 = vld [vmem:[#allocation75_spill] sm:$0xff] }
 0x50d   :  { %v2998_v16 = vadd.f32 %v3888_v0, %v2997_v53  ;;  %v3026_v31 = vor.u32 1.1754944e-38, %v3025_v3  ;;  %v7836_v3 = vld [vmem:[#allocation86_spill] sm:$0xff] }
 0x50e   :  { %3889 = vtanh.f32 %v2761_v54  ;;  %v3022_v50 = vsel %vm3021_vm6, %v6739_v18, %v3018_v24  ;;  %v7823_v54 = vld [vmem:[#allocation59_spill] sm:$0xff] }
 0x50f   :  { %v3002_v60 = vsel %vm3001_vm1, %v3888_v0, %v2998_v16  ;;  %v3027_v53 = vsel %vm3024_vm7, %v3026_v31, %v3022_v50  ;;  %v7827_v16 = vld [vmem:[#allocation76_spill] sm:$0xff]  ;;  %v7833_v24 = vld [vmem:[#allocation51_spill] sm:$0xff] }
 0x510   :  { %v3007_v6 = vsel %vm3004_vm3, %v3006_v4, %v3002_v60  ;;  %v3037_v5 = vsub.f32 1.0, %v3027_v53  ;;  %v3039_v48 = vmul.f32 %v3027_v53, %v6345_v49  ;;  %v7805_v49 = vld [vmem:[#allocation34_spill] sm:$0xff]  ;;  %v7829_v4 = vld [vmem:[#allocation60_spill] sm:$0xff]  ;;  %v7842_v50 = vld [vmem:[#allocation67_spill] sm:$0xff] }
 0x511   :  { %v3034_v57 = vmul.f32 %v3033_v14, %v3007_v6  ;;  %v7830_v60 = vld [vmem:[#allocation74_spill] sm:$0xff]  ;;  %v7831_v14 = vld [vmem:[#allocation36_spill] sm:$0xff]  ;;  %v7844_v31 = vld [vmem:[#allocation71_spill] sm:$0xff] }
 0x512   :  { %v7835_v6 = vld [vmem:[#allocation66_spill] sm:$0xff]  ;;  %v7846_v53 = vld [vmem:[#allocation32_spill] sm:$0xff] }
 0x513   :  { %v3035_v59 = vadd.f32 %v3034_v57, %v2988_v8  ;;  %v7834_v8 = vld [vmem:[#allocation24_spill] sm:$0xff]  ;;  %v7837_v57 = vld [vmem:[#allocation53_spill] sm:$0xff] }
 0x514   :  { %v3890_v0 = vpop.eup %3889 }
 0x515   :  { %v2764_v12 = vmul.f32 %v3890_v0, %v2763_v63  ;;  %3891 = vtanh.f32 %v3035_v59  ;;  %v7839_v63 = vld [vmem:[#allocation85_spill] sm:$0xff] }
 0x516   :  { %v7840_v59 = vld [vmem:[#allocation29_spill] sm:$0xff] }
 0x517   :  { %v6776_v28 = vadd.f32 %v2765_v42, %v2764_v12  ;;  %v7841_v0 = vld [vmem:[#allocation41_spill] sm:$0xff]  ;;  %v7843_v12 = vld [vmem:[#allocation39_spill] sm:$0xff]  ;;  %v7845_v42 = vld [vmem:[#allocation68_spill] sm:$0xff] }
 0x519   :  { %2768 = vst [vmem:[#allocation11 + $0x28] sm:$0xff] %v6776_v28  ;;  %2941 = vmatmul.f32.vlgmr.msra.gmra.mxu1 %v6776_v28  ;;  %2961 = vmatmul.f32.vlgmr.msra.gmra.mxu2 %v6776_v28 }
 0x51a   :  { %2981 = vmatmul.f32.vlgmr.msra.gmra.mxu3 %v6776_v28  ;;  %3299 = vmatpush.msra.mxu1 %v6347_v10  ;;  %v7806_v10 = vld [vmem:[#allocation73_spill] sm:$0xff] }
 0x51b   :  { %v3892_v18 = vpop.eup %3891  ;;  %3367 = vmatpush.msra.mxu2 %v6356_v11  ;;  %3387 = vmatpush.msra.mxu3 %v6362_v23  ;;  %v7808_v11 = vld [vmem:[#allocation28_spill] sm:$0xff]  ;;  %v7810_v23 = vld [vmem:[#allocation22_spill] sm:$0xff] }
 0x51c   :  { %v3038_v44 = vmul.f32 %v3892_v18, %v3037_v5  ;;  %3300 = vmatpush.msra.mxu1 %v6354_v41  ;;  %v7807_v41 = vld [vmem:[#allocation97_spill] sm:$0xff]  ;;  %v7847_v5 = vld [vmem:[#allocation63_spill] sm:$0xff] }
 0x51d   :  { %3368 = vmatpush.msra.mxu2 %v6358_v27  ;;  %3388 = vmatpush.msra.mxu3 %v6425_v51  ;;  %v7809_v27 = vld [vmem:[#allocation77_spill] sm:$0xff] }
 0x51e   :  { %v6789_v39 = vadd.f32 %v3039_v48, %v3038_v44  ;;  %3301 = vmatpush.msra.mxu1 %v6364_v62  ;;  %v7811_v62 = vld [vmem:[#allocation19_spill] sm:$0xff]  ;;  %v7820_v51 = vld [vmem:[#allocation25_spill] sm:$0xff]  ;;  %v7849_v44 = vld [vmem:[#allocation64_spill] sm:$0xff] }
 0x51f   :  { %3369 = vmatpush.msra.mxu2 %v6366_v32  ;;  %3389 = vmatpush.msra.mxu3 %v6431_v33  ;;  %v7812_v32 = vld [vmem:[#allocation81_spill] sm:$0xff]  ;;  %v7821_v33 = vld [vmem:[#allocation79_spill] sm:$0xff] }
 0x520   :  { %3302 = vmatpush.msra.mxu1 %v6371_v20  ;;  %3113 = vmatmul.f32.vlgmr.msrb.gmra.mxu0 %v6789_v39  ;;  %v7813_v20 = vld [vmem:[#allocation69_spill] sm:$0xff]  ;;  %v7850_v48 = vld [vmem:[#allocation31_spill] sm:$0xff] }
 0x521   :  { %3133 = vmatmul.f32.vlgmr.msrb.gmra.mxu1 %v6789_v39  ;;  %3153 = vmatmul.f32.vlgmr.msrb.gmra.mxu2 %v6789_v39  ;;  %v7848_v18 = vld [vmem:[#allocation57_spill] sm:$0xff] }
 0x522   :  { %3275 = vmatmul.f32.vlgmr.msrb.gmra.mxu3 %v6789_v39  ;;  %3303 = vmatpush.msra.mxu1 %v6375_v25  ;;  %v7814_v25 = vld [vmem:[#allocation30_spill] sm:$0xff] }
 0x523   :  { %3370 = vmatpush.msra.mxu2 %v6379_v37  ;;  %3390 = vmatpush.msra.mxu3 %v6437_v26  ;;  %v7815_v37 = vld [vmem:[#allocation49_spill] sm:$0xff] }
 0x524   :  { %3304 = vmatpush.msra.mxu1 %v6383_v56  ;;  %v7816_v56 = vld [vmem:[#allocation27_spill] sm:$0xff]  ;;  %v7822_v26 = vld [vmem:[#allocation61_spill] sm:$0xff] }
 0x525   :  { %3371 = vmatpush.msra.mxu2 %v6387_v1  ;;  %3391 = vmatpush.msra.mxu3 %v6449_v36  ;;  %v7817_v1 = vld [vmem:[#allocation23_spill] sm:$0xff]  ;;  %v7819_v36 = vld [vmem:[#allocation20_spill] sm:$0xff] }
 0x526   :  { %3305 = vmatpush.msra.mxu1 %v6389_v9  ;;  %v7818_v9 = vld [vmem:[#allocation38_spill] sm:$0xff] }
 0x527   :  { %3372 = vmatpush.msra.mxu2 %v7805_v49  ;;  %3392 = vmatpush.msra.mxu3 %v7806_v10  ;;  %v7851_v49 = vld [vmem:[#allocation87_spill] sm:$0xff]  ;;  %v7852_v10 = vld [vmem:[#allocation48_spill] sm:$0xff] }
 0x528   :  { %3306 = vmatpush.msra.mxu1 %v7807_v41  ;;  %3295 = vmatmul.f32.vlgmr.msra.gmra.mxu0 %v6789_v39  ;;  %v7853_v41 = vld [vmem:[#allocation54_spill] sm:$0xff] }
 0x529   :  { %3373 = vmatpush.msra.mxu2 %v7808_v11  ;;  %3393 = vmatpush.msra.mxu3 %v7809_v27  ;;  %v7854_v11 = vld [vmem:[#allocation80_spill] sm:$0xff] }
 0x52a   :  { %3307 = vmatpush.msra.mxu1 %v7810_v23  ;;  %v7856_v27 = vld [vmem:[#allocation84_spill] sm:$0xff] }
 0x52b   :  { %3374 = vmatpush.msra.mxu2 %v7811_v62  ;;  %3394 = vmatpush.msra.mxu3 %v7812_v32  ;;  %v6888_v62 = vld [vmem:[#allocation10 + $0x3] sm:$0x7]  ;;  %v3354_v32 = vld [vmem:[#allocation8 + $0x298] sm:$0xff] }
 0x52c   :  { %3308 = vmatpush.msra.mxu1 %v7813_v20  ;;  %v3091_v20 = vperm.slane %v6888_v62, 0 }
 0x52d   :  { %3375 = vmatpush.msra.mxu2 %v7814_v25  ;;  %3395 = vmatpush.msra.mxu3 %v7815_v37  ;;  %v7869_v25 = vld [vmem:[#allocation50_spill] sm:$0xff]  ;;  %v3092_v37 = vperm.slane %v6888_v62, 1 }
 0x52e   :  { %3309 = vmatpush.msra.mxu1 %v7816_v56  ;;  %v7870_v56 = vld [vmem:[#allocation65_spill] sm:$0xff] }
 0x52f   :  { %3376 = vmatpush.msra.mxu2 %v7817_v1  ;;  %3396 = vmatpush.msra.mxu3 %v7818_v9 }
 0x530   :  { %3310 = vmatpush.msra.mxu1 %v7819_v36 }
 0x531   :  { %3377 = vmatpush.msra.mxu2 %v7820_v51  ;;  %3397 = vmatpush.msra.mxu3 %v7821_v33  ;;  %v7871_v33 = vld [vmem:[#allocation40_spill] sm:$0xff] }
 0x532   :  { %3311 = vmatpush.msra.mxu1 %v7822_v26 }
 0x533   :  { %3378 = vmatpush.msra.mxu2 %v7823_v54  ;;  %3398 = vmatpush.msra.mxu3 %v7824_v15 }
 0x534   :  { %3312 = vmatpush.msra.mxu1 %v7825_v52  ;;  %v7872_v52 = vld [vmem:[#allocation43_spill] sm:$0xff] }
 0x535   :  { %3379 = vmatpush.msra.mxu2 %v7826_v40  ;;  %3399 = vmatpush.msra.mxu3 %v7827_v16 }
 0x536   :  { %3313 = vmatpush.msra.mxu1 %v7828_v7  ;;  %v7873_v7 = vld [vmem:[#allocation46_spill] sm:$0xff] }
 0x537   :  { %3380 = vmatpush.msra.mxu2 %v7829_v4  ;;  %3400 = vmatpush.msra.mxu3 %v7830_v60  ;;  %v3428_v60 = vld [vmem:[#allocation2 + $0xa8] sm:$0xff] }
 0x538   :  { %3314 = vmatpush.msra.mxu1 %v7831_v14  ;;  %v3429_v14 = vld [vmem:[#allocation2 + $0xb0] sm:$0xff] }
 0x539   :  { %3315 = vmatmul.f32.vlgmr.msra.gmra.mxu1 %v6789_v39  ;;  %3381 = vmatpush.msra.mxu2 %v7832_v58  ;;  %v7874_v58 = vld [vmem:[#allocation42_spill] sm:$0xff] }
 0x53a   :  { %3401 = vmatpush.msra.mxu3 %v7833_v24  ;;  %3539 = vmatpush.msrb.mxu1 %v7834_v8 }
 0x53b   :  { %3382 = vmatpush.msra.mxu2 %v7835_v6 }
 0x53c   :  { %3402 = vmatpush.msra.mxu3 %v7836_v3  ;;  %3540 = vmatpush.msrb.mxu1 %v7837_v57  ;;  %v7875_v57 = vld [vmem:[#allocation35_spill] sm:$0xff] }
 0x53d   :  { %3559 = vmatpush.msrb.mxu2 %v7838_v35 }
 0x53e   :  { %3579 = vmatpush.msrb.mxu3 %v7839_v63  ;;  %3541 = vmatpush.msrb.mxu1 %v7840_v59  ;;  %v7876_v59 = vld [vmem:[#allocation45_spill] sm:$0xff] }
 0x53f   :  { %3560 = vmatpush.msrb.mxu2 %v7841_v0 }
 0x540   :  { %3580 = vmatpush.msrb.mxu3 %v7842_v50  ;;  %3542 = vmatpush.msrb.mxu1 %v7843_v12  ;;  %v7877_v50 = vld [vmem:[#allocation33_spill] sm:$0xff] }
 0x541   :  { %3561 = vmatpush.msrb.mxu2 %v7844_v31 }
 0x542   :  { %3581 = vmatpush.msrb.mxu3 %v7845_v42  ;;  %3543 = vmatpush.msrb.mxu1 %v7846_v53  ;;  %v7878_v53 = vld [vmem:[#allocation90_spill] sm:$0xff] }
 0x543   :  { %3562 = vmatpush.msrb.mxu2 %v7847_v5  ;;  %v7879_v5 = vld [vmem:[#allocation47_spill] sm:$0xff] }
 0x544   :  { %3582 = vmatpush.msrb.mxu3 %v6624_v55  ;;  %3544 = vmatpush.msrb.mxu1 %v7848_v18  ;;  %v7855_v55 = vld [vmem:[#allocation83_spill] sm:$0xff] }
 0x545   :  { %3563 = vmatpush.msrb.mxu2 %v7849_v44 }
 0x546   :  { %3583 = vmatpush.msrb.mxu3 %v6632_v43  ;;  %3545 = vmatpush.msrb.mxu1 %v7850_v48  ;;  %v7857_v43 = vld [vmem:[#allocation82_spill] sm:$0xff] }
 0x547   :  { %3564 = vmatpush.msrb.mxu2 %v7851_v49 }
 0x548   :  { %3584 = vmatpush.msrb.mxu3 %v6640_v45  ;;  %3546 = vmatpush.msrb.mxu1 %v7852_v10  ;;  %v7858_v45 = vld [vmem:[#allocation72_spill] sm:$0xff] }
 0x549   :  { %3565 = vmatpush.msrb.mxu2 %v7853_v41 }
 0x54a   :  { %3585 = vmatpush.msrb.mxu3 %v6648_v47  ;;  %3547 = vmatpush.msrb.mxu1 %v7854_v11  ;;  %v7859_v47 = vld [vmem:[#allocation58_spill] sm:$0xff] }
 0x54b   :  { %3566 = vmatpush.msrb.mxu2 %v7855_v55 }
 0x54c   :  { %3586 = vmatpush.msrb.mxu3 %v6656_v46  ;;  %3548 = vmatpush.msrb.mxu1 %v7856_v27  ;;  %v7862_v46 = vld [vmem:[#allocation89_spill] sm:$0xff]  ;;  %v3760_v27 = vld [vmem:[%s6959_s5 + $0x1] ss:$0 sm:$0xff] }
 0x54d   :  { %3567 = vmatpush.msrb.mxu2 %v6630_v21  ;;  %v7860_v21 = vld [vmem:[#allocation52_spill] sm:$0xff] }
 0x54e   :  { %3587 = vmatpush.msrb.mxu3 %v6664_v61  ;;  %3549 = vmatpush.msrb.mxu1 %v7857_v43  ;;  %v7864_v61 = vld [vmem:[#allocation70_spill] sm:$0xff] }
 0x54f   :  { %3568 = vmatpush.msrb.mxu2 %v6638_v19  ;;  %v7861_v19 = vld [vmem:[#allocation78_spill] sm:$0xff] }
 0x550   :  { %3588 = vmatpush.msrb.mxu3 %v6672_v22  ;;  %3550 = vmatpush.msrb.mxu1 %v7858_v45  ;;  %v7865_v22 = vld [vmem:[#allocation94_spill] sm:$0xff] }
 0x551   :  { %3569 = vmatpush.msrb.mxu2 %v6646_v13  ;;  %v7863_v13 = vld [vmem:[#allocation88_spill] sm:$0xff] }
 0x552   :  { %3589 = vmatpush.msrb.mxu3 %v6682_v17  ;;  %3551 = vmatpush.msrb.mxu1 %v7859_v47  ;;  %v7867_v17 = vld [vmem:[#allocation92_spill] sm:$0xff]  ;;  %v3093_v47 = vperm.slane %v6888_v62, 2 }
 0x553   :  { %3570 = vmatpush.msrb.mxu2 %v6654_v29  ;;  %v7866_v29 = vld [vmem:[#allocation56_spill] sm:$0xff] }
 0x554   :  { %3590 = vmatpush.msrb.mxu3 %v6691_v2  ;;  %3552 = vmatpush.msrb.mxu1 %v7860_v21  ;;  %v3366_v2 = vld [vmem:[#allocation8 + $0x2f8] sm:$0xff] }
 0x555   :  { %3571 = vmatpush.msrb.mxu2 %v6662_v38  ;;  %3407 = vmatpush.msrb.mxu0 %v3366_v2  ;;  %v3363_v38 = vld [vmem:[#allocation8 + $0x2e0] sm:$0xff] }
 0x556   :  { %3591 = vmatpush.msrb.mxu3 %v6699_v34  ;;  %3553 = vmatpush.msrb.mxu1 %v7861_v19  ;;  %v3360_v34 = vld [vmem:[#allocation8 + $0x2c8] sm:$0xff] }
 0x557   :  { %3572 = vmatpush.msrb.mxu2 %v6670_v30  ;;  %3408 = vmatpush.msrb.mxu0 %v3363_v38  ;;  %v7868_v30 = vld [vmem:[#allocation21_spill] sm:$0xff] }
 0x558   :  { %3592 = vmatpush.msrb.mxu3 %v7862_v46  ;;  %3554 = vmatpush.msrb.mxu1 %v7863_v13 }
 0x559   :  { %3573 = vmatpush.msrb.mxu2 %v7864_v61  ;;  %3409 = vmatpush.msrb.mxu0 %v3360_v34 }
 0x55a   :  { %3593 = vmatpush.msrb.mxu3 %v7865_v22 }
 0x55b   :  { %3574 = vmatpush.msrb.mxu2 %v7866_v29  ;;  %3410 = vmatpush.msrb.mxu0 %v7868_v30 }
 0x55c   :  { %3594 = vmatpush.msrb.mxu3 %v7867_v17 }
 0x55d   :  { %3411 = vmatpush.msrb.mxu0 %v3354_v32 }
 0x55f   :  { %3412 = vmatpush.msrb.mxu0 %v7869_v25 }
 0x561   :  { %3413 = vmatpush.msrb.mxu0 %v7870_v56 }
 0x563   :  { %3414 = vmatpush.msrb.mxu0 %v7871_v33  ;;  %v3761_v33 = vld [vmem:[%s6959_s5] ss:$0 sm:$0xff] }
 0x565   :  { %3415 = vmatpush.msrb.mxu0 %v7872_v52 }
 0x567   :  { %3416 = vmatpush.msrb.mxu0 %v7873_v7 }
 0x569   :  { %3417 = vmatpush.msrb.mxu0 %v7874_v58 }
 0x56b   :  { %3418 = vmatpush.msrb.mxu0 %v7875_v57 }
 0x56d   :  { %3419 = vmatpush.msrb.mxu0 %v7876_v59 }
 0x56f   :  { %3420 = vmatpush.msrb.mxu0 %v7877_v50 }
 0x571   :  { %3421 = vmatpush.msrb.mxu0 %v7878_v53 }
 0x573   :  { %3422 = vmatpush.msrb.mxu0 %v7879_v5 }
 0x596   :  { %v2942_v23 = vpop.f32.mrf.mxu1 }
 0x59c   :  { %v2962_v54 = vpop.f32.mrf.mxu2 }
 0x59d   :  { %v2982_v1 = vpop.f32.mrf.mxu3  ;;  %v3114_v9 = vpop.f32.mrf.mxu0 }
 0x59e   :  { %v3115_v36 = vadd.f32 %v3114_v9, %v3091_v20  ;;  %v3134_v51 = vpop.f32.mrf.mxu1  ;;  %v3201_v17 = vadd.f32 %v3760_v27, %v2982_v1 }
 0x59f   :  { %v3135_v26 = vadd.f32 %v3134_v51, %v3092_v37 }
 0x5a0   :  { %v3157_v15 = vadd.f32 %v3115_v36, %v2942_v23 }
 0x5a1   :  { %v3177_v40 = vadd.f32 %v3135_v26, %v2962_v54 }
 0x5a2   :  { %v3726_v16 = vmul.f32 -1.442695, %v3157_v15 }
 0x5a3   :  { %v3727_v4 = vmul.f32 -1.442695, %v3177_v40 }
 0x5a4   :  { %3893 = vpow2.f32 %v3726_v16  ;;  %v3154_v19 = vpop.f32.mrf.mxu2 }
 0x5a5   :  { %3895 = vpow2.f32 %v3727_v4  ;;  %v3276_v24 = vpop.f32.mrf.mxu3  ;;  %v3296_v8 = vpop.f32.mrf.mxu0  ;;  %v3155_v23 = vadd.f32 %v3154_v19, %v3093_v47 }
 0x5a6   :  { %v3431_v6 = vadd.f32 %v3428_v60, %v3276_v24  ;;  %v3451_v3 = vadd.f32 %v3429_v14, %v3296_v8  ;;  %v3430_v24 = vld [vmem:[#allocation2 + $0xb8] sm:$0xff] }
 0x5a8   :  { %v3729_v35 = vmul.f32 -1.442695, %v3431_v6  ;;  %v3730_v63 = vmul.f32 -1.442695, %v3451_v3 }
 0x5aa   :  { %v3894_v0 = vpop.eup %3893  ;;  %3897 = vpow2.f32 %v3729_v35 }
 0x5ab   :  { %v3896_v12 = vpop.eup %3895  ;;  %v3161_v31 = vadd.f32 1.0, %v3894_v0  ;;  %3899 = vpow2.f32 %v3730_v63 }
 0x5ac   :  { %v6901_v42 = vadd.f32 1.0, %v3896_v12 }
 0x5ad   :  { %3901 = vrcp.f32 %v3161_v31  ;;  %v3173_v21 = vand.u32 2147483648, %v3161_v31  ;;  %v3171_v13 = vand.u32 2147483647, %v3161_v31  ;;  %vm3167_vm9 = vweird.f32 %v3161_v31 }
 0x5ae   :  { %3903 = vrcp.f32 %v6901_v42  ;;  %v3193_v34 = vand.u32 2147483648, %v6901_v42  ;;  %vm3187_vm14 = vweird.f32 %v6901_v42  ;;  %v3191_v26 = vand.u32 2147483647, %v6901_v42 }
 0x5af   :  { %v3174_v30 = vor.u32 1.1754944e-38, %v3173_v21  ;;  %vm3172_vm11 = vcmp.eq.f32.partialorder %v3171_v13, 8.507059e+37 }
 0x5b0   :  { %v3898_v18 = vpop.eup %3897  ;;  %v3194_v4 = vor.u32 1.1754944e-38, %v3193_v34  ;;  %vm3192_vm3 = vcmp.eq.f32.partialorder %v3191_v26, 8.507059e+37 }
 0x5b1   :  { %v3900_v44 = vpop.eup %3899  ;;  %v3435_v48 = vadd.f32 1.0, %v3898_v18 }
 0x5b2   :  { %v6906_v49 = vadd.f32 1.0, %v3900_v44 }
 0x5b3   :  { %v3902_v10 = vpop.eup %3901  ;;  %3905 = vrcp.f32 %v3435_v48  ;;  %v3447_v25 = vand.u32 2147483648, %v3435_v48  ;;  %v3445_v51 = vand.u32 2147483647, %v3435_v48  ;;  %vm3441_vm0 = vweird.f32 %v3435_v48 }
 0x5b4   :  { %v3904_v41 = vpop.eup %3903  ;;  %v3163_v11 = vmul.f32 %v3902_v10, %v3161_v31  ;;  %3907 = vrcp.f32 %v6906_v49  ;;  %vm3168_vm8 = vweird.f32 %v3902_v10  ;;  %v3467_v35 = vand.u32 2147483648, %v6906_v49 }
 0x5b5   :  { %v3183_v55 = vmul.f32 %v3904_v41, %v6901_v42  ;;  %vm3169_vm10 = vmor %vm3167_vm9, %vm3168_vm8  ;;  %vm3188_vm12 = vweird.f32 %v3904_v41  ;;  %v3448_v60 = vor.u32 1.1754944e-38, %v3447_v25  ;;  %vm3446_vm2 = vcmp.eq.f32.partialorder %v3445_v51, 8.507059e+37 }
 0x5b6   :  { %v3164_v43 = vsub.f32 1.0, %v3163_v11  ;;  %v3316_v15 = vpop.f32.mrf.mxu1  ;;  %vm6921_vm15 = vmor %vm3187_vm14, %vm3188_vm12  ;;  %vm3461_vm5 = vweird.f32 %v6906_v49  ;;  %v3465_v63 = vand.u32 2147483647, %v6906_v49  ;;  %v3468_v31 = vor.u32 1.1754944e-38, %v3467_v35 }
 0x5b7   :  { %v3184_v45 = vsub.f32 1.0, %v3183_v55  ;;  %v3475_v58 = vadd.f32 %v3761_v33, %v3316_v15 }
 0x5b8   :  { %v3165_v46 = vmul.f32 %v3902_v10, %v3164_v43  ;;  %vm3466_vm7 = vcmp.eq.f32.partialorder %v3465_v63, 8.507059e+37 }
 0x5b9   :  { %v3906_v61 = vpop.eup %3905  ;;  %v3185_v22 = vmul.f32 %v3904_v41, %v3184_v45 }
 0x5ba   :  { %v3908_v29 = vpop.eup %3907  ;;  %v3166_v2 = vadd.f32 %v3902_v10, %v3165_v46  ;;  %v3437_v38 = vmul.f32 %v3906_v61, %v3435_v48  ;;  %vm3442_vm13 = vweird.f32 %v3906_v61 }
 0x5bb   :  { %v3457_v32 = vmul.f32 %v3908_v29, %v6906_v49  ;;  %v3186_v56 = vadd.f32 %v3904_v41, %v3185_v22  ;;  %vm3443_vm1 = vmor %vm3441_vm0, %vm3442_vm13  ;;  %vm3462_vm4 = vweird.f32 %v3908_v29 }
 0x5bc   :  { %v3170_v62 = vsel %vm3169_vm10, %v3902_v10, %v3166_v2  ;;  %v3438_v20 = vsub.f32 1.0, %v3437_v38  ;;  %vm3463_vm6 = vmor %vm3461_vm5, %vm3462_vm4 }
 0x5bd   :  { %v3175_v37 = vsel %vm3172_vm11, %v3174_v30, %v3170_v62  ;;  %v3458_v9 = vsub.f32 1.0, %v3457_v32  ;;  %v3190_v7 = vsel %vm6921_vm15, %v3904_v41, %v3186_v56  ;;  %v3762_v32 = vld [vmem:[%s6959_s5 + $0x1] ss:$0 sm:$0xff]  ;;  %s4112_s5 = smov [#allocation11]  }
 0x5be   :  { %v3202_v36 = vmul.f32 %v3201_v17, %v3175_v37  ;;  %v3439_v1 = vmul.f32 %v3906_v61, %v3438_v20  ;;  %v3195_v3 = vsel %vm3192_vm3, %v3194_v4, %v3190_v7  ;;  %s3659_s12 = sshll.u32 %s4112_s5, 4  ;;  %s3660_s12 = int_to_ptr.vmem [resolvable:$true] %s3659_s12 }
 0x5bf   :  { %v3459_v54 = vmul.f32 %v3908_v29, %v3458_v9  ;;  %v3205_v0 = vsub.f32 1.0, %v3195_v3  ;;  %v3207_v53 = vmul.f32 %v3195_v3, %v6776_v28  ;;  %v3531_v28 = vld [vmem:[#allocation10 + $0x3] sm:$0x7] }
 0x5c0   :  { %v3203_v40 = vadd.f32 %v3202_v36, %v3155_v23  ;;  %v3440_v16 = vadd.f32 %v3906_v61, %v3439_v1  ;;  %v3533_v11 = vperm.slane %v3531_v28, 0  ;;  %v3534_v21 = vperm.slane %v3531_v28, 1 }
 0x5c1   :  { %v3460_v6 = vadd.f32 %v3908_v29, %v3459_v54  ;;  %v3535_v37 = vperm.slane %v3531_v28, 2 }
 0x5c2   :  { %3909 = vtanh.f32 %v3203_v40  ;;  %v3444_v14 = vsel %vm3443_vm1, %v3906_v61, %v3440_v16 }
 0x5c3   :  { %v3449_v8 = vsel %vm3446_vm2, %v3448_v60, %v3444_v14  ;;  %v3464_v50 = vsel %vm3463_vm6, %v3908_v29, %v3460_v6 }
 0x5c4   :  { %v3476_v57 = vmul.f32 %v3475_v58, %v3449_v8  ;;  %v3469_v5 = vsel %vm3466_vm7, %v3468_v31, %v3464_v50 }
 0x5c5   :  { %v3479_v44 = vsub.f32 1.0, %v3469_v5  ;;  %v3481_v10 = vmul.f32 %v3469_v5, %v6789_v39 }
 0x5c6   :  { %v3477_v59 = vadd.f32 %v3476_v57, %v3430_v24 }
 0x5c8   :  { %v3910_v12 = vpop.eup %3909  ;;  %3911 = vtanh.f32 %v3477_v59 }
 0x5c9   :  { %v3206_v42 = vmul.f32 %v3910_v12, %v3205_v0 }
 0x5cb   :  { %v6931_v18 = vadd.f32 %v3207_v53, %v3206_v42 }
 0x5cd   :  { %3210 = vst [vmem:[#allocation11 + $0x30] sm:$0xff] %v6931_v18  ;;  %3383 = vmatmul.f32.vlgmr.msra.gmra.mxu2 %v6931_v18  ;;  %3403 = vmatmul.f32.vlgmr.msra.gmra.mxu3 %v6931_v18 }
 0x5ce   :  { %v3912_v48 = vpop.eup %3911  ;;  %3423 = vmatmul.f32.vlgmr.msrb.gmra.mxu0 %v6931_v18 }
 0x5cf   :  { %v3480_v49 = vmul.f32 %v3912_v48, %v3479_v44 }
 0x5d1   :  { %v3482_v41 = vadd.f32 %v3481_v10, %v3480_v49 }
 0x5d3   :  { %3555 = vmatmul.f32.vlgmr.msrb.gmra.mxu1 %v3482_v41  ;;  %3653 = vst [vmem:[#allocation12] sm:$0xff] %v3482_v41 }
 0x5d5   :  { %3575 = vmatmul.f32.vlgmr.msrb.gmra.mxu2 %v3482_v41  ;;  %3595 = vmatmul.f32.vlgmr.msrb.gmra.mxu3 %v3482_v41 }
 0x64b   :  { %v3424_v25 = vpop.f32.mrf.mxu0 }
 0x64c   :  { %v3643_v51 = vadd.f32 %v3762_v32, %v3424_v25 }
 0x650   :  { %v3556_v55 = vpop.f32.mrf.mxu1  ;;  %v3384_v27 = vpop.f32.mrf.mxu2 }
 0x651   :  { %v3557_v43 = vadd.f32 %v3556_v55, %v3533_v11  ;;  %v3404_v13 = vpop.f32.mrf.mxu3 }
 0x653   :  { %v3599_v45 = vadd.f32 %v3557_v43, %v3384_v27 }
 0x655   :  { %v3731_v47 = vmul.f32 -1.442695, %v3599_v45 }
 0x657   :  { %3913 = vpow2.f32 %v3731_v47 }
 0x658   :  { %v3576_v19 = vpop.f32.mrf.mxu2 }
 0x659   :  { %v3577_v46 = vadd.f32 %v3576_v19, %v3534_v21  ;;  %v3596_v36 = vpop.f32.mrf.mxu3 }
 0x65a   :  { %v3597_v52 = vadd.f32 %v3596_v36, %v3535_v37 }
 0x65b   :  { %v3619_v61 = vadd.f32 %v3577_v46, %v3404_v13 }
 0x65d   :  { %v3914_v22 = vpop.eup %3913  ;;  %v3732_v39 = vmul.f32 -1.442695, %v3619_v61 }
 0x65e   :  { %v3603_v29 = vadd.f32 1.0, %v3914_v22 }
 0x65f   :  { %3915 = vpow2.f32 %v3732_v39 }
 0x660   :  { %3917 = vrcp.f32 %v3603_v29  ;;  %v3615_v30 = vand.u32 2147483648, %v3603_v29  ;;  %v3613_v20 = vand.u32 2147483647, %v3603_v29  ;;  %vm3609_vm9 = vweird.f32 %v3603_v29 }
 0x662   :  { %v3616_v1 = vor.u32 1.1754944e-38, %v3615_v30  ;;  %vm3614_vm11 = vcmp.eq.f32.partialorder %v3613_v20, 8.507059e+37 }
 0x665   :  { %v3916_v17 = vpop.eup %3915 }
 0x666   :  { %v3918_v2 = vpop.eup %3917  ;;  %v3623_v38 = vadd.f32 1.0, %v3916_v17 }
 0x667   :  { %v3605_v34 = vmul.f32 %v3918_v2, %v3603_v29  ;;  %vm3610_vm8 = vweird.f32 %v3918_v2 }
 0x668   :  { %3919 = vrcp.f32 %v3623_v38  ;;  %vm3611_vm10 = vmor %vm3609_vm9, %vm3610_vm8  ;;  %v3635_v16 = vand.u32 2147483648, %v3623_v38  ;;  %v3633_v4 = vand.u32 2147483647, %v3623_v38  ;;  %vm3629_vm13 = vweird.f32 %v3623_v38 }
 0x669   :  { %v3606_v23 = vsub.f32 1.0, %v3605_v34 }
 0x66a   :  { %v3636_v58 = vor.u32 1.1754944e-38, %v3635_v16  ;;  %vm3634_vm15 = vcmp.eq.f32.partialorder %v3633_v4, 8.507059e+37 }
 0x66b   :  { %v3607_v62 = vmul.f32 %v3918_v2, %v3606_v23 }
 0x66d   :  { %v3608_v56 = vadd.f32 %v3918_v2, %v3607_v62 }
 0x66e   :  { %v3920_v9 = vpop.eup %3919 }
 0x66f   :  { %v3625_v33 = vmul.f32 %v3920_v9, %v3623_v38  ;;  %v3612_v26 = vsel %vm3611_vm10, %v3918_v2, %v3608_v56  ;;  %vm3630_vm12 = vweird.f32 %v3920_v9 }
 0x670   :  { %v3617_v54 = vsel %vm3614_vm11, %v3616_v1, %v3612_v26  ;;  %vm3631_vm14 = vmor %vm3629_vm13, %vm3630_vm12 }
 0x671   :  { %v3626_v15 = vsub.f32 1.0, %v3625_v33  ;;  %v3644_v40 = vmul.f32 %v3643_v51, %v3617_v54 }
 0x673   :  { %v3627_v7 = vmul.f32 %v3920_v9, %v3626_v15  ;;  %v3645_v60 = vadd.f32 %v3644_v40, %v3597_v52 }
 0x675   :  { %v3628_v14 = vadd.f32 %v3920_v9, %v3627_v7  ;;  %3921 = vtanh.f32 %v3645_v60 }
 0x677   :  { %v3632_v24 = vsel %vm3631_vm14, %v3920_v9, %v3628_v14 }
 0x678   :  { %v3637_v8 = vsel %vm3634_vm15, %v3636_v58, %v3632_v24 }
 0x679   :  { %v3647_v6 = vsub.f32 1.0, %v3637_v8  ;;  %v3649_v35 = vmul.f32 %v3637_v8, %v6931_v18 }
 0x67b   :  { %v3922_v3 = vpop.eup %3921 }
 0x67c   :  { %v3648_v57 = vmul.f32 %v3922_v3, %v3647_v6 }
 0x67e   :  { %v3650_v63 = vadd.f32 %v3649_v35, %v3648_v57 }
 0x680   :  { %3652 = vst [vmem:[#allocation11 + $0x38] sm:$0xff] %v3650_v63 }
 0x681   :  { %3654 = vst [vmem:[#allocation12 + $0x8] sm:$0xff] %v3650_v63  ;;  %3667 = dma.vmem_to_hbm [thread:$0]  %s3660_s12, 1024, %s3662_s14, [#allocation4], %s4102_s29, %s4102_s29, %s4103_s30  }
 0x682   :  { %3680 = dma.vmem_to_hbm [thread:$0]  %s3673_s16, 256, %s3675_s19, [#allocation13], %s4102_s29, %s4102_s29, %s4103_s30  }
 0x683   :  { %4097 = dma.done.wait [#allocation4], 1024  }
 0x684   :  { %4098 = vsyncadd [#allocation4], 4294966272 }
 0x685   :  { %4099 = dma.done.wait [#allocation13], 256  }
 0x686   :  { %4100 = vsyncadd [#allocation13], 4294967040 }
 0x687   :  { %3689 = vsyncpa [#allocation3], 1 }
 0x688   :  { %3690 = vsyncpa [#allocation6], 1 }
 0x689   :  { %3691 = vsyncpa [#allocation9], 1 }
 0x68a   :  { %3692 = vsyncpa [#allocation4], 1 }
 0x68b   :  { %3693 = vsyncpa [#allocation13], 1 }

</bundles_post_ra>
